<compile_context>
chip_gen: v7x
topology: tpu7x:2x2x1
jax: 0.10.0
libtpu: 0.0.40
codegen_flags: <defaults>
</compile_context>

<pallas_src>
import numpy as np
import jax
import jax.numpy as jnp
from jax.experimental import pallas as pl
from jax.experimental.pallas import tpu as pltpu


def _round_up(n, m):
    return ((n + m - 1) // m) * m


# ---------------------------------------------------------------------------
# Fused kernel: conv1+BN+ReLU+pool1 + conv2+BN+ReLU+pool2 + fc1..fc3 + logsoftmax
# ---------------------------------------------------------------------------

def _cnn_kernel(xpad_ref, w1b_ref, s1_ref, b1_ref, w2b_ref, s2_ref, b2_ref,
                wfc1_ref, bfc1_ref, wfc2_ref, bfc2_ref, wfc3_ref, bfc3_ref,
                o_ref, pool1_ref):
    """One batch tile of the whole forward pass.

    xpad_ref : (bn, H+2, W+2)        bf16  zero-padded single-channel image
    w1b_ref  : (3, W+2, N1)          bf16  conv1 banded weights (per kh)
    s1/b1    : (1, N1)               f32   folded BN1 scale/bias, tiled
    w2b_ref  : (3, Wh*16, N2)        bf16  conv2 banded weights (per kh)
    s2/b2    : (1, N2)               f32   folded BN2 scale/bias, tiled
    wfc1_ref : (Hq, Wq*32, 128)      bf16  fc1 with NCHW-flatten folded in
    wfc2_ref : (128, 128), wfc3_ref : (128, 25)   bf16
    bfc*_ref : (1, nout)             f32
    o_ref    : (bn, 25)              f32   log-probabilities
    pool1_ref: (bn, Hh+2, Wh*16)     bf16  VMEM scratch: pooled conv1 + H halo
    """
    f32 = jnp.float32
    bn = o_ref.shape[0]
    Hp2, Wp2 = xpad_ref.shape[1], xpad_ref.shape[2]
    H, W = Hp2 - 2, Wp2 - 2
    Hh = H // 2
    Hq = H // 4

    N1 = w1b_ref.shape[2]
    F1 = pool1_ref.shape[2]           # Wh * 16 (lane-dense pooled conv1 width)
    off1 = N1 - F1                    # 128-aligned start of the "odd column" block
    N2 = w2b_ref.shape[2]
    F2 = wfc1_ref.shape[1]            # Wq * 32 (lane-dense pooled conv2 width)
    off2 = N2 - F2

    # ---- conv1: 3 banded matmuls over padded image rows (bf16 in, f32 acc) ----
    a1 = jnp.dot(xpad_ref[:, 0:H, :].reshape(bn * H, Wp2), w1b_ref[0],
                 preferred_element_type=f32)
    for kh in (1, 2):
        lhs = xpad_ref[:, kh:kh + H, :].reshape(bn * H, Wp2)
        a1 = a1 + jnp.dot(lhs, w1b_ref[kh], preferred_element_type=f32)
    h1 = jnp.maximum(a1 * s1_ref[...] + b1_ref[...], 0.0)         # (bn*H, N1)

    # ---- MaxPool2d(2): W-pool = max of even/odd column blocks (128-aligned),
    #      H-pool = row-pair reshape + max (minor dim preserved) ----
    wmax1 = jnp.maximum(h1[:, 0:F1], h1[:, off1:off1 + F1])       # (bn*H, F1)
    wmax1 = wmax1.reshape(bn * Hh, 2, F1)
    hp1 = jnp.maximum(wmax1[:, 0:1, :], wmax1[:, 1:2, :]).reshape(bn, Hh, F1)

    # ---- pooled conv1 into bf16 scratch; zero only the two H-halo rows ----
    zrow = jnp.zeros((bn, 1, F1), pool1_ref.dtype)
    pool1_ref[:, 0:1, :] = zrow
    pool1_ref[:, Hh + 1:Hh + 2, :] = zrow
    pool1_ref[:, 1:Hh + 1, :] = hp1.astype(pool1_ref.dtype)

    # ---- conv2: 3 banded matmuls over pooled rows (W halo folded into weights)
    a2 = jnp.dot(pool1_ref[:, 0:Hh, :].reshape(bn * Hh, F1), w2b_ref[0],
                 preferred_element_type=f32)
    for kh in (1, 2):
        lhs = pool1_ref[:, kh:kh + Hh, :].reshape(bn * Hh, F1)
        a2 = a2 + jnp.dot(lhs, w2b_ref[kh], preferred_element_type=f32)
    h2 = jnp.maximum(a2 * s2_ref[...] + b2_ref[...], 0.0)         # (bn*Hh, N2)

    # ---- MaxPool2d(2) ----
    wmax2 = jnp.maximum(h2[:, 0:F2], h2[:, off2:off2 + F2])       # (bn*Hh, F2)
    wmax2 = wmax2.reshape(bn * Hq, 2, F2)
    feats = jnp.maximum(wmax2[:, 0:1, :], wmax2[:, 1:2, :]).reshape(bn, Hq, F2)
    feats = feats.astype(jnp.bfloat16)

    # ---- classifier: fc1 (NCHW flatten folded in) -> fc2 -> fc3 -> logsoftmax
    acc = jnp.dot(feats[:, 0, :], wfc1_ref[0], preferred_element_type=f32)
    for hq in range(1, Hq):
        acc = acc + jnp.dot(feats[:, hq, :], wfc1_ref[hq],
                            preferred_element_type=f32)
    z1 = jnp.maximum(acc + bfc1_ref[...], 0.0)
    # TODO(synk): Dropout(0.5) layers are identity here (inference / eval mode).
    z2 = jnp.maximum(jnp.dot(z1.astype(jnp.bfloat16), wfc2_ref[...],
                             preferred_element_type=f32) + bfc2_ref[...], 0.0)
    logits = jnp.dot(z2.astype(jnp.bfloat16), wfc3_ref[...],
                     preferred_element_type=f32) + bfc3_ref[...]
    m = jnp.max(logits, axis=-1, keepdims=True)
    s = logits - m
    lse = jnp.log(jnp.sum(jnp.exp(s), axis=-1, keepdims=True))
    o_ref[...] = (s - lse).astype(o_ref.dtype)


# ---------------------------------------------------------------------------
# pallas_call wrapper
# ---------------------------------------------------------------------------

def _replicated_spec(arr):
    return pl.BlockSpec(arr.shape, lambda *_, n=arr.ndim: (0,) * n)


def _cnn_pallas(xpad, q, *, block_b):
    Np, Hp2, Wp2 = xpad.shape
    H = Hp2 - 2
    Hh = H // 2
    F1 = q["w2b"].shape[1]                  # Wh * 16
    n_out = q["wfc3"].shape[1]
    grid = (Np // block_b,)

    in_specs = [
        pl.BlockSpec((block_b, Hp2, Wp2), lambda i: (i, 0, 0)),
        _replicated_spec(q["w1b"]), _replicated_spec(q["s1t"]),
        _replicated_spec(q["b1t"]),
        _replicated_spec(q["w2b"]), _replicated_spec(q["s2t"]),
        _replicated_spec(q["b2t"]),
        _replicated_spec(q["wfc1"]), _replicated_spec(q["bfc1"]),
        _replicated_spec(q["wfc2"]), _replicated_spec(q["bfc2"]),
        _replicated_spec(q["wfc3"]), _replicated_spec(q["bfc3"]),
    ]
    return pl.pallas_call(
        _cnn_kernel,
        out_shape=jax.ShapeDtypeStruct((Np, n_out), jnp.float32),
        grid=grid,
        in_specs=in_specs,
        out_specs=pl.BlockSpec((block_b, n_out), lambda i: (i, 0)),
        scratch_shapes=[pltpu.VMEM((block_b, Hh + 2, F1), jnp.bfloat16)],
        compiler_params=pltpu.CompilerParams(
            dimension_semantics=("parallel",),     # megacore sharding on v7x
            vmem_limit_bytes=48 * 1024 * 1024),
    )(xpad, q["w1b"], q["s1t"], q["b1t"], q["w2b"], q["s2t"], q["b2t"],
      q["wfc1"], q["bfc1"], q["wfc2"], q["bfc2"], q["wfc3"], q["bfc3"])


def cnn_forward(x_nchw, q, *, block_b=None):
    """x_nchw: (N, 1, H, W) f32; q: prepare_params(...) output -> (N, 25)."""
    N = x_nchw.shape[0]
    H, W = x_nchw.shape[2], x_nchw.shape[3]
    if block_b is None:
        # v7x: ~32 keeps VMEM comfortable; v5e/v6e could go higher still.
        block_b = min(32, _round_up(max(N, 1), 8))
    Np = _round_up(N, block_b)
    x = x_nchw.reshape(N, H, W)
    # Cheap wrapper-side pad of the tiny 1-channel image; kernel input is bf16.
    xpad = jnp.pad(x, ((0, Np - N), (1, 1), (1, 1))).astype(jnp.bfloat16)
    out = _cnn_pallas(xpad, q, block_b=block_b)
    return out[:N]


# ---------------------------------------------------------------------------
# Parameters: module-style init + one-time (host-side) kernel layout prep
# ---------------------------------------------------------------------------

def init_params(key, input_dims=(1, 28, 28)):
    cin, H, W = input_dims
    ks = jax.random.split(key, 18)

    def u(k, shape, fan_in):
        lim = 1.0 / jnp.sqrt(float(fan_in))
        return jax.random.uniform(k, shape, jnp.float32, -lim, lim)

    p = {}
    p["w1"] = u(ks[0], (3, 3, cin, 16), 9 * cin)                 # HWIO
    p["b1"] = u(ks[1], (16,), 9 * cin)
    p["bn1_gamma"] = 1.0 + 0.1 * jax.random.normal(ks[2], (16,), jnp.float32)
    p["bn1_beta"] = 0.1 * jax.random.normal(ks[3], (16,), jnp.float32)
    p["bn1_mean"] = 0.1 * jax.random.normal(ks[4], (16,), jnp.float32)
    p["bn1_var"] = 1.0 + 0.1 * jax.random.uniform(ks[5], (16,), jnp.float32)
    p["w2"] = u(ks[6], (3, 3, 16, 32), 9 * 16)                   # HWIO
    p["b2"] = u(ks[7], (32,), 9 * 16)
    p["bn2_gamma"] = 1.0 + 0.1 * jax.random.normal(ks[8], (32,), jnp.float32)
    p["bn2_beta"] = 0.1 * jax.random.normal(ks[9], (32,), jnp.float32)
    p["bn2_mean"] = 0.1 * jax.random.normal(ks[10], (32,), jnp.float32)
    p["bn2_var"] = 1.0 + 0.1 * jax.random.uniform(ks[11], (32,), jnp.float32)
    nf = 32 * (H // 4) * (W // 4)                                # 1568 for 28x28
    p["w_fc1"] = u(ks[12], (nf, 128), nf)   # rows in PyTorch NCHW-flatten order
    p["b_fc1"] = u(ks[13], (128,), nf)
    p["w_fc2"] = u(ks[14], (128, 128), 128)
    p["b_fc2"] = u(ks[15], (128,), 128)
    p["w_fc3"] = u(ks[16], (128, 25), 128)
    p["b_fc3"] = u(ks[17], (25,), 128)
    return p


def prepare_params(p, input_dims=(1, 28, 28)):
    """One-time (host/numpy) conversion to kernel-ready banded/folded layouts."""
    _, H, W = input_dims
    Hh, Wh, Hq, Wq = H // 2, W // 2, H // 4, W // 4
    eps = 1e-5

    w1 = np.asarray(p["w1"], np.float32)      # (3,3,1,C1)
    w2 = np.asarray(p["w2"], np.float32)      # (3,3,C1,C2)
    C1, C2 = w1.shape[-1], w2.shape[-1]

    def fold(bias, g, b, m, v):
        s = np.asarray(g, np.float32) / np.sqrt(np.asarray(v, np.float32) + eps)
        bb = (np.asarray(bias, np.float32) - np.asarray(m, np.float32)) * s \
            + np.asarray(b, np.float32)
        return s, bb

    s1, bb1 = fold(p["b1"], p["bn1_gamma"], p["bn1_beta"],
                   p["bn1_mean"], p["bn1_var"])
    s2, bb2 = fold(p["b2"], p["bn2_gamma"], p["bn2_beta"],
                   p["bn2_mean"], p["bn2_var"])

    # Even/odd output-column split so MaxPool's W reduction is a max of two
    # 128-aligned lane blocks (no unaligned lane shuffles in the kernel).
    off1 = _round_up(Wh * C1, 128)
    N1 = off1 + Wh * C1
    off2 = _round_up(Wq * C2, 128)
    N2 = off2 + Wq * C2

    def col1(w):                      # start column of (spatial w) in conv1 out
        return (off1 if (w % 2) else 0) + (w // 2) * C1

    def col2(w):                      # start column of (spatial w) in conv2 out
        return (off2 if (w % 2) else 0) + (w // 2) * C2

    # conv1 banded weights: K = W+2 padded columns, N = N1
    w1b = np.zeros((3, W + 2, N1), np.float32)
    for kh in range(3):
        for kw in range(3):
            for w in range(W):
                w1b[kh, w + kw, col1(w):col1(w) + C1] = w1[kh, kw, 0, :]
    s1t = np.zeros((1, N1), np.float32)
    b1t = np.zeros((1, N1), np.float32)
    for w in range(W):
        s1t[0, col1(w):col1(w) + C1] = s1
        b1t[0, col1(w):col1(w) + C1] = bb1

    # conv2 banded weights: input lane = 16*s + ci over pooled conv1 rows;
    # out-of-range W taps are simply omitted (== zero padding).
    K2 = Wh * C1
    w2b = np.zeros((3, K2, N2), np.float32)
    for kh in range(3):
        for kw in range(3):
            for wo in range(Wh):
                si = wo + kw - 1
                if 0 <= si < Wh:
                    w2b[kh, si * C1:(si + 1) * C1,
                        col2(wo):col2(wo) + C2] = w2[kh, kw, :, :]
    s2t = np.zeros((1, N2), np.float32)
    b2t = np.zeros((1, N2), np.float32)
    for wo in range(Wh):
        s2t[0, col2(wo):col2(wo) + C2] = s2
        b2t[0, col2(wo):col2(wo) + C2] = bb2

    # fc1: fold the PyTorch NCHW flatten (idx = c*Hq*Wq + h*Wq + w) and the
    # pooled feature lane layout (lane = w*C2 + c) into the weight rows.
    wfc1 = np.asarray(p["w_fc1"], np.float32)                    # (nf, 128)
    nh = wfc1.shape[1]
    wfc1b = wfc1.reshape(C2, Hq, Wq, nh).transpose(1, 2, 0, 3)   # (Hq,Wq,C2,nh)
    wfc1b = wfc1b.reshape(Hq, Wq * C2, nh)

    return {
        "w1b": jnp.asarray(w1b, jnp.bfloat16),
        "s1t": jnp.asarray(s1t, jnp.float32),
        "b1t": jnp.asarray(b1t, jnp.float32),
        "w2b": jnp.asarray(w2b, jnp.bfloat16),
        "s2t": jnp.asarray(s2t, jnp.float32),
        "b2t": jnp.asarray(b2t, jnp.float32),
        "wfc1": jnp.asarray(wfc1b, jnp.bfloat16),
        "bfc1": jnp.asarray(np.asarray(p["b_fc1"], np.float32).reshape(1, -1)),
        "wfc2": jnp.asarray(np.asarray(p["w_fc2"]), jnp.bfloat16),
        "bfc2": jnp.asarray(np.asarray(p["b_fc2"], np.float32).reshape(1, -1)),
        "wfc3": jnp.asarray(np.asarray(p["w_fc3"]), jnp.bfloat16),
        "bfc3": jnp.asarray(np.asarray(p["b_fc3"], np.float32).reshape(1, -1)),
    }


# ---------------------------------------------------------------------------
# Pure-JAX/XLA reference (same bf16 matmul-input rounding) for validation
# ---------------------------------------------------------------------------

def reference_forward(x_nchw, p):
    f32 = jnp.float32
    bf = lambda a: a.astype(jnp.bfloat16)

    def conv(x_nhwc, w_hwio):
        return jax.lax.conv_general_dilated(
            bf(x_nhwc), bf(w_hwio), window_strides=(1, 1),
            padding=((1, 1), (1, 1)),
            dimension_numbers=("NHWC", "HWIO", "NHWC"),
            preferred_element_type=f32)

    def bn(y, cb, g, b, m, v):
        s = g / jnp.sqrt(v + 1e-5)
        return (y + cb) * s + (b - m * s)

    def pool(y):
        return jax.lax.reduce_window(y, -jnp.inf, jax.lax.max,
                                     (1, 2, 2, 1), (1, 2, 2, 1), "VALID")

    x = jnp.transpose(x_nchw, (0, 2, 3, 1))                      # NHWC
    h = pool(jnp.maximum(bn(conv(x, p["w1"]), p["b1"], p["bn1_gamma"],
                            p["bn1_beta"], p["bn1_mean"], p["bn1_var"]), 0.0))
    h = pool(jnp.maximum(bn(conv(h, p["w2"]), p["b2"], p["bn2_gamma"],
                            p["bn2_beta"], p["bn2_mean"], p["bn2_var"]), 0.0))
    feats = jnp.transpose(h, (0, 3, 1, 2)).reshape(x.shape[0], -1)  # NCHW flat
    z = jnp.maximum(jnp.dot(bf(feats), bf(p["w_fc1"]),
                            preferred_element_type=f32) + p["b_fc1"], 0.0)
    z = jnp.maximum(jnp.dot(bf(z), bf(p["w_fc2"]),
                            preferred_element_type=f32) + p["b_fc2"], 0.0)
    logits = jnp.dot(bf(z), bf(p["w_fc3"]),
                     preferred_element_type=f32) + p["b_fc3"]
    return jax.nn.log_softmax(logits, axis=-1)


if __name__ == "__main__":
    key = jax.random.PRNGKey(0)
    kp, kx = jax.random.split(key)
    params = init_params(kp, input_dims=(1, 28, 28))
    # One-time layout prep OUTSIDE the jitted forward (hoisted per review).
    q = prepare_params(params, input_dims=(1, 28, 28))

    x = jax.random.normal(kx, (2, 1, 28, 28), jnp.float32)       # NCHW like PyTorch

    fwd = jax.jit(cnn_forward)
    out = jax.block_until_ready(fwd(x, q))

    assert out.shape == (2, 25), out.shape
    # log-softmax sanity: rows exponentiate to probability distributions
    row_sums = jnp.sum(jnp.exp(out), axis=1)
    assert bool(jnp.all(jnp.abs(row_sums - 1.0) < 1e-3)), row_sums
    # numerical check against a pure-JAX reference with matching bf16 rounding
    ref = reference_forward(x, params)
    err = float(jnp.max(jnp.abs(out - ref)))
    assert err < 3e-2, f"max |pallas - reference| = {err}"
    print("KERNEL_OK")
</pallas_src>

<mosaic_0001>
module attributes {stable_mosaic.version = 11 : i64} {
  func.func @_cnn_kernel(%arg0: i32, %arg1: memref<8x30x30xbf16, #tpu.memory_space<vmem>>, %arg2: memref<3x30x480xbf16, #tpu.memory_space<vmem>>, %arg3: memref<1x480xf32, #tpu.memory_space<vmem>>, %arg4: memref<1x480xf32, #tpu.memory_space<vmem>>, %arg5: memref<3x224x480xbf16, #tpu.memory_space<vmem>>, %arg6: memref<1x480xf32, #tpu.memory_space<vmem>>, %arg7: memref<1x480xf32, #tpu.memory_space<vmem>>, %arg8: memref<7x224x128xbf16, #tpu.memory_space<vmem>>, %arg9: memref<1x128xf32, #tpu.memory_space<vmem>>, %arg10: memref<128x128xbf16, #tpu.memory_space<vmem>>, %arg11: memref<1x128xf32, #tpu.memory_space<vmem>>, %arg12: memref<128x25xbf16, #tpu.memory_space<vmem>>, %arg13: memref<1x25xf32, #tpu.memory_space<vmem>>, %arg14: memref<8x25xf32, #tpu.memory_space<vmem>>, %arg15: memref<8x16x224xbf16, #tpu.memory_space<vmem>>) attributes {dimension_semantics = [#tpu.dimension_semantics<parallel>], iteration_bounds = array<i64: 1>, scalar_prefetch = 0 : i64, scratch_operands = 1 : i64, tpu.core_type = #tpu.core_type<tc>, window_params = [{transform_indices = @transform_0, window_bounds = array<i64: 8, 30, 30>}, {pipeline_mode = #tpu.pipeline_mode<synchronous>, transform_indices = @transform_1, window_bounds = array<i64: 3, 30, 480>}, {pipeline_mode = #tpu.pipeline_mode<synchronous>, transform_indices = @transform_2, window_bounds = array<i64: 1, 480>}, {pipeline_mode = #tpu.pipeline_mode<synchronous>, transform_indices = @transform_3, window_bounds = array<i64: 1, 480>}, {pipeline_mode = #tpu.pipeline_mode<synchronous>, transform_indices = @transform_4, window_bounds = array<i64: 3, 224, 480>}, {pipeline_mode = #tpu.pipeline_mode<synchronous>, transform_indices = @transform_5, window_bounds = array<i64: 1, 480>}, {pipeline_mode = #tpu.pipeline_mode<synchronous>, transform_indices = @transform_6, window_bounds = array<i64: 1, 480>}, {pipeline_mode = #tpu.pipeline_mode<synchronous>, transform_indices = @transform_7, window_bounds = array<i64: 7, 224, 128>}, {pipeline_mode = #tpu.pipeline_mode<synchronous>, transform_indices = @transform_8, window_bounds = array<i64: 1, 128>}, {pipeline_mode = #tpu.pipeline_mode<synchronous>, transform_indices = @transform_9, window_bounds = array<i64: 128, 128>}, {pipeline_mode = #tpu.pipeline_mode<synchronous>, transform_indices = @transform_10, window_bounds = array<i64: 1, 128>}, {pipeline_mode = #tpu.pipeline_mode<synchronous>, transform_indices = @transform_11, window_bounds = array<i64: 128, 25>}, {pipeline_mode = #tpu.pipeline_mode<synchronous>, transform_indices = @transform_12, window_bounds = array<i64: 1, 25>}, {transform_indices = @transform_13, window_bounds = array<i64: 8, 25>}]} {
    %c0 = arith.constant 0 : index
    %c0_0 = arith.constant 0 : index
    %c0_1 = arith.constant 0 : index
    %0 = vector.load %arg1[%c0, %c0_0, %c0_1] : memref<8x30x30xbf16, #tpu.memory_space<vmem>>, vector<8x28x30xbf16>
    %1 = vector.shape_cast %0 : vector<8x28x30xbf16> to vector<224x30xbf16>
    %c0_2 = arith.constant 0 : index
    %c0_3 = arith.constant 0 : index
    %c0_4 = arith.constant 0 : index
    %2 = vector.load %arg2[%c0_2, %c0_3, %c0_4] : memref<3x30x480xbf16, #tpu.memory_space<vmem>>, vector<1x30x480xbf16>
    %3 = vector.shape_cast %2 : vector<1x30x480xbf16> to vector<30x480xbf16>
    %cst = arith.constant dense<0.000000e+00> : vector<224x480xf32>
    %4 = tpu.matmul %1, %3, %cst {dimension_numbers = #tpu.dot_dimension_numbers<[1], [0], [0], [1], [0, 0, 1, 1], [], []>} : vector<224x30xbf16>, vector<30x480xbf16>, vector<224x480xf32> -> vector<224x480xf32>
    %c0_5 = arith.constant 0 : index
    %c1 = arith.constant 1 : index
    %c0_6 = arith.constant 0 : index
    %5 = vector.load %arg1[%c0_5, %c1, %c0_6] : memref<8x30x30xbf16, #tpu.memory_space<vmem>>, vector<8x28x30xbf16>
    %6 = vector.shape_cast %5 : vector<8x28x30xbf16> to vector<224x30xbf16>
    %c1_7 = arith.constant 1 : index
    %c0_8 = arith.constant 0 : index
    %c0_9 = arith.constant 0 : index
    %7 = vector.load %arg2[%c1_7, %c0_8, %c0_9] : memref<3x30x480xbf16, #tpu.memory_space<vmem>>, vector<1x30x480xbf16>
    %8 = vector.shape_cast %7 : vector<1x30x480xbf16> to vector<30x480xbf16>
    %cst_10 = arith.constant dense<0.000000e+00> : vector<224x480xf32>
    %9 = tpu.matmul %6, %8, %cst_10 {dimension_numbers = #tpu.dot_dimension_numbers<[1], [0], [0], [1], [0, 0, 1, 1], [], []>} : vector<224x30xbf16>, vector<30x480xbf16>, vector<224x480xf32> -> vector<224x480xf32>
    %10 = arith.addf %4, %9 : vector<224x480xf32>
    %c0_11 = arith.constant 0 : index
    %c2 = arith.constant 2 : index
    %c0_12 = arith.constant 0 : index
    %11 = vector.load %arg1[%c0_11, %c2, %c0_12] : memref<8x30x30xbf16, #tpu.memory_space<vmem>>, vector<8x28x30xbf16>
    %12 = vector.shape_cast %11 : vector<8x28x30xbf16> to vector<224x30xbf16>
    %c2_13 = arith.constant 2 : index
    %c0_14 = arith.constant 0 : index
    %c0_15 = arith.constant 0 : index
    %13 = vector.load %arg2[%c2_13, %c0_14, %c0_15] : memref<3x30x480xbf16, #tpu.memory_space<vmem>>, vector<1x30x480xbf16>
    %14 = vector.shape_cast %13 : vector<1x30x480xbf16> to vector<30x480xbf16>
    %cst_16 = arith.constant dense<0.000000e+00> : vector<224x480xf32>
    %15 = tpu.matmul %12, %14, %cst_16 {dimension_numbers = #tpu.dot_dimension_numbers<[1], [0], [0], [1], [0, 0, 1, 1], [], []>} : vector<224x30xbf16>, vector<30x480xbf16>, vector<224x480xf32> -> vector<224x480xf32>
    %16 = arith.addf %10, %15 : vector<224x480xf32>
    %c0_17 = arith.constant 0 : index
    %c0_18 = arith.constant 0 : index
    %17 = vector.load %arg3[%c0_17, %c0_18] : memref<1x480xf32, #tpu.memory_space<vmem>>, vector<1x480xf32>
    %18 = vector.broadcast %17 : vector<1x480xf32> to vector<224x480xf32>
    %19 = arith.mulf %16, %18 : vector<224x480xf32>
    %c0_19 = arith.constant 0 : index
    %c0_20 = arith.constant 0 : index
    %20 = vector.load %arg4[%c0_19, %c0_20] : memref<1x480xf32, #tpu.memory_space<vmem>>, vector<1x480xf32>
    %21 = vector.broadcast %20 : vector<1x480xf32> to vector<224x480xf32>
    %22 = arith.addf %19, %21 : vector<224x480xf32>
    %cst_21 = arith.constant 0.000000e+00 : f32
    %23 = vector.broadcast %cst_21 : f32 to vector<224x480xf32>
    %24 = arith.maximumf %22, %23 : vector<224x480xf32>
    %25 = vector.extract_strided_slice %24 {offsets = [0, 0], sizes = [224, 224], strides = [1, 1]} : vector<224x480xf32> to vector<224x224xf32>
    %26 = vector.extract_strided_slice %24 {offsets = [0, 256], sizes = [224, 224], strides = [1, 1]} : vector<224x480xf32> to vector<224x224xf32>
    %27 = arith.maximumf %25, %26 : vector<224x224xf32>
    %28 = vector.shape_cast %27 : vector<224x224xf32> to vector<112x2x224xf32>
    %29 = vector.extract_strided_slice %28 {offsets = [0, 0, 0], sizes = [112, 1, 224], strides = [1, 1, 1]} : vector<112x2x224xf32> to vector<112x1x224xf32>
    %30 = vector.extract_strided_slice %28 {offsets = [0, 1, 0], sizes = [112, 1, 224], strides = [1, 1, 1]} : vector<112x2x224xf32> to vector<112x1x224xf32>
    %31 = arith.maximumf %29, %30 : vector<112x1x224xf32>
    %32 = vector.shape_cast %31 : vector<112x1x224xf32> to vector<8x14x224xf32>
    %cst_22 = arith.constant 0.000000e+00 : bf16
    %33 = vector.broadcast %cst_22 : bf16 to vector<8x1x224xbf16>
    %c0_23 = arith.constant 0 : index
    %c0_24 = arith.constant 0 : index
    %c0_25 = arith.constant 0 : index
    %34 = vector.load %arg15[%c0_23, %c0_24, %c0_25] : memref<8x16x224xbf16, #tpu.memory_space<vmem>>, vector<8x1x224xbf16>
    tpu.vector_store %arg15[%c0_23, %c0_24, %c0_25], %33 {strides = array<i32>} : memref<8x16x224xbf16, #tpu.memory_space<vmem>>, vector<8x1x224xbf16>,
    %c0_26 = arith.constant 0 : index
    %c15 = arith.constant 15 : index
    %c0_27 = arith.constant 0 : index
    %35 = vector.load %arg15[%c0_26, %c15, %c0_27] : memref<8x16x224xbf16, #tpu.memory_space<vmem>>, vector<8x1x224xbf16>
    tpu.vector_store %arg15[%c0_26, %c15, %c0_27], %33 {strides = array<i32>} : memref<8x16x224xbf16, #tpu.memory_space<vmem>>, vector<8x1x224xbf16>,
    %36 = arith.truncf %32 : vector<8x14x224xf32> to vector<8x14x224xbf16>
    %c0_28 = arith.constant 0 : index
    %c1_29 = arith.constant 1 : index
    %c0_30 = arith.constant 0 : index
    %37 = vector.load %arg15[%c0_28, %c1_29, %c0_30] : memref<8x16x224xbf16, #tpu.memory_space<vmem>>, vector<8x14x224xbf16>
    tpu.vector_store %arg15[%c0_28, %c1_29, %c0_30], %36 {strides = array<i32>} : memref<8x16x224xbf16, #tpu.memory_space<vmem>>, vector<8x14x224xbf16>,
    %c0_31 = arith.constant 0 : index
    %c0_32 = arith.constant 0 : index
    %c0_33 = arith.constant 0 : index
    %38 = vector.load %arg15[%c0_31, %c0_32, %c0_33] : memref<8x16x224xbf16, #tpu.memory_space<vmem>>, vector<8x14x224xbf16>
    %39 = vector.shape_cast %38 : vector<8x14x224xbf16> to vector<112x224xbf16>
    %c0_34 = arith.constant 0 : index
    %c0_35 = arith.constant 0 : index
    %c0_36 = arith.constant 0 : index
    %40 = vector.load %arg5[%c0_34, %c0_35, %c0_36] : memref<3x224x480xbf16, #tpu.memory_space<vmem>>, vector<1x224x480xbf16>
    %41 = vector.shape_cast %40 : vector<1x224x480xbf16> to vector<224x480xbf16>
    %cst_37 = arith.constant dense<0.000000e+00> : vector<112x480xf32>
    %42 = tpu.matmul %39, %41, %cst_37 {dimension_numbers = #tpu.dot_dimension_numbers<[1], [0], [0], [1], [0, 0, 1, 1], [], []>} : vector<112x224xbf16>, vector<224x480xbf16>, vector<112x480xf32> -> vector<112x480xf32>
    %c0_38 = arith.constant 0 : index
    %c1_39 = arith.constant 1 : index
    %c0_40 = arith.constant 0 : index
    %43 = vector.load %arg15[%c0_38, %c1_39, %c0_40] : memref<8x16x224xbf16, #tpu.memory_space<vmem>>, vector<8x14x224xbf16>
    %44 = vector.shape_cast %43 : vector<8x14x224xbf16> to vector<112x224xbf16>
    %c1_41 = arith.constant 1 : index
    %c0_42 = arith.constant 0 : index
    %c0_43 = arith.constant 0 : index
    %45 = vector.load %arg5[%c1_41, %c0_42, %c0_43] : memref<3x224x480xbf16, #tpu.memory_space<vmem>>, vector<1x224x480xbf16>
    %46 = vector.shape_cast %45 : vector<1x224x480xbf16> to vector<224x480xbf16>
    %cst_44 = arith.constant dense<0.000000e+00> : vector<112x480xf32>
    %47 = tpu.matmul %44, %46, %cst_44 {dimension_numbers = #tpu.dot_dimension_numbers<[1], [0], [0], [1], [0, 0, 1, 1], [], []>} : vector<112x224xbf16>, vector<224x480xbf16>, vector<112x480xf32> -> vector<112x480xf32>
    %48 = arith.addf %42, %47 : vector<112x480xf32>
    %c0_45 = arith.constant 0 : index
    %c2_46 = arith.constant 2 : index
    %c0_47 = arith.constant 0 : index
    %49 = vector.load %arg15[%c0_45, %c2_46, %c0_47] : memref<8x16x224xbf16, #tpu.memory_space<vmem>>, vector<8x14x224xbf16>
    %50 = vector.shape_cast %49 : vector<8x14x224xbf16> to vector<112x224xbf16>
    %c2_48 = arith.constant 2 : index
    %c0_49 = arith.constant 0 : index
    %c0_50 = arith.constant 0 : index
    %51 = vector.load %arg5[%c2_48, %c0_49, %c0_50] : memref<3x224x480xbf16, #tpu.memory_space<vmem>>, vector<1x224x480xbf16>
    %52 = vector.shape_cast %51 : vector<1x224x480xbf16> to vector<224x480xbf16>
    %cst_51 = arith.constant dense<0.000000e+00> : vector<112x480xf32>
    %53 = tpu.matmul %50, %52, %cst_51 {dimension_numbers = #tpu.dot_dimension_numbers<[1], [0], [0], [1], [0, 0, 1, 1], [], []>} : vector<112x224xbf16>, vector<224x480xbf16>, vector<112x480xf32> -> vector<112x480xf32>
    %54 = arith.addf %48, %53 : vector<112x480xf32>
    %c0_52 = arith.constant 0 : index
    %c0_53 = arith.constant 0 : index
    %55 = vector.load %arg6[%c0_52, %c0_53] : memref<1x480xf32, #tpu.memory_space<vmem>>, vector<1x480xf32>
    %56 = vector.broadcast %55 : vector<1x480xf32> to vector<112x480xf32>
    %57 = arith.mulf %54, %56 : vector<112x480xf32>
    %c0_54 = arith.constant 0 : index
    %c0_55 = arith.constant 0 : index
    %58 = vector.load %arg7[%c0_54, %c0_55] : memref<1x480xf32, #tpu.memory_space<vmem>>, vector<1x480xf32>
    %59 = vector.broadcast %58 : vector<1x480xf32> to vector<112x480xf32>
    %60 = arith.addf %57, %59 : vector<112x480xf32>
    %cst_56 = arith.constant 0.000000e+00 : f32
    %61 = vector.broadcast %cst_56 : f32 to vector<112x480xf32>
    %62 = arith.maximumf %60, %61 : vector<112x480xf32>
    %63 = vector.extract_strided_slice %62 {offsets = [0, 0], sizes = [112, 224], strides = [1, 1]} : vector<112x480xf32> to vector<112x224xf32>
    %64 = vector.extract_strided_slice %62 {offsets = [0, 256], sizes = [112, 224], strides = [1, 1]} : vector<112x480xf32> to vector<112x224xf32>
    %65 = arith.maximumf %63, %64 : vector<112x224xf32>
    %66 = vector.shape_cast %65 : vector<112x224xf32> to vector<56x2x224xf32>
    %67 = vector.extract_strided_slice %66 {offsets = [0, 0, 0], sizes = [56, 1, 224], strides = [1, 1, 1]} : vector<56x2x224xf32> to vector<56x1x224xf32>
    %68 = vector.extract_strided_slice %66 {offsets = [0, 1, 0], sizes = [56, 1, 224], strides = [1, 1, 1]} : vector<56x2x224xf32> to vector<56x1x224xf32>
    %69 = arith.maximumf %67, %68 : vector<56x1x224xf32>
    %70 = vector.shape_cast %69 : vector<56x1x224xf32> to vector<8x7x224xf32>
    %71 = arith.truncf %70 : vector<8x7x224xf32> to vector<8x7x224xbf16>
    %72 = vector.extract_strided_slice %71 {offsets = [0, 0, 0], sizes = [8, 1, 224], strides = [1, 1, 1]} : vector<8x7x224xbf16> to vector<8x1x224xbf16>
    %73 = vector.shape_cast %72 : vector<8x1x224xbf16> to vector<8x224xbf16>
    %c0_57 = arith.constant 0 : index
    %c0_58 = arith.constant 0 : index
    %c0_59 = arith.constant 0 : index
    %74 = vector.load %arg8[%c0_57, %c0_58, %c0_59] : memref<7x224x128xbf16, #tpu.memory_space<vmem>>, vector<1x224x128xbf16>
    %75 = vector.shape_cast %74 : vector<1x224x128xbf16> to vector<224x128xbf16>
    %cst_60 = arith.constant dense<0.000000e+00> : vector<8x128xf32>
    %76 = tpu.matmul %73, %75, %cst_60 {dimension_numbers = #tpu.dot_dimension_numbers<[1], [0], [0], [1], [0, 0, 1, 1], [], []>} : vector<8x224xbf16>, vector<224x128xbf16>, vector<8x128xf32> -> vector<8x128xf32>
    %77 = vector.extract_strided_slice %71 {offsets = [0, 1, 0], sizes = [8, 1, 224], strides = [1, 1, 1]} : vector<8x7x224xbf16> to vector<8x1x224xbf16>
    %78 = vector.shape_cast %77 : vector<8x1x224xbf16> to vector<8x224xbf16>
    %c1_61 = arith.constant 1 : index
    %c0_62 = arith.constant 0 : index
    %c0_63 = arith.constant 0 : index
    %79 = vector.load %arg8[%c1_61, %c0_62, %c0_63] : memref<7x224x128xbf16, #tpu.memory_space<vmem>>, vector<1x224x128xbf16>
    %80 = vector.shape_cast %79 : vector<1x224x128xbf16> to vector<224x128xbf16>
    %cst_64 = arith.constant dense<0.000000e+00> : vector<8x128xf32>
    %81 = tpu.matmul %78, %80, %cst_64 {dimension_numbers = #tpu.dot_dimension_numbers<[1], [0], [0], [1], [0, 0, 1, 1], [], []>} : vector<8x224xbf16>, vector<224x128xbf16>, vector<8x128xf32> -> vector<8x128xf32>
    %82 = arith.addf %76, %81 : vector<8x128xf32>
    %83 = vector.extract_strided_slice %71 {offsets = [0, 2, 0], sizes = [8, 1, 224], strides = [1, 1, 1]} : vector<8x7x224xbf16> to vector<8x1x224xbf16>
    %84 = vector.shape_cast %83 : vector<8x1x224xbf16> to vector<8x224xbf16>
    %c2_65 = arith.constant 2 : index
    %c0_66 = arith.constant 0 : index
    %c0_67 = arith.constant 0 : index
    %85 = vector.load %arg8[%c2_65, %c0_66, %c0_67] : memref<7x224x128xbf16, #tpu.memory_space<vmem>>, vector<1x224x128xbf16>
    %86 = vector.shape_cast %85 : vector<1x224x128xbf16> to vector<224x128xbf16>
    %cst_68 = arith.constant dense<0.000000e+00> : vector<8x128xf32>
    %87 = tpu.matmul %84, %86, %cst_68 {dimension_numbers = #tpu.dot_dimension_numbers<[1], [0], [0], [1], [0, 0, 1, 1], [], []>} : vector<8x224xbf16>, vector<224x128xbf16>, vector<8x128xf32> -> vector<8x128xf32>
    %88 = arith.addf %82, %87 : vector<8x128xf32>
    %89 = vector.extract_strided_slice %71 {offsets = [0, 3, 0], sizes = [8, 1, 224], strides = [1, 1, 1]} : vector<8x7x224xbf16> to vector<8x1x224xbf16>
    %90 = vector.shape_cast %89 : vector<8x1x224xbf16> to vector<8x224xbf16>
    %c3 = arith.constant 3 : index
    %c0_69 = arith.constant 0 : index
    %c0_70 = arith.constant 0 : index
    %91 = vector.load %arg8[%c3, %c0_69, %c0_70] : memref<7x224x128xbf16, #tpu.memory_space<vmem>>, vector<1x224x128xbf16>
    %92 = vector.shape_cast %91 : vector<1x224x128xbf16> to vector<224x128xbf16>
    %cst_71 = arith.constant dense<0.000000e+00> : vector<8x128xf32>
    %93 = tpu.matmul %90, %92, %cst_71 {dimension_numbers = #tpu.dot_dimension_numbers<[1], [0], [0], [1], [0, 0, 1, 1], [], []>} : vector<8x224xbf16>, vector<224x128xbf16>, vector<8x128xf32> -> vector<8x128xf32>
    %94 = arith.addf %88, %93 : vector<8x128xf32>
    %95 = vector.extract_strided_slice %71 {offsets = [0, 4, 0], sizes = [8, 1, 224], strides = [1, 1, 1]} : vector<8x7x224xbf16> to vector<8x1x224xbf16>
    %96 = vector.shape_cast %95 : vector<8x1x224xbf16> to vector<8x224xbf16>
    %c4 = arith.constant 4 : index
    %c0_72 = arith.constant 0 : index
    %c0_73 = arith.constant 0 : index
    %97 = vector.load %arg8[%c4, %c0_72, %c0_73] : memref<7x224x128xbf16, #tpu.memory_space<vmem>>, vector<1x224x128xbf16>
    %98 = vector.shape_cast %97 : vector<1x224x128xbf16> to vector<224x128xbf16>
    %cst_74 = arith.constant dense<0.000000e+00> : vector<8x128xf32>
    %99 = tpu.matmul %96, %98, %cst_74 {dimension_numbers = #tpu.dot_dimension_numbers<[1], [0], [0], [1], [0, 0, 1, 1], [], []>} : vector<8x224xbf16>, vector<224x128xbf16>, vector<8x128xf32> -> vector<8x128xf32>
    %100 = arith.addf %94, %99 : vector<8x128xf32>
    %101 = vector.extract_strided_slice %71 {offsets = [0, 5, 0], sizes = [8, 1, 224], strides = [1, 1, 1]} : vector<8x7x224xbf16> to vector<8x1x224xbf16>
    %102 = vector.shape_cast %101 : vector<8x1x224xbf16> to vector<8x224xbf16>
    %c5 = arith.constant 5 : index
    %c0_75 = arith.constant 0 : index
    %c0_76 = arith.constant 0 : index
    %103 = vector.load %arg8[%c5, %c0_75, %c0_76] : memref<7x224x128xbf16, #tpu.memory_space<vmem>>, vector<1x224x128xbf16>
    %104 = vector.shape_cast %103 : vector<1x224x128xbf16> to vector<224x128xbf16>
    %cst_77 = arith.constant dense<0.000000e+00> : vector<8x128xf32>
    %105 = tpu.matmul %102, %104, %cst_77 {dimension_numbers = #tpu.dot_dimension_numbers<[1], [0], [0], [1], [0, 0, 1, 1], [], []>} : vector<8x224xbf16>, vector<224x128xbf16>, vector<8x128xf32> -> vector<8x128xf32>
    %106 = arith.addf %100, %105 : vector<8x128xf32>
    %107 = vector.extract_strided_slice %71 {offsets = [0, 6, 0], sizes = [8, 1, 224], strides = [1, 1, 1]} : vector<8x7x224xbf16> to vector<8x1x224xbf16>
    %108 = vector.shape_cast %107 : vector<8x1x224xbf16> to vector<8x224xbf16>
    %c6 = arith.constant 6 : index
    %c0_78 = arith.constant 0 : index
    %c0_79 = arith.constant 0 : index
    %109 = vector.load %arg8[%c6, %c0_78, %c0_79] : memref<7x224x128xbf16, #tpu.memory_space<vmem>>, vector<1x224x128xbf16>
    %110 = vector.shape_cast %109 : vector<1x224x128xbf16> to vector<224x128xbf16>
    %cst_80 = arith.constant dense<0.000000e+00> : vector<8x128xf32>
    %111 = tpu.matmul %108, %110, %cst_80 {dimension_numbers = #tpu.dot_dimension_numbers<[1], [0], [0], [1], [0, 0, 1, 1], [], []>} : vector<8x224xbf16>, vector<224x128xbf16>, vector<8x128xf32> -> vector<8x128xf32>
    %112 = arith.addf %106, %111 : vector<8x128xf32>
    %c0_81 = arith.constant 0 : index
    %c0_82 = arith.constant 0 : index
    %113 = vector.load %arg9[%c0_81, %c0_82] : memref<1x128xf32, #tpu.memory_space<vmem>>, vector<1x128xf32>
    %114 = vector.broadcast %113 : vector<1x128xf32> to vector<8x128xf32>
    %115 = arith.addf %112, %114 : vector<8x128xf32>
    %cst_83 = arith.constant 0.000000e+00 : f32
    %116 = vector.broadcast %cst_83 : f32 to vector<8x128xf32>
    %117 = arith.maximumf %115, %116 : vector<8x128xf32>
    %118 = arith.truncf %117 : vector<8x128xf32> to vector<8x128xbf16>
    %c0_84 = arith.constant 0 : index
    %c0_85 = arith.constant 0 : index
    %119 = vector.load %arg10[%c0_84, %c0_85] : memref<128x128xbf16, #tpu.memory_space<vmem>>, vector<128x128xbf16>
    %cst_86 = arith.constant dense<0.000000e+00> : vector<8x128xf32>
    %120 = tpu.matmul %118, %119, %cst_86 {dimension_numbers = #tpu.dot_dimension_numbers<[1], [0], [0], [1], [0, 0, 1, 1], [], []>} : vector<8x128xbf16>, vector<128x128xbf16>, vector<8x128xf32> -> vector<8x128xf32>
    %c0_87 = arith.constant 0 : index
    %c0_88 = arith.constant 0 : index
    %121 = vector.load %arg11[%c0_87, %c0_88] : memref<1x128xf32, #tpu.memory_space<vmem>>, vector<1x128xf32>
    %122 = vector.broadcast %121 : vector<1x128xf32> to vector<8x128xf32>
    %123 = arith.addf %120, %122 : vector<8x128xf32>
    %cst_89 = arith.constant 0.000000e+00 : f32
    %124 = vector.broadcast %cst_89 : f32 to vector<8x128xf32>
    %125 = arith.maximumf %123, %124 : vector<8x128xf32>
    %126 = arith.truncf %125 : vector<8x128xf32> to vector<8x128xbf16>
    %c0_90 = arith.constant 0 : index
    %c0_91 = arith.constant 0 : index
    %127 = vector.load %arg12[%c0_90, %c0_91] : memref<128x25xbf16, #tpu.memory_space<vmem>>, vector<128x25xbf16>
    %cst_92 = arith.constant dense<0.000000e+00> : vector<8x25xf32>
    %128 = tpu.matmul %126, %127, %cst_92 {dimension_numbers = #tpu.dot_dimension_numbers<[1], [0], [0], [1], [0, 0, 1, 1], [], []>} : vector<8x128xbf16>, vector<128x25xbf16>, vector<8x25xf32> -> vector<8x25xf32>
    %c0_93 = arith.constant 0 : index
    %c0_94 = arith.constant 0 : index
    %129 = vector.load %arg13[%c0_93, %c0_94] : memref<1x25xf32, #tpu.memory_space<vmem>>, vector<1x25xf32>
    %130 = vector.broadcast %129 : vector<1x25xf32> to vector<8x25xf32>
    %131 = arith.addf %128, %130 : vector<8x25xf32>
    %cst_95 = arith.constant dense<0xFF800000> : vector<8xf32>
    %132 = vector.multi_reduction <maximumf>, %131, %cst_95 [1] : vector<8x25xf32> to vector<8xf32>
    %133 = vector.shape_cast %132 : vector<8xf32> to vector<8x1xf32>
    %134 = vector.broadcast %133 : vector<8x1xf32> to vector<8x25xf32>
    %135 = arith.subf %131, %134 : vector<8x25xf32>
    %136 = math.exp %135 : vector<8x25xf32>
    %cst_96 = arith.constant dense<0.000000e+00> : vector<8xf32>
    %137 = vector.multi_reduction <add>, %136, %cst_96 [1] : vector<8x25xf32> to vector<8xf32>
    %138 = vector.shape_cast %137 : vector<8xf32> to vector<8x1xf32>
    %139 = math.log %138 : vector<8x1xf32>
    %140 = vector.broadcast %139 : vector<8x1xf32> to vector<8x25xf32>
    %141 = arith.subf %135, %140 : vector<8x25xf32>
    %c0_97 = arith.constant 0 : index
    %c0_98 = arith.constant 0 : index
    %142 = vector.load %arg14[%c0_97, %c0_98] : memref<8x25xf32, #tpu.memory_space<vmem>>, vector<8x25xf32>
    tpu.vector_store %arg14[%c0_97, %c0_98], %141 {strides = array<i32>} : memref<8x25xf32, #tpu.memory_space<vmem>>, vector<8x25xf32>,
    return
  }
  func.func @transform_0(%arg0: i32) -> (i32, i32, i32) {
    %c0_i32 = arith.constant 0 : i32
    %c0_i32_0 = arith.constant 0 : i32
    %c0_i32_1 = arith.constant 0 : i32
    return %arg0, %c0_i32, %c0_i32_0 : i32, i32, i32
  }
  func.func @transform_1(%arg0: i32) -> (i32, i32, i32) {
    %c0_i32 = arith.constant 0 : i32
    %c0_i32_0 = arith.constant 0 : i32
    %c0_i32_1 = arith.constant 0 : i32
    %c0_i32_2 = arith.constant 0 : i32
    return %c0_i32, %c0_i32_0, %c0_i32_1 : i32, i32, i32
  }
  func.func @transform_2(%arg0: i32) -> (i32, i32) {
    %c0_i32 = arith.constant 0 : i32
    %c0_i32_0 = arith.constant 0 : i32
    %c0_i32_1 = arith.constant 0 : i32
    return %c0_i32, %c0_i32_0 : i32, i32
  }
  func.func @transform_3(%arg0: i32) -> (i32, i32) {
    %c0_i32 = arith.constant 0 : i32
    %c0_i32_0 = arith.constant 0 : i32
    %c0_i32_1 = arith.constant 0 : i32
    return %c0_i32, %c0_i32_0 : i32, i32
  }
  func.func @transform_4(%arg0: i32) -> (i32, i32, i32) {
    %c0_i32 = arith.constant 0 : i32
    %c0_i32_0 = arith.constant 0 : i32
    %c0_i32_1 = arith.constant 0 : i32
    %c0_i32_2 = arith.constant 0 : i32
    return %c0_i32, %c0_i32_0, %c0_i32_1 : i32, i32, i32
  }
  func.func @transform_5(%arg0: i32) -> (i32, i32) {
    %c0_i32 = arith.constant 0 : i32
    %c0_i32_0 = arith.constant 0 : i32
    %c0_i32_1 = arith.constant 0 : i32
    return %c0_i32, %c0_i32_0 : i32, i32
  }
  func.func @transform_6(%arg0: i32) -> (i32, i32) {
    %c0_i32 = arith.constant 0 : i32
    %c0_i32_0 = arith.constant 0 : i32
    %c0_i32_1 = arith.constant 0 : i32
    return %c0_i32, %c0_i32_0 : i32, i32
  }
  func.func @transform_7(%arg0: i32) -> (i32, i32, i32) {
    %c0_i32 = arith.constant 0 : i32
    %c0_i32_0 = arith.constant 0 : i32
    %c0_i32_1 = arith.constant 0 : i32
    %c0_i32_2 = arith.constant 0 : i32
    return %c0_i32, %c0_i32_0, %c0_i32_1 : i32, i32, i32
  }
  func.func @transform_8(%arg0: i32) -> (i32, i32) {
    %c0_i32 = arith.constant 0 : i32
    %c0_i32_0 = arith.constant 0 : i32
    %c0_i32_1 = arith.constant 0 : i32
    return %c0_i32, %c0_i32_0 : i32, i32
  }
  func.func @transform_9(%arg0: i32) -> (i32, i32) {
    %c0_i32 = arith.constant 0 : i32
    %c0_i32_0 = arith.constant 0 : i32
    %c0_i32_1 = arith.constant 0 : i32
    return %c0_i32, %c0_i32_0 : i32, i32
  }
  func.func @transform_10(%arg0: i32) -> (i32, i32) {
    %c0_i32 = arith.constant 0 : i32
    %c0_i32_0 = arith.constant 0 : i32
    %c0_i32_1 = arith.constant 0 : i32
    return %c0_i32, %c0_i32_0 : i32, i32
  }
  func.func @transform_11(%arg0: i32) -> (i32, i32) {
    %c0_i32 = arith.constant 0 : i32
    %c0_i32_0 = arith.constant 0 : i32
    %c0_i32_1 = arith.constant 0 : i32
    return %c0_i32, %c0_i32_0 : i32, i32
  }
  func.func @transform_12(%arg0: i32) -> (i32, i32) {
    %c0_i32 = arith.constant 0 : i32
    %c0_i32_0 = arith.constant 0 : i32
    %c0_i32_1 = arith.constant 0 : i32
    return %c0_i32, %c0_i32_0 : i32, i32
  }
  func.func @transform_13(%arg0: i32) -> (i32, i32) {
    %c0_i32 = arith.constant 0 : i32
    %c0_i32_0 = arith.constant 0 : i32
    return %arg0, %c0_i32 : i32, i32
  }
}

</mosaic_0001>

<bundles_post_ra>
// kernel: cnn_forward.1
= control target key start
LH: loop header
LB: loop body
LE: loop exit
PB: predicated region body
PF: predicated region fallthrough
CT: control target
= control target key end

     0   :  { %18 = vsyncpa [#allocation4], 0  ;;  %s22290_s0 = inlined_call_operand.vmem [shape: bf16[8,30,30], index: 0, kind: input, shape index: {}]   ;;  %s22291_s1 = inlined_call_operand.vmem [shape: bf16[3,30,480], index: 1, kind: input, shape index: {}]   ;;  %s22292_s2 = inlined_call_operand.vmem [shape: f32[1,480], index: 2, kind: input, shape index: {}]   ;;  %s22293_s3 = inlined_call_operand.vmem [shape: f32[1,480], index: 3, kind: input, shape index: {}]   ;;  %s22294_s4 = inlined_call_operand.hbm [shape: bf16[3,224,480], index: 4, kind: input, shape index: {}]   ;;  %s22295_s5 = inlined_call_operand.vmem [shape: f32[1,480], index: 5, kind: input, shape index: {}]   ;;  %s22296_s6 = inlined_call_operand.vmem [shape: f32[1,480], index: 6, kind: input, shape index: {}]   ;;  %s22297_s7 = inlined_call_operand.hbm [shape: bf16[7,224,128], index: 7, kind: input, shape index: {}]   ;;  %s22298_s8 = inlined_call_operand.vmem [shape: f32[1,128], index: 8, kind: input, shape index: {}]   ;;  %s22299_s9 = inlined_call_operand.vmem [shape: bf16[128,128], index: 9, kind: input, shape index: {}]   ;;  %s22300_s10 = inlined_call_operand.vmem [shape: f32[1,128], index: 10, kind: input, shape index: {}]   ;;  %s22301_s11 = inlined_call_operand.vmem [shape: bf16[128,25], index: 11, kind: input, shape index: {}]   ;;  %s22302_s12 = inlined_call_operand.vmem [shape: f32[1,25], index: 12, kind: input, shape index: {}]   ;;  %s22303_s13 = inlined_call_operand.vmem [shape: f32[8,25], index: 13, kind: output, shape index: {}]  }
   0x1   :  { %19 = vsyncpa [#allocation6], 0  ;;  %s17742_s25 = smov [#allocation3]   ;;  %s17694_s29 = scalar_lea.hbm %s22294_s4, 21504 }
   0x2   :  { %s33_s26 = sshll.u32 %s17742_s25, 4  ;;  %p17695_p0 = scmp.ne.s32.totalorder %s22294_s4, %s17694_s29  ;;  %s34_s26 = int_to_ptr.vmem [resolvable:$true] %s33_s26 }
   0x3   :  { %p17698_p1 = scmp.lt.u32.totalorder %s17694_s29, %s22294_s4 }
   0x5   :  { %p17700_p2 = pnand %p17698_p1, %p17695_p0 }
   0x7   :  { %17703 = shalt.err (!%p17700_p2)
}
   0x8   :  { %s17704_s17 = scalar_lea.vmem %s34_s26, 21504  ;;  %p17709_p4 = scmp.lt.s32.totalorder %s34_s26, %s34_s26 }
   0x9   :  { %p17705_p3 = scmp.ne.s32.totalorder %s34_s26, %s17704_s17  ;;  %p17710_p5 = scmp.lt.s32.totalorder %s17704_s17, %s17704_s17 }
   0xb   :  { %p17711_p6 = por %p17710_p5, %p17709_p4 }
   0xd   :  { %p17712_p7 = pnand %p17711_p6, %p17705_p3 }
   0xf   :  { %17715 = shalt.err (!%p17712_p7)
}
  0x10   :  { %s17743_s18 = smov 256   ;;  %s17744_s19 = smov 16  }
  0x11   :  { %39 = dma.hbm_to_vmem [thread:$0]  %s22294_s4, 21504, %s34_s26, [#allocation4], %s17743_s18, %s17743_s18, %s17744_s19  }
  0x12   :  { %s17745_s22 = smov [#allocation5]   ;;  %s17716_s27 = scalar_lea.hbm %s22297_s7, 12544 }
  0x13   :  { %s49_s23 = sshll.u32 %s17745_s22, 4  ;;  %p17717_p8 = scmp.ne.s32.totalorder %s22297_s7, %s17716_s27  ;;  %s50_s23 = int_to_ptr.vmem [resolvable:$true] %s49_s23 }
  0x14   :  { %p17720_p9 = scmp.lt.u32.totalorder %s17716_s27, %s22297_s7 }
  0x16   :  { %p17722_p10 = pnand %p17720_p9, %p17717_p8 }
  0x18   :  { %17725 = shalt.err (!%p17722_p10)
}
  0x19   :  { %s17726_s15 = scalar_lea.vmem %s50_s23, 12544  ;;  %p17731_p12 = scmp.lt.s32.totalorder %s50_s23, %s50_s23 }
  0x1a   :  { %p17727_p11 = scmp.ne.s32.totalorder %s50_s23, %s17726_s15  ;;  %p17732_p13 = scmp.lt.s32.totalorder %s17726_s15, %s17726_s15 }
  0x1c   :  { %p17733_p0 = por %p17732_p13, %p17731_p12 }
  0x1e   :  { %p17734_p1 = pnand %p17733_p0, %p17727_p11 }
  0x20   :  { %17737 = shalt.err (!%p17734_p1)
}
  0x21   :  { %s17746_s4 = smov 64   ;;  %s17747_s26 = smov 4  }
  0x22   :  { %55 = dma.hbm_to_vmem [thread:$0]  %s22297_s7, 12544, %s50_s23, [#allocation6], %s17746_s4, %s17746_s4, %s17747_s26  }
  0x23   :  { %17738 = dma.done.wait [#allocation4], 21504  }
  0x24   :  { %17739 = vsyncadd [#allocation4], 4294945792 }
  0x25   :  { %17740 = dma.done.wait [#allocation6], 12544  }
  0x26   :  { %17741 = vsyncadd [#allocation6], 4294954752  ;;  %v22304_v0 = vmov 0   ;;  %v17203_v1 = vld [vmem:[%s22291_s1 + $0x44] ss:$16 sps:$4 sm:$0xff]   ;;  %vm1398_vm2 = vcmask 1046528   ;;  %v1086_v7 = vlaneseq }
  0x27   :  { %1443 = vmatprep.mubr.bf16.mxu0 %v22304_v0  ;;  %1616 = vmatprep.mubr.bf16.mxu1 %v22304_v0  ;;  %vm473_vm0 = vsmask.f32 1280  ;;  %v17205_v2 = vld [vmem:[%s22291_s1 + $0x4c] ss:$16 sps:$4 sm:$0xff]   ;;  %vm474_vm1 = vsmask.f32 3336 }
  0x28   :  { %1411 = vmatprep.subr.bf16.mxu0 %v17203_v1  ;;  %v17207_v3 = vld [vmem:[%s22291_s1 + $0x40] ss:$16 sps:$4 sm:$0xff]   ;;  %v17208_v4 = vld [vmem:[%s22291_s1 + $0x48] ss:$16 sps:$4 sm:$0xff]   ;;  %v17749_v5 = vmov 1983009808   ;;  %1584 = vmatprep.subr.bf16.mxu1 %v17205_v2  ;;  %vm475_vm5 = vmor %vm473_vm0, %vm474_vm1 }
  0x29   :  { %v1084_v6 = vunpack.c.l.s4 %v17749_v5  ;;  %v17209_v8 = vld [vmem:[%s22291_s1 + $0x64] ss:$16 sps:$4 sm:$0x7f]   ;;  %1412 = vmatpush1.bf16.msra.mxu0 %v17207_v3  ;;  %1585 = vmatpush1.bf16.msra.mxu1 %v17208_v4  ;;  %v17211_v9 = vld [vmem:[%s22291_s1 + $0x6c] ss:$16 sps:$4 sm:$0x7f]  }
  0x2a   :  { %16074 = vmatprep.subr.msk.bf16.mxu0 %vm1398_vm2, %v17209_v8  ;;  %v17213_v10 = vld [vmem:[%s22291_s1 + $0x60] ss:$16 sps:$4 sm:$0x7f]   ;;  %v17214_v11 = vld [vmem:[%s22291_s1 + $0x68] ss:$16 sps:$4 sm:$0x7f]   ;;  %16089 = vmatprep.subr.msk.bf16.mxu1 %vm1398_vm2, %v17211_v9 }
  0x2b   :  { %v17217_v12 = vld [vmem:[%s22291_s1 + $0x4] ss:$16 sps:$4 sm:$0xff]   ;;  %vm476_vm3 = vsmask.f32 5392  ;;  %v1085_v13 = vunpack.c.0.s8 %v1084_v6  ;;  %v17878_v14 = vshrl.u32 %v1086_v7, 7  ;;  %v1400_v15 = vsel %vm1398_vm2, %v17213_v10, 0 }
  0x2c   :  { %v1406_v16 = vsel %vm1398_vm2, %v17214_v11, 0  ;;  %vm478_vm4 = vsmask.f32 7448  ;;  %v17220_v17 = vld [vmem:[%s22291_s1 + $0xc] ss:$16 sps:$4 sm:$0xff]   ;;  %vm477_vm6 = vmor %vm475_vm5, %vm476_vm3  ;;  %vm1355_vm8 = vcmask 244736  }
  0x2d   :  { %1414 = vmatpush1.bf16.msra.mxu0 %v1400_v15  ;;  %1587 = vmatpush1.bf16.msra.mxu1 %v1406_v16  ;;  %v16018_v18 = vld.sshfl [vmem:[%s22290_s0] sm:$0x33 pattern:$0x76325410]  ;;  %v17901_v27 = vsub.s32 %v1085_v13, %v17878_v14  ;;  %vm17909_vm7 = vmor %vm477_vm6, %vm478_vm4  ;;  %vm2751_vm9 = vcmask 1040384   ;;  %vm22323_vm10 = vcmask 1042434  }
  0x2e   :  { %2085 = vmatprep.subr.bf16.mxu0 %v17217_v12  ;;  %v16019_v19 = vld.sshfl [vmem:[%s22290_s0 + $0x4] sm:$0x33 pattern:$0x76325410]  ;;  %v17893_v20 = vcombine.high %v16018_v18, %v16018_v18  ;;  %v481_v21 = vshrl.u32 %v16018_v18, 16  ;;  %v484_v22 = vshll.u32 %v16018_v18, 16  ;;  %2258 = vmatprep.subr.bf16.mxu1 %v17220_v17  ;;  %vm2753_vm11 = vmor %vm2751_vm9, %vm22323_vm10 }
  0x2f   :  { %v16020_v23 = vld.sshfl [vmem:[%s22290_s0 + $0x8] sm:$0x33 pattern:$0x76325410]  ;;  %v17898_v24 = vcombine.high %v16019_v19, %v16019_v19  ;;  %v500_v25 = vshll.u32 %v16019_v19, 16  ;;  %v504_v26 = vshrl.u32 %v16019_v19, 16 }
  0x30   :  { %v483_v28 = vrot.slane %v481_v21, 6  ;;  %v486_v29 = vrot.slane %v484_v22, 7  ;;  %v490_v30 = vshll.u32 %v17893_v20, 16  ;;  %v494_v31 = vshrl.u32 %v17893_v20, 16  ;;  %v17215_v18 = vld [vmem:[%s22291_s1] ss:$16 sps:$4 sm:$0xff]  }
  0x31   :  { %v502_v32 = vrot.slane %v500_v25, 7  ;;  %v506_v33 = vrot.slane %v504_v26, 6  ;;  %v510_v34 = vshll.u32 %v17898_v24, 16  ;;  %v514_v35 = vshrl.u32 %v17898_v24, 16  ;;  %v17218_v25 = vld [vmem:[%s22291_s1 + $0x8] ss:$16 sps:$4 sm:$0xff]  }
  0x32   :  { %v487_v36 = vor.u32 %v486_v29, %v483_v28  ;;  %v492_v37 = vrot.slane %v490_v30, 7  ;;  %v496_v38 = vrot.slane %v494_v31, 6  ;;  %v520_v39 = vshll.u32 %v16020_v23, 16  ;;  %v17221_v31 = vld [vmem:[%s22291_s1 + $0x24] ss:$16 sps:$4 sm:$0x7f]  }
  0x33   :  { %v507_v41 = vor.u32 %v506_v33, %v502_v32  ;;  %v512_v42 = vrot.slane %v510_v34, 7  ;;  %v516_v43 = vrot.slane %v514_v35, 6  ;;  %v16022_v44 = vld.sshfl [vmem:[%s22290_s0 + $0x10] sm:$0x33 pattern:$0x76325410]  ;;  %v17916_v45 = vcombine.high %v16020_v23, %v16020_v23 }
  0x34   :  { %v488_v46 = vrot.slane %v487_v36, 2  ;;  %v497_v47 = vor.u32 %v496_v38, %v492_v37  ;;  %v522_v48 = vrot.slane %v520_v39, 7  ;;  %v17918_v49 = vcombine.high %v16022_v44, %v16022_v44  ;;  %v16050_v50 = vld.sshfl [vmem:[%s22290_s0 + $0xc] sm:$0x13 pattern:$0x76325410] }
  0x35   :  { %v508_v51 = vrot.slane %v507_v41, 2  ;;  %v517_v52 = vor.u32 %v516_v43, %v512_v42  ;;  %v416_v53 = vcombine.high %v16050_v50, %v16050_v50  ;;  %v524_v54 = vshrl.u32 %v16020_v23, 16  ;;  %v16023_v12 = vld.sshfl [vmem:[%s22290_s0 + $0x14] sm:$0x33 pattern:$0x76325410] }
  0x36   :  { %v493_v55 = vsel %vm17909_vm7, %v488_v46, %v492_v37  ;;  %v498_v56 = vrot.slane %v497_v47, 2  ;;  %v530_v57 = vshll.u32 %v17916_v45, 16  ;;  %v534_v58 = vshrl.u32 %v17916_v45, 16 }
  0x37   :  { %v513_v59 = vsel %vm17909_vm7, %v508_v51, %v512_v42  ;;  %v518_v60 = vrot.slane %v517_v52, 2  ;;  %v526_v61 = vrot.slane %v524_v54, 6  ;;  %v540_v62 = vshll.u32 %v16050_v50, 16  ;;  %v17223_v42 = vld [vmem:[%s22291_s1 + $0x2c] ss:$16 sps:$4 sm:$0x7f]  }
  0x38   :  { %v503_v63 = vsel %vm17909_vm7, %v498_v56, %v502_v32  ;;  %v532_v1 = vrot.slane %v530_v57, 7  ;;  %v536_v2 = vrot.slane %v534_v58, 6  ;;  %v544_v3 = vshrl.u32 %v16050_v50, 16 }
  0x39   :  { %v523_v4 = vsel %vm17909_vm7, %v518_v60, %v522_v48  ;;  %v1081_v5 = vcombine.low %v493_v55, %v503_v63  ;;  %v527_v6 = vor.u32 %v526_v61, %v522_v48  ;;  %v542_v7 = vrot.slane %v540_v62, 7  ;;  %v16024_v35 = vld.sshfl [vmem:[%s22290_s0 + $0x18] sm:$0x33 pattern:$0x76325410] }
  0x3a   :  { %v1082_v8 = vcombine.low %v513_v59, %v523_v4  ;;  %v537_v9 = vor.u32 %v536_v2, %v532_v1  ;;  %v546_v10 = vrot.slane %v544_v3, 6  ;;  %v550_v11 = vshll.u32 %v416_v53, 16  ;;  %v17970_v48 = vld.sshfl [vmem:[%s22290_s0 + $0x20] sm:$0x33 pattern:$0x76325410] }
  0x3b   :  { %v1089_v13 = vrot.slane %v1081_v5, %v17901_v27  ;;  %v528_v15 = vrot.slane %v527_v6, 2  ;;  %v555_v16 = vshrl.u32 %v16022_v44, 16  ;;  %v558_v17 = vshll.u32 %v16022_v44, 16 }
  0x3c   :  { %v1096_v19 = vrot.slane %v1082_v8, %v17901_v27  ;;  %v538_v21 = vrot.slane %v537_v9, 2  ;;  %v547_v22 = vor.u32 %v546_v10, %v542_v7  ;;  %v552_v23 = vrot.slane %v550_v11, 7  ;;  %v16021_v40 = vld.sshfl [vmem:[%s22290_s0 + $0xc] sm:$0x3 pattern:$0x76325410] }
  0x3d   :  { %v533_v26 = vsel %vm17909_vm7, %v528_v15, %v532_v1  ;;  %v557_v28 = vrot.slane %v555_v16, 6  ;;  %v560_v29 = vrot.slane %v558_v17, 7  ;;  %v564_v30 = vshll.u32 %v17918_v49, 16 }
  0x3e   :  { %v1097_v32 = vcombine.low %v1089_v13, %v1096_v19  ;;  %v543_v33 = vsel %vm17909_vm7, %v538_v21, %v542_v7  ;;  %v548_v34 = vrot.slane %v547_v22, 2  ;;  %v17955_v36 = vcombine.high %v16023_v12, %v16023_v12  ;;  %v16051_v7 = vld.sshfl [vmem:[%s22290_s0 + $0x1c] sm:$0x13 pattern:$0x76325410] }
  0x3f   :  { %v561_v37 = vor.u32 %v560_v29, %v557_v28  ;;  %v566_v38 = vrot.slane %v564_v30, 7  ;;  %v1098_v39 = vcombine.low %v533_v26, %v543_v33  ;;  %v17957_v41 = vcombine.high %v16024_v35, %v16024_v35  ;;  %v16027_v26 = vld.sshfl [vmem:[%s22290_s0 + $0x24] sm:$0x33 pattern:$0x76325410] }
  0x40   :  { %16075 = vmatmul.mubr.msk.bf16.vlgmr.msra.gmra.mrb[0].mxu0 %vm1355_vm8, %v1097_v32  ;;  %16090 = vmatmul.mubr.msk.bf16.vlgmr.msra.gmra.mrb[0].mxu1 %vm1355_vm8, %v1097_v32  ;;  %v553_v43 = vsel %vm17909_vm7, %v548_v34, %v552_v23  ;;  %v568_v44 = vshrl.u32 %v17918_v49, 16  ;;  %v574_v46 = vshll.u32 %v16023_v12, 16  ;;  %v578_v47 = vshrl.u32 %v16023_v12, 16 }
  0x41   :  { %2086 = vmatpush1.bf16.msra.mxu0 %v17215_v18  ;;  %2259 = vmatpush1.bf16.msra.mxu1 %v17218_v25  ;;  %v562_v50 = vrot.slane %v561_v37, 2  ;;  %v1106_v51 = vrot.slane %v1098_v39, %v17901_v27  ;;  %v584_v52 = vshll.u32 %v17955_v36, 16  ;;  %v588_v53 = vshrl.u32 %v17955_v36, 16 }
  0x42   :  { %1453 = vmatprep.mubr.bf16.mxu0 %v22304_v0  ;;  %1626 = vmatprep.mubr.bf16.mxu1 %v22304_v0  ;;  %v570_v54 = vrot.slane %v568_v44, 6  ;;  %v576_v55 = vrot.slane %v574_v46, 7  ;;  %v580_v56 = vrot.slane %v578_v47, 6  ;;  %v594_v57 = vshll.u32 %v16024_v35, 16 }
  0x43   :  { %v567_v58 = vsel %vm17909_vm7, %v562_v50, %v566_v38  ;;  %v586_v59 = vrot.slane %v584_v52, 7  ;;  %v590_v60 = vrot.slane %v588_v53, 6  ;;  %v598_v61 = vshrl.u32 %v16024_v35, 16  ;;  %16112 = vmatprep.subr.msk.bf16.mxu0 %vm1398_vm2, %v17221_v31  ;;  %16127 = vmatprep.subr.msk.bf16.mxu1 %vm1398_vm2, %v17223_v42 }
  0x44   :  { %v1099_v62 = vcombine.low %v553_v43, %v567_v58  ;;  %v571_v63 = vor.u32 %v570_v54, %v566_v38  ;;  %v581_v1 = vor.u32 %v580_v56, %v576_v55  ;;  %v596_v2 = vrot.slane %v594_v57, 7  ;;  %v16028_v38 = vld.sshfl [vmem:[%s22290_s0 + $0x28] sm:$0x33 pattern:$0x76325410] }
  0x45   :  { %v591_v3 = vor.u32 %v590_v60, %v586_v59  ;;  %v600_v4 = vrot.slane %v598_v61, 6  ;;  %v604_v5 = vshll.u32 %v17957_v41, 16  ;;  %v17984_v6 = vcombine.high %v17970_v48, %v17970_v48 }
  0x46   :  { %v1113_v8 = vrot.slane %v1099_v62, %v17901_v27  ;;  %v572_v9 = vrot.slane %v571_v63, 2  ;;  %v582_v10 = vrot.slane %v581_v1, 2  ;;  %v424_v11 = vcombine.high %v16051_v7, %v16051_v7 }
  0x47   :  { %v592_v12 = vrot.slane %v591_v3, 2  ;;  %v601_v13 = vor.u32 %v600_v4, %v596_v2  ;;  %v606_v15 = vrot.slane %v604_v5, 7  ;;  %v608_v16 = vshrl.u32 %v17957_v41, 16 }
  0x48   :  { %v1114_v17 = vcombine.low %v1106_v51, %v1113_v8  ;;  %v577_v18 = vsel %vm17909_vm7, %v572_v9, %v576_v55  ;;  %v587_v19 = vsel %vm17909_vm7, %v582_v10, %v586_v59  ;;  %v614_v21 = vshll.u32 %v16051_v7, 16  ;;  %v16052_v5 = vld.sshfl [vmem:[%s22290_s0 + $0x2c] sm:$0x13 pattern:$0x76325410] }
  0x49   :  { %v597_v22 = vsel %vm17909_vm7, %v592_v12, %v596_v2  ;;  %v602_v23 = vrot.slane %v601_v13, 2  ;;  %v1115_v25 = vcombine.low %v577_v18, %v587_v19  ;;  %v610_v28 = vrot.slane %v608_v16, 6 }
  0x4a   :  { %16076 = vmatmul.mubr.msk.bf16.gmra.mrb[4].mxu0 %vm1355_vm8, %v1114_v17  ;;  %16091 = vmatmul.mubr.msk.bf16.gmra.mrb[4].mxu1 %vm1355_vm8, %v1114_v17  ;;  %v616_v29 = vrot.slane %v614_v21, 7  ;;  %v618_v30 = vshrl.u32 %v16051_v7, 16  ;;  %v624_v31 = vshll.u32 %v424_v11, 16  ;;  %v629_v32 = vshrl.u32 %v17970_v48, 16 }
  0x4b   :  { %1463 = vmatprep.mubr.bf16.mxu0 %v22304_v0  ;;  %1636 = vmatprep.mubr.bf16.mxu1 %v22304_v0  ;;  %v607_v33 = vsel %vm17909_vm7, %v602_v23, %v606_v15  ;;  %v1123_v34 = vrot.slane %v1115_v25, %v17901_v27  ;;  %v611_v35 = vor.u32 %v610_v28, %v606_v15  ;;  %v632_v37 = vshll.u32 %v17970_v48, 16  ;;  %v16030_v15 = vld.sshfl [vmem:[%s22290_s0 + $0x30] sm:$0x33 pattern:$0x76325410] }
  0x4c   :  { %v1116_v39 = vcombine.low %v597_v22, %v607_v33  ;;  %v620_v42 = vrot.slane %v618_v30, 6  ;;  %v626_v43 = vrot.slane %v624_v31, 7  ;;  %v631_v44 = vrot.slane %v629_v32, 6 }
  0x4d   :  { %v612_v46 = vrot.slane %v611_v35, 2  ;;  %v634_v47 = vrot.slane %v632_v37, 7  ;;  %v638_v50 = vshll.u32 %v17984_v6, 16  ;;  %v642_v51 = vshrl.u32 %v17984_v6, 16 }
  0x4e   :  { %v1130_v52 = vrot.slane %v1116_v39, %v17901_v27  ;;  %v621_v53 = vor.u32 %v620_v42, %v616_v29  ;;  %v648_v54 = vshll.u32 %v16027_v26, 16  ;;  %v18015_v55 = vcombine.high %v16027_v26, %v16027_v26  ;;  %v16031_v31 = vld.sshfl [vmem:[%s22290_s0 + $0x34] sm:$0x33 pattern:$0x76325410] }
  0x4f   :  { %v617_v48 = vsel %vm17909_vm7, %v612_v46, %v616_v29  ;;  %v635_v56 = vor.u32 %v634_v47, %v631_v44  ;;  %v640_v57 = vrot.slane %v638_v50, 7  ;;  %v644_v58 = vrot.slane %v642_v51, 6 }
  0x50   :  { %v1131_v59 = vcombine.low %v1123_v34, %v1130_v52  ;;  %v622_v60 = vrot.slane %v621_v53, 2  ;;  %v650_v61 = vrot.slane %v648_v54, 7  ;;  %v18019_v62 = vcombine.high %v16028_v38, %v16028_v38 }
  0x51   :  { %v636_v63 = vrot.slane %v635_v56, 2  ;;  %v645_v1 = vor.u32 %v644_v58, %v640_v57  ;;  %v652_v2 = vshrl.u32 %v16027_v26, 16  ;;  %v658_v3 = vshll.u32 %v18015_v55, 16 }
  0x52   :  { %16077 = vmatmul.mubr.msk.bf16.gmra.mrb[8].mxu0 %vm1355_vm8, %v1131_v59  ;;  %16092 = vmatmul.mubr.msk.bf16.gmra.mrb[8].mxu1 %vm1355_vm8, %v1131_v59  ;;  %v627_v4 = vsel %vm17909_vm7, %v622_v60, %v626_v43  ;;  %v662_v7 = vshrl.u32 %v18015_v55, 16  ;;  %v668_v8 = vshll.u32 %v16028_v38, 16  ;;  %v672_v9 = vshrl.u32 %v16028_v38, 16 }
  0x53   :  { %1473 = vmatprep.mubr.bf16.mxu0 %v22304_v0  ;;  %1646 = vmatprep.mubr.bf16.mxu1 %v22304_v0  ;;  %v641_v10 = vsel %vm17909_vm7, %v636_v63, %v640_v57  ;;  %v646_v11 = vrot.slane %v645_v1, 2  ;;  %v1132_v12 = vcombine.low %v617_v48, %v627_v4  ;;  %v654_v13 = vrot.slane %v652_v2, 6  ;;  %v16032_v58 = vld.sshfl [vmem:[%s22290_s0 + $0x38] sm:$0x33 pattern:$0x76325410] }
  0x54   :  { %v660_v16 = vrot.slane %v658_v3, 7  ;;  %v664_v17 = vrot.slane %v662_v7, 6  ;;  %v670_v18 = vrot.slane %v668_v8, 7  ;;  %v674_v19 = vrot.slane %v672_v9, 6 }
  0x55   :  { %v651_v21 = vsel %vm17909_vm7, %v646_v11, %v650_v61  ;;  %v1140_v22 = vrot.slane %v1132_v12, %v17901_v27  ;;  %v655_v23 = vor.u32 %v654_v13, %v650_v61  ;;  %v678_v25 = vshll.u32 %v18019_v62, 16 }
  0x56   :  { %v1133_v26 = vcombine.low %v641_v10, %v651_v21  ;;  %v665_v28 = vor.u32 %v664_v17, %v660_v16  ;;  %v675_v29 = vor.u32 %v674_v19, %v670_v18  ;;  %v682_v30 = vshrl.u32 %v18019_v62, 16  ;;  %v16053_v19 = vld.sshfl [vmem:[%s22290_s0 + $0x3c] sm:$0x13 pattern:$0x76325410] }
  0x57   :  { %v656_v32 = vrot.slane %v655_v23, 2  ;;  %v680_v33 = vrot.slane %v678_v25, 7  ;;  %v688_v34 = vshll.u32 %v16052_v5, 16  ;;  %v18045_v35 = vcombine.high %v16030_v15, %v16030_v15 }
  0x58   :  { %v1147_v37 = vrot.slane %v1133_v26, %v17901_v27  ;;  %v666_v38 = vrot.slane %v665_v28, 2  ;;  %v676_v39 = vrot.slane %v675_v29, 2  ;;  %v684_v42 = vrot.slane %v682_v30, 6 }
  0x59   :  { %v661_v43 = vsel %vm17909_vm7, %v656_v32, %v660_v16  ;;  %v690_v44 = vrot.slane %v688_v34, 7  ;;  %v18050_v46 = vcombine.high %v16031_v31, %v16031_v31  ;;  %v432_v47 = vcombine.high %v16052_v5, %v16052_v5 }
  0x5a   :  { %v1148_v50 = vcombine.low %v1140_v22, %v1147_v37  ;;  %v671_v51 = vsel %vm17909_vm7, %v666_v38, %v670_v18  ;;  %v681_v52 = vsel %vm17909_vm7, %v676_v39, %v680_v33  ;;  %v685_v53 = vor.u32 %v684_v42, %v680_v33 }
  0x5b   :  { %v1149_v54 = vcombine.low %v661_v43, %v671_v51  ;;  %v692_v48 = vshrl.u32 %v16052_v5, 16  ;;  %v698_v56 = vshll.u32 %v432_v47, 16  ;;  %v703_v57 = vshrl.u32 %v16030_v15, 16 }
  0x5c   :  { %16078 = vmatmul.mubr.msk.bf16.gmra.mrb[12].mxu0 %vm1355_vm8, %v1148_v50  ;;  %16093 = vmatmul.mubr.msk.bf16.gmra.mrb[12].mxu1 %vm1355_vm8, %v1148_v50  ;;  %v686_v59 = vrot.slane %v685_v53, 2  ;;  %v706_v60 = vshll.u32 %v16030_v15, 16  ;;  %v712_v61 = vshll.u32 %v18045_v35, 16  ;;  %v716_v63 = vshrl.u32 %v18045_v35, 16 }
  0x5d   :  { %1483 = vmatprep.mubr.bf16.mxu0 %v22304_v0  ;;  %1656 = vmatprep.mubr.bf16.mxu1 %v22304_v0  ;;  %v1157_v1 = vrot.slane %v1149_v54, %v17901_v27  ;;  %v694_v2 = vrot.slane %v692_v48, 6  ;;  %v700_v3 = vrot.slane %v698_v56, 7  ;;  %v705_v4 = vrot.slane %v703_v57, 6 }
  0x5e   :  { %v691_v5 = vsel %vm17909_vm7, %v686_v59, %v690_v44  ;;  %v708_v7 = vrot.slane %v706_v60, 7  ;;  %v714_v8 = vrot.slane %v712_v61, 7  ;;  %v718_v9 = vrot.slane %v716_v63, 6 }
  0x5f   :  { %v1150_v10 = vcombine.low %v681_v52, %v691_v5  ;;  %v695_v11 = vor.u32 %v694_v2, %v690_v44  ;;  %v722_v12 = vshll.u32 %v16031_v31, 16  ;;  %v726_v13 = vshrl.u32 %v16031_v31, 16  ;;  %v16034_v43 = vld.sshfl [vmem:[%s22290_s0 + $0x40] sm:$0x33 pattern:$0x76325410] }
  0x60   :  { %v709_v15 = vor.u32 %v708_v7, %v705_v4  ;;  %v719_v16 = vor.u32 %v718_v9, %v714_v8  ;;  %v732_v17 = vshll.u32 %v18050_v46, 16  ;;  %v18069_v18 = vcombine.high %v16032_v58, %v16032_v58  ;;  %v16035_v60 = vld.sshfl [vmem:[%s22290_s0 + $0x44] sm:$0x33 pattern:$0x76325410] }
  0x61   :  { %v1164_v21 = vrot.slane %v1150_v10, %v17901_v27  ;;  %v696_v22 = vrot.slane %v695_v11, 2  ;;  %v724_v23 = vrot.slane %v722_v12, 7  ;;  %v728_v25 = vrot.slane %v726_v13, 6 }
  0x62   :  { %v710_v26 = vrot.slane %v709_v15, 2  ;;  %v720_v28 = vrot.slane %v719_v16, 2  ;;  %v734_v29 = vrot.slane %v732_v17, 7  ;;  %v440_v30 = vcombine.high %v16053_v19, %v16053_v19 }
  0x63   :  { %v1165_v31 = vcombine.low %v1157_v1, %v1164_v21  ;;  %v701_v32 = vsel %vm17909_vm7, %v696_v22, %v700_v3  ;;  %v729_v33 = vor.u32 %v728_v25, %v724_v23  ;;  %v736_v34 = vshrl.u32 %v18050_v46, 16 }
  0x64   :  { %v715_v37 = vsel %vm17909_vm7, %v710_v26, %v714_v8  ;;  %v725_v38 = vsel %vm17909_vm7, %v720_v28, %v724_v23  ;;  %v742_v39 = vshll.u32 %v16032_v58, 16  ;;  %v746_v42 = vshrl.u32 %v16032_v58, 16  ;;  %v16036_v26 = vld.sshfl [vmem:[%s22290_s0 + $0x48] sm:$0x33 pattern:$0x76325410] }
  0x65   :  { %16079 = vmatmul.mubr.msk.bf16.gmra.mrb[16].mxu0 %vm1355_vm8, %v1165_v31  ;;  %16094 = vmatmul.mubr.msk.bf16.gmra.mrb[16].mxu1 %vm1355_vm8, %v1165_v31  ;;  %v730_v44 = vrot.slane %v729_v33, 2  ;;  %v1166_v47 = vcombine.low %v701_v32, %v715_v37  ;;  %v738_v50 = vrot.slane %v736_v34, 6  ;;  %v752_v51 = vshll.u32 %v18069_v18, 16  ;;  %v17226_v37 = vld [vmem:[%s22291_s1 + $0x28] ss:$16 sps:$4 sm:$0x7f]  }
  0x66   :  { %1493 = vmatprep.mubr.bf16.mxu0 %v22304_v0  ;;  %1666 = vmatprep.mubr.bf16.mxu1 %v22304_v0  ;;  %v744_v52 = vrot.slane %v742_v39, 7  ;;  %v748_v53 = vrot.slane %v746_v42, 6  ;;  %v756_v54 = vshrl.u32 %v18069_v18, 16  ;;  %v762_v48 = vshll.u32 %v16053_v19, 16 }
  0x67   :  { %v735_v56 = vsel %vm17909_vm7, %v730_v44, %v734_v29  ;;  %v1174_v57 = vrot.slane %v1166_v47, %v17901_v27  ;;  %v739_v58 = vor.u32 %v738_v50, %v734_v29  ;;  %v754_v59 = vrot.slane %v752_v51, 7 }
  0x68   :  { %v1167_v61 = vcombine.low %v725_v38, %v735_v56  ;;  %v749_v63 = vor.u32 %v748_v53, %v744_v52  ;;  %v758_v1 = vrot.slane %v756_v54, 6  ;;  %v764_v2 = vrot.slane %v762_v48, 7 }
  0x69   :  { %v740_v3 = vrot.slane %v739_v58, 2  ;;  %v766_v4 = vshrl.u32 %v16053_v19, 16  ;;  %v772_v5 = vshll.u32 %v440_v30, 16  ;;  %v18097_v7 = vcombine.high %v16034_v43, %v16034_v43  ;;  %v17225_v30 = vld [vmem:[%s22291_s1 + $0x20] ss:$16 sps:$4 sm:$0x7f]  }
  0x6a   :  { %v1181_v8 = vrot.slane %v1167_v61, %v17901_v27  ;;  %v750_v9 = vrot.slane %v749_v63, 2  ;;  %v759_v10 = vor.u32 %v758_v1, %v754_v59  ;;  %v18100_v11 = vcombine.high %v16035_v60, %v16035_v60  ;;  %v16038_v63 = vld.sshfl [vmem:[%s22290_s0 + $0x50] sm:$0x33 pattern:$0x76325410] }
  0x6b   :  { %v745_v12 = vsel %vm17909_vm7, %v740_v3, %v744_v52  ;;  %v768_v13 = vrot.slane %v766_v4, 6  ;;  %v774_v15 = vrot.slane %v772_v5, 7  ;;  %v777_v16 = vshrl.u32 %v16034_v43, 16  ;;  %v17229_v52 = vld [vmem:[%s22291_s1 + $0x84] ss:$16 sps:$4 sm:$0xff]  }
  0x6c   :  { %v1182_v17 = vcombine.low %v1174_v57, %v1181_v8  ;;  %v755_v21 = vsel %vm17909_vm7, %v750_v9, %v754_v59  ;;  %v760_v19 = vrot.slane %v759_v10, 2  ;;  %v780_v22 = vshll.u32 %v16034_v43, 16  ;;  %v17232_v57 = vld [vmem:[%s22291_s1 + $0x8c] ss:$16 sps:$4 sm:$0xff]  }
  0x6d   :  { %v769_v23 = vor.u32 %v768_v13, %v764_v2  ;;  %v1183_v25 = vcombine.low %v745_v12, %v755_v21  ;;  %v779_v28 = vrot.slane %v777_v16, 6  ;;  %v786_v29 = vshll.u32 %v18097_v7, 16  ;;  %v16054_v12 = vld.sshfl [vmem:[%s22290_s0 + $0x4c] sm:$0x13 pattern:$0x76325410] }
  0x6e   :  { %16080 = vmatmul.mubr.msk.bf16.gmra.mrb[20].mxu0 %vm1355_vm8, %v1182_v17  ;;  %16095 = vmatmul.mubr.msk.bf16.gmra.mrb[20].mxu1 %vm1355_vm8, %v1182_v17  ;;  %v765_v31 = vsel %vm17909_vm7, %v760_v19, %v764_v2  ;;  %v782_v32 = vrot.slane %v780_v22, 7  ;;  %v790_v33 = vshrl.u32 %v18097_v7, 16  ;;  %v796_v34 = vshll.u32 %v16035_v60, 16 }
  0x6f   :  { %1503 = vmatprep.mubr.bf16.mxu0 %v22304_v0  ;;  %1676 = vmatprep.mubr.bf16.mxu1 %v22304_v0  ;;  %v770_v38 = vrot.slane %v769_v23, 2  ;;  %v1191_v39 = vrot.slane %v1183_v25, %v17901_v27  ;;  %v788_v42 = vrot.slane %v786_v29, 7  ;;  %v800_v43 = vshrl.u32 %v16035_v60, 16 }
  0x70   :  { %v783_v44 = vor.u32 %v782_v32, %v779_v28  ;;  %v792_v47 = vrot.slane %v790_v33, 6  ;;  %v798_v50 = vrot.slane %v796_v34, 7  ;;  %v806_v51 = vshll.u32 %v18100_v11, 16 }
  0x71   :  { %v775_v53 = vsel %vm17909_vm7, %v770_v38, %v774_v15  ;;  %v802_v54 = vrot.slane %v800_v43, 6  ;;  %v810_v48 = vshrl.u32 %v18100_v11, 16  ;;  %v816_v56 = vshll.u32 %v16036_v26, 16 }
  0x72   :  { %v1184_v58 = vcombine.low %v765_v31, %v775_v53  ;;  %v784_v59 = vrot.slane %v783_v44, 2  ;;  %v793_v60 = vor.u32 %v792_v47, %v788_v42  ;;  %v808_v61 = vrot.slane %v806_v51, 7 }
  0x73   :  { %v803_v1 = vor.u32 %v802_v54, %v798_v50  ;;  %v812_v2 = vrot.slane %v810_v48, 6  ;;  %v818_v3 = vrot.slane %v816_v56, 7  ;;  %v2074_v4 = vsel %vm1398_vm2, %v17225_v30, 0 }
  0x74   :  { %v1198_v5 = vrot.slane %v1184_v58, %v17901_v27  ;;  %v789_v8 = vsel %vm17909_vm7, %v784_v59, %v788_v42  ;;  %v794_v9 = vrot.slane %v793_v60, 2  ;;  %2088 = vmatpush1.bf16.msra.mxu0 %v2074_v4  ;;  %v2080_v10 = vsel %vm1398_vm2, %v17226_v37, 0  ;;  %v18172_v59 = vld.sshfl [vmem:[%s22290_s0 + $0x58] sm:$0x33 pattern:$0x76325410] }
  0x75   :  { %v804_v13 = vrot.slane %v803_v1, 2  ;;  %v813_v15 = vor.u32 %v812_v2, %v808_v61  ;;  %2261 = vmatpush1.bf16.msra.mxu1 %v2080_v10  ;;  %v18145_v16 = vcombine.high %v16036_v26, %v16036_v26  ;;  %v18147_v17 = vcombine.high %v16038_v63, %v16038_v63  ;;  %3271 = vmatprep.subr.bf16.mxu0 %v17229_v52 }
  0x76   :  { %v1199_v21 = vcombine.low %v1191_v39, %v1198_v5  ;;  %v799_v19 = vsel %vm17909_vm7, %v794_v9, %v798_v50  ;;  %v448_v22 = vcombine.high %v16054_v12, %v16054_v12  ;;  %v820_v23 = vshrl.u32 %v16036_v26, 16  ;;  %3444 = vmatprep.subr.bf16.mxu1 %v17232_v57  ;;  %v18165_v50 = vld.sshfl [vmem:[%s22290_s0 + $0x54] sm:$0x33 pattern:$0x76325410] }
  0x77   :  { %v809_v25 = vsel %vm17909_vm7, %v804_v13, %v808_v61  ;;  %v814_v28 = vrot.slane %v813_v15, 2  ;;  %v1200_v29 = vcombine.low %v789_v8, %v799_v19  ;;  %v826_v30 = vshll.u32 %v18145_v16, 16 }
  0x78   :  { %16081 = vmatmul.mubr.msk.bf16.gmra.mrb[24].mxu0 %vm1355_vm8, %v1199_v21  ;;  %16096 = vmatmul.mubr.msk.bf16.gmra.mrb[24].mxu1 %vm1355_vm8, %v1199_v21  ;;  %v822_v31 = vrot.slane %v820_v23, 6  ;;  %v830_v32 = vshrl.u32 %v18145_v16, 16  ;;  %v836_v33 = vshll.u32 %v16054_v12, 16  ;;  %v840_v34 = vshrl.u32 %v16054_v12, 16 }
  0x79   :  { %1513 = vmatprep.mubr.bf16.mxu0 %v22304_v0  ;;  %1686 = vmatprep.mubr.bf16.mxu1 %v22304_v0  ;;  %v819_v26 = vsel %vm17909_vm7, %v814_v28, %v818_v3  ;;  %v1208_v37 = vrot.slane %v1200_v29, %v17901_v27  ;;  %v828_v38 = vrot.slane %v826_v30, 7  ;;  %v846_v39 = vshll.u32 %v448_v22, 16  ;;  %v18195_v22 = vld.sshfl [vmem:[%s22290_s0 + $0x60] sm:$0x33 pattern:$0x76325410] }
  0x7a   :  { %v1201_v42 = vcombine.low %v809_v25, %v819_v26  ;;  %v823_v43 = vor.u32 %v822_v31, %v818_v3  ;;  %v832_v44 = vrot.slane %v830_v32, 6  ;;  %v838_v47 = vrot.slane %v836_v33, 7 }
  0x7b   :  { %v842_v51 = vrot.slane %v840_v34, 6  ;;  %v848_v52 = vrot.slane %v846_v39, 7  ;;  %v851_v53 = vshrl.u32 %v16038_v63, 16  ;;  %v854_v54 = vshll.u32 %v16038_v63, 16 }
  0x7c   :  { %v1215_v48 = vrot.slane %v1201_v42, %v17901_v27  ;;  %v824_v56 = vrot.slane %v823_v43, 2  ;;  %v833_v57 = vor.u32 %v832_v44, %v828_v38  ;;  %v860_v58 = vshll.u32 %v18147_v17, 16 }
  0x7d   :  { %v843_v60 = vor.u32 %v842_v51, %v838_v47  ;;  %v853_v61 = vrot.slane %v851_v53, 6  ;;  %v856_v1 = vrot.slane %v854_v54, 7  ;;  %v18176_v2 = vcombine.high %v18165_v50, %v18165_v50 }
  0x7e   :  { %v1216_v3 = vcombine.low %v1208_v37, %v1215_v48  ;;  %v829_v63 = vsel %vm17909_vm7, %v824_v56, %v828_v38  ;;  %v834_v4 = vrot.slane %v833_v57, 2  ;;  %v862_v5 = vrot.slane %v860_v58, 7 }
  0x7f   :  { %v844_v8 = vrot.slane %v843_v60, 2  ;;  %v857_v9 = vor.u32 %v856_v1, %v853_v61  ;;  %v18182_v10 = vcombine.high %v18172_v59, %v18172_v59  ;;  %v864_v12 = vshrl.u32 %v18147_v17, 16 }
  0x80   :  { %16082 = vmatmul.mubr.msk.bf16.gmra.mrb[28].mxu0 %vm1355_vm8, %v1216_v3  ;;  %16097 = vmatmul.mubr.msk.bf16.gmra.mrb[28].mxu1 %vm1355_vm8, %v1216_v3  ;;  %v839_v13 = vsel %vm17909_vm7, %v834_v4, %v838_v47  ;;  %v870_v15 = vshll.u32 %v18165_v50, 16  ;;  %v874_v21 = vshrl.u32 %v18165_v50, 16  ;;  %v880_v19 = vshll.u32 %v18176_v2, 16 }
  0x81   :  { %1523 = vmatprep.mubr.bf16.mxu0 %v22304_v0  ;;  %1696 = vmatprep.mubr.bf16.mxu1 %v22304_v0  ;;  %v849_v23 = vsel %vm17909_vm7, %v844_v8, %v848_v52  ;;  %v858_v25 = vrot.slane %v857_v9, 2  ;;  %v1217_v28 = vcombine.low %v829_v63, %v839_v13  ;;  %v866_v29 = vrot.slane %v864_v12, 6  ;;  %v16055_v47 = vld.sshfl [vmem:[%s22290_s0 + $0x5c] sm:$0x13 pattern:$0x76325410] }
  0x82   :  { %v872_v30 = vrot.slane %v870_v15, 7  ;;  %v876_v31 = vrot.slane %v874_v21, 6  ;;  %v882_v32 = vrot.slane %v880_v19, 7  ;;  %v884_v33 = vshrl.u32 %v18176_v2, 16 }
  0x83   :  { %v863_v34 = vsel %vm17909_vm7, %v858_v25, %v862_v5  ;;  %v1225_v26 = vrot.slane %v1217_v28, %v17901_v27  ;;  %v867_v37 = vor.u32 %v866_v29, %v862_v5  ;;  %v890_v38 = vshll.u32 %v18172_v59, 16  ;;  %v18224_v12 = vld.sshfl [vmem:[%s22290_s0 + $0x64] sm:$0x33 pattern:$0x76325410] }
  0x84   :  { %v1218_v39 = vcombine.low %v849_v23, %v863_v34  ;;  %v877_v42 = vor.u32 %v876_v31, %v872_v30  ;;  %v886_v43 = vrot.slane %v884_v33, 6  ;;  %v894_v44 = vshrl.u32 %v18172_v59, 16  ;;  %v18237_v33 = vld.sshfl [vmem:[%s22290_s0 + $0x68] sm:$0x33 pattern:$0x76325410] }
  0x85   :  { %v868_v51 = vrot.slane %v867_v37, 2  ;;  %v892_v52 = vrot.slane %v890_v38, 7  ;;  %v900_v53 = vshll.u32 %v18182_v10, 16  ;;  %v18213_v54 = vcombine.high %v18195_v22, %v18195_v22 }
  0x86   :  { %v1232_v48 = vrot.slane %v1218_v39, %v17901_v27  ;;  %v878_v56 = vrot.slane %v877_v42, 2  ;;  %v887_v57 = vor.u32 %v886_v43, %v882_v32  ;;  %v896_v58 = vrot.slane %v894_v44, 6 }
  0x87   :  { %v873_v60 = vsel %vm17909_vm7, %v868_v51, %v872_v30  ;;  %v902_v61 = vrot.slane %v900_v53, 7  ;;  %v456_v1 = vcombine.high %v16055_v47, %v16055_v47  ;;  %v904_v3 = vshrl.u32 %v18182_v10, 16 }
  0x88   :  { %v1233_v63 = vcombine.low %v1225_v26, %v1232_v48  ;;  %v883_v4 = vsel %vm17909_vm7, %v878_v56, %v882_v32  ;;  %v888_v5 = vrot.slane %v887_v57, 2  ;;  %v897_v8 = vor.u32 %v896_v58, %v892_v52 }
  0x89   :  { %v1234_v9 = vcombine.low %v873_v60, %v883_v4  ;;  %v906_v13 = vrot.slane %v904_v3, 6  ;;  %v910_v15 = vshll.u32 %v16055_v47, 16  ;;  %v914_v21 = vshrl.u32 %v16055_v47, 16 }
  0x8a   :  { %16083 = vmatmul.mubr.msk.bf16.gmra.mrb[32].mxu0 %vm1355_vm8, %v1233_v63  ;;  %16098 = vmatmul.mubr.msk.bf16.gmra.mrb[32].mxu1 %vm1355_vm8, %v1233_v63  ;;  %v893_v19 = vsel %vm17909_vm7, %v888_v5, %v892_v52  ;;  %v898_v23 = vrot.slane %v897_v8, 2  ;;  %v920_v25 = vshll.u32 %v456_v1, 16  ;;  %v925_v28 = vshrl.u32 %v18195_v22, 16 }
  0x8b   :  { %1533 = vmatprep.mubr.bf16.mxu0 %v22304_v0  ;;  %1706 = vmatprep.mubr.bf16.mxu1 %v22304_v0  ;;  %v1242_v29 = vrot.slane %v1234_v9, %v17901_v27  ;;  %v907_v30 = vor.u32 %v906_v13, %v902_v61  ;;  %v912_v31 = vrot.slane %v910_v15, 7  ;;  %v916_v32 = vrot.slane %v914_v21, 6  ;;  %v16056_v5 = vld.sshfl [vmem:[%s22290_s0 + $0x6c] sm:$0x13 pattern:$0x76325410] }
  0x8c   :  { %v903_v34 = vsel %vm17909_vm7, %v898_v23, %v902_v61  ;;  %v922_v26 = vrot.slane %v920_v25, 7  ;;  %v927_v37 = vrot.slane %v925_v28, 6  ;;  %v928_v38 = vshll.u32 %v18195_v22, 16 }
  0x8d   :  { %v1235_v39 = vcombine.low %v893_v19, %v903_v34  ;;  %v908_v42 = vrot.slane %v907_v30, 2  ;;  %v917_v43 = vor.u32 %v916_v32, %v912_v31  ;;  %v934_v44 = vshll.u32 %v18213_v54, 16  ;;  %v18271_v30 = vld.sshfl [vmem:[%s22290_s0 + $0x70] sm:$0x33 pattern:$0x76325410] }
  0x8e   :  { %v930_v47 = vrot.slane %v928_v38, 7  ;;  %v938_v51 = vshrl.u32 %v18213_v54, 16  ;;  %v944_v52 = vshll.u32 %v18224_v12, 16  ;;  %v18247_v53 = vcombine.high %v18224_v12, %v18224_v12 }
  0x8f   :  { %v1249_v48 = vrot.slane %v1235_v39, %v17901_v27  ;;  %v913_v56 = vsel %vm17909_vm7, %v908_v42, %v912_v31  ;;  %v918_v57 = vrot.slane %v917_v43, 2  ;;  %v936_v58 = vrot.slane %v934_v44, 7 }
  0x90   :  { %v931_v60 = vor.u32 %v930_v47, %v927_v37  ;;  %v940_v61 = vrot.slane %v938_v51, 6  ;;  %v946_v1 = vrot.slane %v944_v52, 7  ;;  %v18254_v3 = vcombine.high %v18237_v33, %v18237_v33  ;;  %v18285_v52 = vld.sshfl [vmem:[%s22290_s0 + $0x74] sm:$0x33 pattern:$0x76325410] }
  0x91   :  { %v1250_v63 = vcombine.low %v1242_v29, %v1249_v48  ;;  %v923_v4 = vsel %vm17909_vm7, %v918_v57, %v922_v26  ;;  %v948_v8 = vshrl.u32 %v18224_v12, 16  ;;  %v954_v9 = vshll.u32 %v18247_v53, 16 }
  0x92   :  { %v932_v13 = vrot.slane %v931_v60, 2  ;;  %v941_v15 = vor.u32 %v940_v61, %v936_v58  ;;  %v1251_v21 = vcombine.low %v913_v56, %v923_v4  ;;  %v958_v19 = vshrl.u32 %v18247_v53, 16 }
  0x93   :  { %16084 = vmatmul.mubr.msk.bf16.gmra.mrb[36].mxu0 %vm1355_vm8, %v1250_v63  ;;  %16099 = vmatmul.mubr.msk.bf16.gmra.mrb[36].mxu1 %vm1355_vm8, %v1250_v63  ;;  %v950_v23 = vrot.slane %v948_v8, 6  ;;  %v956_v25 = vrot.slane %v954_v9, 7  ;;  %v964_v28 = vshll.u32 %v18237_v33, 16  ;;  %v968_v29 = vshrl.u32 %v18237_v33, 16 }
  0x94   :  { %1543 = vmatprep.mubr.bf16.mxu0 %v22304_v0  ;;  %1716 = vmatprep.mubr.bf16.mxu1 %v22304_v0  ;;  %v937_v31 = vsel %vm17909_vm7, %v932_v13, %v936_v58  ;;  %v942_v32 = vrot.slane %v941_v15, 2  ;;  %v1259_v34 = vrot.slane %v1251_v21, %v17901_v27  ;;  %v960_v26 = vrot.slane %v958_v19, 6 }
  0x95   :  { %v951_v37 = vor.u32 %v950_v23, %v946_v1  ;;  %v966_v38 = vrot.slane %v964_v28, 7  ;;  %v970_v39 = vrot.slane %v968_v29, 6  ;;  %v974_v42 = vshll.u32 %v18254_v3, 16 }
  0x96   :  { %v947_v43 = vsel %vm17909_vm7, %v942_v32, %v946_v1  ;;  %v961_v44 = vor.u32 %v960_v26, %v956_v25  ;;  %v978_v47 = vshrl.u32 %v18254_v3, 16  ;;  %v984_v51 = vshll.u32 %v16056_v5, 16 }
  0x97   :  { %v1252_v48 = vcombine.low %v937_v31, %v947_v43  ;;  %v952_v56 = vrot.slane %v951_v37, 2  ;;  %v971_v57 = vor.u32 %v970_v39, %v966_v38  ;;  %v976_v58 = vrot.slane %v974_v42, 7  ;;  %v18307_v42 = vld.sshfl [vmem:[%s22290_s0 + $0x78] sm:$0x33 pattern:$0x76325410] }
  0x98   :  { %v962_v60 = vrot.slane %v961_v44, 2  ;;  %v980_v61 = vrot.slane %v978_v47, 6  ;;  %v986_v63 = vrot.slane %v984_v51, 7  ;;  %v18289_v4 = vcombine.high %v18271_v30, %v18271_v30 }
  0x99   :  { %v1266_v1 = vrot.slane %v1252_v48, %v17901_v27  ;;  %v957_v8 = vsel %vm17909_vm7, %v952_v56, %v956_v25  ;;  %v972_v9 = vrot.slane %v971_v57, 2  ;;  %v18296_v13 = vcombine.high %v18285_v52, %v18285_v52 }
  0x9a   :  { %v967_v15 = vsel %vm17909_vm7, %v962_v60, %v966_v38  ;;  %v981_v21 = vor.u32 %v980_v61, %v976_v58  ;;  %v464_v19 = vcombine.high %v16056_v5, %v16056_v5  ;;  %v988_v23 = vshrl.u32 %v16056_v5, 16 }
  0x9b   :  { %v1267_v28 = vcombine.low %v1259_v34, %v1266_v1  ;;  %v977_v29 = vsel %vm17909_vm7, %v972_v9, %v976_v58  ;;  %v1268_v31 = vcombine.low %v957_v8, %v967_v15  ;;  %v999_v32 = vshrl.u32 %v18271_v30, 16 }
  0x9c   :  { %v982_v26 = vrot.slane %v981_v21, 2  ;;  %v990_v25 = vrot.slane %v988_v23, 6  ;;  %v994_v37 = vshll.u32 %v464_v19, 16  ;;  %v1002_v39 = vshll.u32 %v18271_v30, 16 }
  0x9d   :  { %16085 = vmatmul.mubr.msk.bf16.gmra.mrb[40].mxu0 %vm1355_vm8, %v1267_v28  ;;  %16100 = vmatmul.mubr.msk.bf16.gmra.mrb[40].mxu1 %vm1355_vm8, %v1267_v28  ;;  %v1276_v5 = vrot.slane %v1268_v31, %v17901_v27  ;;  %v1001_v34 = vrot.slane %v999_v32, 6  ;;  %v1008_v38 = vshll.u32 %v18289_v4, 16  ;;  %v1012_v43 = vshrl.u32 %v18289_v4, 16 }
  0x9e   :  { %1553 = vmatprep.mubr.bf16.mxu0 %v22304_v0  ;;  %1726 = vmatprep.mubr.bf16.mxu1 %v22304_v0  ;;  %v987_v44 = vsel %vm17909_vm7, %v982_v26, %v986_v63  ;;  %v991_v47 = vor.u32 %v990_v25, %v986_v63  ;;  %v996_v51 = vrot.slane %v994_v37, 7  ;;  %v1004_v48 = vrot.slane %v1002_v39, 7  ;;  %v16057_v23 = vld.sshfl [vmem:[%s22290_s0 + $0x7c] sm:$0x13 pattern:$0x76325410] }
  0x9f   :  { %v1269_v56 = vcombine.low %v977_v29, %v987_v44  ;;  %v1010_v57 = vrot.slane %v1008_v38, 7  ;;  %v1014_v58 = vrot.slane %v1012_v43, 6  ;;  %v1018_v60 = vshll.u32 %v18285_v52, 16 }
  0xa0   :  { %v992_v61 = vrot.slane %v991_v47, 2  ;;  %v1005_v1 = vor.u32 %v1004_v48, %v1001_v34  ;;  %v1022_v8 = vshrl.u32 %v18285_v52, 16  ;;  %v1028_v9 = vshll.u32 %v18296_v13, 16 }
  0xa1   :  { %v1283_v15 = vrot.slane %v1269_v56, %v17901_v27  ;;  %v1015_v21 = vor.u32 %v1014_v58, %v1010_v57  ;;  %v1020_v19 = vrot.slane %v1018_v60, 7  ;;  %v18324_v63 = vcombine.high %v18307_v42, %v18307_v42 }
  0xa2   :  { %v997_v28 = vsel %vm17909_vm7, %v992_v61, %v996_v51  ;;  %v1006_v29 = vrot.slane %v1005_v1, 2  ;;  %v1024_v31 = vrot.slane %v1022_v8, 6  ;;  %v1030_v32 = vrot.slane %v1028_v9, 7 }
  0xa3   :  { %v1284_v26 = vcombine.low %v1276_v5, %v1283_v15  ;;  %v1016_v25 = vrot.slane %v1015_v21, 2  ;;  %v472_v37 = vcombine.high %v16057_v23, %v16057_v23  ;;  %v1032_v39 = vshrl.u32 %v18296_v13, 16 }
  0xa4   :  { %v1011_v34 = vsel %vm17909_vm7, %v1006_v29, %v1010_v57  ;;  %v1025_v38 = vor.u32 %v1024_v31, %v1020_v19  ;;  %v1038_v43 = vshll.u32 %v18307_v42, 16  ;;  %v1042_v44 = vshrl.u32 %v18307_v42, 16 }
  0xa5   :  { %16086 = vmatmul.mubr.msk.bf16.gmra.mrb[44].mxu0 %vm1355_vm8, %v1284_v26  ;;  %16101 = vmatmul.mubr.msk.bf16.gmra.mrb[44].mxu1 %vm1355_vm8, %v1284_v26  ;;  %v1021_v47 = vsel %vm17909_vm7, %v1016_v25, %v1020_v19  ;;  %v1285_v5 = vcombine.low %v997_v28, %v1011_v34  ;;  %v1034_v51 = vrot.slane %v1032_v39, 6  ;;  %v1048_v48 = vshll.u32 %v18324_v63, 16 }
  0xa6   :  { %1563 = vmatprep.mubr.bf16.mxu0 %v22304_v0  ;;  %1736 = vmatprep.mubr.bf16.mxu1 %v22304_v0  ;;  %v1026_v56 = vrot.slane %v1025_v38, 2  ;;  %v1040_v57 = vrot.slane %v1038_v43, 7  ;;  %v1044_v58 = vrot.slane %v1042_v44, 6  ;;  %v1052_v60 = vshrl.u32 %v18324_v63, 16 }
  0xa7   :  { %v1293_v61 = vrot.slane %v1285_v5, %v17901_v27  ;;  %v1035_v1 = vor.u32 %v1034_v51, %v1030_v32  ;;  %v1050_v8 = vrot.slane %v1048_v48, 7  ;;  %v1058_v9 = vshll.u32 %v16057_v23, 16 }
  0xa8   :  { %v1031_v15 = vsel %vm17909_vm7, %v1026_v56, %v1030_v32  ;;  %v1045_v21 = vor.u32 %v1044_v58, %v1040_v57  ;;  %v1054_v19 = vrot.slane %v1052_v60, 6  ;;  %v1062_v28 = vshrl.u32 %v16057_v23, 16 }
  0xa9   :  { %v1286_v29 = vcombine.low %v1021_v47, %v1031_v15  ;;  %v1036_v31 = vrot.slane %v1035_v1, 2  ;;  %v1060_v26 = vrot.slane %v1058_v9, 7  ;;  %v1068_v25 = vshll.u32 %v472_v37, 16 }
  0xaa   :  { %v1046_v39 = vrot.slane %v1045_v21, 2  ;;  %v1055_v34 = vor.u32 %v1054_v19, %v1050_v8  ;;  %v1064_v38 = vrot.slane %v1062_v28, 6  ;;  %v17678_v1 = vld.sshfl [vmem:[%s22290_s0] sm:$0x33 pattern:$0x76325410] }
  0xab   :  { %v1300_v43 = vrot.slane %v1286_v29, %v17901_v27  ;;  %v1041_v44 = vsel %vm17909_vm7, %v1036_v31, %v1040_v57  ;;  %v1070_v48 = vrot.slane %v1068_v25, 7  ;;  %v17679_v9 = vld.sshfl [vmem:[%s22290_s0 + $0x4] sm:$0x33 pattern:$0x76325410]  ;;  %v1910_v25 = vcombine.low %v18147_v17, %v18165_v50 }
  0xac   :  { %v1051_v5 = vsel %vm17909_vm7, %v1046_v39, %v1050_v8  ;;  %v1056_v51 = vrot.slane %v1055_v34, 2  ;;  %v1065_v32 = vor.u32 %v1064_v38, %v1060_v26  ;;  %v1757_v8 = vcombine.low %v17678_v1, %v17893_v20  ;;  %v16041_v19 = vld.sshfl [vmem:[%s22290_s0 + $0x5c] sm:$0x3 pattern:$0x76325410] }
  0xad   :  { %v1301_v56 = vcombine.low %v1293_v61, %v1300_v43  ;;  %v1302_v23 = vcombine.low %v1041_v44, %v1051_v5  ;;  %v1758_v15 = vcombine.low %v17679_v9, %v17898_v24  ;;  %v17680_v24 = vld.sshfl [vmem:[%s22290_s0 + $0x8] sm:$0x33 pattern:$0x76325410]  ;;  %v1911_v38 = vcombine.low %v18176_v2, %v18172_v59 }
  0xae   :  { %v1061_v47 = vsel %vm17909_vm7, %v1056_v51, %v1060_v26  ;;  %v1066_v37 = vrot.slane %v1065_v32, 2  ;;  %v1765_v20 = vrot.slane %v1757_v8, %v17901_v27  ;;  %v1774_v29 = vcombine.low %v17680_v24, %v17916_v45  ;;  %v17681_v31 = vld.sshfl [vmem:[%s22290_s0 + $0x10] sm:$0x33 pattern:$0x76325410] }
  0xaf   :  { %16087 = vmatmul.mubr.msk.bf16.gmra.mrb[48].mxu0 %vm1355_vm8, %v1301_v56  ;;  %16102 = vmatmul.mubr.msk.bf16.gmra.mrb[48].mxu1 %vm1355_vm8, %v1301_v56  ;;  %v1310_v60 = vrot.slane %v1302_v23, %v17901_v27  ;;  %v1772_v28 = vrot.slane %v1758_v15, %v17901_v27  ;;  %v1775_v26 = vcombine.low %v16021_v40, %v17681_v31  ;;  %v16045_v39 = vld.sshfl [vmem:[%s22290_s0 + $0x6c] sm:$0x3 pattern:$0x76325410]  ;;  %v17227_v45 = vld [vmem:[%s22291_s1 + $0x80] ss:$16 sps:$4 sm:$0xff]  }
  0xb0   :  { %1573 = vmatprep.mubr.bf16.mxu0 %v22304_v0  ;;  %1746 = vmatprep.mubr.bf16.mxu1 %v22304_v0  ;;  %v1071_v57 = vsel %vm17909_vm7, %v1066_v37, %v1070_v48  ;;  %v17230_v34 = vld [vmem:[%s22291_s1 + $0x88] ss:$16 sps:$4 sm:$0xff]   ;;  %v1927_v43 = vcombine.low %v18182_v10, %v16041_v19  ;;  %v1928_v17 = vcombine.low %v18195_v22, %v18213_v54  ;;  %v17237_v5 = vld [vmem:[%s22291_s1 + $0xa0] ss:$16 sps:$4 sm:$0x7f]   ;;  %vm2754_vm12 = vcmask 1044484  }
  0xb1   :  { %v1303_v58 = vcombine.low %v1061_v47, %v1071_v57  ;;  %v1773_v50 = vcombine.low %v1765_v20, %v1772_v28  ;;  %v1782_v44 = vrot.slane %v1774_v29, %v17901_v27  ;;  %v1918_v51 = vrot.slane %v1910_v25, %v17901_v27  ;;  %v16049_v59 = vld.sshfl [vmem:[%s22290_s0 + $0x7c] sm:$0x3 pattern:$0x76325410]  ;;  %vm2755_vm14 = vmor %vm2753_vm11, %vm2754_vm12 }
  0xb2   :  { %v1944_v32 = vcombine.low %v18224_v12, %v18247_v53  ;;  %v17233_v2 = vld [vmem:[%s22291_s1 + $0xa4] ss:$16 sps:$4 sm:$0x7f]   ;;  %v17235_v10 = vld [vmem:[%s22291_s1 + $0xac] ss:$16 sps:$4 sm:$0x7f]   ;;  %v1925_v22 = vrot.slane %v1911_v38, %v17901_v27  ;;  %v1935_v54 = vrot.slane %v1927_v43, %v17901_v27  ;;  %v1942_v48 = vrot.slane %v1928_v17, %v17901_v27 }
  0xb3   :  { %v1317_v61 = vrot.slane %v1303_v58, %v17901_v27  ;;  %v1945_v12 = vcombine.low %v18237_v33, %v18254_v3  ;;  %v1789_v53 = vrot.slane %v1775_v26, %v17901_v27  ;;  %v17238_v56 = vld [vmem:[%s22291_s1 + $0xa8] ss:$16 sps:$4 sm:$0x7f]   ;;  %v1961_v47 = vcombine.low %v16045_v39, %v18271_v30 }
  0xb4   :  { %v1952_v23 = vrot.slane %v1944_v32, %v17901_v27  ;;  %v1962_v37 = vcombine.low %v18289_v4, %v18285_v52  ;;  %v18434_v57 = vcombine.low %v1918_v51, %v1925_v22  ;;  %v18436_v58 = vcombine.low %v1935_v54, %v1942_v48  ;;  %v17682_v9 = vld.sshfl [vmem:[%s22290_s0 + $0x14] sm:$0x33 pattern:$0x76325410] }
  0xb5   :  { %v1318_v21 = vcombine.low %v1310_v60, %v1317_v61  ;;  %v1959_v60 = vrot.slane %v1945_v12, %v17901_v27  ;;  %v1978_v33 = vcombine.low %v18296_v13, %v18307_v42  ;;  %v1969_v3 = vrot.slane %v1961_v47, %v17901_v27  ;;  %v17683_v40 = vld.sshfl [vmem:[%s22290_s0 + $0x18] sm:$0x33 pattern:$0x76325410] }
  0xb6   :  { %v1976_v30 = vrot.slane %v1962_v37, %v17901_v27  ;;  %v1979_v61 = vcombine.low %v18324_v63, %v16049_v59  ;;  %v3260_v13 = vsel %vm1398_vm2, %v17237_v5, 0  ;;  %v3266_v42 = vsel %vm1398_vm2, %v17238_v56, 0  ;;  %v16025_v20 = vld.sshfl [vmem:[%s22290_s0 + $0x1c] sm:$0x3 pattern:$0x76325410] }
  0xb7   :  { %16088 = vmatmul.mubr.msk.bf16.gmra.mrb[52].mxu0 %vm1355_vm8, %v1318_v21  ;;  %16103 = vmatmul.mubr.msk.bf16.gmra.mrb[52].mxu1 %vm1355_vm8, %v1318_v21  ;;  %v18446_v52 = vcombine.low %v1952_v23, %v1959_v60  ;;  %v1986_v4 = vrot.slane %v1978_v33, %v17901_v27  ;;  %v1790_v63 = vcombine.low %v1782_v44, %v1789_v53  ;;  %v17684_v29 = vld.sshfl [vmem:[%s22290_s0 + $0x20] sm:$0x33 pattern:$0x76325410]  ;;  %vm22324_vm13 = vcmask 1046534  }
  0xb8   :  { %2117 = vmatprep.mubr.bf16.mxu0 %v22304_v0  ;;  %2290 = vmatprep.mubr.bf16.mxu1 %v22304_v0  ;;  %v18453_v1 = vcombine.low %v1969_v3, %v1976_v30  ;;  %v1993_v8 = vrot.slane %v1979_v61, %v17901_v27  ;;  %v1791_v15 = vcombine.low %v17918_v49, %v17682_v9  ;;  %v16029_v38 = vld.sshfl [vmem:[%s22290_s0 + $0x2c] sm:$0x3 pattern:$0x76325410]  ;;  %vm18591_vm15 = vmor %vm2755_vm14, %vm22324_vm13  ;;  %vm22321_vm0 = vcmask 1047559  }
  0xb9   :  { %v1792_v21 = vcombine.low %v17955_v36, %v17683_v40  ;;  %v1808_v24 = vcombine.low %v17957_v41, %v16025_v20  ;;  %v1809_v31 = vcombine.low %v17684_v29, %v17984_v6  ;;  %v17685_v41 = vld.sshfl [vmem:[%s22290_s0 + $0x24] sm:$0x33 pattern:$0x76325410]  ;;  %vm22319_vm1 = vsmask.f32 256 }
  0xba   :  { %v18466_v19 = vcombine.low %v1986_v4, %v1993_v8  ;;  %v1799_v49 = vrot.slane %v1791_v15, %v17901_v27  ;;  %v17686_v6 = vld.sshfl [vmem:[%s22290_s0 + $0x28] sm:$0x33 pattern:$0x76325410]  ;;  %v5287_v29 = vld [vmem:[#allocation2] sm:$0x1]  ;;  %vm18896_vm4 = vmand %vm2751_vm9, %vm22319_vm1 }
  0xbb   :  { %v1806_v28 = vrot.slane %v1792_v21, %v17901_v27  ;;  %v1816_v26 = vrot.slane %v1808_v24, %v17901_v27  ;;  %v1823_v25 = vrot.slane %v1809_v31, %v17901_v27  ;;  %v17688_v44 = vld.sshfl [vmem:[%s22290_s0 + $0x34] sm:$0x33 pattern:$0x76325410]  ;;  %vm5343_vm3 = vcmask 785415  }
  0xbc   :  { %v1843_v5 = vcombine.low %v18045_v35, %v17688_v44  ;;  %v16033_v51 = vld.sshfl [vmem:[%s22290_s0 + $0x3c] sm:$0x3 pattern:$0x76325410]  ;;  %vm5338_vm5 = vsmask.f32 7966 }
  0xbd   :  { %v1807_v36 = vcombine.low %v1799_v49, %v1806_v28  ;;  %v1824_v39 = vcombine.low %v1816_v26, %v1823_v25  ;;  %v17689_v35 = vld.sshfl [vmem:[%s22290_s0 + $0x38] sm:$0x33 pattern:$0x76325410]  ;;  %v1860_v22 = vcombine.low %v18069_v18, %v16033_v51  ;;  %vm18910_vm7 = vmand %vm22321_vm0, %vm5338_vm5  ;;  %vm22329_vm9 = vcmask 1043459  }
  0xbe   :  { %v1857_v59 = vrot.slane %v1843_v5, %v17901_v27  ;;  %v17690_v53 = vld.sshfl [vmem:[%s22290_s0 + $0x40] sm:$0x33 pattern:$0x76325410]  ;;  %vm7305_vm11 = vcmask 1045509   ;;  %vm22320_vm14 = vcmask 1041409  }
  0xbf   :  { %16113 = vmatmul.mubr.msk.bf16.vlgmr.msra.gmra.mrb[0].mxu0 %vm1355_vm8, %v1773_v50  ;;  %16128 = vmatmul.mubr.msk.bf16.vlgmr.msra.gmra.mrb[0].mxu1 %vm1355_vm8, %v1773_v50  ;;  %v1874_v48 = vrot.slane %v1860_v22, %v17901_v27  ;;  %v17691_v18 = vld.sshfl [vmem:[%s22290_s0 + $0x44] sm:$0x33 pattern:$0x76325410] }
  0xc0   :  { %3272 = vmatpush1.bf16.msra.mxu0 %v17227_v45  ;;  %3445 = vmatpush1.bf16.msra.mxu1 %v17230_v34  ;;  %v1825_v45 = vcombine.low %v17685_v41, %v18015_v55  ;;  %v1826_v34 = vcombine.low %v17686_v6, %v18019_v62  ;;  %v17687_v62 = vld.sshfl [vmem:[%s22290_s0 + $0x30] sm:$0x33 pattern:$0x76325410]  ;;  %v1877_v56 = vcombine.low %v17691_v18, %v18100_v11 }
  0xc1   :  { %2127 = vmatprep.mubr.bf16.mxu0 %v22304_v0  ;;  %2300 = vmatprep.mubr.bf16.mxu1 %v22304_v0  ;;  %v1842_v50 = vcombine.low %v16029_v38, %v17687_v62  ;;  %v16037_v37 = vld.sshfl [vmem:[%s22290_s0 + $0x4c] sm:$0x3 pattern:$0x76325410] }
  0xc2   :  { %16198 = vmatprep.subr.msk.bf16.mxu0 %vm1398_vm2, %v17233_v2  ;;  %16213 = vmatprep.subr.msk.bf16.mxu1 %vm1398_vm2, %v17235_v10  ;;  %v1833_v43 = vrot.slane %v1825_v45, %v17901_v27  ;;  %v1840_v17 = vrot.slane %v1826_v34, %v17901_v27  ;;  %v1859_v10 = vcombine.low %v18050_v46, %v17689_v35  ;;  %v17692_v11 = vld.sshfl [vmem:[%s22290_s0 + $0x48] sm:$0x33 pattern:$0x76325410]  ;;  %vm5290_vm2 = vcmask 778240  }
  0xc3   :  { %v1850_v32 = vrot.slane %v1842_v50, %v17901_v27  ;;  %v1876_v46 = vcombine.low %v17690_v53, %v18097_v7  ;;  %v1891_v47 = vrot.slane %v1877_v56, %v17901_v27  ;;  %v1893_v60 = vcombine.low %v17692_v11, %v18145_v16  ;;  %v17693_v33 = vld.sshfl [vmem:[%s22290_s0 + $0x50] sm:$0x33 pattern:$0x76325410]  ;;  %vm18903_vm6 = vmand %vm5290_vm2, %vm22319_vm1 }
  0xc4   :  { %3274 = vmatpush1.bf16.msra.mxu0 %v3260_v13  ;;  %3447 = vmatpush1.bf16.msra.mxu1 %v3266_v42  ;;  %v1841_v55 = vcombine.low %v1833_v43, %v1840_v17  ;;  %v1867_v54 = vrot.slane %v1859_v10, %v17901_v27  ;;  %v1894_v3 = vcombine.low %v16037_v37, %v17693_v33  ;;  %v16142_v16 = vld.sshfl [vmem:[%s22290_s0] sm:$0x32 pattern:$0x76325410]  ;;  %vm7734_vm2 = vsmask.f32 7426 }
  0xc5   :  { %v1858_v2 = vcombine.low %v1850_v32, %v1857_v59  ;;  %v1884_v23 = vrot.slane %v1876_v46, %v17901_v27  ;;  %v1901_v30 = vrot.slane %v1893_v60, %v17901_v27  ;;  %v16143_v13 = vld.sshfl [vmem:[%s22290_s0 + $0x4] sm:$0x33 pattern:$0x76325410]  ;;  %v2502_v42 = vcombine.high %v16142_v16, %v16142_v16 }
  0xc6   :  { %v1875_v12 = vcombine.low %v1867_v54, %v1874_v48  ;;  %v1908_v61 = vrot.slane %v1894_v3, %v17901_v27  ;;  %v2510_v8 = vcombine.high %v16143_v13, %v16143_v13  ;;  %v2763_v15 = vrot.slane %v16143_v13, 7  ;;  %v16145_v31 = vld.sshfl [vmem:[%s22290_s0 + $0xc] sm:$0x13 pattern:$0x76325410] }
  0xc7   :  { %16114 = vmatmul.mubr.msk.bf16.gmra.mrb[4].mxu0 %vm1355_vm8, %v1790_v63  ;;  %16129 = vmatmul.mubr.msk.bf16.gmra.mrb[4].mxu1 %vm1355_vm8, %v1790_v63  ;;  %v1892_v7 = vcombine.low %v1884_v23, %v1891_v47  ;;  %v16144_v63 = vld.sshfl [vmem:[%s22290_s0 + $0x8] sm:$0x33 pattern:$0x76325410]  ;;  %v2760_v9 = vrot.slane %v2502_v42, 7  ;;  %v2775_v6 = vrot.slane %v16145_v31, 7 }
  0xc8   :  { %2137 = vmatprep.mubr.bf16.mxu0 %v22304_v0  ;;  %2310 = vmatprep.mubr.bf16.mxu1 %v22304_v0  ;;  %v1909_v4 = vcombine.low %v1901_v30, %v1908_v61  ;;  %v2766_v40 = vrot.slane %v2510_v8, 7  ;;  %v2518_v21 = vcombine.high %v16144_v63, %v16144_v63  ;;  %v2765_v49 = vrot.slane %v2763_v15, 2  ;;  %v16147_v34 = vld.sshfl [vmem:[%s22290_s0 + $0x14] sm:$0x33 pattern:$0x76325410] }
  0xc9   :  { %v2762_v20 = vrot.slane %v2760_v9, 2  ;;  %v2769_v28 = vrot.slane %v16144_v63, 7  ;;  %v2777_v50 = vrot.slane %v2775_v6, 2  ;;  %v2542_v51 = vcombine.high %v16147_v34, %v16147_v34 }
  0xca   :  { %v2772_v24 = vrot.slane %v2518_v21, 7  ;;  %v2767_v41 = vsel %vm18591_vm15, %v2765_v49, %v2766_v40  ;;  %v16148_v5 = vld.sshfl [vmem:[%s22290_s0 + $0x18] sm:$0x33 pattern:$0x76325410]  ;;  %v2785_v48 = vrot.slane %v16147_v34, 7 }
  0xcb   :  { %v2771_v38 = vrot.slane %v2769_v28, 2  ;;  %v2550_v22 = vcombine.high %v16148_v5, %v16148_v5  ;;  %v2791_v53 = vrot.slane %v16148_v5, 7  ;;  %v16150_v46 = vld.sshfl [vmem:[%s22290_s0 + $0x20] sm:$0x32 pattern:$0x76325410] }
  0xcc   :  { %v2774_v62 = vrot.slane %v2772_v24, 2  ;;  %v2566_v33 = vcombine.high %v16150_v46, %v16150_v46  ;;  %v16155_v5 = vld.sshfl [vmem:[%s22290_s0 + $0x34] sm:$0x33 pattern:$0x76325410] }
  0xcd   :  { %v2773_v32 = vsel %vm18591_vm15, %v2771_v38, %v2772_v24  ;;  %v2794_v47 = vrot.slane %v2550_v22, 7  ;;  %v2793_v60 = vrot.slane %v2791_v53, 2  ;;  %v16154_v38 = vld.sshfl [vmem:[%s22290_s0 + $0x30] sm:$0x32 pattern:$0x76325410] }
  0xce   :  { %v2776_v10 = vsel %vm18591_vm15, %v2774_v62, %v2775_v6  ;;  %v2804_v63 = vrot.slane %v2566_v33, 7 }
  0xcf   :  { %16115 = vmatmul.mubr.msk.bf16.gmra.mrb[8].mxu0 %vm1355_vm8, %v1807_v36  ;;  %16130 = vmatmul.mubr.msk.bf16.gmra.mrb[8].mxu1 %vm1355_vm8, %v1807_v36  ;;  %v2768_v36 = vrot.slane %v2766_v40, 2  ;;  %v2960_v18 = vcombine.low %v2773_v32, %v2776_v10  ;;  %v2795_v8 = vsel %vm18591_vm15, %v2793_v60, %v2794_v47  ;;  %v2796_v40 = vrot.slane %v2794_v47, 2  ;;  %v16156_v47 = vld.sshfl [vmem:[%s22290_s0 + $0x38] sm:$0x33 pattern:$0x76325410] }
  0xd0   :  { %2147 = vmatprep.mubr.bf16.mxu0 %v22304_v0  ;;  %2320 = vmatprep.mubr.bf16.mxu1 %v22304_v0  ;;  %v16177_v60 = vrot.slane %v16154_v38, 9 }
  0xd1   :  { %v2770_v45 = vsel %vm18591_vm15, %v2768_v36, %v2769_v28  ;;  %v2968_v30 = vrot.slane %v2960_v18, %v17901_v27 }
  0xd7   :  { %16116 = vmatmul.mubr.msk.bf16.gmra.mrb[12].mxu0 %vm1355_vm8, %v1824_v39  ;;  %16131 = vmatmul.mubr.msk.bf16.gmra.mrb[12].mxu1 %vm1355_vm8, %v1824_v39  ;;  %v2526_v39 = vcombine.high %v16145_v31, %v16145_v31  ;;  %v2806_v31 = vrot.slane %v2804_v63, 2 }
  0xd8   :  { %2157 = vmatprep.mubr.bf16.mxu0 %v22304_v0  ;;  %2330 = vmatprep.mubr.bf16.mxu1 %v22304_v0 }
  0xd9   :  { %v2778_v44 = vrot.slane %v2526_v39, 7 }
  0xdb   :  { %v2779_v54 = vsel %vm18591_vm15, %v2777_v50, %v2778_v44 }
  0xdf   :  { %16117 = vmatmul.mubr.msk.bf16.gmra.mrb[16].mxu0 %vm1355_vm8, %v1841_v55  ;;  %16132 = vmatmul.mubr.msk.bf16.gmra.mrb[16].mxu1 %vm1355_vm8, %v1841_v55  ;;  %v2944_v55 = vcombine.low %v2767_v41, %v2770_v45 }
  0xe0   :  { %2167 = vmatprep.mubr.bf16.mxu0 %v22304_v0  ;;  %2340 = vmatprep.mubr.bf16.mxu1 %v22304_v0 }
  0xe1   :  { %v2958_v35 = vrot.slane %v2944_v55, %v17901_v27 }
  0xe7   :  { %16118 = vmatmul.mubr.msk.bf16.gmra.mrb[20].mxu0 %vm1355_vm8, %v1858_v2  ;;  %16133 = vmatmul.mubr.msk.bf16.gmra.mrb[20].mxu1 %vm1355_vm8, %v1858_v2 }
  0xe8   :  { %2177 = vmatprep.mubr.bf16.mxu0 %v22304_v0  ;;  %2350 = vmatprep.mubr.bf16.mxu1 %v22304_v0 }
  0xef   :  { %16119 = vmatmul.mubr.msk.bf16.gmra.mrb[24].mxu0 %vm1355_vm8, %v1875_v12  ;;  %16134 = vmatmul.mubr.msk.bf16.gmra.mrb[24].mxu1 %vm1355_vm8, %v1875_v12  ;;  %v2788_v12 = vrot.slane %v2542_v51, 7  ;;  %v2598_v51 = vcombine.high %v16154_v38, %v16154_v38 }
  0xf0   :  { %2187 = vmatprep.mubr.bf16.mxu0 %v22304_v0  ;;  %2360 = vmatprep.mubr.bf16.mxu1 %v22304_v0 }
  0xf1   :  { %v2790_v11 = vrot.slane %v2788_v12, 2 }
  0xf3   :  { %v2792_v42 = vsel %vm18591_vm15, %v2790_v11, %v2791_v53  ;;  %v2826_v53 = vrot.slane %v2598_v51, 7 }
  0xf5   :  { %v2828_v33 = vrot.slane %v2826_v53, 2 }
  0xf7   :  { %16120 = vmatmul.mubr.msk.bf16.gmra.mrb[28].mxu0 %vm1355_vm8, %v1892_v7  ;;  %16135 = vmatmul.mubr.msk.bf16.gmra.mrb[28].mxu1 %vm1355_vm8, %v1892_v7  ;;  %v2787_v7 = vrot.slane %v2785_v48, 2 }
  0xf8   :  { %2197 = vmatprep.mubr.bf16.mxu0 %v22304_v0  ;;  %2370 = vmatprep.mubr.bf16.mxu1 %v22304_v0 }
  0xf9   :  { %v2789_v13 = vsel %vm18591_vm15, %v2787_v7, %v2788_v12  ;;  %v2606_v12 = vcombine.high %v16155_v5, %v16155_v5 }
  0xff   :  { %16121 = vmatmul.mubr.msk.bf16.gmra.mrb[32].mxu0 %vm1355_vm8, %v1909_v4  ;;  %16136 = vmatmul.mubr.msk.bf16.gmra.mrb[32].mxu1 %vm1355_vm8, %v1909_v4 }
 0x100   :  { %2207 = vmatprep.mubr.bf16.mxu0 %v22304_v0  ;;  %2380 = vmatprep.mubr.bf16.mxu1 %v22304_v0 }
 0x107   :  { %16122 = vmatmul.mubr.msk.bf16.gmra.mrb[36].mxu0 %vm1355_vm8, %v18434_v57  ;;  %16137 = vmatmul.mubr.msk.bf16.gmra.mrb[36].mxu1 %vm1355_vm8, %v18434_v57  ;;  %v16174_v57 = vrot.slane %v16142_v16, 9 }
 0x108   :  { %2217 = vmatprep.mubr.bf16.mxu0 %v22304_v0  ;;  %2390 = vmatprep.mubr.bf16.mxu1 %v22304_v0 }
 0x109   :  { %v2761_v25 = vsel %vm18591_vm15, %v16174_v57, %v2760_v9  ;;  %v16152_v9 = vld.sshfl [vmem:[%s22290_s0 + $0x28] sm:$0x33 pattern:$0x76325410] }
 0x10a   :  { %v2582_v24 = vcombine.high %v16152_v9, %v16152_v9  ;;  %v2813_v6 = vrot.slane %v16152_v9, 7 }
 0x10c   :  { %v2816_v34 = vrot.slane %v2582_v24, 7 }
 0x10f   :  { %16123 = vmatmul.mubr.msk.bf16.gmra.mrb[40].mxu0 %vm1355_vm8, %v18436_v58  ;;  %16138 = vmatmul.mubr.msk.bf16.gmra.mrb[40].mxu1 %vm1355_vm8, %v18436_v58  ;;  %v16146_v58 = vld.sshfl [vmem:[%s22290_s0 + $0x10] sm:$0x32 pattern:$0x76325410] }
 0x110   :  { %2227 = vmatprep.mubr.bf16.mxu0 %v22304_v0  ;;  %2400 = vmatprep.mubr.bf16.mxu1 %v22304_v0  ;;  %v2534_v26 = vcombine.high %v16146_v58, %v16146_v58 }
 0x112   :  { %v2782_v43 = vrot.slane %v2534_v26, 7 }
 0x114   :  { %v2784_v23 = vrot.slane %v2782_v43, 2 }
 0x116   :  { %v2786_v4 = vsel %vm18591_vm15, %v2784_v23, %v2785_v48  ;;  %v2829_v23 = vrot.slane %v16155_v5, 7 }
 0x117   :  { %16124 = vmatmul.mubr.msk.bf16.gmra.mrb[44].mxu0 %vm1355_vm8, %v18446_v52  ;;  %16139 = vmatmul.mubr.msk.bf16.gmra.mrb[44].mxu1 %vm1355_vm8, %v18446_v52  ;;  %v2764_v52 = vsel %vm18591_vm15, %v2762_v20, %v2763_v15  ;;  %v16151_v15 = vld.sshfl [vmem:[%s22290_s0 + $0x24] sm:$0x33 pattern:$0x76325410]  ;;  %v2977_v57 = vcombine.low %v2786_v4, %v2789_v13  ;;  %v2978_v20 = vcombine.low %v2792_v42, %v2795_v8 }
 0x118   :  { %2237 = vmatprep.mubr.bf16.mxu0 %v22304_v0  ;;  %2410 = vmatprep.mubr.bf16.mxu1 %v22304_v0  ;;  %v2943_v17 = vcombine.low %v2761_v25, %v2764_v52  ;;  %v2574_v28 = vcombine.high %v16151_v15, %v16151_v15  ;;  %v2807_v26 = vrot.slane %v16151_v15, 7  ;;  %v2614_v4 = vcombine.high %v16156_v47, %v16156_v47 }
 0x119   :  { %v2985_v39 = vrot.slane %v2977_v57, %v17901_v27  ;;  %v2992_v52 = vrot.slane %v2978_v20, %v17901_v27  ;;  %v2830_v9 = vsel %vm18591_vm15, %v2828_v33, %v2829_v23  ;;  %v2835_v15 = vrot.slane %v16156_v47, 7  ;;  %v16163_v33 = vld.sshfl [vmem:[%s22290_s0 + $0x54] sm:$0x33 pattern:$0x76325410] }
 0x11a   :  { %v2951_v2 = vrot.slane %v2943_v17, %v17901_v27  ;;  %v2810_v45 = vrot.slane %v2574_v28, 7  ;;  %v16153_v17 = vld.sshfl [vmem:[%s22290_s0 + $0x2c] sm:$0x13 pattern:$0x76325410]  ;;  %v2809_v50 = vrot.slane %v2807_v26, 2 }
 0x11b   :  { %v2993_v62 = vcombine.low %v2985_v39, %v2992_v52  ;;  %v2590_v22 = vcombine.high %v16153_v17, %v16153_v17  ;;  %v2838_v57 = vrot.slane %v2614_v4, 7  ;;  %v16159_v28 = vld.sshfl [vmem:[%s22290_s0 + $0x44] sm:$0x33 pattern:$0x76325410] }
 0x11c   :  { %v2959_v37 = vcombine.low %v2951_v2, %v2958_v35  ;;  %v2812_v44 = vrot.slane %v2810_v45, 2  ;;  %v2818_v2 = vrot.slane %v2816_v34, 2  ;;  %v2819_v35 = vrot.slane %v16153_v17, 7 }
 0x11d   :  { %v2822_v7 = vrot.slane %v2590_v22, 7  ;;  %v2840_v39 = vrot.slane %v2838_v57, 2 }
 0x11e   :  { %v2814_v48 = vsel %vm18591_vm15, %v2812_v44, %v2813_v6 }
 0x11f   :  { %16125 = vmatmul.mubr.msk.bf16.gmra.mrb[48].mxu0 %vm1355_vm8, %v18453_v1  ;;  %16140 = vmatmul.mubr.msk.bf16.gmra.mrb[48].mxu1 %vm1355_vm8, %v18453_v1  ;;  %v16175_v1 = vrot.slane %v16146_v58, 9  ;;  %v16176_v58 = vrot.slane %v16150_v46, 9 }
 0x120   :  { %2247 = vmatprep.mubr.bf16.mxu0 %v22304_v0  ;;  %2420 = vmatprep.mubr.bf16.mxu1 %v22304_v0 }
 0x121   :  { %v2783_v59 = vsel %vm18591_vm15, %v16175_v1, %v2782_v43  ;;  %v2805_v1 = vsel %vm18591_vm15, %v16176_v58, %v2804_v63  ;;  %v2808_v43 = vsel %vm18591_vm15, %v2806_v31, %v2807_v26  ;;  %v2827_v63 = vsel %vm18591_vm15, %v16177_v60, %v2826_v53 }
 0x122   :  { %v2961_v56 = vcombine.low %v2779_v54, %v2783_v59  ;;  %v2995_v32 = vcombine.low %v2805_v1, %v2808_v43  ;;  %v2815_v59 = vrot.slane %v2813_v6, 2  ;;  %v2811_v54 = vsel %vm18591_vm15, %v2809_v50, %v2810_v45 }
 0x123   :  { %v2837_v26 = vrot.slane %v2835_v15, 2  ;;  %v2638_v45 = vcombine.high %v16159_v28, %v16159_v28  ;;  %v2851_v50 = vrot.slane %v16159_v28, 7  ;;  %v16166_v28 = vld.sshfl [vmem:[%s22290_s0 + $0x60] sm:$0x32 pattern:$0x76325410] }
 0x124   :  { %v2975_v61 = vrot.slane %v2961_v56, %v17901_v27  ;;  %v3009_v46 = vrot.slane %v2995_v32, %v17901_v27  ;;  %v2817_v18 = vsel %vm18591_vm15, %v2815_v59, %v2816_v34  ;;  %v2820_v56 = vsel %vm18591_vm15, %v2818_v2, %v2819_v35 }
 0x125   :  { %v3012_v11 = vcombine.low %v2817_v18, %v2820_v56  ;;  %v2839_v1 = vsel %vm18591_vm15, %v2837_v26, %v2838_v57  ;;  %v2854_v44 = vrot.slane %v2638_v45, 7  ;;  %v2853_v22 = vrot.slane %v2851_v50, 2  ;;  %v16165_v26 = vld.sshfl [vmem:[%s22290_s0 + $0x5c] sm:$0x13 pattern:$0x76325410] }
 0x126   :  { %v2976_v36 = vcombine.low %v2968_v30, %v2975_v61  ;;  %v2831_v30 = vrot.slane %v2829_v23, 2  ;;  %v2832_v61 = vrot.slane %v2606_v12, 7 }
 0x127   :  { %16126 = vmatmul.mubr.msk.bf16.gmra.mrb[52].mxu0 %vm1355_vm8, %v18466_v19  ;;  %16141 = vmatmul.mubr.msk.bf16.gmra.mrb[52].mxu1 %vm1355_vm8, %v18466_v19  ;;  %v16149_v19 = vld.sshfl [vmem:[%s22290_s0 + $0x1c] sm:$0x13 pattern:$0x76325410]  ;;  %v3026_v8 = vrot.slane %v3012_v11, %v17901_v27 }
 0x128   :  { %3303 = vmatprep.mubr.bf16.mxu0 %v22304_v0  ;;  %3476 = vmatprep.mubr.bf16.mxu1 %v22304_v0  ;;  %v2558_v3 = vcombine.high %v16149_v19, %v16149_v19  ;;  %v2797_v16 = vrot.slane %v16149_v19, 7  ;;  %v3011_v19 = vcombine.low %v2811_v54, %v2814_v48  ;;  %v2834_v24 = vrot.slane %v2832_v61, 2  ;;  %v16162_v48 = vld.sshfl [vmem:[%s22290_s0 + $0x50] sm:$0x32 pattern:$0x76325410] }
 0x129   :  { %v2856_v54 = vrot.slane %v2854_v44, 2  ;;  %v2662_v47 = vcombine.high %v16162_v48, %v16162_v48 }
 0x12a   :  { %v2800_v21 = vrot.slane %v2558_v3, 7  ;;  %v2799_v49 = vrot.slane %v2797_v16, 2  ;;  %v2798_v25 = vsel %vm18591_vm15, %v2796_v40, %v2797_v16  ;;  %v16157_v16 = vld.sshfl [vmem:[%s22290_s0 + $0x3c] sm:$0x13 pattern:$0x76325410]  ;;  %v3019_v13 = vrot.slane %v3011_v19, %v17901_v27 }
 0x12b   :  { %v2833_v40 = vsel %vm18591_vm15, %v2831_v30, %v2832_v61  ;;  %v2841_v20 = vrot.slane %v16157_v16, 7  ;;  %v2836_v38 = vsel %vm18591_vm15, %v2834_v24, %v2835_v15  ;;  %v2855_v19 = vsel %vm18591_vm15, %v2853_v22, %v2854_v44 }
 0x12c   :  { %v2801_v41 = vsel %vm18591_vm15, %v2799_v49, %v2800_v21  ;;  %v2622_v21 = vcombine.high %v16157_v16, %v16157_v16  ;;  %v16158_v49 = vld.sshfl [vmem:[%s22290_s0 + $0x40] sm:$0x32 pattern:$0x76325410]  ;;  %v3027_v58 = vcombine.low %v3019_v13, %v3026_v8  ;;  %v3029_v31 = vcombine.low %v2830_v9, %v2833_v40 }
 0x12d   :  { %v2994_v55 = vcombine.low %v2798_v25, %v2801_v41  ;;  %v2630_v25 = vcombine.high %v16158_v49, %v16158_v49  ;;  %v2843_v52 = vrot.slane %v2841_v20, 2  ;;  %v2842_v17 = vsel %vm18591_vm15, %v2840_v39, %v2841_v20  ;;  %v16164_v9 = vld.sshfl [vmem:[%s22290_s0 + $0x58] sm:$0x33 pattern:$0x76325410] }
 0x12e   :  { %v2844_v41 = vrot.slane %v2622_v21, 7  ;;  %v3043_v34 = vrot.slane %v3029_v31, %v17901_v27  ;;  %v3045_v5 = vcombine.low %v2836_v38, %v2839_v1  ;;  %v16178_v51 = vrot.slane %v16158_v49, 9 }
 0x12f   :  { %16199 = vmatmul.mubr.msk.bf16.vlgmr.msra.gmra.mrb[0].mxu0 %vm1355_vm8, %v2959_v37  ;;  %16214 = vmatmul.mubr.msk.bf16.vlgmr.msra.gmra.mrb[0].mxu1 %vm1355_vm8, %v2959_v37  ;;  %v3002_v10 = vrot.slane %v2994_v55, %v17901_v27  ;;  %v2821_v37 = vrot.slane %v2819_v35, 2  ;;  %v2848_v43 = vrot.slane %v2630_v25, 7  ;;  %v16161_v35 = vld.sshfl [vmem:[%s22290_s0 + $0x4c] sm:$0x13 pattern:$0x76325410]  ;;  %v2694_v25 = vcombine.high %v16166_v28, %v16166_v28 }
 0x130   :  { %3313 = vmatprep.mubr.bf16.mxu0 %v22304_v0  ;;  %3486 = vmatprep.mubr.bf16.mxu1 %v22304_v0  ;;  %v2845_v55 = vsel %vm18591_vm15, %v2843_v52, %v2844_v41  ;;  %v3053_v53 = vrot.slane %v3045_v5, %v17901_v27  ;;  %v2654_v23 = vcombine.high %v16161_v35, %v16161_v35  ;;  %v2863_v11 = vrot.slane %v16161_v35, 7  ;;  %v16167_v5 = vld.sshfl [vmem:[%s22290_s0 + $0x64] sm:$0x33 pattern:$0x76325410] }
 0x131   :  { %v3010_v3 = vcombine.low %v3002_v10, %v3009_v46  ;;  %v2823_v42 = vsel %vm18591_vm15, %v2821_v37, %v2822_v7  ;;  %v3046_v32 = vcombine.low %v2842_v17, %v2845_v55  ;;  %v2850_v59 = vrot.slane %v2848_v43, 2 }
 0x132   :  { %v2849_v46 = vsel %vm18591_vm15, %v16178_v51, %v2848_v43  ;;  %v2866_v4 = vrot.slane %v2654_v23, 7  ;;  %v2865_v13 = vrot.slane %v2863_v11, 2  ;;  %v2870_v8 = vrot.slane %v2662_v47, 7 }
 0x133   :  { %v3060_v18 = vrot.slane %v3046_v32, %v17901_v27  ;;  %v2852_v56 = vsel %vm18591_vm15, %v2850_v59, %v2851_v50  ;;  %v2873_v24 = vrot.slane %v16163_v33, 7  ;;  %v2879_v31 = vrot.slane %v16164_v9, 7 }
 0x134   :  { %v3062_v30 = vcombine.low %v2849_v46, %v2852_v56  ;;  %v2867_v20 = vsel %vm18591_vm15, %v2865_v13, %v2866_v4  ;;  %v2872_v45 = vrot.slane %v2870_v8, 2  ;;  %v2686_v43 = vcombine.high %v16165_v26, %v16165_v26  ;;  %v16170_v4 = vld.sshfl [vmem:[%s22290_s0 + $0x70] sm:$0x32 pattern:$0x76325410] }
 0x135   :  { %v2881_v38 = vrot.slane %v2879_v31, 2  ;;  %v2885_v17 = vrot.slane %v16165_v26, 7  ;;  %v2892_v55 = vrot.slane %v2694_v25, 7 }
 0x136   :  { %v3070_v15 = vrot.slane %v3062_v30, %v17901_v27  ;;  %v2874_v44 = vsel %vm18591_vm15, %v2872_v45, %v2873_v24  ;;  %v2888_v22 = vrot.slane %v2686_v43, 7  ;;  %v16169_v30 = vld.sshfl [vmem:[%s22290_s0 + $0x6c] sm:$0x13 pattern:$0x76325410] }
 0x137   :  { %16200 = vmatmul.mubr.msk.bf16.gmra.mrb[4].mxu0 %vm1355_vm8, %v2976_v36  ;;  %16215 = vmatmul.mubr.msk.bf16.gmra.mrb[4].mxu1 %vm1355_vm8, %v2976_v36  ;;  %v3028_v36 = vcombine.low %v2823_v42, %v2827_v63  ;;  %v16179_v42 = vrot.slane %v16162_v48, 9  ;;  %v2670_v63 = vcombine.high %v16163_v33, %v16163_v33  ;;  %v2894_v48 = vrot.slane %v2892_v55, 2 }
 0x138   :  { %3323 = vmatprep.mubr.bf16.mxu0 %v22304_v0  ;;  %3496 = vmatprep.mubr.bf16.mxu1 %v22304_v0 }
 0x139   :  { %v3036_v6 = vrot.slane %v3028_v36, %v17901_v27  ;;  %v2871_v49 = vsel %vm18591_vm15, %v16179_v42, %v2870_v8  ;;  %v2678_v36 = vcombine.high %v16164_v9, %v16164_v9 }
 0x13a   :  { %v3080_v41 = vcombine.low %v2867_v20, %v2871_v49 }
 0x13b   :  { %v3044_v10 = vcombine.low %v3036_v6, %v3043_v34  ;;  %v2875_v6 = vrot.slane %v2873_v24, 2  ;;  %v2882_v1 = vrot.slane %v2678_v36, 7 }
 0x13c   :  { %v3094_v50 = vrot.slane %v3080_v41, %v17901_v27  ;;  %v16172_v41 = vld.sshfl [vmem:[%s22290_s0 + $0x78] sm:$0x33 pattern:$0x76325410] }
 0x13d   :  { %v2883_v59 = vsel %vm18591_vm15, %v2881_v38, %v2882_v1  ;;  %v2884_v35 = vrot.slane %v2882_v1, 2  ;;  %v16181_v1 = vrot.slane %v16170_v4, 9 }
 0x13f   :  { %16201 = vmatmul.mubr.msk.bf16.gmra.mrb[8].mxu0 %vm1355_vm8, %v2993_v62  ;;  %16216 = vmatmul.mubr.msk.bf16.gmra.mrb[8].mxu1 %vm1355_vm8, %v2993_v62  ;;  %v16160_v62 = vld.sshfl [vmem:[%s22290_s0 + $0x48] sm:$0x33 pattern:$0x76325410]  ;;  %v2886_v47 = vsel %vm18591_vm15, %v2884_v35, %v2885_v17 }
 0x140   :  { %3333 = vmatprep.mubr.bf16.mxu0 %v22304_v0  ;;  %3506 = vmatprep.mubr.bf16.mxu1 %v22304_v0  ;;  %v2857_v2 = vrot.slane %v16160_v62, 7  ;;  %v2646_v12 = vcombine.high %v16160_v62, %v16160_v62 }
 0x142   :  { %v2858_v37 = vsel %vm18591_vm15, %v2856_v54, %v2857_v2  ;;  %v2860_v7 = vrot.slane %v2646_v12, 7  ;;  %v2859_v60 = vrot.slane %v2857_v2, 2  ;;  %v16168_v2 = vld.sshfl [vmem:[%s22290_s0 + $0x68] sm:$0x33 pattern:$0x76325410] }
 0x143   :  { %v3063_v61 = vcombine.low %v2855_v19, %v2858_v37  ;;  %v16180_v54 = vrot.slane %v16166_v28, 9  ;;  %v2895_v12 = vrot.slane %v16167_v5, 7  ;;  %v2710_v23 = vcombine.high %v16168_v2, %v16168_v2 }
 0x144   :  { %v2862_v16 = vrot.slane %v2860_v7, 2  ;;  %v2861_v21 = vsel %vm18591_vm15, %v2859_v60, %v2860_v7  ;;  %v2901_v60 = vrot.slane %v16168_v2, 7 }
 0x145   :  { %v3077_v40 = vrot.slane %v3063_v61, %v17901_v27  ;;  %v2893_v37 = vsel %vm18591_vm15, %v16180_v54, %v2892_v55  ;;  %v2896_v7 = vsel %vm18591_vm15, %v2894_v48, %v2895_v12  ;;  %v2904_v61 = vrot.slane %v2710_v23, 7 }
 0x146   :  { %v2864_v57 = vsel %vm18591_vm15, %v2862_v16, %v2863_v11  ;;  %v3114_v13 = vcombine.low %v2893_v37, %v2896_v7  ;;  %v2897_v42 = vrot.slane %v2895_v12, 2 }
 0x147   :  { %16202 = vmatmul.mubr.msk.bf16.gmra.mrb[12].mxu0 %vm1355_vm8, %v3010_v3  ;;  %16217 = vmatmul.mubr.msk.bf16.gmra.mrb[12].mxu1 %vm1355_vm8, %v3010_v3  ;;  %v3061_v3 = vcombine.low %v3053_v53, %v3060_v18  ;;  %v3078_v39 = vcombine.low %v3070_v15, %v3077_v40  ;;  %v3079_v52 = vcombine.low %v2861_v21, %v2864_v57  ;;  %v2906_v15 = vrot.slane %v2904_v61, 2  ;;  %v16171_v57 = vld.sshfl [vmem:[%s22290_s0 + $0x74] sm:$0x33 pattern:$0x76325410] }
 0x148   :  { %3343 = vmatprep.mubr.bf16.mxu0 %v22304_v0  ;;  %3516 = vmatprep.mubr.bf16.mxu1 %v22304_v0  ;;  %v2702_v53 = vcombine.high %v16167_v5, %v16167_v5  ;;  %v2907_v40 = vrot.slane %v16169_v30, 7  ;;  %v2726_v21 = vcombine.high %v16170_v4, %v16170_v4  ;;  %v3128_v49 = vrot.slane %v3114_v13, %v17901_v27 }
 0x149   :  { %v3087_v62 = vrot.slane %v3079_v52, %v17901_v27  ;;  %v2734_v26 = vcombine.high %v16171_v57, %v16171_v57 }
 0x14a   :  { %v2898_v11 = vrot.slane %v2702_v53, 7  ;;  %v2914_v25 = vrot.slane %v2726_v21, 7  ;;  %v17241_v21 = vld [vmem:[#allocation3 + $0x1c4] ss:$16 sps:$4 sm:$0xff]  }
 0x14b   :  { %v3095_v46 = vcombine.low %v3087_v62, %v3094_v50  ;;  %v2920_v55 = vrot.slane %v2734_v26, 7  ;;  %v2742_v62 = vcombine.high %v16172_v41, %v16172_v41  ;;  %v16173_v50 = vld.sshfl [vmem:[%s22290_s0 + $0x7c] sm:$0x13 pattern:$0x76325410]  ;;  %9996 = vmatprep.subr.bf16.mxu0 %v17241_v21 }
 0x14c   :  { %v2900_v8 = vrot.slane %v2898_v11, 2  ;;  %v2899_v28 = vsel %vm18591_vm15, %v2897_v42, %v2898_v11  ;;  %v2916_v43 = vrot.slane %v2914_v25, 2  ;;  %v2750_v35 = vcombine.high %v16173_v50, %v16173_v50  ;;  %v17247_v26 = vld [vmem:[#allocation3 + $0x1e4] ss:$16 sps:$4 sm:$0xff]  }
 0x14d   :  { %v2929_v54 = vrot.slane %v16173_v50, 7  ;;  %v22369_v42 = vmov 0  ;;  %v3729_v50 = vld [vmem:[%s22292_s2] sm:$0xf] }
 0x14e   :  { %v2902_v36 = vsel %vm18591_vm15, %v2900_v8, %v2901_v60  ;;  %v22370_v42 = vsel %vm18896_vm4, 4294967295, %v22369_v42  ;;  %v5292_v8 = vld [vmem:[#allocation2 + $0x8] sm:$0x1] }
 0x14f   :  { %16203 = vmatmul.mubr.msk.bf16.gmra.mrb[16].mxu0 %vm1355_vm8, %v3027_v58  ;;  %16218 = vmatmul.mubr.msk.bf16.gmra.mrb[16].mxu1 %vm1355_vm8, %v3027_v58  ;;  %v2876_v58 = vrot.slane %v2670_v63, 7  ;;  %v2903_v63 = vrot.slane %v2901_v60, 2  ;;  %v3130_v45 = vcombine.low %v2899_v28, %v2902_v36  ;;  %v2931_v23 = vrot.slane %v2929_v54, 2  ;;  %22371 = vst [vmem:[#allocation9_spill] sm:$0xff] %v22370_v42  ;;  %v17242_v28 = vld [vmem:[#allocation3 + $0x1c8] ss:$16 sps:$4 sm:$0xff]  }
 0x150   :  { %3353 = vmatprep.mubr.bf16.mxu0 %v22304_v0  ;;  %3526 = vmatprep.mubr.bf16.mxu1 %v22304_v0 }
 0x151   :  { %v2878_v34 = vrot.slane %v2876_v58, 2  ;;  %v2877_v51 = vsel %vm18591_vm15, %v2875_v6, %v2876_v58  ;;  %v2905_v24 = vsel %vm18591_vm15, %v2903_v63, %v2904_v61  ;;  %v2718_v58 = vcombine.high %v16169_v30, %v16169_v30  ;;  %v5340_v63 = vld [vmem:[#allocation2] sm:$0x80] }
 0x152   :  { %v3096_v18 = vcombine.low %v2874_v44, %v2877_v51  ;;  %v3138_v44 = vrot.slane %v3130_v45, %v17901_v27  ;;  %v5341_v36 = vsel %vm18910_vm7, 0, %v5340_v63  ;;  %v5298_v45 = vld [vmem:[#allocation2 + $0x18] sm:$0x1] }
 0x153   :  { %v2880_v32 = vsel %vm18591_vm15, %v2878_v34, %v2879_v31  ;;  %v2908_v31 = vsel %vm18591_vm15, %v2906_v15, %v2907_v40  ;;  %v2909_v34 = vrot.slane %v2907_v40, 2  ;;  %v2910_v38 = vrot.slane %v2718_v58, 7  ;;  %v5345_v40 = vld [vmem:[#allocation2 + $0x8] sm:$0x80]  ;;  %5342 = vst [vmem:[#allocation2] sm:$0x80] %v5341_v36 }
 0x154   :  { %v3097_v56 = vcombine.low %v2880_v32, %v2883_v59  ;;  %v3104_v33 = vrot.slane %v3096_v18, %v17901_v27  ;;  %v3131_v6 = vcombine.low %v2905_v24, %v2908_v31  ;;  %v2915_v32 = vsel %vm18591_vm15, %v16181_v1, %v2914_v25  ;;  %v17244_v58 = vld [vmem:[#allocation3 + $0x1cc] ss:$16 sps:$4 sm:$0xff]  }
 0x155   :  { %v2911_v51 = vsel %vm18591_vm15, %v2909_v34, %v2910_v38  ;;  %v22372_v15 = vmov 0  ;;  %v22378_v24 = vmov 0  ;;  %10099 = vmatprep.subr.bf16.mxu1 %v17244_v58  ;;  %v17250_v25 = vld [vmem:[#allocation3 + $0x1ec] ss:$16 sps:$4 sm:$0xff]   ;;  %v5299_v38 = vsel %vm18903_vm6, 0, %v5298_v45 }
 0x156   :  { %v3145_v5 = vrot.slane %v3131_v6, %v17901_v27  ;;  %v3147_v12 = vcombine.low %v2911_v51, %v2915_v32  ;;  %v22373_v15 = vsel %vm18903_vm6, 4294967295, %v22372_v15  ;;  %10100 = vmatpush1.bf16.msra.mxu1 %v17242_v28  ;;  %v5348_v6 = vld [vmem:[#allocation2 + $0x10] sm:$0x80]  ;;  %5300 = vst [vmem:[#allocation2 + $0x18] sm:$0x1] %v5299_v38 }
 0x157   :  { %16204 = vmatmul.mubr.msk.bf16.gmra.mrb[20].mxu0 %vm1355_vm8, %v3044_v10  ;;  %16219 = vmatmul.mubr.msk.bf16.gmra.mrb[20].mxu1 %vm1355_vm8, %v3044_v10  ;;  %v2887_v10 = vrot.slane %v2885_v17, 2  ;;  %22374 = vst [vmem:[#allocation10_spill] sm:$0xff] %v22373_v15  ;;  %v5349_v1 = vsel %vm18910_vm7, 0, %v5348_v6  ;;  %v17253_v51 = vld [vmem:[#allocation3 + $0x204] ss:$16 sps:$4 sm:$0xff]  }
 0x158   :  { %3363 = vmatprep.mubr.bf16.mxu0 %v22304_v0  ;;  %3536 = vmatprep.mubr.bf16.mxu1 %v22304_v0  ;;  %v3146_v48 = vcombine.low %v3138_v44, %v3145_v5  ;;  %5350 = vst [vmem:[#allocation2 + $0x10] sm:$0x80] %v5349_v1  ;;  %v18941_v44 = vsub.s32 1, %v17878_v14  ;;  %v18944_v5 = vsub.s32 3, %v17878_v14  ;;  %v17256_v32 = vld [vmem:[#allocation3 + $0x20c] ss:$16 sps:$4 sm:$0xff]  }
 0x159   :  { %v2889_v19 = vsel %vm18591_vm15, %v2887_v10, %v2888_v22  ;;  %v2923_v10 = vrot.slane %v16172_v41, 7  ;;  %v2926_v22 = vrot.slane %v2742_v62, 7  ;;  %10101 = vmatprep.subr.bf16.mxu1 %v17250_v25  ;;  %v5295_v41 = vld [vmem:[#allocation2 + $0x10] sm:$0x1]  ;;  %v18935_v62 = vsub.s32 2, %v17878_v14 }
 0x15a   :  { %v3113_v16 = vcombine.low %v2886_v47, %v2889_v19  ;;  %v2932_v47 = vrot.slane %v2750_v35, 7  ;;  %v3155_v19 = vrot.slane %v3147_v12, %v17901_v27  ;;  %v5296_v34 = vsel %vm18896_vm4, 0, %v5295_v41  ;;  %22381 = vst [vmem:[#allocation13_spill] sm:$0xff] %v18941_v44  ;;  %22382 = vst [vmem:[#allocation14_spill] sm:$0xff] %v18944_v5  ;;  %v17254_v35 = vld [vmem:[#allocation3 + $0x208] ss:$16 sps:$4 sm:$0xff]  }
 0x15b   :  { %v2925_v18 = vrot.slane %v2923_v10, 2  ;;  %5297 = vst [vmem:[#allocation2 + $0x10] sm:$0x1] %v5296_v34  ;;  %v18956_v12 = vrot.slane %v3729_v50, %v18941_v44 }
 0x15c   :  { %v3121_v20 = vrot.slane %v3113_v16, %v17901_v27 }
 0x15d   :  { %v2927_v11 = vsel %vm18591_vm15, %v2925_v18, %v2926_v22 }
 0x15e   :  { %v3129_v52 = vcombine.low %v3121_v20, %v3128_v49  ;;  %v22375_v20 = vmov 0  ;;  %v17239_v49 = vld [vmem:[#allocation3 + $0x1c0] ss:$16 sps:$4 sm:$0xff]  }
 0x15f   :  { %16205 = vmatmul.mubr.msk.bf16.gmra.mrb[24].mxu0 %vm1355_vm8, %v3061_v3  ;;  %16220 = vmatmul.mubr.msk.bf16.gmra.mrb[24].mxu1 %vm1355_vm8, %v3061_v3  ;;  %v3111_v3 = vrot.slane %v3097_v56, %v17901_v27  ;;  %v2928_v56 = vrot.slane %v2926_v22, 2  ;;  %v22376_v20 = vsel %vm18910_vm7, 4294967295, %v22375_v20  ;;  %v18953_v22 = vrot.slane %v3729_v50, %v18935_v62 }
 0x160   :  { %3373 = vmatprep.mubr.bf16.mxu0 %v22304_v0  ;;  %3546 = vmatprep.mubr.bf16.mxu1 %v22304_v0  ;;  %22377 = vst [vmem:[#allocation11_spill] sm:$0xff] %v22376_v20 }
 0x161   :  { %v3112_v9 = vcombine.low %v3104_v33, %v3111_v3  ;;  %v2930_v60 = vsel %vm18591_vm15, %v2928_v56, %v2929_v54  ;;  %v2933_v33 = vsel %vm18591_vm15, %v2931_v23, %v2932_v47  ;;  %9997 = vmatpush1.bf16.msra.mxu0 %v17239_v49  ;;  %v17750_v54 = vmov 1966171168  }
 0x162   :  { %v3165_v61 = vcombine.low %v2930_v60, %v2933_v33  ;;  %9998 = vmatprep.subr.bf16.mxu0 %v17247_v26 }
 0x164   :  { %v3179_v16 = vrot.slane %v3165_v61, %v17901_v27 }
 0x167   :  { %16206 = vmatmul.mubr.msk.bf16.gmra.mrb[28].mxu0 %vm1355_vm8, %v3078_v39  ;;  %16221 = vmatmul.mubr.msk.bf16.gmra.mrb[28].mxu1 %vm1355_vm8, %v3078_v39  ;;  %v2917_v39 = vrot.slane %v16171_v57, 7  ;;  %v5293_v57 = vsel %vm18903_vm6, 0, %v5292_v8 }
 0x168   :  { %3383 = vmatprep.mubr.bf16.mxu0 %v22304_v0  ;;  %3556 = vmatprep.mubr.bf16.mxu1 %v22304_v0  ;;  %5294 = vst [vmem:[#allocation2 + $0x8] sm:$0x1] %v5293_v57 }
 0x169   :  { %v2919_v17 = vrot.slane %v2917_v39, 2  ;;  %v2918_v59 = vsel %vm18591_vm15, %v2916_v43, %v2917_v39  ;;  %v17245_v39 = vld [vmem:[#allocation3 + $0x1e0] ss:$16 sps:$4 sm:$0xff]   ;;  %v5351_v43 = vld [vmem:[#allocation2 + $0x18] sm:$0x80] }
 0x16a   :  { %9999 = vmatpush1.bf16.msra.mxu0 %v17245_v39 }
 0x16b   :  { %v2921_v2 = vsel %vm18591_vm15, %v2919_v17, %v2920_v55  ;;  %10000 = vmatprep.subr.bf16.mxu0 %v17253_v51 }
 0x16c   :  { %v3148_v53 = vcombine.low %v2918_v59, %v2921_v2  ;;  %v3863_v59 = vld [vmem:[%s22293_s3] sm:$0xf] }
 0x16d   :  { %v17251_v2 = vld [vmem:[#allocation3 + $0x200] ss:$16 sps:$4 sm:$0xff]   ;;  %v18965_v18 = vrot.slane %v3863_v59, %v18935_v62  ;;  %v18968_v47 = vrot.slane %v3863_v59, %v18941_v44 }
 0x16e   :  { %v3162_v37 = vrot.slane %v3148_v53, %v17901_v27  ;;  %v18959_v53 = vrot.slane %v3729_v50, %v18944_v5  ;;  %10001 = vmatpush1.bf16.msra.mxu0 %v17251_v2 }
 0x16f   :  { %16207 = vmatmul.mubr.msk.bf16.gmra.mrb[32].mxu0 %vm1355_vm8, %v3095_v46  ;;  %16222 = vmatmul.mubr.msk.bf16.gmra.mrb[32].mxu1 %vm1355_vm8, %v3095_v46  ;;  %v2922_v46 = vrot.slane %v2920_v55, 2  ;;  %v18932_v55 = vsub.s32 0, %v17878_v14 }
 0x170   :  { %3393 = vmatprep.mubr.bf16.mxu0 %v22304_v0  ;;  %3566 = vmatprep.mubr.bf16.mxu1 %v22304_v0  ;;  %v3163_v3 = vcombine.low %v3155_v19, %v3162_v37  ;;  %v18971_v19 = vrot.slane %v3863_v59, %v18944_v5 }
 0x171   :  { %v2924_v7 = vsel %vm18591_vm15, %v2922_v46, %v2923_v10  ;;  %v18950_v10 = vrot.slane %v3729_v50, %v18932_v55  ;;  %v18962_v46 = vrot.slane %v3863_v59, %v18932_v55  ;;  %vm7733_vm15 = vcmask 1047552  }
 0x172   :  { %v3164_v30 = vcombine.low %v2924_v7, %v2927_v11 }
 0x174   :  { %v3172_v4 = vrot.slane %v3164_v30, %v17901_v27 }
 0x176   :  { %v3180_v13 = vcombine.low %v3172_v4, %v3179_v16 }
 0x177   :  { %16208 = vmatmul.mubr.msk.bf16.gmra.mrb[36].mxu0 %vm1355_vm8, %v3112_v9  ;;  %16223 = vmatmul.mubr.msk.bf16.gmra.mrb[36].mxu1 %vm1355_vm8, %v3112_v9  ;;  %v5288_v9 = vsel %vm18896_vm4, 0, %v5287_v29 }
 0x178   :  { %3403 = vmatprep.mubr.bf16.mxu0 %v22304_v0  ;;  %3576 = vmatprep.mubr.bf16.mxu1 %v22304_v0  ;;  %5289 = vst [vmem:[#allocation2] sm:$0x1] %v5288_v9 }
 0x17f   :  { %16209 = vmatmul.mubr.msk.bf16.gmra.mrb[40].mxu0 %vm1355_vm8, %v3129_v52  ;;  %16224 = vmatmul.mubr.msk.bf16.gmra.mrb[40].mxu1 %vm1355_vm8, %v3129_v52  ;;  %v17248_v52 = vld [vmem:[#allocation3 + $0x1e8] ss:$16 sps:$4 sm:$0xff]  }
 0x180   :  { %3413 = vmatprep.mubr.bf16.mxu0 %v22304_v0  ;;  %3586 = vmatprep.mubr.bf16.mxu1 %v22304_v0 }
 0x181   :  { %10102 = vmatpush1.bf16.msra.mxu1 %v17248_v52 }
 0x182   :  { %10103 = vmatprep.subr.bf16.mxu1 %v17256_v32 }
 0x185   :  { %10104 = vmatpush1.bf16.msra.mxu1 %v17254_v35 }
 0x187   :  { %16210 = vmatmul.mubr.msk.bf16.gmra.mrb[44].mxu0 %vm1355_vm8, %v3146_v48  ;;  %16225 = vmatmul.mubr.msk.bf16.gmra.mrb[44].mxu1 %vm1355_vm8, %v3146_v48  ;;  %v7821_v48 = vunpack.c.l.s4 %v17750_v54 }
 0x188   :  { %3423 = vmatprep.mubr.bf16.mxu0 %v22304_v0  ;;  %3596 = vmatprep.mubr.bf16.mxu1 %v22304_v0 }
 0x189   :  { %v7822_v33 = vunpack.c.0.s8 %v7821_v48 }
 0x18b   :  { %v18990_v50 = vsub.s32 %v7822_v33, %v17878_v14 }
 0x18d   :  { %22383 = vst [vmem:[#allocation15_spill] sm:$0xff] %v18990_v50 }
 0x18f   :  { %16211 = vmatmul.mubr.msk.bf16.gmra.mrb[48].mxu0 %vm1355_vm8, %v3163_v3  ;;  %16226 = vmatmul.mubr.msk.bf16.gmra.mrb[48].mxu1 %vm1355_vm8, %v3163_v3 }
 0x190   :  { %3433 = vmatprep.mubr.bf16.mxu0 %v22304_v0  ;;  %3606 = vmatprep.mubr.bf16.mxu1 %v22304_v0 }
 0x197   :  { %16212 = vmatmul.mubr.msk.bf16.gmra.mrb[52].mxu0 %vm1355_vm8, %v3180_v13  ;;  %16227 = vmatmul.mubr.msk.bf16.gmra.mrb[52].mxu1 %vm1355_vm8, %v3180_v13  ;;  %vm18917_vm8 = vmand %vm5343_vm3, %vm5338_vm5  ;;  %vm22322_vm3 = vcmask 785408  }
 0x198   :  { %v22379_v24 = vsel %vm18917_vm8, 4294967295, %v22378_v24  ;;  %v5346_v31 = vsel %vm18917_vm8, 0, %v5345_v40  ;;  %v5352_v17 = vsel %vm18917_vm8, 0, %v5351_v43  ;;  %vm19242_vm5 = vmand %vm7733_vm15, %vm7734_vm2  ;;  %vm8698_vm15 = vsmask.f32 1284 }
 0x199   :  { %22380 = vst [vmem:[#allocation12_spill] sm:$0xff] %v22379_v24  ;;  %5347 = vst [vmem:[#allocation2 + $0x8] sm:$0x80] %v5346_v31 }
 0x19a   :  { %5353 = vst [vmem:[#allocation2 + $0x18] sm:$0x80] %v5352_v17  ;;  %vm19254_vm1 = vmand %vm22322_vm3, %vm7734_vm2  ;;  %vm8700_vm2 = vsmask.f32 2312  ;;  %vm22489_vm3 = vsmask.f32 256 }
 0x202   :  { %v3305_v56 = vpop.f32.mrb[0].mxu0  ;;  %v3478_v23 = vpop.f32.mrb[0].mxu1 }
 0x203   :  { %v3751_v37 = vmul.f32 %v18950_v10, %v3305_v56  ;;  %v3753_v7 = vmul.f32 %v18953_v22, %v3478_v23  ;;  %v3307_v11 = vpop.f32.mrb[1].mxu0  ;;  %v3480_v60 = vpop.f32.mrb[1].mxu1 }
 0x204   :  { %v3752_v3 = vmul.f32 %v18956_v12, %v3307_v11  ;;  %v3754_v30 = vmul.f32 %v18959_v53, %v3480_v60  ;;  %v3309_v61 = vpop.f32.mrb[2].mxu0  ;;  %v3482_v4 = vpop.f32.mrb[2].mxu1 }
 0x205   :  { %v3885_v16 = vadd.f32 %v18962_v46, %v3751_v37  ;;  %v3887_v13 = vadd.f32 %v18965_v18, %v3753_v7  ;;  %v3755_v29 = vmul.f32 %v18950_v10, %v3309_v61  ;;  %v3757_v8 = vmul.f32 %v18953_v22, %v3482_v4  ;;  %v3311_v63 = vpop.f32.mrb[3].mxu0  ;;  %v3484_v9 = vpop.f32.mrb[3].mxu1 }
 0x206   :  { %v3886_v40 = vadd.f32 %v18968_v47, %v3752_v3  ;;  %v3888_v21 = vadd.f32 %v18971_v19, %v3754_v30  ;;  %v3756_v57 = vmul.f32 %v18956_v12, %v3311_v63  ;;  %v3758_v49 = vmul.f32 %v18959_v53, %v3484_v9 }
 0x207   :  { %v3997_v28 = vmax.f32 %v3885_v16, 0.0  ;;  %v3999_v36 = vmax.f32 %v3887_v13, 0.0  ;;  %v3889_v58 = vadd.f32 %v18962_v46, %v3755_v29  ;;  %v3891_v31 = vadd.f32 %v18965_v18, %v3757_v8 }
 0x208   :  { %v3998_v26 = vmax.f32 %v3886_v40, 0.0  ;;  %v4000_v25 = vmax.f32 %v3888_v21, 0.0  ;;  %v3890_v39 = vadd.f32 %v18968_v47, %v3756_v57  ;;  %v3892_v52 = vadd.f32 %v18971_v19, %v3758_v49 }
 0x209   :  { %v4109_v41 = vmax.f32 %v3997_v28, %v3999_v36  ;;  %v4001_v45 = vmax.f32 %v3889_v58, 0.0  ;;  %v4003_v6 = vmax.f32 %v3891_v31, 0.0 }
 0x20a   :  { %v4110_v34 = vmax.f32 %v3998_v26, %v4000_v25  ;;  %v4002_v38 = vmax.f32 %v3890_v39, 0.0  ;;  %v4004_v1 = vmax.f32 %v3892_v52, 0.0  ;;  %v3315_v43 = vpop.f32.mrb[4].mxu0  ;;  %v3488_v17 = vpop.f32.mrb[4].mxu1 }
 0x20b   :  { %v4111_v51 = vmax.f32 %v4001_v45, %v4003_v6  ;;  %v3759_v32 = vmul.f32 %v18950_v10, %v3315_v43  ;;  %v3761_v59 = vmul.f32 %v18953_v22, %v3488_v17  ;;  %v3317_v2 = vpop.f32.mrb[5].mxu0  ;;  %v3490_v35 = vpop.f32.mrb[5].mxu1 }
 0x20c   :  { %v4221_v54 = vcombine.low %v4109_v41, %v4110_v34  ;;  %v4222_v48 = vcombine.high %v4109_v41, %v4110_v34  ;;  %v4112_v56 = vmax.f32 %v4002_v38, %v4004_v1  ;;  %v3760_v23 = vmul.f32 %v18956_v12, %v3317_v2  ;;  %v3319_v37 = vpop.f32.mrb[6].mxu0  ;;  %v18995_v7 = vpop.f32.mrb[6].mxu1 }
 0x20d   :  { %v3893_v11 = vadd.f32 %v18962_v46, %v3759_v32  ;;  %v3895_v14 = vadd.f32 %v18965_v18, %v3761_v59  ;;  %v3762_v60 = vmul.f32 %v18959_v53, %v3490_v35  ;;  %v19001_v33 = vmul.f32 %v18950_v10, %v3319_v37  ;;  %v19003_v3 = vpop.f32.mrb[7].mxu0  ;;  %v19005_v30 = vpop.f32.mrb[7].mxu1 }
 0x20e   :  { %v4229_v61 = vrot.slane %v4221_v54, %v17901_v27  ;;  %v4236_v4 = vrot.slane %v4222_v48, %v17901_v27  ;;  %v4239_v16 = vcombine.low %v4111_v51, %v4112_v56  ;;  %v4240_v13 = vcombine.high %v4111_v51, %v4112_v56 }
 0x20f   :  { %v4005_v29 = vmax.f32 %v3893_v11, 0.0  ;;  %v4007_v8 = vmax.f32 %v3895_v14, 0.0  ;;  %v19010_v63 = vadd.f32 %v18968_v47, %v3760_v23  ;;  %v19013_v9 = vadd.f32 %v18971_v19, %v3762_v60 }
 0x210   :  { %v4237_v40 = vcombine.high %v4229_v61, %v4229_v61  ;;  %v4238_v21 = vcombine.high %v4236_v4, %v4236_v4  ;;  %v16228_v57 = vrot.slane %v4229_v61, 9  ;;  %v16230_v49 = vrot.slane %v4236_v4, 9 }
 0x211   :  { %v19016_v28 = vrot.slane %v4239_v16, %v17901_v27  ;;  %v19019_v36 = vrot.slane %v4240_v13, %v17901_v27  ;;  %v19021_v58 = vmax.f32 %v4005_v29, %v4007_v8  ;;  %v22388_v15 = vmax.f32 %v19010_v63, 0.0 }
 0x212   :  { %v16229_v26 = vrot.slane %v4237_v40, 9  ;;  %v16231_v25 = vrot.slane %v4238_v21, 9  ;;  %v5173_v39 = vmax.f32 %v4229_v61, %v16228_v57  ;;  %v5175_v52 = vmax.f32 %v4236_v4, %v16230_v49  ;;  %v19024_v41 = vpop.f32.mrb[8].mxu0  ;;  %v19026_v45 = vpop.f32.mrb[8].mxu1 }
 0x213   :  { %v4255_v6 = vcombine.high %v19016_v28, %v19016_v28  ;;  %v4256_v34 = vcombine.high %v19019_v36, %v19019_v36  ;;  %v16232_v38 = vrot.slane %v19016_v28, 9  ;;  %v16234_v1 = vrot.slane %v19019_v36, 9  ;;  %v19034_v43 = vpop.f32.mrb[9].mxu0  ;;  %v19036_v17 = vpop.f32.mrb[9].mxu1 }
 0x214   :  { %v5174_v51 = vmax.f32 %v4237_v40, %v16229_v26  ;;  %v5176_v32 = vmax.f32 %v4238_v21, %v16231_v25  ;;  %v5505_v59 = vrot.slane %v5173_v39, %v18932_v55  ;;  %v5509_v2 = vrot.slane %v5173_v39, %v18935_v62  ;;  %v19040_v35 = vpop.f32.mrb[10].mxu0  ;;  %v19042_v54 = vpop.f32.mrb[10].mxu1 }
 0x215   :  { %v5521_v48 = vrot.slane %v5175_v52, %v18932_v55  ;;  %v5525_v56 = vrot.slane %v5175_v52, %v18935_v62  ;;  %v16233_v23 = vrot.slane %v4255_v6, 9  ;;  %v16235_v37 = vrot.slane %v4256_v34, 9  ;;  %v19046_v11 = vpop.f32.mrb[11].mxu0  ;;  %v19048_v14 = vpop.f32.mrb[11].mxu1 }
 0x216   :  { %v5513_v60 = vrot.slane %v5174_v51, %v18932_v55  ;;  %v5517_v61 = vrot.slane %v5174_v51, %v18935_v62  ;;  %v5529_v4 = vrot.slane %v5176_v32, %v18932_v55  ;;  %v5533_v16 = vrot.slane %v5176_v32, %v18935_v62 }
 0x217   :  { %v6622_v13 = vpack.c.bf16 %v5505_v59, %v5505_v59  ;;  %v6623_v29 = vpack.c.bf16 %v5509_v2, %v5509_v2  ;;  %v6626_v8 = vpack.c.bf16 %v5521_v48, %v5521_v48  ;;  %v6627_v40 = vpack.c.bf16 %v5525_v56, %v5525_v56 }
 0x218   :  { %v6624_v21 = vpack.c.bf16 %v5513_v60, %v5513_v60  ;;  %v6625_v57 = vpack.c.bf16 %v5517_v61, %v5517_v61  ;;  %v6628_v49 = vpack.c.bf16 %v5529_v4, %v5529_v4  ;;  %v6629_v26 = vpack.c.bf16 %v5533_v16, %v5533_v16 }
 0x219   :  { %v7070_v25 = vunpack.c.l.b16 %v6622_v13  ;;  %v7071_v39 = vunpack.c.l.b16 %v6623_v29  ;;  %v7074_v52 = vunpack.c.l.b16 %v6626_v8  ;;  %v7075_v0 = vunpack.c.l.b16 %v6627_v40 }
 0x21a   :  { %v7072_v31 = vunpack.c.l.b16 %v6624_v21  ;;  %v7073_v5 = vunpack.c.l.b16 %v6625_v57  ;;  %v7076_v44 = vunpack.c.l.b16 %v6628_v49  ;;  %v7077_v51 = vunpack.c.l.b16 %v6629_v26  ;;  %v19054_v50 = vpop.f32.mrb[12].mxu0  ;;  %v19056_v24 = vpop.f32.mrb[12].mxu1 }
 0x21b   :  { %v7294_v32 = vrot.slane %v7070_v25, 7  ;;  %v7298_v59 = vrot.slane %v7074_v52, 5  ;;  %v7313_v2 = vrot.slane %v7071_v39, 7  ;;  %v7316_v48 = vrot.slane %v7075_v0, 5  ;;  %v19058_v56 = vpop.f32.mrb[13].mxu0  ;;  %v19060_v60 = vpop.f32.mrb[13].mxu1 }
 0x21c   :  { %v7295_v61 = vrot.slane %v7072_v31, 6  ;;  %v7301_v4 = vrot.slane %v7076_v44, 4  ;;  %v7314_v16 = vrot.slane %v7073_v5, 6  ;;  %v7318_v13 = vrot.slane %v7077_v51, 4  ;;  %v19062_v29 = vpop.f32.mrb[14].mxu0  ;;  %v19064_v8 = vpop.f32.mrb[14].mxu1 }
 0x21d   :  { %v5177_v40 = vmax.f32 %v19016_v28, %v16232_v38  ;;  %v5178_v21 = vmax.f32 %v4255_v6, %v16233_v23  ;;  %v5179_v57 = vmax.f32 %v19019_v36, %v16234_v1  ;;  %v5180_v49 = vmax.f32 %v4256_v34, %v16235_v37  ;;  %v19068_v0 = vpop.f32.mrb[15].mxu0  ;;  %v19070_v26 = vpop.f32.mrb[15].mxu1  ;;  %v17259_v25 = vld [vmem:[#allocation3 + $0x224] ss:$16 sps:$4 sm:$0xff]   ;;  %v17262_v31 = vld [vmem:[#allocation3 + $0x22c] ss:$16 sps:$4 sm:$0xff]  }
 0x21e   :  { %v7297_v44 = vsel %vm22323_vm10, %v7295_v61, %v7294_v32  ;;  %v7315_v5 = vsel %vm22323_vm10, %v7314_v16, %v7313_v2  ;;  %v4008_v39 = vmax.f32 %v19013_v9, 0.0  ;;  %v19077_v28 = vadd.f32 %v18962_v46, %v19001_v33  ;;  %v17257_v6 = vld [vmem:[#allocation3 + $0x220] ss:$16 sps:$4 sm:$0xff]   ;;  %v17260_v36 = vld [vmem:[#allocation3 + $0x228] ss:$16 sps:$4 sm:$0xff]   ;;  %10002 = vmatprep.subr.bf16.mxu0 %v17259_v25  ;;  %10105 = vmatprep.subr.bf16.mxu1 %v17262_v31 }
 0x21f   :  { %v7300_v34 = vsel %vm22329_vm9, %v7298_v59, %v7297_v44  ;;  %v7317_v38 = vsel %vm22329_vm9, %v7316_v48, %v7315_v5  ;;  %v5537_v1 = vrot.slane %v5177_v40, %v18932_v55  ;;  %v5541_v23 = vrot.slane %v5177_v40, %v18935_v62  ;;  %10003 = vmatpush1.bf16.msra.mxu0 %v17257_v6 }
 0x220   :  { %v7303_v37 = vsel %vm2754_vm12, %v7301_v4, %v7300_v34  ;;  %v7319_v52 = vsel %vm2754_vm12, %v7318_v13, %v7317_v38  ;;  %v5545_v9 = vrot.slane %v5178_v21, %v18932_v55  ;;  %v5549_v33 = vrot.slane %v5178_v21, %v18935_v62  ;;  %10106 = vmatpush1.bf16.msra.mxu1 %v17260_v36 }
 0x221   :  { %v5553_v51 = vrot.slane %v5179_v57, %v18932_v55  ;;  %v5557_v32 = vrot.slane %v5179_v57, %v18935_v62  ;;  %v5561_v59 = vrot.slane %v5180_v49, %v18932_v55  ;;  %v5565_v2 = vrot.slane %v5180_v49, %v18935_v62 }
 0x222   :  { %v6630_v48 = vpack.c.bf16 %v5537_v1, %v5537_v1  ;;  %v6631_v61 = vpack.c.bf16 %v5541_v23, %v5541_v23  ;;  %v6632_v16 = vpack.c.bf16 %v5545_v9, %v5545_v9  ;;  %v6633_v4 = vpack.c.bf16 %v5549_v33, %v5549_v33  ;;  %v19091_v40 = vpop.f32.mrb[16].mxu0  ;;  %v19093_v13 = vpop.f32.mrb[16].mxu1 }
 0x223   :  { %v6634_v21 = vpack.c.bf16 %v5553_v51, %v5553_v51  ;;  %v6635_v25 = vpack.c.bf16 %v5557_v32, %v5557_v32  ;;  %v6636_v31 = vpack.c.bf16 %v5561_v59, %v5561_v59  ;;  %v6637_v44 = vpack.c.bf16 %v5565_v2, %v5565_v2  ;;  %v19095_v5 = vpop.f32.mrb[17].mxu0  ;;  %v19097_v57 = vpop.f32.mrb[17].mxu1 }
 0x224   :  { %v7078_v34 = vunpack.c.l.b16 %v6630_v48  ;;  %v7079_v49 = vunpack.c.l.b16 %v6631_v61  ;;  %v7080_v6 = vunpack.c.l.b16 %v6632_v16  ;;  %v7081_v38 = vunpack.c.l.b16 %v6633_v4  ;;  %v19099_v1 = vpop.f32.mrb[18].mxu0  ;;  %v19101_v23 = vpop.f32.mrb[18].mxu1 }
 0x225   :  { %22384 = vst [vmem:[#allocation16_spill] sm:$0xff] %v19099_v1  ;;  %22385 = vst [vmem:[#allocation17_spill] sm:$0xff] %v19101_v23  ;;  %v7082_v9 = vunpack.c.l.b16 %v6634_v21  ;;  %v7083_v33 = vunpack.c.l.b16 %v6635_v25  ;;  %v19103_v20 = vunpack.c.l.b16 %v6636_v31  ;;  %v19105_v36 = vunpack.c.l.b16 %v6637_v44  ;;  %v19107_v51 = vpop.f32.mrb[19].mxu0  ;;  %v19109_v32 = vpop.f32.mrb[19].mxu1 }
 0x226   :  { %22386 = vst [vmem:[#allocation18_spill] sm:$0xff] %v19107_v51  ;;  %22387 = vst [vmem:[#allocation19_spill] sm:$0xff] %v19109_v32  ;;  %v7304_v59 = vrot.slane %v7078_v34, 3  ;;  %v7307_v2 = vrot.slane %v7080_v6, 2  ;;  %v7320_v48 = vrot.slane %v7079_v49, 3  ;;  %v7322_v61 = vrot.slane %v7081_v38, 2 }
 0x227   :  { %v7310_v16 = vrot.slane %v7082_v9, 1  ;;  %v7324_v4 = vrot.slane %v7083_v33, 1  ;;  %v4114_v42 = vmax.f32 %v22388_v15, %v4008_v39  ;;  %v4009_v21 = vmax.f32 %v19077_v28, 0.0 }
 0x228   :  { %v7306_v25 = vsel %vm7305_vm11, %v7304_v59, %v7303_v37  ;;  %v7321_v31 = vsel %vm7305_vm11, %v7320_v48, %v7319_v52  ;;  %v3765_v44 = vmul.f32 %v18953_v22, %v18995_v7  ;;  %v3764_v34 = vmul.f32 %v18956_v12, %v19003_v3 }
 0x229   :  { %v7309_v49 = vsel %vm22324_vm13, %v7307_v2, %v7306_v25  ;;  %v7323_v6 = vsel %vm22324_vm13, %v7322_v61, %v7321_v31  ;;  %v4257_v38 = vcombine.low %v19021_v58, %v4114_v42  ;;  %v4258_v15 = vcombine.high %v19021_v58, %v4114_v42 }
 0x22a   :  { %v19125_v63 = vsel %vm22321_vm0, %v7310_v16, %v7309_v49  ;;  %v19128_v39 = vsel %vm22321_vm0, %v7324_v4, %v7323_v6  ;;  %v3899_v28 = vadd.f32 %v18965_v18, %v3765_v44  ;;  %v3898_v7 = vadd.f32 %v18968_v47, %v3764_v34  ;;  %v19132_v37 = vpop.f32.mrb[20].mxu0  ;;  %v19134_v3 = vpop.f32.mrb[20].mxu1 }
 0x22b   :  { %22389 = vst [vmem:[#allocation20_spill] sm:$0xff] %v19132_v37  ;;  %22390 = vst [vmem:[#allocation21_spill] sm:$0xff] %v19134_v3  ;;  %v4265_v52 = vrot.slane %v4257_v38, %v17901_v27  ;;  %v4272_v9 = vrot.slane %v4258_v15, %v17901_v27  ;;  %v3766_v42 = vmul.f32 %v18959_v53, %v19005_v30  ;;  %v19142_v33 = vpop.f32.mrb[21].mxu0  ;;  %v19144_v59 = vpop.f32.mrb[21].mxu1 }
 0x22c   :  { %v3767_v58 = vmul.f32 %v18950_v10, %v19024_v41  ;;  %22391 = vst [vmem:[#allocation22_spill] sm:$0xff] %v19142_v33  ;;  %22392 = vst [vmem:[#allocation23_spill] sm:$0xff] %v19144_v59  ;;  %v4011_v2 = vmax.f32 %v3899_v28, 0.0  ;;  %v4010_v48 = vmax.f32 %v3898_v7, 0.0  ;;  %v3769_v61 = vmul.f32 %v18953_v22, %v19026_v45  ;;  %v19150_v4 = vpop.f32.mrb[22].mxu0  ;;  %v19152_v34 = vpop.f32.mrb[22].mxu1 }
 0x22d   :  { %v3768_v16 = vmul.f32 %v18956_v12, %v19034_v43  ;;  %22393 = vst [vmem:[#allocation24_spill] sm:$0xff] %v19150_v4  ;;  %v4273_v25 = vcombine.high %v4265_v52, %v4265_v52  ;;  %v4274_v31 = vcombine.high %v4272_v9, %v4272_v9  ;;  %v16236_v30 = vrot.slane %v4265_v52, 9  ;;  %22394 = vst [vmem:[#allocation25_spill] sm:$0xff] %v19152_v34  ;;  %v19162_v34 = vpop.f32.mrb[23].mxu0 }
 0x22e   :  { %v16238_v44 = vrot.slane %v4272_v9, 9  ;;  %v19154_v41 = vmax.f32 %v4009_v21, %v4011_v2  ;;  %v3900_v49 = vadd.f32 %v18971_v19, %v3766_v42  ;;  %v3901_v6 = vadd.f32 %v18962_v46, %v3767_v58  ;;  %22395 = vst [vmem:[#allocation26_spill] sm:$0xff] %v19162_v34 }
 0x22f   :  { %v3903_v38 = vadd.f32 %v18965_v18, %v3769_v61  ;;  %v16237_v45 = vrot.slane %v4273_v25, 9  ;;  %v16239_v15 = vrot.slane %v4274_v31, 9  ;;  %v5181_v28 = vmax.f32 %v4265_v52, %v16236_v30 }
 0x230   :  { %v5183_v43 = vmax.f32 %v4272_v9, %v16238_v44  ;;  %v4012_v7 = vmax.f32 %v3900_v49, 0.0  ;;  %v4013_v4 = vmax.f32 %v3901_v6, 0.0  ;;  %v19160_v33 = vadd.f32 %v18968_v47, %v3768_v16 }
 0x231   :  { %v4015_v59 = vmax.f32 %v3903_v38, 0.0  ;;  %v5182_v21 = vmax.f32 %v4273_v25, %v16237_v45  ;;  %v5184_v2 = vmax.f32 %v4274_v31, %v16239_v15  ;;  %v5569_v42 = vrot.slane %v5181_v28, %v18932_v55  ;;  %v19174_v31 = vpop.f32.mrb[23].mxu1 }
 0x232   :  { %v5573_v58 = vrot.slane %v5181_v28, %v18935_v62  ;;  %v5585_v61 = vrot.slane %v5183_v43, %v18932_v55  ;;  %v5589_v52 = vrot.slane %v5183_v43, %v18935_v62  ;;  %v4116_v9 = vmax.f32 %v4010_v48, %v4012_v7  ;;  %22396 = vst [vmem:[#allocation27_spill] sm:$0xff] %v19174_v31 }
 0x233   :  { %v19168_v30 = vmax.f32 %v4013_v4, %v4015_v59  ;;  %v5577_v44 = vrot.slane %v5182_v21, %v18932_v55  ;;  %v5581_v16 = vrot.slane %v5182_v21, %v18935_v62  ;;  %v5593_v49 = vrot.slane %v5184_v2, %v18932_v55 }
 0x234   :  { %v5597_v25 = vrot.slane %v5184_v2, %v18935_v62  ;;  %v6638_v6 = vpack.c.bf16 %v5569_v42, %v5569_v42  ;;  %v6639_v38 = vpack.c.bf16 %v5573_v58, %v5573_v58  ;;  %v6642_v45 = vpack.c.bf16 %v5585_v61, %v5585_v61 }
 0x235   :  { %v6643_v15 = vpack.c.bf16 %v5589_v52, %v5589_v52  ;;  %v6640_v28 = vpack.c.bf16 %v5577_v44, %v5577_v44  ;;  %v6641_v34 = vpack.c.bf16 %v5581_v16, %v5581_v16  ;;  %v6644_v43 = vpack.c.bf16 %v5593_v49, %v5593_v49 }
 0x236   :  { %v6645_v48 = vpack.c.bf16 %v5597_v25, %v5597_v25  ;;  %v7086_v59 = vunpack.c.l.b16 %v6638_v6  ;;  %v7087_v4 = vunpack.c.l.b16 %v6639_v38  ;;  %v7090_v7 = vunpack.c.l.b16 %v6642_v45  ;;  %v17263_v38 = vld [vmem:[#allocation3 + $0x240] ss:$16 sps:$4 sm:$0xff]   ;;  %v17266_v45 = vld [vmem:[#allocation3 + $0x248] ss:$16 sps:$4 sm:$0xff]  }
 0x237   :  { %v7091_v3 = vunpack.c.l.b16 %v6643_v15  ;;  %v7088_v37 = vunpack.c.l.b16 %v6640_v28  ;;  %v7089_v21 = vunpack.c.l.b16 %v6641_v34  ;;  %v7092_v32 = vunpack.c.l.b16 %v6644_v43 }
 0x238   :  { %v7093_v51 = vunpack.c.l.b16 %v6645_v48  ;;  %v7326_v23 = vrot.slane %v7086_v59, 7  ;;  %v7331_v2 = vrot.slane %v7090_v7, 5  ;;  %v7339_v1 = vrot.slane %v7087_v4, 7 }
 0x239   :  { %v7343_v31 = vrot.slane %v7091_v3, 5  ;;  %v7329_v42 = vrot.slane %v7088_v37, 6  ;;  %v7333_v58 = vrot.slane %v7092_v32, 4  ;;  %v7341_v61 = vrot.slane %v7089_v21, 6  ;;  %v17268_v37 = vld [vmem:[#allocation3 + $0x24c] ss:$16 sps:$4 sm:$0xff]  }
 0x23a   :  { %v7345_v52 = vrot.slane %v7093_v51, 4  ;;  %v7328_v44 = vsel %vm22320_vm14, %v7326_v23, %v19103_v20  ;;  %v7340_v16 = vsel %vm22320_vm14, %v7339_v1, %v19105_v36  ;;  %v4275_v49 = vcombine.low %v19154_v41, %v4116_v9  ;;  %v17265_v36 = vld [vmem:[#allocation3 + $0x244] ss:$16 sps:$4 sm:$0xff]   ;;  %10107 = vmatprep.subr.bf16.mxu1 %v17268_v37  ;;  %v19209_v21 = vpop.f32.mrb[24].mxu1 }
 0x23b   :  { %v4276_v34 = vcombine.high %v19154_v41, %v4116_v9  ;;  %v7330_v25 = vsel %vm22323_vm10, %v7329_v42, %v7328_v44  ;;  %v7342_v6 = vsel %vm22323_vm10, %v7341_v61, %v7340_v16  ;;  %v4014_v3 = vmax.f32 %v19160_v33, 0.0  ;;  %10004 = vmatprep.subr.bf16.mxu0 %v17265_v36  ;;  %10108 = vmatpush1.bf16.msra.mxu1 %v17266_v45 }
 0x23c   :  { %v3770_v32 = vmul.f32 %v18959_v53, %v19036_v17  ;;  %v7332_v51 = vsel %vm22329_vm9, %v7331_v2, %v7330_v25  ;;  %v7344_v20 = vsel %vm22329_vm9, %v7343_v31, %v7342_v6  ;;  %v4283_v23 = vrot.slane %v4275_v49, %v17901_v27  ;;  %10005 = vmatpush1.bf16.msra.mxu0 %v17263_v38 }
 0x23d   :  { %v4290_v1 = vrot.slane %v4276_v34, %v17901_v27  ;;  %v19192_v41 = vsel %vm2754_vm12, %v7333_v58, %v7332_v51  ;;  %v19195_v9 = vsel %vm2754_vm12, %v7345_v52, %v7344_v20  ;;  %v3771_v17 = vmul.f32 %v18950_v10, %v19040_v35  ;;  %v19207_v35 = vpop.f32.mrb[24].mxu0 }
 0x23e   :  { %v3904_v33 = vadd.f32 %v18971_v19, %v3770_v32  ;;  %v4291_v31 = vcombine.high %v4283_v23, %v4283_v23  ;;  %v16240_v28 = vrot.slane %v4283_v23, 9  ;;  %v3773_v4 = vmul.f32 %v18953_v22, %v19042_v54  ;;  %v19224_v20 = vpop.f32.mrb[25].mxu0 }
 0x23f   :  { %v4292_v15 = vcombine.high %v4290_v1, %v4290_v1  ;;  %v16242_v43 = vrot.slane %v4290_v1, 9  ;;  %v19201_v59 = vadd.f32 %v18962_v46, %v3771_v17  ;;  %v3772_v7 = vmul.f32 %v18956_v12, %v19046_v11 }
 0x240   :  { %v4016_v48 = vmax.f32 %v3904_v33, 0.0  ;;  %v16241_v2 = vrot.slane %v4291_v31, 9  ;;  %v5185_v58 = vmax.f32 %v4283_v23, %v16240_v28  ;;  %v19213_v54 = vadd.f32 %v18965_v18, %v3773_v4  ;;  %v19226_v23 = vpop.f32.mrb[25].mxu1 }
 0x241   :  { %v16243_v42 = vrot.slane %v4292_v15, 9  ;;  %v5187_v61 = vmax.f32 %v4290_v1, %v16242_v43  ;;  %v19216_v11 = vadd.f32 %v18968_v47, %v3772_v7  ;;  %22397 = vst [vmem:[#allocation28_spill] sm:$0xff] %v19226_v23 }
 0x242   :  { %v4118_v52 = vmax.f32 %v4014_v3, %v4016_v48  ;;  %v5186_v16 = vmax.f32 %v4291_v31, %v16241_v2  ;;  %v5601_v34 = vrot.slane %v5185_v58, %v18932_v55  ;;  %v5605_v25 = vrot.slane %v5185_v58, %v18935_v62 }
 0x243   :  { %v5188_v49 = vmax.f32 %v4292_v15, %v16243_v42  ;;  %v5617_v6 = vrot.slane %v5187_v61, %v18932_v55  ;;  %v5621_v32 = vrot.slane %v5187_v61, %v18935_v62 }
 0x244   :  { %v4293_v3 = vcombine.low %v19168_v30, %v4118_v52  ;;  %v4294_v51 = vcombine.high %v19168_v30, %v4118_v52  ;;  %v5609_v1 = vrot.slane %v5186_v16, %v18932_v55  ;;  %v5613_v36 = vrot.slane %v5186_v16, %v18935_v62 }
 0x245   :  { %v5625_v37 = vrot.slane %v5188_v49, %v18932_v55  ;;  %v5629_v33 = vrot.slane %v5188_v49, %v18935_v62  ;;  %v6646_v17 = vpack.c.bf16 %v5601_v34, %v5601_v34  ;;  %v6647_v38 = vpack.c.bf16 %v5605_v25, %v5605_v25 }
 0x246   :  { %v6650_v45 = vpack.c.bf16 %v5617_v6, %v5617_v6  ;;  %v6651_v31 = vpack.c.bf16 %v5621_v32, %v5621_v32  ;;  %v6648_v15 = vpack.c.bf16 %v5609_v1, %v5609_v1  ;;  %v6649_v28 = vpack.c.bf16 %v5613_v36, %v5613_v36  ;;  %v19232_v1 = vpop.f32.mrb[26].mxu0  ;;  %v19234_v36 = vpop.f32.mrb[26].mxu1 }
 0x247   :  { %v6652_v43 = vpack.c.bf16 %v5625_v37, %v5625_v37  ;;  %v6653_v30 = vpack.c.bf16 %v5629_v33, %v5629_v33  ;;  %v7094_v48 = vunpack.c.l.b16 %v6646_v17  ;;  %v7095_v4 = vunpack.c.l.b16 %v6647_v38 }
 0x248   :  { %v7098_v7 = vunpack.c.l.b16 %v6650_v45  ;;  %v7099_v2 = vunpack.c.l.b16 %v6651_v31  ;;  %v7096_v42 = vunpack.c.l.b16 %v6648_v15  ;;  %v7097_v58 = vunpack.c.l.b16 %v6649_v28 }
 0x249   :  { %v7100_v61 = vunpack.c.l.b16 %v6652_v43  ;;  %v7101_v52 = vunpack.c.l.b16 %v6653_v30  ;;  %v7335_v16 = vrot.slane %v7094_v48, 3  ;;  %v7347_v44 = vrot.slane %v7095_v4, 3  ;;  %v7736_v43 = vld [vmem:[#allocation2] sm:$0xff] }
 0x24a   :  { %v7351_v23 = vrot.slane %v7098_v7, 7  ;;  %v7364_v49 = vrot.slane %v7099_v2, 7  ;;  %v7337_v34 = vrot.slane %v7096_v42, 2  ;;  %v7349_v25 = vrot.slane %v7097_v58, 2 }
 0x24b   :  { %v7352_v6 = vrot.slane %v7100_v61, 6  ;;  %v7365_v32 = vrot.slane %v7101_v52, 6  ;;  %v7336_v37 = vsel %vm7305_vm11, %v7335_v16, %v19192_v41  ;;  %v7348_v33 = vsel %vm7305_vm11, %v7347_v44, %v19195_v9  ;;  %v7741_v44 = vld [vmem:[#allocation2 + $0x8] sm:$0xff] }
 0x24c   :  { %v4301_v38 = vrot.slane %v4293_v3, %v17901_v27  ;;  %v4308_v45 = vrot.slane %v4294_v51, %v17901_v27  ;;  %v7338_v31 = vsel %vm22324_vm13, %v7337_v34, %v7336_v37  ;;  %v7350_v15 = vsel %vm22324_vm13, %v7349_v25, %v7348_v33 }
 0x24d   :  { %v7353_v28 = vsel %vm22323_vm10, %v7352_v6, %v7351_v23  ;;  %v7366_v41 = vsel %vm22323_vm10, %v7365_v32, %v7364_v49  ;;  %v7701_v3 = vpack.c.b16 %v7338_v31, %v19125_v63  ;;  %v7702_v51 = vpack.c.b16 %v7350_v15, %v19128_v39 }
 0x24e   :  { %v4309_v30 = vcombine.high %v4301_v38, %v4301_v38  ;;  %v4310_v48 = vcombine.high %v4308_v45, %v4308_v45  ;;  %v16244_v4 = vrot.slane %v4301_v38, 9  ;;  %v16246_v7 = vrot.slane %v4308_v45, 9 }
 0x24f   :  { %v4019_v23 = vmax.f32 %v19213_v54, 0.0  ;;  %v7737_v42 = vsel %vm19242_vm5, %v7701_v3, %v7736_v43  ;;  %v7742_v58 = vsel %vm19254_vm1, %v7702_v51, %v7741_v44  ;;  %v22402_v16 = vmax.f32 %v19201_v59, 0.0  ;;  %v19286_v43 = vpop.f32.mrb[27].mxu1 }
 0x250   :  { %v16245_v61 = vrot.slane %v4309_v30, 9  ;;  %v16247_v52 = vrot.slane %v4310_v48, 9  ;;  %7738 = vst [vmem:[#allocation2] sm:$0xff] %v7737_v42  ;;  %7743 = vst [vmem:[#allocation2 + $0x8] sm:$0xff] %v7742_v58  ;;  %v5189_v63 = vmax.f32 %v4301_v38, %v16244_v4  ;;  %v5191_v39 = vmax.f32 %v4308_v45, %v16246_v7 }
 0x251   :  { %v19268_v49 = vmax.f32 %v22402_v16, %v4019_v23  ;;  %v3774_v54 = vmul.f32 %v18959_v53, %v19048_v14  ;;  %v3775_v6 = vmul.f32 %v18950_v10, %v19054_v50  ;;  %v3777_v32 = vmul.f32 %v18953_v22, %v19056_v24  ;;  %v19284_v50 = vpop.f32.mrb[27].mxu0  ;;  %22403 = vst [vmem:[#allocation29_spill] sm:$0xff] %v19286_v43 }
 0x252   :  { %v5190_v34 = vmax.f32 %v4309_v30, %v16245_v61  ;;  %v5192_v25 = vmax.f32 %v4310_v48, %v16247_v52  ;;  %v5633_v37 = vrot.slane %v5189_v63, %v18932_v55  ;;  %v5637_v33 = vrot.slane %v5189_v63, %v18935_v62 }
 0x253   :  { %v5649_v38 = vrot.slane %v5191_v39, %v18932_v55  ;;  %v5653_v59 = vrot.slane %v5191_v39, %v18935_v62 }
 0x254   :  { %v5641_v45 = vrot.slane %v5190_v34, %v18932_v55  ;;  %v5645_v14 = vrot.slane %v5190_v34, %v18935_v62  ;;  %v5657_v31 = vrot.slane %v5192_v25, %v18932_v55  ;;  %v5661_v15 = vrot.slane %v5192_v25, %v18935_v62 }
 0x255   :  { %v6654_v24 = vpack.c.bf16 %v5633_v37, %v5633_v37  ;;  %v6655_v44 = vpack.c.bf16 %v5637_v33, %v5637_v33  ;;  %v6658_v3 = vpack.c.bf16 %v5649_v38, %v5649_v38  ;;  %v6659_v51 = vpack.c.bf16 %v5653_v59, %v5653_v59 }
 0x256   :  { %v6656_v30 = vpack.c.bf16 %v5641_v45, %v5641_v45  ;;  %v6657_v48 = vpack.c.bf16 %v5645_v14, %v5645_v14  ;;  %v6660_v4 = vpack.c.bf16 %v5657_v31, %v5657_v31  ;;  %v6661_v7 = vpack.c.bf16 %v5661_v15, %v5661_v15 }
 0x257   :  { %v7102_v23 = vunpack.c.l.b16 %v6654_v24  ;;  %v7103_v42 = vunpack.c.l.b16 %v6655_v44  ;;  %v7106_v58 = vunpack.c.l.b16 %v6658_v3  ;;  %v7107_v61 = vunpack.c.l.b16 %v6659_v51 }
 0x258   :  { %v7104_v52 = vunpack.c.l.b16 %v6656_v30  ;;  %v7105_v63 = vunpack.c.l.b16 %v6657_v48  ;;  %v7108_v39 = vunpack.c.l.b16 %v6660_v4  ;;  %v7109_v16 = vunpack.c.l.b16 %v6661_v7  ;;  %v17271_v7 = vld [vmem:[#allocation3 + $0x264] ss:$16 sps:$4 sm:$0xff]  }
 0x259   :  { %v7354_v34 = vrot.slane %v7102_v23, 5  ;;  %v7358_v25 = vrot.slane %v7106_v58, 3  ;;  %v7367_v2 = vrot.slane %v7103_v42, 5  ;;  %v7371_v43 = vrot.slane %v7107_v61, 3  ;;  %v17269_v61 = vld [vmem:[#allocation3 + $0x260] ss:$16 sps:$4 sm:$0xff]   ;;  %10006 = vmatprep.subr.bf16.mxu0 %v17271_v7 }
 0x25a   :  { %v7356_v37 = vrot.slane %v7104_v52, 4  ;;  %v7360_v33 = vrot.slane %v7108_v39, 2  ;;  %v7369_v38 = vrot.slane %v7105_v63, 4  ;;  %v7373_v59 = vrot.slane %v7109_v16, 2  ;;  %v17272_v52 = vld [vmem:[#allocation3 + $0x268] ss:$16 sps:$4 sm:$0xff]   ;;  %10007 = vmatpush1.bf16.msra.mxu0 %v17269_v61 }
 0x25b   :  { %v7355_v45 = vsel %vm22329_vm9, %v7354_v34, %v7353_v28  ;;  %v7368_v14 = vsel %vm22329_vm9, %v7367_v2, %v7366_v41  ;;  %v3908_v31 = vadd.f32 %v18971_v19, %v3774_v54  ;;  %v3909_v15 = vadd.f32 %v18962_v46, %v3775_v6 }
 0x25c   :  { %v7357_v24 = vsel %vm2754_vm12, %v7356_v37, %v7355_v45  ;;  %v7370_v44 = vsel %vm2754_vm12, %v7369_v38, %v7368_v14  ;;  %v3911_v3 = vadd.f32 %v18965_v18, %v3777_v32  ;;  %v3776_v51 = vmul.f32 %v18956_v12, %v19058_v56  ;;  %v17274_v32 = vld [vmem:[#allocation3 + $0x26c] ss:$16 sps:$4 sm:$0xff]  }
 0x25d   :  { %v7359_v30 = vsel %vm7305_vm11, %v7358_v25, %v7357_v24  ;;  %v7372_v48 = vsel %vm7305_vm11, %v7371_v43, %v7370_v44  ;;  %v4020_v28 = vmax.f32 %v3908_v31, 0.0  ;;  %v4021_v4 = vmax.f32 %v3909_v15, 0.0  ;;  %10109 = vmatprep.subr.bf16.mxu1 %v17274_v32  ;;  %v17280_v38 = vld [vmem:[#allocation3 + $0x28c] ss:$16 sps:$4 sm:$0xff]   ;;  %v17275_v31 = vld [vmem:[#allocation3 + $0x280] ss:$16 sps:$4 sm:$0xff]  }
 0x25e   :  { %v19300_v41 = vsel %vm22324_vm13, %v7360_v33, %v7359_v30  ;;  %v19303_v2 = vsel %vm22324_vm13, %v7373_v59, %v7372_v48  ;;  %v4023_v54 = vmax.f32 %v3911_v3, 0.0  ;;  %v3910_v6 = vadd.f32 %v18968_v47, %v3776_v51  ;;  %10110 = vmatpush1.bf16.msra.mxu1 %v17272_v52  ;;  %v17277_v33 = vld [vmem:[#allocation3 + $0x284] ss:$16 sps:$4 sm:$0xff]   ;;  %v17278_v15 = vld [vmem:[#allocation3 + $0x288] ss:$16 sps:$4 sm:$0xff]  }
 0x25f   :  { %v22404_v23 = vmax.f32 %v19216_v11, 0.0  ;;  %v3778_v42 = vmul.f32 %v18959_v53, %v19060_v60  ;;  %v3779_v43 = vmul.f32 %v18950_v10, %v19062_v29  ;;  %v3781_v58 = vmul.f32 %v18953_v22, %v19064_v8  ;;  %10008 = vmatprep.subr.bf16.mxu0 %v17277_v33  ;;  %10111 = vmatprep.subr.bf16.mxu1 %v17280_v38 }
 0x260   :  { %v4121_v63 = vmax.f32 %v4021_v4, %v4023_v54  ;;  %v4022_v39 = vmax.f32 %v3910_v6, 0.0  ;;  %v3780_v16 = vmul.f32 %v18956_v12, %v19068_v0  ;;  %v3782_v11 = vmul.f32 %v18959_v53, %v19070_v26  ;;  %v19332_v4 = vpop.f32.mrb[28].mxu0  ;;  %v19334_v54 = vpop.f32.mrb[28].mxu1  ;;  %10009 = vmatpush1.bf16.msra.mxu0 %v17275_v31 }
 0x261   :  { %v4120_v56 = vmax.f32 %v22404_v23, %v4020_v28  ;;  %v3912_v29 = vadd.f32 %v18971_v19, %v3778_v42  ;;  %v3913_v8 = vadd.f32 %v18962_v46, %v3779_v43  ;;  %v3915_v25 = vadd.f32 %v18965_v18, %v3781_v58  ;;  %22405 = vst [vmem:[#allocation30_spill] sm:$0xff] %v19332_v4  ;;  %v19343_v42 = vpop.f32.mrb[29].mxu1 }
 0x262   :  { %v3914_v37 = vadd.f32 %v18968_v47, %v3780_v16  ;;  %v3916_v0 = vadd.f32 %v18971_v19, %v3782_v11  ;;  %v3783_v26 = vmul.f32 %v18950_v10, %v19091_v40  ;;  %22406 = vst [vmem:[#allocation31_spill] sm:$0xff] %v19334_v54  ;;  %22408 = vst [vmem:[#allocation33_spill] sm:$0xff] %v19343_v42  ;;  %10112 = vmatpush1.bf16.msra.mxu1 %v17278_v15 }
 0x263   :  { %v4311_v60 = vcombine.low %v19268_v49, %v4120_v56  ;;  %v4312_v34 = vcombine.high %v19268_v49, %v4120_v56  ;;  %v4024_v45 = vmax.f32 %v3912_v29, 0.0  ;;  %v4025_v14 = vmax.f32 %v3913_v8, 0.0  ;;  %v19341_v56 = vpop.f32.mrb[29].mxu0 }
 0x264   :  { %v4027_v24 = vmax.f32 %v3915_v25, 0.0  ;;  %v4026_v44 = vmax.f32 %v3914_v37, 0.0  ;;  %v4028_v3 = vmax.f32 %v3916_v0, 0.0  ;;  %v19330_v51 = vadd.f32 %v18962_v46, %v3783_v26  ;;  %22407 = vst [vmem:[#allocation32_spill] sm:$0xff] %v19341_v56 }
 0x265   :  { %v4319_v59 = vrot.slane %v4311_v60, %v17901_v27  ;;  %v4326_v49 = vrot.slane %v4312_v34, %v17901_v27  ;;  %v4122_v6 = vmax.f32 %v4022_v39, %v4024_v45 }
 0x266   :  { %v19336_v7 = vmax.f32 %v4025_v14, %v4027_v24  ;;  %v19338_v32 = vmax.f32 %v4026_v44, %v4028_v3 }
 0x267   :  { %v4327_v40 = vcombine.high %v4319_v59, %v4319_v59  ;;  %v4328_v30 = vcombine.high %v4326_v49, %v4326_v49  ;;  %v16248_v48 = vrot.slane %v4319_v59, 9  ;;  %v16250_v28 = vrot.slane %v4326_v49, 9 }
 0x268   :  { %v4329_v16 = vcombine.low %v4121_v63, %v4122_v6  ;;  %v4330_v11 = vcombine.high %v4121_v63, %v4122_v6  ;;  %v4347_v39 = vcombine.low %v19336_v7, %v19338_v32  ;;  %v4348_v60 = vcombine.high %v19336_v7, %v19338_v32 }
 0x269   :  { %v16249_v43 = vrot.slane %v4327_v40, 9  ;;  %v16251_v58 = vrot.slane %v4328_v30, 9  ;;  %v5193_v61 = vmax.f32 %v4319_v59, %v16248_v48  ;;  %v5195_v52 = vmax.f32 %v4326_v49, %v16250_v28 }
 0x26a   :  { %v4337_v26 = vrot.slane %v4329_v16, %v17901_v27  ;;  %v4344_v63 = vrot.slane %v4330_v11, %v17901_v27 }
 0x26b   :  { %v5194_v34 = vmax.f32 %v4327_v40, %v16249_v43  ;;  %v5196_v29 = vmax.f32 %v4328_v30, %v16251_v58  ;;  %v5665_v8 = vrot.slane %v5193_v61, %v18932_v55  ;;  %v5669_v25 = vrot.slane %v5193_v61, %v18935_v62  ;;  %v19359_v61 = vpop.f32.mrb[30].mxu0 }
 0x26c   :  { %v5681_v37 = vrot.slane %v5195_v52, %v18932_v55  ;;  %v5685_v0 = vrot.slane %v5195_v52, %v18935_v62  ;;  %22409 = vst [vmem:[#allocation34_spill] sm:$0xff] %v19359_v61  ;;  %v19361_v52 = vpop.f32.mrb[30].mxu1 }
 0x26d   :  { %v5673_v33 = vrot.slane %v5194_v34, %v18932_v55  ;;  %v5677_v38 = vrot.slane %v5194_v34, %v18935_v62  ;;  %v5689_v59 = vrot.slane %v5196_v29, %v18932_v55  ;;  %v5693_v49 = vrot.slane %v5196_v29, %v18935_v62  ;;  %22410 = vst [vmem:[#allocation35_spill] sm:$0xff] %v19361_v52 }
 0x26e   :  { %v6662_v45 = vpack.c.bf16 %v5665_v8, %v5665_v8  ;;  %v6663_v14 = vpack.c.bf16 %v5669_v25, %v5669_v25  ;;  %v6666_v31 = vpack.c.bf16 %v5681_v37, %v5681_v37  ;;  %v6667_v15 = vpack.c.bf16 %v5685_v0, %v5685_v0 }
 0x26f   :  { %v6664_v24 = vpack.c.bf16 %v5673_v33, %v5673_v33  ;;  %v6665_v44 = vpack.c.bf16 %v5677_v38, %v5677_v38  ;;  %v6668_v3 = vpack.c.bf16 %v5689_v59, %v5689_v59  ;;  %v6669_v40 = vpack.c.bf16 %v5693_v49, %v5693_v49 }
 0x270   :  { %v7110_v30 = vunpack.c.l.b16 %v6662_v45  ;;  %v7111_v48 = vunpack.c.l.b16 %v6663_v14  ;;  %v7114_v28 = vunpack.c.l.b16 %v6666_v31  ;;  %v7115_v6 = vunpack.c.l.b16 %v6667_v15  ;;  %v19373_v45 = vpop.f32.mrb[31].mxu0  ;;  %v19375_v14 = vpop.f32.mrb[31].mxu1 }
 0x271   :  { %v7112_v7 = vunpack.c.l.b16 %v6664_v24  ;;  %v7113_v32 = vunpack.c.l.b16 %v6665_v44  ;;  %v7116_v43 = vunpack.c.l.b16 %v6668_v3  ;;  %v7117_v58 = vunpack.c.l.b16 %v6669_v40  ;;  %22411 = vst [vmem:[#allocation36_spill] sm:$0xff] %v19373_v45  ;;  %22412 = vst [vmem:[#allocation37_spill] sm:$0xff] %v19375_v14 }
 0x272   :  { %v7362_v16 = vrot.slane %v7110_v30, 1  ;;  %v7375_v11 = vrot.slane %v7111_v48, 1  ;;  %v7377_v34 = vrot.slane %v7114_v28, 7  ;;  %v7389_v29 = vrot.slane %v7115_v6, 7 }
 0x273   :  { %v7379_v8 = vrot.slane %v7116_v43, 6  ;;  %v7391_v25 = vrot.slane %v7117_v58, 6  ;;  %v4345_v37 = vcombine.high %v4337_v26, %v4337_v26  ;;  %v4346_v0 = vcombine.high %v4344_v63, %v4344_v63 }
 0x274   :  { %v19365_v33 = vsel %vm22321_vm0, %v7362_v16, %v19300_v41  ;;  %v19369_v38 = vsel %vm22321_vm0, %v7375_v11, %v19303_v2  ;;  %v7378_v59 = vsel %vm22320_vm14, %v7377_v34, %v7112_v7  ;;  %v7390_v49 = vsel %vm22320_vm14, %v7389_v29, %v7113_v32 }
 0x275   :  { %v7380_v31 = vsel %vm22323_vm10, %v7379_v8, %v7378_v59  ;;  %v7392_v15 = vsel %vm22323_vm10, %v7391_v25, %v7390_v49  ;;  %v16252_v24 = vrot.slane %v4337_v26, 9  ;;  %v16253_v44 = vrot.slane %v4345_v37, 9 }
 0x276   :  { %v16254_v41 = vrot.slane %v4344_v63, 9  ;;  %v16255_v3 = vrot.slane %v4346_v0, 9  ;;  %v4355_v40 = vrot.slane %v4347_v39, %v17901_v27  ;;  %v4362_v2 = vrot.slane %v4348_v60, %v17901_v27 }
 0x277   :  { %v5197_v30 = vmax.f32 %v4337_v26, %v16252_v24  ;;  %v5198_v48 = vmax.f32 %v4345_v37, %v16253_v44  ;;  %v19383_v28 = vmul.f32 %v18953_v22, %v19093_v13  ;;  %v19387_v6 = vmul.f32 %v18956_v12, %v19095_v5 }
 0x278   :  { %v5199_v7 = vmax.f32 %v4344_v63, %v16254_v41  ;;  %v5200_v32 = vmax.f32 %v4346_v0, %v16255_v3  ;;  %v4363_v43 = vcombine.high %v4355_v40, %v4355_v40  ;;  %v4364_v58 = vcombine.high %v4362_v2, %v4362_v2 }
 0x279   :  { %v5697_v16 = vrot.slane %v5197_v30, %v18932_v55  ;;  %v5701_v39 = vrot.slane %v5197_v30, %v18935_v62  ;;  %v5705_v60 = vrot.slane %v5198_v48, %v18932_v55  ;;  %v5709_v26 = vrot.slane %v5198_v48, %v18935_v62 }
 0x27a   :  { %v5713_v11 = vrot.slane %v5199_v7, %v18932_v55  ;;  %v5717_v13 = vrot.slane %v5199_v7, %v18935_v62  ;;  %v5721_v34 = vrot.slane %v5200_v32, %v18932_v55  ;;  %v5725_v5 = vrot.slane %v5200_v32, %v18935_v62 }
 0x27b   :  { %v6670_v63 = vpack.c.bf16 %v5697_v16, %v5697_v16  ;;  %v6671_v29 = vpack.c.bf16 %v5701_v39, %v5701_v39  ;;  %v6672_v8 = vpack.c.bf16 %v5705_v60, %v5705_v60  ;;  %v6673_v25 = vpack.c.bf16 %v5709_v26, %v5709_v26 }
 0x27c   :  { %v6674_v37 = vpack.c.bf16 %v5713_v11, %v5713_v11  ;;  %v6675_v0 = vpack.c.bf16 %v5717_v13, %v5717_v13  ;;  %v6676_v59 = vpack.c.bf16 %v5721_v34, %v5721_v34  ;;  %v6677_v49 = vpack.c.bf16 %v5725_v5, %v5725_v5 }
 0x27d   :  { %v7118_v24 = vunpack.c.l.b16 %v6670_v63  ;;  %v7119_v44 = vunpack.c.l.b16 %v6671_v29  ;;  %v7120_v41 = vunpack.c.l.b16 %v6672_v8  ;;  %v7121_v3 = vunpack.c.l.b16 %v6673_v25 }
 0x27e   :  { %v7122_v30 = vunpack.c.l.b16 %v6674_v37  ;;  %v7123_v48 = vunpack.c.l.b16 %v6675_v0  ;;  %v7124_v23 = vunpack.c.l.b16 %v6676_v59  ;;  %v7125_v7 = vunpack.c.l.b16 %v6677_v49  ;;  %v17283_v37 = vld [vmem:[#allocation3 + $0x2a4] ss:$16 sps:$4 sm:$0xff]   ;;  %v17286_v0 = vld [vmem:[#allocation3 + $0x2ac] ss:$16 sps:$4 sm:$0xff]  }
 0x27f   :  { %v7381_v14 = vrot.slane %v7118_v24, 5  ;;  %v7383_v45 = vrot.slane %v7120_v41, 4  ;;  %v7393_v52 = vrot.slane %v7119_v44, 5  ;;  %v7395_v32 = vrot.slane %v7121_v3, 4  ;;  %v17281_v44 = vld [vmem:[#allocation3 + $0x2a0] ss:$16 sps:$4 sm:$0xff]   ;;  %10010 = vmatprep.subr.bf16.mxu0 %v17283_v37  ;;  %10113 = vmatprep.subr.bf16.mxu1 %v17286_v0 }
 0x280   :  { %v7385_v16 = vrot.slane %v7122_v30, 3  ;;  %v7387_v39 = vrot.slane %v7124_v23, 2  ;;  %v7397_v60 = vrot.slane %v7123_v48, 3  ;;  %v7399_v26 = vrot.slane %v7125_v7, 2  ;;  %10011 = vmatpush1.bf16.msra.mxu0 %v17281_v44 }
 0x281   :  { %v7382_v11 = vsel %vm22329_vm9, %v7381_v14, %v7380_v31  ;;  %v7394_v13 = vsel %vm22329_vm9, %v7393_v52, %v7392_v15  ;;  %v16256_v34 = vrot.slane %v4355_v40, 9  ;;  %v16257_v5 = vrot.slane %v4363_v43, 9  ;;  %v17284_v14 = vld [vmem:[#allocation3 + $0x2a8] ss:$16 sps:$4 sm:$0xff]   ;;  %v7744_v15 = vld [vmem:[#allocation2 + $0x10] sm:$0xff] }
 0x282   :  { %v7384_v63 = vsel %vm2754_vm12, %v7383_v45, %v7382_v11  ;;  %v7396_v29 = vsel %vm2754_vm12, %v7395_v32, %v7394_v13  ;;  %v16258_v8 = vrot.slane %v4362_v2, 9  ;;  %v16259_v25 = vrot.slane %v4364_v58, 9  ;;  %v7747_v45 = vld [vmem:[#allocation2 + $0x18] sm:$0xff]  ;;  %10114 = vmatpush1.bf16.msra.mxu1 %v17284_v14  ;;  %v17287_v11 = vld [vmem:[#allocation3 + $0x2c0] ss:$16 sps:$4 sm:$0xff]  }
 0x283   :  { %v7386_v59 = vsel %vm7305_vm11, %v7385_v16, %v7384_v63  ;;  %v7398_v23 = vsel %vm7305_vm11, %v7397_v60, %v7396_v29  ;;  %v5201_v49 = vmax.f32 %v4355_v40, %v16256_v34  ;;  %v5202_v24 = vmax.f32 %v4363_v43, %v16257_v5  ;;  %v17290_v13 = vld [vmem:[#allocation3 + $0x2c8] ss:$16 sps:$4 sm:$0xff]  }
 0x284   :  { %v7388_v52 = vsel %vm22324_vm13, %v7387_v39, %v7386_v59  ;;  %v7400_v31 = vsel %vm22324_vm13, %v7399_v26, %v7398_v23  ;;  %v5203_v41 = vmax.f32 %v4362_v2, %v16258_v8  ;;  %v5204_v3 = vmax.f32 %v4364_v58, %v16259_v25  ;;  %v17289_v2 = vld [vmem:[#allocation3 + $0x2c4] ss:$16 sps:$4 sm:$0xff]   ;;  %v17292_v58 = vld [vmem:[#allocation3 + $0x2cc] ss:$16 sps:$4 sm:$0xff]   ;;  %v19419_v59 = vpop.f32.mrb[32].mxu0  ;;  %v19421_v23 = vpop.f32.mrb[32].mxu1 }
 0x285   :  { %v7703_v30 = vpack.c.b16 %v7388_v52, %v19365_v33  ;;  %v7704_v48 = vpack.c.b16 %v7400_v31, %v19369_v38  ;;  %v5729_v7 = vrot.slane %v5201_v49, %v18932_v55  ;;  %v5733_v40 = vrot.slane %v5201_v49, %v18935_v62  ;;  %10012 = vmatprep.subr.bf16.mxu0 %v17289_v2  ;;  %v19423_v52 = vpop.f32.mrb[33].mxu0  ;;  %v19425_v31 = vpop.f32.mrb[33].mxu1 }
 0x286   :  { %v5737_v43 = vrot.slane %v5202_v24, %v18932_v55  ;;  %v5741_v32 = vrot.slane %v5202_v24, %v18935_v62  ;;  %v5745_v16 = vrot.slane %v5203_v41, %v18932_v55  ;;  %v5749_v39 = vrot.slane %v5203_v41, %v18935_v62  ;;  %22413 = vst [vmem:[#allocation38_spill] sm:$0xff] %v19419_v59 }
 0x287   :  { %v7745_v33 = vsel %vm19242_vm5, %v7703_v30, %v7744_v15  ;;  %v7748_v38 = vsel %vm19254_vm1, %v7704_v48, %v7747_v45  ;;  %v5753_v60 = vrot.slane %v5204_v3, %v18932_v55  ;;  %v5757_v26 = vrot.slane %v5204_v3, %v18935_v62  ;;  %22414 = vst [vmem:[#allocation39_spill] sm:$0xff] %v19421_v23 }
 0x288   :  { %7746 = vst [vmem:[#allocation2 + $0x10] sm:$0xff] %v7745_v33  ;;  %7749 = vst [vmem:[#allocation2 + $0x18] sm:$0xff] %v7748_v38  ;;  %v6678_v34 = vpack.c.bf16 %v5729_v7, %v5729_v7  ;;  %v6679_v5 = vpack.c.bf16 %v5733_v40, %v5733_v40  ;;  %v6680_v63 = vpack.c.bf16 %v5737_v43, %v5737_v43  ;;  %10115 = vmatprep.subr.bf16.mxu1 %v17292_v58 }
 0x289   :  { %v6681_v29 = vpack.c.bf16 %v5741_v32, %v5741_v32  ;;  %v6682_v8 = vpack.c.bf16 %v5745_v16, %v5745_v16  ;;  %v6683_v25 = vpack.c.bf16 %v5749_v39, %v5749_v39  ;;  %v6684_v37 = vpack.c.bf16 %v5753_v60, %v5753_v60  ;;  %22415 = vst [vmem:[#allocation40_spill] sm:$0xff] %v19423_v52 }
 0x28a   :  { %v6685_v0 = vpack.c.bf16 %v5757_v26, %v5757_v26  ;;  %v7126_v49 = vunpack.c.l.b16 %v6678_v34  ;;  %v7127_v24 = vunpack.c.l.b16 %v6679_v5  ;;  %v7128_v44 = vunpack.c.l.b16 %v6680_v63  ;;  %22416 = vst [vmem:[#allocation41_spill] sm:$0xff] %v19425_v31  ;;  %10013 = vmatpush1.bf16.msra.mxu0 %v17287_v11  ;;  %10116 = vmatpush1.bf16.msra.mxu1 %v17290_v13  ;;  %v22417_v13 = vld [vmem:[#allocation16_spill] sm:$0xff] }
 0x28b   :  { %v7129_v14 = vunpack.c.l.b16 %v6681_v29  ;;  %v7130_v15 = vunpack.c.l.b16 %v6682_v8  ;;  %v7131_v45 = vunpack.c.l.b16 %v6683_v25  ;;  %v7132_v41 = vunpack.c.l.b16 %v6684_v37  ;;  %v22418_v25 = vld [vmem:[#allocation17_spill] sm:$0xff] }
 0x28c   :  { %v7133_v3 = vunpack.c.l.b16 %v6685_v0  ;;  %v7401_v30 = vrot.slane %v7126_v49, 7  ;;  %v7402_v48 = vrot.slane %v7128_v44, 6  ;;  %v7414_v7 = vrot.slane %v7127_v24, 7  ;;  %v22419_v0 = vld [vmem:[#allocation18_spill] sm:$0xff]  ;;  %v19451_v49 = vpop.f32.mrb[34].mxu0  ;;  %v19453_v24 = vpop.f32.mrb[34].mxu1 }
 0x28d   :  { %v7415_v40 = vrot.slane %v7129_v14, 6  ;;  %v7404_v43 = vrot.slane %v7130_v15, 5  ;;  %v7406_v32 = vrot.slane %v7132_v41, 4  ;;  %v7417_v16 = vrot.slane %v7131_v45, 5  ;;  %22420 = vst [vmem:[#allocation16_spill] sm:$0xff] %v19451_v49  ;;  %22421 = vst [vmem:[#allocation17_spill] sm:$0xff] %v19453_v24 }
 0x28e   :  { %v7419_v39 = vrot.slane %v7133_v3, 4  ;;  %v7403_v2 = vsel %vm22323_vm10, %v7402_v48, %v7401_v30  ;;  %v3919_v33 = vadd.f32 %v18965_v18, %v19383_v28  ;;  %v3918_v38 = vadd.f32 %v18968_v47, %v19387_v6  ;;  %v22423_v15 = vld [vmem:[#allocation19_spill] sm:$0xff]  ;;  %v22424_v41 = vld [vmem:[#allocation20_spill] sm:$0xff]  ;;  %v22425_v30 = vld [vmem:[#allocation21_spill] sm:$0xff] }
 0x28f   :  { %v7416_v58 = vsel %vm22323_vm10, %v7415_v40, %v7414_v7  ;;  %v7405_v60 = vsel %vm22329_vm9, %v7404_v43, %v7403_v2  ;;  %v3786_v11 = vmul.f32 %v18959_v53, %v19097_v57  ;;  %v3787_v34 = vmul.f32 %v18950_v10, %v22417_v13  ;;  %v19463_v7 = vpop.f32.mrb[35].mxu0  ;;  %v19465_v40 = vpop.f32.mrb[35].mxu1  ;;  %v22429_v13 = vld [vmem:[#allocation23_spill] sm:$0xff] }
 0x290   :  { %v7418_v26 = vsel %vm22329_vm9, %v7417_v16, %v7416_v58  ;;  %v19440_v5 = vsel %vm2754_vm12, %v7406_v32, %v7405_v60  ;;  %v4031_v28 = vmax.f32 %v3919_v33, 0.0  ;;  %v4030_v29 = vmax.f32 %v3918_v38, 0.0  ;;  %22426 = vst [vmem:[#allocation18_spill] sm:$0xff] %v19463_v7  ;;  %22427 = vst [vmem:[#allocation19_spill] sm:$0xff] %v19465_v40  ;;  %v22428_v33 = vld [vmem:[#allocation22_spill] sm:$0xff] }
 0x291   :  { %v19443_v63 = vsel %vm2754_vm12, %v7419_v39, %v7418_v26  ;;  %v3920_v6 = vadd.f32 %v18971_v19, %v3786_v11  ;;  %v3921_v8 = vadd.f32 %v18962_v46, %v3787_v34  ;;  %v3789_v37 = vmul.f32 %v18953_v22, %v22418_v25 }
 0x292   :  { %v3788_v57 = vmul.f32 %v18956_v12, %v22419_v0  ;;  %v22422_v44 = vmax.f32 %v19330_v51, 0.0  ;;  %v3790_v45 = vmul.f32 %v18959_v53, %v22423_v15  ;;  %v3791_v3 = vmul.f32 %v18950_v10, %v22424_v41  ;;  %v5304_v0 = vld [vmem:[#allocation2 + $0x28] sm:$0x1]  ;;  %v5354_v41 = vld [vmem:[#allocation2 + $0x20] sm:$0x80] }
 0x293   :  { %v3793_v48 = vmul.f32 %v18953_v22, %v22425_v30  ;;  %v4032_v43 = vmax.f32 %v3920_v6, 0.0  ;;  %v4033_v32 = vmax.f32 %v3921_v8, 0.0  ;;  %v3923_v16 = vadd.f32 %v18965_v18, %v3789_v37 }
 0x294   :  { %v4125_v14 = vmax.f32 %v22422_v44, %v4031_v28  ;;  %v3922_v51 = vadd.f32 %v18968_v47, %v3788_v57  ;;  %v3924_v39 = vadd.f32 %v18971_v19, %v3790_v45  ;;  %v3925_v2 = vadd.f32 %v18962_v46, %v3791_v3  ;;  %v5301_v28 = vld [vmem:[#allocation2 + $0x20] sm:$0x1]  ;;  %v5357_v3 = vld [vmem:[#allocation2 + $0x28] sm:$0x80] }
 0x295   :  { %v3927_v58 = vadd.f32 %v18965_v18, %v3793_v48  ;;  %v3792_v38 = vmul.f32 %v18956_v12, %v22428_v33  ;;  %v4126_v60 = vmax.f32 %v4030_v29, %v4032_v43  ;;  %v4035_v26 = vmax.f32 %v3923_v16, 0.0 }
 0x296   :  { %v4034_v11 = vmax.f32 %v3922_v51, 0.0  ;;  %v3794_v34 = vmul.f32 %v18959_v53, %v22429_v13  ;;  %v4036_v6 = vmax.f32 %v3924_v39, 0.0  ;;  %v4037_v8 = vmax.f32 %v3925_v2, 0.0 }
 0x297   :  { %v4039_v25 = vmax.f32 %v3927_v58, 0.0  ;;  %v3926_v37 = vadd.f32 %v18968_v47, %v3792_v38  ;;  %v4365_v57 = vcombine.low %v4125_v14, %v4126_v60  ;;  %v4366_v44 = vcombine.high %v4125_v14, %v4126_v60 }
 0x298   :  { %v4127_v15 = vmax.f32 %v4033_v32, %v4035_v26  ;;  %v3928_v45 = vadd.f32 %v18971_v19, %v3794_v34  ;;  %v4128_v29 = vmax.f32 %v4034_v11, %v4036_v6  ;;  %v5302_v16 = vsel %vm18896_vm4, 0, %v5301_v28 }
 0x299   :  { %v19478_v30 = vmax.f32 %v4037_v8, %v4039_v25  ;;  %v4038_v48 = vmax.f32 %v3926_v37, 0.0  ;;  %v4373_v51 = vrot.slane %v4365_v57, %v17901_v27  ;;  %v4380_v39 = vrot.slane %v4366_v44, %v17901_v27  ;;  %5303 = vst [vmem:[#allocation2 + $0x20] sm:$0x1] %v5302_v16 }
 0x29a   :  { %v4040_v2 = vmax.f32 %v3928_v45, 0.0  ;;  %v5305_v14 = vsel %vm18903_vm6, 0, %v5304_v0  ;;  %v4383_v32 = vcombine.low %v4127_v15, %v4128_v29  ;;  %v4384_v33 = vcombine.high %v4127_v15, %v4128_v29  ;;  %v22434_v0 = vld [vmem:[#allocation24_spill] sm:$0xff] }
 0x29b   :  { %5306 = vst [vmem:[#allocation2 + $0x28] sm:$0x1] %v5305_v14  ;;  %v5355_v60 = vsel %vm18910_vm7, 0, %v5354_v41  ;;  %v5358_v11 = vsel %vm18917_vm8, 0, %v5357_v3  ;;  %v4381_v13 = vcombine.high %v4373_v51, %v4373_v51  ;;  %v4382_v34 = vcombine.high %v4380_v39, %v4380_v39 }
 0x29c   :  { %v16260_v28 = vrot.slane %v4373_v51, 9  ;;  %v16262_v6 = vrot.slane %v4380_v39, 9  ;;  %5356 = vst [vmem:[#allocation2 + $0x20] sm:$0x80] %v5355_v60  ;;  %5359 = vst [vmem:[#allocation2 + $0x28] sm:$0x80] %v5358_v11  ;;  %v4391_v8 = vrot.slane %v4383_v32, %v17901_v27  ;;  %v4398_v25 = vrot.slane %v4384_v33, %v17901_v27 }
 0x29d   :  { %v19492_v37 = vmax.f32 %v4038_v48, %v4040_v2  ;;  %v19496_v57 = vmul.f32 %v18950_v10, %v22434_v0  ;;  %v16261_v44 = vrot.slane %v4381_v13, 9  ;;  %v16263_v15 = vrot.slane %v4382_v34, 9  ;;  %v17295_v48 = vld [vmem:[#allocation3 + $0x2e4] ss:$16 sps:$4 sm:$0xff]   ;;  %v17298_v2 = vld [vmem:[#allocation3 + $0x2ec] ss:$16 sps:$4 sm:$0xff]  }
 0x29e   :  { %v5205_v45 = vmax.f32 %v4373_v51, %v16260_v28  ;;  %v5207_v41 = vmax.f32 %v4380_v39, %v16262_v6  ;;  %v4399_v3 = vcombine.high %v4391_v8, %v4391_v8  ;;  %v4400_v29 = vcombine.high %v4398_v25, %v4398_v25  ;;  %v17293_v51 = vld [vmem:[#allocation3 + $0x2e0] ss:$16 sps:$4 sm:$0xff]   ;;  %v17296_v39 = vld [vmem:[#allocation3 + $0x2e8] ss:$16 sps:$4 sm:$0xff]   ;;  %10014 = vmatprep.subr.bf16.mxu0 %v17295_v48 }
 0x29f   :  { %v16264_v16 = vrot.slane %v4391_v8, 9  ;;  %v16266_v14 = vrot.slane %v4398_v25, 9  ;;  %v5206_v60 = vmax.f32 %v4381_v13, %v16261_v44  ;;  %v5208_v11 = vmax.f32 %v4382_v34, %v16263_v15  ;;  %10117 = vmatprep.subr.bf16.mxu1 %v17298_v2  ;;  %10015 = vmatpush1.bf16.msra.mxu0 %v17293_v51 }
 0x2a0   :  { %v5761_v32 = vrot.slane %v5205_v45, %v18932_v55  ;;  %v5765_v33 = vrot.slane %v5205_v45, %v18935_v62  ;;  %v5777_v40 = vrot.slane %v5207_v41, %v18932_v55  ;;  %v5781_v0 = vrot.slane %v5207_v41, %v18935_v62  ;;  %10118 = vmatpush1.bf16.msra.mxu1 %v17296_v39 }
 0x2a1   :  { %v16265_v7 = vrot.slane %v4399_v3, 9  ;;  %v16267_v24 = vrot.slane %v4400_v29, 9  ;;  %v5769_v28 = vrot.slane %v5206_v60, %v18932_v55  ;;  %v5773_v6 = vrot.slane %v5206_v60, %v18935_v62 }
 0x2a2   :  { %v5785_v13 = vrot.slane %v5208_v11, %v18932_v55  ;;  %v5789_v34 = vrot.slane %v5208_v11, %v18935_v62  ;;  %v6686_v44 = vpack.c.bf16 %v5761_v32, %v5761_v32  ;;  %v6687_v15 = vpack.c.bf16 %v5765_v33, %v5765_v33 }
 0x2a3   :  { %v6690_v45 = vpack.c.bf16 %v5777_v40, %v5777_v40  ;;  %v6691_v49 = vpack.c.bf16 %v5781_v0, %v5781_v0  ;;  %v6688_v31 = vpack.c.bf16 %v5769_v28, %v5769_v28  ;;  %v6689_v41 = vpack.c.bf16 %v5773_v6, %v5773_v6  ;;  %v19506_v0 = vpop.f32.mrb[36].mxu0 }
 0x2a4   :  { %v6692_v52 = vpack.c.bf16 %v5785_v13, %v5785_v13  ;;  %v6693_v23 = vpack.c.bf16 %v5789_v34, %v5789_v34  ;;  %v7134_v59 = vunpack.c.l.b16 %v6686_v44  ;;  %v7135_v61 = vunpack.c.l.b16 %v6687_v15 }
 0x2a5   :  { %v7138_v42 = vunpack.c.l.b16 %v6690_v45  ;;  %v7139_v56 = vunpack.c.l.b16 %v6691_v49  ;;  %v7136_v60 = vunpack.c.l.b16 %v6688_v31  ;;  %v7137_v54 = vunpack.c.l.b16 %v6689_v41 }
 0x2a6   :  { %v7140_v4 = vunpack.c.l.b16 %v6692_v52  ;;  %v7141_v11 = vunpack.c.l.b16 %v6693_v23  ;;  %v7408_v48 = vrot.slane %v7134_v59, 3  ;;  %v7421_v33 = vrot.slane %v7135_v61, 3 }
 0x2a7   :  { %v7412_v32 = vrot.slane %v7138_v42, 1  ;;  %v7425_v40 = vrot.slane %v7139_v56, 1  ;;  %v7410_v2 = vrot.slane %v7136_v60, 2  ;;  %v7423_v28 = vrot.slane %v7137_v54, 2 }
 0x2a8   :  { %v5209_v6 = vmax.f32 %v4391_v8, %v16264_v16  ;;  %v5210_v13 = vmax.f32 %v4399_v3, %v16265_v7  ;;  %v7409_v51 = vsel %vm7305_vm11, %v7408_v48, %v19440_v5  ;;  %v7422_v49 = vsel %vm7305_vm11, %v7421_v33, %v19443_v63 }
 0x2a9   :  { %v5211_v31 = vmax.f32 %v4398_v25, %v16266_v14  ;;  %v5212_v39 = vmax.f32 %v4400_v29, %v16267_v24  ;;  %v7411_v23 = vsel %vm22324_vm13, %v7410_v2, %v7409_v51  ;;  %v7424_v42 = vsel %vm22324_vm13, %v7423_v28, %v7422_v49  ;;  %v19528_v25 = vpop.f32.mrb[36].mxu1 }
 0x2aa   :  { %v5793_v56 = vrot.slane %v5209_v6, %v18932_v55  ;;  %v5797_v61 = vrot.slane %v5209_v6, %v18935_v62  ;;  %v19517_v54 = vsel %vm22321_vm0, %v7412_v32, %v7411_v23  ;;  %v19520_v59 = vsel %vm22321_vm0, %v7425_v40, %v7424_v42 }
 0x2ab   :  { %v5801_v52 = vrot.slane %v5210_v13, %v18932_v55  ;;  %v5805_v5 = vrot.slane %v5210_v13, %v18935_v62  ;;  %v5809_v63 = vrot.slane %v5211_v31, %v18932_v55  ;;  %v5813_v24 = vrot.slane %v5211_v31, %v18935_v62  ;;  %v17301_v31 = vld [vmem:[#allocation3 + $0x304] ss:$16 sps:$4 sm:$0xff]  }
 0x2ac   :  { %v5817_v7 = vrot.slane %v5212_v39, %v18932_v55  ;;  %v5821_v8 = vrot.slane %v5212_v39, %v18935_v62  ;;  %v6694_v3 = vpack.c.bf16 %v5793_v56, %v5793_v56  ;;  %v6695_v29 = vpack.c.bf16 %v5797_v61, %v5797_v61  ;;  %10016 = vmatprep.subr.bf16.mxu0 %v17301_v31 }
 0x2ad   :  { %v6696_v16 = vpack.c.bf16 %v5801_v52, %v5801_v52  ;;  %v6697_v14 = vpack.c.bf16 %v5805_v5, %v5805_v5  ;;  %v6698_v34 = vpack.c.bf16 %v5809_v63, %v5809_v63  ;;  %v6699_v44 = vpack.c.bf16 %v5813_v24, %v5813_v24 }
 0x2ae   :  { %v6700_v15 = vpack.c.bf16 %v5817_v7, %v5817_v7  ;;  %v6701_v45 = vpack.c.bf16 %v5821_v8, %v5821_v8  ;;  %v7142_v41 = vunpack.c.l.b16 %v6694_v3  ;;  %v7143_v60 = vunpack.c.l.b16 %v6695_v29  ;;  %v22435_v3 = vld [vmem:[#allocation25_spill] sm:$0xff] }
 0x2af   :  { %v7144_v48 = vunpack.c.l.b16 %v6696_v16  ;;  %v7145_v32 = vunpack.c.l.b16 %v6697_v14  ;;  %v7146_v33 = vunpack.c.l.b16 %v6698_v34  ;;  %v7147_v40 = vunpack.c.l.b16 %v6699_v44  ;;  %v17302_v16 = vld [vmem:[#allocation3 + $0x308] ss:$16 sps:$4 sm:$0xff]   ;;  %v19546_v44 = vpop.f32.mrb[37].mxu0 }
 0x2b0   :  { %v7148_v2 = vunpack.c.l.b16 %v6700_v15  ;;  %v7149_v28 = vunpack.c.l.b16 %v6701_v45  ;;  %v7427_v6 = vrot.slane %v7142_v41, 7  ;;  %v7439_v51 = vrot.slane %v7143_v60, 7  ;;  %v19548_v15 = vpop.f32.mrb[37].mxu1  ;;  %v19563_v31 = vpop.f32.mrb[38].mxu0 }
 0x2b1   :  { %v7429_v13 = vrot.slane %v7144_v48, 6  ;;  %v7441_v49 = vrot.slane %v7145_v32, 6  ;;  %v7431_v39 = vrot.slane %v7146_v33, 5  ;;  %v7443_v42 = vrot.slane %v7147_v40, 5 }
 0x2b2   :  { %v7433_v23 = vrot.slane %v7148_v2, 4  ;;  %v7445_v56 = vrot.slane %v7149_v28, 4  ;;  %v7428_v61 = vsel %vm22320_vm14, %v7427_v6, %v7140_v4  ;;  %v7440_v52 = vsel %vm22320_vm14, %v7439_v51, %v7141_v11  ;;  %v17299_v4 = vld [vmem:[#allocation3 + $0x300] ss:$16 sps:$4 sm:$0xff]   ;;  %v17304_v11 = vld [vmem:[#allocation3 + $0x30c] ss:$16 sps:$4 sm:$0xff]  }
 0x2b3   :  { %v4401_v5 = vcombine.low %v19478_v30, %v19492_v37  ;;  %v4402_v63 = vcombine.high %v19478_v30, %v19492_v37  ;;  %v7430_v24 = vsel %vm22323_vm10, %v7429_v13, %v7428_v61  ;;  %v7442_v7 = vsel %vm22323_vm10, %v7441_v49, %v7440_v52  ;;  %10119 = vmatprep.subr.bf16.mxu1 %v17304_v11  ;;  %v22436_v28 = vld [vmem:[#allocation26_spill] sm:$0xff]  ;;  %v22437_v13 = vld [vmem:[#allocation27_spill] sm:$0xff] }
 0x2b4   :  { %v3929_v8 = vadd.f32 %v18962_v46, %v19496_v57  ;;  %v3797_v29 = vmul.f32 %v18953_v22, %v22435_v3  ;;  %v7432_v14 = vsel %vm22329_vm9, %v7431_v39, %v7430_v24  ;;  %v7444_v34 = vsel %vm22329_vm9, %v7443_v42, %v7442_v7  ;;  %10017 = vmatpush1.bf16.msra.mxu0 %v17299_v4 }
 0x2b5   :  { %v4409_v30 = vrot.slane %v4401_v5, %v17901_v27  ;;  %v4416_v37 = vrot.slane %v4402_v63, %v17901_v27  ;;  %v19551_v57 = vsel %vm2754_vm12, %v7433_v23, %v7432_v14  ;;  %v19554_v45 = vsel %vm2754_vm12, %v7445_v56, %v7444_v34  ;;  %10120 = vmatpush1.bf16.msra.mxu1 %v17302_v16 }
 0x2b6   :  { %v4041_v41 = vmax.f32 %v3929_v8, 0.0  ;;  %v3931_v60 = vadd.f32 %v18965_v18, %v3797_v29  ;;  %v3796_v6 = vmul.f32 %v18956_v12, %v22436_v28  ;;  %v3798_v51 = vmul.f32 %v18959_v53, %v22437_v13 }
 0x2b7   :  { %v4417_v48 = vcombine.high %v4409_v30, %v4409_v30  ;;  %v4418_v32 = vcombine.high %v4416_v37, %v4416_v37  ;;  %v16268_v33 = vrot.slane %v4409_v30, 9  ;;  %v16270_v40 = vrot.slane %v4416_v37, 9 }
 0x2b8   :  { %v4043_v2 = vmax.f32 %v3931_v60, 0.0  ;;  %v3799_v49 = vmul.f32 %v18950_v10, %v19207_v35  ;;  %v3930_v52 = vadd.f32 %v18968_v47, %v3796_v6  ;;  %v3932_v5 = vadd.f32 %v18971_v19, %v3798_v51 }
 0x2b9   :  { %v16269_v39 = vrot.slane %v4417_v48, 9  ;;  %v16271_v23 = vrot.slane %v4418_v32, 9  ;;  %v5213_v42 = vmax.f32 %v4409_v30, %v16268_v33  ;;  %v5215_v56 = vmax.f32 %v4416_v37, %v16270_v40  ;;  %v19580_v37 = vpop.f32.mrb[38].mxu1  ;;  %v19582_v33 = vpop.f32.mrb[39].mxu0 }
 0x2ba   :  { %v19565_v61 = vmax.f32 %v4041_v41, %v4043_v2  ;;  %v19570_v63 = vadd.f32 %v18962_v46, %v3799_v49  ;;  %v4042_v4 = vmax.f32 %v3930_v52, 0.0  ;;  %v4044_v16 = vmax.f32 %v3932_v5, 0.0  ;;  %22438 = vst [vmem:[#allocation20_spill] sm:$0xff] %v19582_v33  ;;  %v19584_v40 = vpop.f32.mrb[39].mxu1 }
 0x2bb   :  { %v5214_v24 = vmax.f32 %v4417_v48, %v16269_v39  ;;  %v5216_v7 = vmax.f32 %v4418_v32, %v16271_v23  ;;  %v5825_v8 = vrot.slane %v5213_v42, %v18932_v55  ;;  %v5829_v35 = vrot.slane %v5213_v42, %v18935_v62  ;;  %22439 = vst [vmem:[#allocation21_spill] sm:$0xff] %v19584_v40 }
 0x2bc   :  { %v5841_v3 = vrot.slane %v5215_v56, %v18932_v55  ;;  %v5845_v29 = vrot.slane %v5215_v56, %v18935_v62 }
 0x2bd   :  { %v5833_v11 = vrot.slane %v5214_v24, %v18932_v55  ;;  %v5837_v14 = vrot.slane %v5214_v24, %v18935_v62  ;;  %v5849_v34 = vrot.slane %v5216_v7, %v18932_v55  ;;  %v5853_v30 = vrot.slane %v5216_v7, %v18935_v62 }
 0x2be   :  { %v6702_v41 = vpack.c.bf16 %v5825_v8, %v5825_v8  ;;  %v6703_v60 = vpack.c.bf16 %v5829_v35, %v5829_v35  ;;  %v6706_v48 = vpack.c.bf16 %v5841_v3, %v5841_v3  ;;  %v6707_v32 = vpack.c.bf16 %v5845_v29, %v5845_v29  ;;  %v17307_v3 = vld [vmem:[#allocation3 + $0x324] ss:$16 sps:$4 sm:$0xff]  }
 0x2bf   :  { %v6704_v2 = vpack.c.bf16 %v5833_v11, %v5833_v11  ;;  %v6705_v28 = vpack.c.bf16 %v5837_v14, %v5837_v14  ;;  %v6708_v6 = vpack.c.bf16 %v5849_v34, %v5849_v34  ;;  %v6709_v13 = vpack.c.bf16 %v5853_v30, %v5853_v30  ;;  %v17305_v14 = vld [vmem:[#allocation3 + $0x320] ss:$16 sps:$4 sm:$0xff]   ;;  %10018 = vmatprep.subr.bf16.mxu0 %v17307_v3  ;;  %v17313_v3 = vld [vmem:[#allocation3 + $0x344] ss:$16 sps:$4 sm:$0xff]  }
 0x2c0   :  { %v7150_v51 = vunpack.c.l.b16 %v6702_v41  ;;  %v7151_v49 = vunpack.c.l.b16 %v6703_v60  ;;  %v7154_v39 = vunpack.c.l.b16 %v6706_v48  ;;  %v7155_v23 = vunpack.c.l.b16 %v6707_v32  ;;  %v17308_v48 = vld [vmem:[#allocation3 + $0x328] ss:$16 sps:$4 sm:$0xff]   ;;  %v17310_v32 = vld [vmem:[#allocation3 + $0x32c] ss:$16 sps:$4 sm:$0xff]   ;;  %10019 = vmatpush1.bf16.msra.mxu0 %v17305_v14 }
 0x2c1   :  { %v7152_v42 = vunpack.c.l.b16 %v6704_v2  ;;  %v7153_v56 = vunpack.c.l.b16 %v6705_v28  ;;  %v7156_v52 = vunpack.c.l.b16 %v6708_v6  ;;  %v7157_v5 = vunpack.c.l.b16 %v6709_v13  ;;  %10121 = vmatprep.subr.bf16.mxu1 %v17310_v32  ;;  %10020 = vmatprep.subr.bf16.mxu0 %v17313_v3 }
 0x2c2   :  { %v7435_v24 = vrot.slane %v7150_v51, 3  ;;  %v7447_v7 = vrot.slane %v7151_v49, 3  ;;  %v7451_v8 = vrot.slane %v7154_v39, 7  ;;  %v7464_v35 = vrot.slane %v7155_v23, 7  ;;  %v7753_v51 = vld [vmem:[#allocation2 + $0x28] sm:$0xff]  ;;  %10122 = vmatpush1.bf16.msra.mxu1 %v17308_v48 }
 0x2c3   :  { %v7437_v29 = vrot.slane %v7152_v42, 2  ;;  %v7449_v33 = vrot.slane %v7153_v56, 2  ;;  %v7452_v40 = vrot.slane %v7156_v52, 6  ;;  %v7465_v11 = vrot.slane %v7157_v5, 6  ;;  %v22440_v49 = vld [vmem:[#allocation28_spill] sm:$0xff]  ;;  %v19623_v52 = vpop.f32.mrb[40].mxu0 }
 0x2c4   :  { %v7436_v34 = vsel %vm7305_vm11, %v7435_v24, %v19551_v57  ;;  %v7448_v30 = vsel %vm7305_vm11, %v7447_v7, %v19554_v45  ;;  %v4132_v41 = vmax.f32 %v4042_v4, %v4044_v16  ;;  %v4045_v60 = vmax.f32 %v19570_v63, 0.0  ;;  %v7750_v57 = vld [vmem:[#allocation2 + $0x20] sm:$0xff]  ;;  %v19625_v5 = vpop.f32.mrb[40].mxu1 }
 0x2c5   :  { %v7438_v2 = vsel %vm22324_vm13, %v7437_v29, %v7436_v34  ;;  %v7450_v28 = vsel %vm22324_vm13, %v7449_v33, %v7448_v30  ;;  %v19594_v6 = vsel %vm22323_vm10, %v7452_v40, %v7451_v8  ;;  %v19597_v13 = vsel %vm22323_vm10, %v7465_v11, %v7464_v35  ;;  %22441 = vst [vmem:[#allocation22_spill] sm:$0xff] %v19625_v5  ;;  %v17316_v29 = vld [vmem:[#allocation3 + $0x34c] ss:$16 sps:$4 sm:$0xff]  }
 0x2c6   :  { %v7705_v45 = vpack.c.b16 %v7438_v2, %v19517_v54  ;;  %v7706_v63 = vpack.c.b16 %v7450_v28, %v19520_v59  ;;  %v4419_v4 = vcombine.low %v19565_v61, %v4132_v41  ;;  %v4420_v16 = vcombine.high %v19565_v61, %v4132_v41  ;;  %v17311_v41 = vld [vmem:[#allocation3 + $0x340] ss:$16 sps:$4 sm:$0xff]   ;;  %10123 = vmatprep.subr.bf16.mxu1 %v17316_v29 }
 0x2c7   :  { %v3801_v33 = vmul.f32 %v18953_v22, %v19209_v21  ;;  %v3800_v40 = vmul.f32 %v18956_v12, %v19224_v20  ;;  %v3802_v39 = vmul.f32 %v18959_v53, %v22440_v49  ;;  %v3803_v23 = vmul.f32 %v18950_v10, %v19232_v1  ;;  %10021 = vmatpush1.bf16.msra.mxu0 %v17311_v41 }
 0x2c8   :  { %v7751_v54 = vsel %vm19242_vm5, %v7705_v45, %v7750_v57  ;;  %v7754_v59 = vsel %vm19254_vm1, %v7706_v63, %v7753_v51  ;;  %v4427_v61 = vrot.slane %v4419_v4, %v17901_v27  ;;  %v4434_v21 = vrot.slane %v4420_v16, %v17901_v27  ;;  %v17314_v57 = vld [vmem:[#allocation3 + $0x348] ss:$16 sps:$4 sm:$0xff]  }
 0x2c9   :  { %7752 = vst [vmem:[#allocation2 + $0x20] sm:$0xff] %v7751_v54  ;;  %7755 = vst [vmem:[#allocation2 + $0x28] sm:$0xff] %v7754_v59  ;;  %v3935_v20 = vadd.f32 %v18965_v18, %v3801_v33  ;;  %v3934_v42 = vadd.f32 %v18968_v47, %v3800_v40  ;;  %v3936_v56 = vadd.f32 %v18971_v19, %v3802_v39  ;;  %v19634_v39 = vpop.f32.mrb[41].mxu0  ;;  %10124 = vmatpush1.bf16.msra.mxu1 %v17314_v57 }
 0x2ca   :  { %v19621_v1 = vadd.f32 %v18962_v46, %v3803_v23  ;;  %v4435_v24 = vcombine.high %v4427_v61, %v4427_v61  ;;  %v4436_v7 = vcombine.high %v4434_v21, %v4434_v21  ;;  %v16272_v8 = vrot.slane %v4427_v61, 9  ;;  %22442 = vst [vmem:[#allocation23_spill] sm:$0xff] %v19634_v39 }
 0x2cb   :  { %v16274_v35 = vrot.slane %v4434_v21, 9  ;;  %v4047_v11 = vmax.f32 %v3935_v20, 0.0  ;;  %v4046_v14 = vmax.f32 %v3934_v42, 0.0  ;;  %v4048_v34 = vmax.f32 %v3936_v56, 0.0 }
 0x2cc   :  { %v4049_v30 = vmax.f32 %v19621_v1, 0.0  ;;  %v16273_v48 = vrot.slane %v4435_v24, 9  ;;  %v16275_v32 = vrot.slane %v4436_v7, 9  ;;  %v5217_v2 = vmax.f32 %v4427_v61, %v16272_v8 }
 0x2cd   :  { %v5219_v28 = vmax.f32 %v4434_v21, %v16274_v35  ;;  %v4133_v51 = vmax.f32 %v4045_v60, %v4047_v11  ;;  %v4134_v45 = vmax.f32 %v4046_v14, %v4048_v34  ;;  %v3805_v63 = vmul.f32 %v18953_v22, %v19234_v36 }
 0x2ce   :  { %v3804_v4 = vmul.f32 %v18956_v12, %v19284_v50  ;;  %v5218_v16 = vmax.f32 %v4435_v24, %v16273_v48  ;;  %v5220_v33 = vmax.f32 %v4436_v7, %v16275_v32  ;;  %v5857_v40 = vrot.slane %v5217_v2, %v18932_v55 }
 0x2cf   :  { %v5861_v49 = vrot.slane %v5217_v2, %v18935_v62  ;;  %v5873_v23 = vrot.slane %v5219_v28, %v18932_v55  ;;  %v5877_v60 = vrot.slane %v5219_v28, %v18935_v62  ;;  %v4437_v54 = vcombine.low %v4133_v51, %v4134_v45 }
 0x2d0   :  { %v4438_v59 = vcombine.high %v4133_v51, %v4134_v45  ;;  %v5865_v36 = vrot.slane %v5218_v16, %v18932_v55  ;;  %v5869_v50 = vrot.slane %v5218_v16, %v18935_v62  ;;  %v5881_v61 = vrot.slane %v5220_v33, %v18932_v55 }
 0x2d1   :  { %v5885_v21 = vrot.slane %v5220_v33, %v18935_v62  ;;  %v6710_v20 = vpack.c.bf16 %v5857_v40, %v5857_v40  ;;  %v6711_v42 = vpack.c.bf16 %v5861_v49, %v5861_v49  ;;  %v6714_v56 = vpack.c.bf16 %v5873_v23, %v5873_v23 }
 0x2d2   :  { %v6715_v24 = vpack.c.bf16 %v5877_v60, %v5877_v60  ;;  %v6712_v7 = vpack.c.bf16 %v5865_v36, %v5865_v36  ;;  %v6713_v8 = vpack.c.bf16 %v5869_v50, %v5869_v50  ;;  %v6716_v35 = vpack.c.bf16 %v5881_v61, %v5881_v61  ;;  %v19648_v61 = vpop.f32.mrb[41].mxu1 }
 0x2d3   :  { %v6717_v3 = vpack.c.bf16 %v5885_v21, %v5885_v21  ;;  %v7158_v29 = vunpack.c.l.b16 %v6710_v20  ;;  %v7159_v11 = vunpack.c.l.b16 %v6711_v42  ;;  %v7162_v14 = vunpack.c.l.b16 %v6714_v56  ;;  %22443 = vst [vmem:[#allocation24_spill] sm:$0xff] %v19648_v61 }
 0x2d4   :  { %v7163_v34 = vunpack.c.l.b16 %v6715_v24  ;;  %v7160_v41 = vunpack.c.l.b16 %v6712_v7  ;;  %v7161_v48 = vunpack.c.l.b16 %v6713_v8  ;;  %v7164_v32 = vunpack.c.l.b16 %v6716_v35 }
 0x2d5   :  { %v7165_v2 = vunpack.c.l.b16 %v6717_v3  ;;  %v7454_v28 = vrot.slane %v7158_v29, 5  ;;  %v7458_v57 = vrot.slane %v7162_v14, 3  ;;  %v7467_v51 = vrot.slane %v7159_v11, 5  ;;  %v5310_v29 = vld [vmem:[#allocation2 + $0x38] sm:$0x1] }
 0x2d6   :  { %v7471_v45 = vrot.slane %v7163_v34, 3  ;;  %v7456_v16 = vrot.slane %v7160_v41, 4  ;;  %v7460_v33 = vrot.slane %v7164_v32, 2  ;;  %v7469_v40 = vrot.slane %v7161_v48, 4  ;;  %v22444_v48 = vld [vmem:[#allocation29_spill] sm:$0xff] }
 0x2d7   :  { %v7473_v49 = vrot.slane %v7165_v2, 2  ;;  %v7455_v23 = vsel %vm22329_vm9, %v7454_v28, %v19594_v6  ;;  %v7468_v60 = vsel %vm22329_vm9, %v7467_v51, %v19597_v13  ;;  %v4445_v36 = vrot.slane %v4437_v54, %v17901_v27  ;;  %v5307_v54 = vld [vmem:[#allocation2 + $0x30] sm:$0x1] }
 0x2d8   :  { %v4452_v50 = vrot.slane %v4438_v59, %v17901_v27  ;;  %v7457_v21 = vsel %vm2754_vm12, %v7456_v16, %v7455_v23  ;;  %v7470_v20 = vsel %vm2754_vm12, %v7469_v40, %v7468_v60  ;;  %v3939_v42 = vadd.f32 %v18965_v18, %v3805_v63  ;;  %v19671_v16 = vpop.f32.mrb[42].mxu0  ;;  %v19677_v60 = vpop.f32.mrb[42].mxu1 }
 0x2d9   :  { %v19654_v56 = vadd.f32 %v18968_v47, %v3804_v4  ;;  %v7459_v6 = vsel %vm7305_vm11, %v7458_v57, %v7457_v21  ;;  %v7472_v24 = vsel %vm7305_vm11, %v7471_v45, %v7470_v20  ;;  %v4453_v13 = vcombine.high %v4445_v36, %v4445_v36  ;;  %22445 = vst [vmem:[#allocation25_spill] sm:$0xff] %v19671_v16 }
 0x2da   :  { %v4454_v7 = vcombine.high %v4452_v50, %v4452_v50  ;;  %v7461_v59 = vsel %vm22324_vm13, %v7460_v33, %v7459_v6  ;;  %v7474_v8 = vsel %vm22324_vm13, %v7473_v49, %v7472_v24  ;;  %v16276_v35 = vrot.slane %v4445_v36, 9  ;;  %22446 = vst [vmem:[#allocation26_spill] sm:$0xff] %v19677_v60  ;;  %v19683_v24 = vpop.f32.mrb[43].mxu0 }
 0x2db   :  { %v16278_v3 = vrot.slane %v4452_v50, 9  ;;  %v16277_v11 = vrot.slane %v4453_v13, 9  ;;  %v4051_v63 = vmax.f32 %v3939_v42, 0.0  ;;  %v3806_v32 = vmul.f32 %v18959_v53, %v22444_v48  ;;  %22447 = vst [vmem:[#allocation27_spill] sm:$0xff] %v19683_v24 }
 0x2dc   :  { %v16279_v14 = vrot.slane %v4454_v7, 9  ;;  %v5221_v34 = vmax.f32 %v4445_v36, %v16276_v35  ;;  %v5308_v2 = vsel %vm18896_vm4, 0, %v5307_v54  ;;  %v5311_v45 = vsel %vm18903_vm6, 0, %v5310_v29 }
 0x2dd   :  { %v5223_v41 = vmax.f32 %v4452_v50, %v16278_v3  ;;  %v5222_v28 = vmax.f32 %v4453_v13, %v16277_v11  ;;  %v19667_v51 = vmax.f32 %v4049_v30, %v4051_v63  ;;  %5309 = vst [vmem:[#allocation2 + $0x30] sm:$0x1] %v5308_v2  ;;  %5312 = vst [vmem:[#allocation2 + $0x38] sm:$0x1] %v5311_v45  ;;  %v19685_v13 = vpop.f32.mrb[43].mxu1 }
 0x2de   :  { %v5224_v57 = vmax.f32 %v4454_v7, %v16279_v14  ;;  %v5889_v33 = vrot.slane %v5221_v34, %v18932_v55  ;;  %v5893_v40 = vrot.slane %v5221_v34, %v18935_v62  ;;  %22448 = vst [vmem:[#allocation28_spill] sm:$0xff] %v19685_v13  ;;  %v5360_v34 = vld [vmem:[#allocation2 + $0x30] sm:$0x80] }
 0x2df   :  { %v5905_v49 = vrot.slane %v5223_v41, %v18932_v55  ;;  %v5909_v23 = vrot.slane %v5223_v41, %v18935_v62  ;;  %v5897_v1 = vrot.slane %v5222_v28, %v18932_v55  ;;  %v5901_v30 = vrot.slane %v5222_v28, %v18935_v62 }
 0x2e0   :  { %v5913_v36 = vrot.slane %v5224_v57, %v18932_v55  ;;  %v5917_v50 = vrot.slane %v5224_v57, %v18935_v62  ;;  %v6718_v21 = vpack.c.bf16 %v5889_v33, %v5889_v33  ;;  %v6719_v20 = vpack.c.bf16 %v5893_v40, %v5893_v40 }
 0x2e1   :  { %v6722_v42 = vpack.c.bf16 %v5905_v49, %v5905_v49  ;;  %v6723_v6 = vpack.c.bf16 %v5909_v23, %v5909_v23  ;;  %v6720_v7 = vpack.c.bf16 %v5897_v1, %v5897_v1  ;;  %v6721_v54 = vpack.c.bf16 %v5901_v30, %v5901_v30  ;;  %v5363_v49 = vld [vmem:[#allocation2 + $0x38] sm:$0x80] }
 0x2e2   :  { %v6724_v35 = vpack.c.bf16 %v5913_v36, %v5913_v36  ;;  %v6725_v3 = vpack.c.bf16 %v5917_v50, %v5917_v50  ;;  %v7166_v29 = vunpack.c.l.b16 %v6718_v21  ;;  %v7167_v11 = vunpack.c.l.b16 %v6719_v20 }
 0x2e3   :  { %v7170_v14 = vunpack.c.l.b16 %v6722_v42  ;;  %v7171_v63 = vunpack.c.l.b16 %v6723_v6  ;;  %v7168_v41 = vunpack.c.l.b16 %v6720_v7  ;;  %v7169_v48 = vunpack.c.l.b16 %v6721_v54  ;;  %v22450_v54 = vld [vmem:[#allocation31_spill] sm:$0xff] }
 0x2e4   :  { %v7172_v2 = vunpack.c.l.b16 %v6724_v35  ;;  %v7173_v28 = vunpack.c.l.b16 %v6725_v3  ;;  %v7462_v57 = vrot.slane %v7166_v29, 1  ;;  %v7475_v45 = vrot.slane %v7167_v11, 1  ;;  %v22451_v3 = vld [vmem:[#allocation32_spill] sm:$0xff]  ;;  %v22452_v11 = vld [vmem:[#allocation33_spill] sm:$0xff] }
 0x2e5   :  { %v7477_v33 = vrot.slane %v7170_v14, 7  ;;  %v7489_v40 = vrot.slane %v7171_v63, 7  ;;  %v3940_v1 = vadd.f32 %v18971_v19, %v3806_v32  ;;  %v5361_v30 = vsel %vm18910_vm7, 0, %v5360_v34  ;;  %v17319_v63 = vld [vmem:[#allocation3 + $0x364] ss:$16 sps:$4 sm:$0xff]  }
 0x2e6   :  { %v7479_v23 = vrot.slane %v7172_v2, 6  ;;  %v7491_v4 = vrot.slane %v7173_v28, 6  ;;  %v19691_v36 = vsel %vm22321_vm0, %v7462_v57, %v7461_v59  ;;  %v19694_v50 = vsel %vm22321_vm0, %v7475_v45, %v7474_v8  ;;  %5362 = vst [vmem:[#allocation2 + $0x30] sm:$0x80] %v5361_v30  ;;  %v22449_v59 = vld [vmem:[#allocation30_spill] sm:$0xff]  ;;  %v22455_v28 = vld [vmem:[#allocation35_spill] sm:$0xff]  ;;  %10022 = vmatprep.subr.bf16.mxu0 %v17319_v63 }
 0x2e7   :  { %v7478_v21 = vsel %vm22320_vm14, %v7477_v33, %v7168_v41  ;;  %v7490_v20 = vsel %vm22320_vm14, %v7489_v40, %v7169_v48  ;;  %v4052_v32 = vmax.f32 %v3940_v1, 0.0  ;;  %v5364_v7 = vsel %vm18917_vm8, 0, %v5363_v49  ;;  %v22454_v48 = vld [vmem:[#allocation34_spill] sm:$0xff]  ;;  %v22456_v45 = vld [vmem:[#allocation36_spill] sm:$0xff]  ;;  %v17317_v40 = vld [vmem:[#allocation3 + $0x360] ss:$16 sps:$4 sm:$0xff]  }
 0x2e8   :  { %v19699_v42 = vsel %vm22323_vm10, %v7479_v23, %v7478_v21  ;;  %v19702_v6 = vsel %vm22323_vm10, %v7491_v4, %v7490_v20  ;;  %5365 = vst [vmem:[#allocation2 + $0x38] sm:$0x80] %v5364_v7  ;;  %v3807_v8 = vmul.f32 %v18950_v10, %v22449_v59  ;;  %v3809_v35 = vmul.f32 %v18953_v22, %v22450_v54  ;;  %v17322_v4 = vld [vmem:[#allocation3 + $0x36c] ss:$16 sps:$4 sm:$0xff]   ;;  %v17320_v49 = vld [vmem:[#allocation3 + $0x368] ss:$16 sps:$4 sm:$0xff]  }
 0x2e9   :  { %v3808_v29 = vmul.f32 %v18956_v12, %v22451_v3  ;;  %v3810_v14 = vmul.f32 %v18959_v53, %v22452_v11  ;;  %v22453_v34 = vmax.f32 %v19654_v56, 0.0  ;;  %v3811_v2 = vmul.f32 %v18950_v10, %v22454_v48  ;;  %10125 = vmatprep.subr.bf16.mxu1 %v17322_v4  ;;  %10023 = vmatpush1.bf16.msra.mxu0 %v17317_v40 }
 0x2ea   :  { %v3813_v57 = vmul.f32 %v18953_v22, %v22455_v28  ;;  %v3812_v33 = vmul.f32 %v18956_v12, %v22456_v45  ;;  %v3941_v23 = vadd.f32 %v18962_v46, %v3807_v8  ;;  %v3943_v1 = vadd.f32 %v18965_v18, %v3809_v35  ;;  %10126 = vmatpush1.bf16.msra.mxu1 %v17320_v49 }
 0x2eb   :  { %v4136_v41 = vmax.f32 %v22453_v34, %v4052_v32  ;;  %v3942_v30 = vadd.f32 %v18968_v47, %v3808_v29  ;;  %v3944_v56 = vadd.f32 %v18971_v19, %v3810_v14  ;;  %v3945_v32 = vadd.f32 %v18962_v46, %v3811_v2 }
 0x2ec   :  { %v3947_v7 = vadd.f32 %v18965_v18, %v3813_v57  ;;  %v4053_v59 = vmax.f32 %v3941_v23, 0.0  ;;  %v4055_v54 = vmax.f32 %v3943_v1, 0.0 }
 0x2ed   :  { %v4455_v21 = vcombine.low %v19667_v51, %v4136_v41  ;;  %v4456_v20 = vcombine.high %v19667_v51, %v4136_v41  ;;  %v4054_v3 = vmax.f32 %v3942_v30, 0.0  ;;  %v4056_v8 = vmax.f32 %v3944_v56, 0.0  ;;  %v22457_v41 = vld [vmem:[#allocation37_spill] sm:$0xff] }
 0x2ee   :  { %v4057_v11 = vmax.f32 %v3945_v32, 0.0  ;;  %v4059_v14 = vmax.f32 %v3947_v7, 0.0  ;;  %v4137_v63 = vmax.f32 %v4053_v59, %v4055_v54  ;;  %v19733_v51 = vadd.f32 %v18968_v47, %v3812_v33  ;;  %v22458_v7 = vld [vmem:[#allocation38_spill] sm:$0xff] }
 0x2ef   :  { %v4463_v35 = vrot.slane %v4455_v21, %v17901_v27  ;;  %v4470_v29 = vrot.slane %v4456_v20, %v17901_v27  ;;  %v4138_v34 = vmax.f32 %v4054_v3, %v4056_v8  ;;  %v3814_v4 = vmul.f32 %v18959_v53, %v22457_v41 }
 0x2f0   :  { %v19737_v49 = vmax.f32 %v4057_v11, %v4059_v14  ;;  %v19747_v59 = vmul.f32 %v18950_v10, %v22458_v7 }
 0x2f1   :  { %v4471_v48 = vcombine.high %v4463_v35, %v4463_v35  ;;  %v4472_v2 = vcombine.high %v4470_v29, %v4470_v29  ;;  %v16280_v28 = vrot.slane %v4463_v35, 9  ;;  %v16282_v57 = vrot.slane %v4470_v29, 9 }
 0x2f2   :  { %v4473_v45 = vcombine.low %v4137_v63, %v4138_v34  ;;  %v4474_v40 = vcombine.high %v4137_v63, %v4138_v34  ;;  %v19743_v32 = vadd.f32 %v18971_v19, %v3814_v4 }
 0x2f3   :  { %v16281_v1 = vrot.slane %v4471_v48, 9  ;;  %v16283_v30 = vrot.slane %v4472_v2, 9  ;;  %v5225_v56 = vmax.f32 %v4463_v35, %v16280_v28  ;;  %v5227_v21 = vmax.f32 %v4470_v29, %v16282_v57 }
 0x2f4   :  { %v4481_v33 = vrot.slane %v4473_v45, %v17901_v27  ;;  %v4488_v20 = vrot.slane %v4474_v40, %v17901_v27 }
 0x2f5   :  { %v5226_v54 = vmax.f32 %v4471_v48, %v16281_v1  ;;  %v5228_v3 = vmax.f32 %v4472_v2, %v16283_v30  ;;  %v5921_v8 = vrot.slane %v5225_v56, %v18932_v55  ;;  %v5925_v11 = vrot.slane %v5225_v56, %v18935_v62 }
 0x2f6   :  { %v5937_v35 = vrot.slane %v5227_v21, %v18932_v55  ;;  %v5941_v29 = vrot.slane %v5227_v21, %v18935_v62  ;;  %v4489_v14 = vcombine.high %v4481_v33, %v4481_v33  ;;  %v4490_v63 = vcombine.high %v4488_v20, %v4488_v20 }
 0x2f7   :  { %v5929_v34 = vrot.slane %v5226_v54, %v18932_v55  ;;  %v5933_v41 = vrot.slane %v5226_v54, %v18935_v62  ;;  %v5945_v4 = vrot.slane %v5228_v3, %v18932_v55  ;;  %v5949_v28 = vrot.slane %v5228_v3, %v18935_v62 }
 0x2f8   :  { %v6726_v48 = vpack.c.bf16 %v5921_v8, %v5921_v8  ;;  %v6727_v2 = vpack.c.bf16 %v5925_v11, %v5925_v11  ;;  %v6730_v57 = vpack.c.bf16 %v5937_v35, %v5937_v35  ;;  %v6731_v45 = vpack.c.bf16 %v5941_v29, %v5941_v29 }
 0x2f9   :  { %v6728_v40 = vpack.c.bf16 %v5929_v34, %v5929_v34  ;;  %v6729_v1 = vpack.c.bf16 %v5933_v41, %v5933_v41  ;;  %v6732_v30 = vpack.c.bf16 %v5945_v4, %v5945_v4  ;;  %v6733_v56 = vpack.c.bf16 %v5949_v28, %v5949_v28 }
 0x2fa   :  { %v7174_v7 = vunpack.c.l.b16 %v6726_v48  ;;  %v7175_v21 = vunpack.c.l.b16 %v6727_v2  ;;  %v7178_v23 = vunpack.c.l.b16 %v6730_v57  ;;  %v7179_v13 = vunpack.c.l.b16 %v6731_v45 }
 0x2fb   :  { %v7176_v24 = vunpack.c.l.b16 %v6728_v40  ;;  %v7177_v60 = vunpack.c.l.b16 %v6729_v1  ;;  %v7180_v16 = vunpack.c.l.b16 %v6732_v30  ;;  %v7181_v54 = vunpack.c.l.b16 %v6733_v56 }
 0x2fc   :  { %v7481_v61 = vrot.slane %v7174_v7, 5  ;;  %v7485_v39 = vrot.slane %v7178_v23, 3  ;;  %v7493_v5 = vrot.slane %v7175_v21, 5  ;;  %v7497_v3 = vrot.slane %v7179_v13, 3 }
 0x2fd   :  { %v7483_v8 = vrot.slane %v7176_v24, 4  ;;  %v7487_v11 = vrot.slane %v7180_v16, 2  ;;  %v7495_v35 = vrot.slane %v7177_v60, 4  ;;  %v7499_v29 = vrot.slane %v7181_v54, 2 }
 0x2fe   :  { %v7482_v34 = vsel %vm22329_vm9, %v7481_v61, %v19699_v42  ;;  %v7494_v41 = vsel %vm22329_vm9, %v7493_v5, %v19702_v6  ;;  %v16284_v4 = vrot.slane %v4481_v33, 9  ;;  %v16285_v28 = vrot.slane %v4489_v14, 9  ;;  %v7756_v42 = vld [vmem:[#allocation2 + $0x30] sm:$0xff]  ;;  %v7759_v5 = vld [vmem:[#allocation2 + $0x38] sm:$0xff] }
 0x2ff   :  { %v7484_v48 = vsel %vm2754_vm12, %v7483_v8, %v7482_v34  ;;  %v7496_v2 = vsel %vm2754_vm12, %v7495_v35, %v7494_v41  ;;  %v16286_v57 = vrot.slane %v4488_v20, 9  ;;  %v16287_v23 = vrot.slane %v4490_v63, 9 }
 0x300   :  { %v7486_v13 = vsel %vm7305_vm11, %v7485_v39, %v7484_v48  ;;  %v7498_v16 = vsel %vm7305_vm11, %v7497_v3, %v7496_v2  ;;  %v5229_v60 = vmax.f32 %v4481_v33, %v16284_v4  ;;  %v5230_v24 = vmax.f32 %v4489_v14, %v16285_v28 }
 0x301   :  { %v7488_v45 = vsel %vm22324_vm13, %v7487_v11, %v7486_v13  ;;  %v7500_v61 = vsel %vm22324_vm13, %v7499_v29, %v7498_v16  ;;  %v5231_v6 = vmax.f32 %v4488_v20, %v16286_v57  ;;  %v5232_v40 = vmax.f32 %v4490_v63, %v16287_v23 }
 0x302   :  { %v7707_v1 = vpack.c.b16 %v7488_v45, %v19691_v36  ;;  %v7708_v30 = vpack.c.b16 %v7500_v61, %v19694_v50  ;;  %v5953_v56 = vrot.slane %v5229_v60, %v18932_v55  ;;  %v5957_v39 = vrot.slane %v5229_v60, %v18935_v62 }
 0x303   :  { %v5961_v7 = vrot.slane %v5230_v24, %v18932_v55  ;;  %v5965_v33 = vrot.slane %v5230_v24, %v18935_v62  ;;  %v5969_v14 = vrot.slane %v5231_v6, %v18932_v55  ;;  %v5973_v21 = vrot.slane %v5231_v6, %v18935_v62 }
 0x304   :  { %v7757_v20 = vsel %vm19242_vm5, %v7707_v1, %v7756_v42  ;;  %v7760_v36 = vsel %vm19254_vm1, %v7708_v30, %v7759_v5  ;;  %v5977_v50 = vrot.slane %v5232_v40, %v18932_v55  ;;  %v5981_v63 = vrot.slane %v5232_v40, %v18935_v62 }
 0x305   :  { %7758 = vst [vmem:[#allocation2 + $0x30] sm:$0xff] %v7757_v20  ;;  %7761 = vst [vmem:[#allocation2 + $0x38] sm:$0xff] %v7760_v36  ;;  %v6734_v54 = vpack.c.bf16 %v5953_v56, %v5953_v56  ;;  %v6735_v3 = vpack.c.bf16 %v5957_v39, %v5957_v39  ;;  %v6736_v8 = vpack.c.bf16 %v5961_v7, %v5961_v7  ;;  %v4060_v56 = vmax.f32 %v19743_v32, 0.0  ;;  %v22460_v20 = vld [vmem:[#allocation40_spill] sm:$0xff] }
 0x306   :  { %v6737_v11 = vpack.c.bf16 %v5965_v33, %v5965_v33  ;;  %v6738_v35 = vpack.c.bf16 %v5969_v14, %v5969_v14  ;;  %v6739_v29 = vpack.c.bf16 %v5973_v21, %v5973_v21  ;;  %v6740_v34 = vpack.c.bf16 %v5977_v50, %v5977_v50  ;;  %v22459_v14 = vld [vmem:[#allocation39_spill] sm:$0xff] }
 0x307   :  { %v6741_v41 = vpack.c.bf16 %v5981_v63, %v5981_v63  ;;  %v7182_v4 = vunpack.c.l.b16 %v6734_v54  ;;  %v7183_v28 = vunpack.c.l.b16 %v6735_v3  ;;  %v7184_v48 = vunpack.c.l.b16 %v6736_v8 }
 0x308   :  { %v7185_v2 = vunpack.c.l.b16 %v6737_v11  ;;  %v7186_v57 = vunpack.c.l.b16 %v6738_v35  ;;  %v7187_v23 = vunpack.c.l.b16 %v6739_v29  ;;  %v7188_v13 = vunpack.c.l.b16 %v6740_v34  ;;  %v22462_v11 = vld [vmem:[#allocation41_spill] sm:$0xff]  ;;  %v22463_v29 = vld [vmem:[#allocation16_spill] sm:$0xff] }
 0x309   :  { %v7189_v16 = vunpack.c.l.b16 %v6741_v41  ;;  %v7501_v60 = vrot.slane %v7182_v4, 7  ;;  %v7502_v24 = vrot.slane %v7184_v48, 6  ;;  %v7514_v45 = vrot.slane %v7183_v28, 7  ;;  %v22464_v28 = vld [vmem:[#allocation17_spill] sm:$0xff] }
 0x30a   :  { %v7515_v61 = vrot.slane %v7185_v2, 6  ;;  %v7504_v42 = vrot.slane %v7186_v57, 5  ;;  %v7506_v5 = vrot.slane %v7188_v13, 4  ;;  %v7517_v6 = vrot.slane %v7187_v23, 5 }
 0x30b   :  { %v7519_v40 = vrot.slane %v7189_v16, 4  ;;  %v7503_v1 = vsel %vm22323_vm10, %v7502_v24, %v7501_v60  ;;  %v3949_v39 = vadd.f32 %v18962_v46, %v19747_v59  ;;  %v3817_v21 = vmul.f32 %v18953_v22, %v22459_v14 }
 0x30c   :  { %v7516_v30 = vsel %vm22323_vm10, %v7515_v61, %v7514_v45  ;;  %v7505_v7 = vsel %vm22329_vm9, %v7504_v42, %v7503_v1  ;;  %v3816_v36 = vmul.f32 %v18956_v12, %v22460_v20  ;;  %v22461_v32 = vmax.f32 %v19733_v51, 0.0  ;;  %v22465_v51 = vld [vmem:[#allocation18_spill] sm:$0xff] }
 0x30d   :  { %v7518_v33 = vsel %vm22329_vm9, %v7517_v6, %v7516_v30  ;;  %v19793_v50 = vsel %vm2754_vm12, %v7506_v5, %v7505_v7  ;;  %v4061_v59 = vmax.f32 %v3949_v39, 0.0  ;;  %v3951_v3 = vadd.f32 %v18965_v18, %v3817_v21  ;;  %v22466_v6 = vld [vmem:[#allocation19_spill] sm:$0xff] }
 0x30e   :  { %v19796_v63 = vsel %vm2754_vm12, %v7519_v40, %v7518_v33  ;;  %v4140_v54 = vmax.f32 %v22461_v32, %v4060_v56  ;;  %v3950_v8 = vadd.f32 %v18968_v47, %v3816_v36  ;;  %v3818_v35 = vmul.f32 %v18959_v53, %v22462_v11 }
 0x30f   :  { %v3819_v34 = vmul.f32 %v18950_v10, %v22463_v29  ;;  %v3821_v48 = vmul.f32 %v18953_v22, %v22464_v28  ;;  %v3820_v2 = vmul.f32 %v18956_v12, %v22465_v51  ;;  %v4063_v57 = vmax.f32 %v3951_v3, 0.0  ;;  %v19833_v28 = vpop.f32.mrb[44].mxu1 }
 0x310   :  { %v4491_v41 = vcombine.low %v19737_v49, %v4140_v54  ;;  %v4492_v4 = vcombine.high %v19737_v49, %v4140_v54  ;;  %v4062_v23 = vmax.f32 %v3950_v8, 0.0  ;;  %v3952_v13 = vadd.f32 %v18971_v19, %v3818_v35 }
 0x311   :  { %v3953_v16 = vadd.f32 %v18962_v46, %v3819_v34  ;;  %v3955_v45 = vadd.f32 %v18965_v18, %v3821_v48  ;;  %v19818_v49 = vadd.f32 %v18968_v47, %v3820_v2  ;;  %v4141_v61 = vmax.f32 %v4061_v59, %v4063_v57 }
 0x312   :  { %v4499_v60 = vrot.slane %v4491_v41, %v17901_v27  ;;  %v4506_v24 = vrot.slane %v4492_v4, %v17901_v27  ;;  %v4064_v42 = vmax.f32 %v3952_v13, 0.0  ;;  %v3822_v40 = vmul.f32 %v18959_v53, %v22466_v6  ;;  %v19831_v4 = vpop.f32.mrb[44].mxu0  ;;  %v19841_v13 = vpop.f32.mrb[45].mxu1 }
 0x313   :  { %v4065_v5 = vmax.f32 %v3953_v16, 0.0  ;;  %v4067_v33 = vmax.f32 %v3955_v45, 0.0  ;;  %v4066_v14 = vmax.f32 %v19818_v49, 0.0 }
 0x314   :  { %v4507_v1 = vcombine.high %v4499_v60, %v4499_v60  ;;  %v4508_v30 = vcombine.high %v4506_v24, %v4506_v24  ;;  %v16288_v56 = vrot.slane %v4499_v60, 9  ;;  %v16290_v39 = vrot.slane %v4506_v24, 9 }
 0x315   :  { %v4142_v7 = vmax.f32 %v4062_v23, %v4064_v42  ;;  %v19824_v21 = vadd.f32 %v18971_v19, %v3822_v40  ;;  %v19826_v8 = vmax.f32 %v4065_v5, %v4067_v33  ;;  %v19839_v23 = vpop.f32.mrb[45].mxu0 }
 0x316   :  { %v16289_v20 = vrot.slane %v4507_v1, 9  ;;  %v16291_v36 = vrot.slane %v4508_v30, 9  ;;  %v5233_v32 = vmax.f32 %v4499_v60, %v16288_v56  ;;  %v5235_v54 = vmax.f32 %v4506_v24, %v16290_v39 }
 0x317   :  { %v4509_v59 = vcombine.low %v4141_v61, %v4142_v7  ;;  %v4510_v3 = vcombine.high %v4141_v61, %v4142_v7  ;;  %v4068_v11 = vmax.f32 %v19824_v21, 0.0 }
 0x318   :  { %v5234_v35 = vmax.f32 %v4507_v1, %v16289_v20  ;;  %v5236_v29 = vmax.f32 %v4508_v30, %v16291_v36  ;;  %v5985_v34 = vrot.slane %v5233_v32, %v18932_v55  ;;  %v5989_v41 = vrot.slane %v5233_v32, %v18935_v62 }
 0x319   :  { %v6001_v48 = vrot.slane %v5235_v54, %v18932_v55  ;;  %v6005_v51 = vrot.slane %v5235_v54, %v18935_v62  ;;  %v4517_v2 = vrot.slane %v4509_v59, %v17901_v27  ;;  %v4524_v57 = vrot.slane %v4510_v3, %v17901_v27 }
 0x31a   :  { %v5993_v16 = vrot.slane %v5234_v35, %v18932_v55  ;;  %v5997_v60 = vrot.slane %v5234_v35, %v18935_v62  ;;  %v6009_v24 = vrot.slane %v5236_v29, %v18932_v55  ;;  %v6013_v45 = vrot.slane %v5236_v29, %v18935_v62 }
 0x31b   :  { %v6742_v61 = vpack.c.bf16 %v5985_v34, %v5985_v34  ;;  %v6743_v42 = vpack.c.bf16 %v5989_v41, %v5989_v41  ;;  %v6746_v5 = vpack.c.bf16 %v6001_v48, %v6001_v48  ;;  %v6747_v6 = vpack.c.bf16 %v6005_v51, %v6005_v51 }
 0x31c   :  { %v6744_v40 = vpack.c.bf16 %v5993_v16, %v5993_v16  ;;  %v6745_v1 = vpack.c.bf16 %v5997_v60, %v5997_v60  ;;  %v6748_v30 = vpack.c.bf16 %v6009_v24, %v6009_v24  ;;  %v6749_v56 = vpack.c.bf16 %v6013_v45, %v6013_v45 }
 0x31d   :  { %v7190_v39 = vunpack.c.l.b16 %v6742_v61  ;;  %v7191_v7 = vunpack.c.l.b16 %v6743_v42  ;;  %v7194_v33 = vunpack.c.l.b16 %v6746_v5  ;;  %v7195_v21 = vunpack.c.l.b16 %v6747_v6  ;;  %v5313_v61 = vld [vmem:[#allocation2 + $0x40] sm:$0x1] }
 0x31e   :  { %v7192_v20 = vunpack.c.l.b16 %v6744_v40  ;;  %v7193_v36 = vunpack.c.l.b16 %v6745_v1  ;;  %v19847_v32 = vunpack.c.l.b16 %v6748_v30  ;;  %v19849_v54 = vunpack.c.l.b16 %v6749_v56 }
 0x31f   :  { %v7508_v59 = vrot.slane %v7190_v39, 3  ;;  %v7512_v3 = vrot.slane %v7194_v33, 1  ;;  %v7521_v35 = vrot.slane %v7191_v7, 3  ;;  %v7525_v29 = vrot.slane %v7195_v21, 1 }
 0x320   :  { %v7510_v34 = vrot.slane %v7192_v20, 2  ;;  %v7523_v41 = vrot.slane %v7193_v36, 2  ;;  %v4525_v48 = vcombine.high %v4517_v2, %v4517_v2  ;;  %v4526_v51 = vcombine.high %v4524_v57, %v4524_v57 }
 0x321   :  { %v7509_v16 = vsel %vm7305_vm11, %v7508_v59, %v19793_v50  ;;  %v7522_v60 = vsel %vm7305_vm11, %v7521_v35, %v19796_v63  ;;  %v16292_v24 = vrot.slane %v4517_v2, 9  ;;  %v16294_v45 = vrot.slane %v4524_v57, 9 }
 0x322   :  { %v7511_v42 = vsel %vm22324_vm13, %v7510_v34, %v7509_v16  ;;  %v7524_v5 = vsel %vm22324_vm13, %v7523_v41, %v7522_v60  ;;  %v16293_v6 = vrot.slane %v4525_v48, 9  ;;  %v16295_v40 = vrot.slane %v4526_v51, 9 }
 0x323   :  { %v19858_v1 = vsel %vm22321_vm0, %v7512_v3, %v7511_v42  ;;  %v19861_v30 = vsel %vm22321_vm0, %v7525_v29, %v7524_v5  ;;  %v5237_v56 = vmax.f32 %v4517_v2, %v16292_v24  ;;  %v5239_v50 = vmax.f32 %v4524_v57, %v16294_v45  ;;  %v19877_v42 = vpop.f32.mrb[46].mxu1 }
 0x324   :  { %v5238_v39 = vmax.f32 %v4525_v48, %v16293_v6  ;;  %v5240_v7 = vmax.f32 %v4526_v51, %v16295_v40  ;;  %v4144_v63 = vmax.f32 %v4066_v14, %v4068_v11  ;;  %v5314_v33 = vsel %vm18896_vm4, 0, %v5313_v61  ;;  %v19875_v61 = vpop.f32.mrb[46].mxu0 }
 0x325   :  { %v6017_v21 = vrot.slane %v5237_v56, %v18932_v55  ;;  %v6021_v20 = vrot.slane %v5237_v56, %v18935_v62  ;;  %v6033_v36 = vrot.slane %v5239_v50, %v18932_v55  ;;  %v6037_v59 = vrot.slane %v5239_v50, %v18935_v62  ;;  %5315 = vst [vmem:[#allocation2 + $0x40] sm:$0x1] %v5314_v33  ;;  %v5316_v50 = vld [vmem:[#allocation2 + $0x48] sm:$0x1] }
 0x326   :  { %v6025_v2 = vrot.slane %v5238_v39, %v18932_v55  ;;  %v6029_v57 = vrot.slane %v5238_v39, %v18935_v62  ;;  %v6041_v3 = vrot.slane %v5240_v7, %v18932_v55  ;;  %v6045_v49 = vrot.slane %v5240_v7, %v18935_v62  ;;  %v19879_v39 = vpop.f32.mrb[47].mxu0  ;;  %v19881_v7 = vpop.f32.mrb[47].mxu1 }
 0x327   :  { %v6750_v14 = vpack.c.bf16 %v6017_v21, %v6017_v21  ;;  %v6751_v11 = vpack.c.bf16 %v6021_v20, %v6021_v20  ;;  %v6754_v35 = vpack.c.bf16 %v6033_v36, %v6033_v36  ;;  %v6755_v29 = vpack.c.bf16 %v6037_v59, %v6037_v59  ;;  %v5366_v59 = vld [vmem:[#allocation2 + $0x40] sm:$0x80] }
 0x328   :  { %v6752_v34 = vpack.c.bf16 %v6025_v2, %v6025_v2  ;;  %v6753_v41 = vpack.c.bf16 %v6029_v57, %v6029_v57  ;;  %v6756_v48 = vpack.c.bf16 %v6041_v3, %v6041_v3  ;;  %v6757_v51 = vpack.c.bf16 %v6045_v49, %v6045_v49 }
 0x329   :  { %v7198_v16 = vunpack.c.l.b16 %v6750_v14  ;;  %v7199_v60 = vunpack.c.l.b16 %v6751_v11  ;;  %v7202_v24 = vunpack.c.l.b16 %v6754_v35  ;;  %v7203_v45 = vunpack.c.l.b16 %v6755_v29 }
 0x32a   :  { %v7200_v5 = vunpack.c.l.b16 %v6752_v34  ;;  %v7201_v6 = vunpack.c.l.b16 %v6753_v41  ;;  %v7204_v40 = vunpack.c.l.b16 %v6756_v48  ;;  %v7205_v56 = vunpack.c.l.b16 %v6757_v51  ;;  %v5369_v34 = vld [vmem:[#allocation2 + $0x48] sm:$0x80] }
 0x32b   :  { %v7527_v33 = vrot.slane %v7198_v16, 7  ;;  %v7531_v21 = vrot.slane %v7202_v24, 5  ;;  %v7539_v20 = vrot.slane %v7199_v60, 7  ;;  %v7543_v36 = vrot.slane %v7203_v45, 5 }
 0x32c   :  { %v7529_v2 = vrot.slane %v7200_v5, 6  ;;  %v7533_v57 = vrot.slane %v7204_v40, 4  ;;  %v7541_v3 = vrot.slane %v7201_v6, 6  ;;  %v7545_v49 = vrot.slane %v7205_v56, 4 }
 0x32d   :  { %v7528_v14 = vsel %vm22320_vm14, %v7527_v33, %v19847_v32  ;;  %v7540_v11 = vsel %vm22320_vm14, %v7539_v20, %v19849_v54  ;;  %v4527_v35 = vcombine.low %v19826_v8, %v4144_v63  ;;  %v4528_v29 = vcombine.high %v19826_v8, %v4144_v63  ;;  %v19899_v8 = vpop.f32.mrb[48].mxu0  ;;  %v19901_v63 = vpop.f32.mrb[48].mxu1 }
 0x32e   :  { %v7530_v41 = vsel %vm22323_vm10, %v7529_v2, %v7528_v14  ;;  %v7542_v48 = vsel %vm22323_vm10, %v7541_v3, %v7540_v11  ;;  %v5317_v51 = vsel %vm18903_vm6, 0, %v5316_v50  ;;  %v5367_v16 = vsel %vm18910_vm7, 0, %v5366_v59  ;;  %22467 = vst [vmem:[#allocation29_spill] sm:$0xff] %v19899_v8  ;;  %22468 = vst [vmem:[#allocation30_spill] sm:$0xff] %v19901_v63  ;;  %v19913_v56 = vpop.f32.mrb[49].mxu0  ;;  %v19915_v50 = vpop.f32.mrb[49].mxu1 }
 0x32f   :  { %v7532_v32 = vsel %vm22329_vm9, %v7531_v21, %v7530_v41  ;;  %v7544_v60 = vsel %vm22329_vm9, %v7543_v36, %v7542_v48  ;;  %v4535_v54 = vrot.slane %v4527_v35, %v17901_v27  ;;  %v4542_v24 = vrot.slane %v4528_v29, %v17901_v27  ;;  %5318 = vst [vmem:[#allocation2 + $0x48] sm:$0x1] %v5317_v51  ;;  %v19917_v59 = vpop.f32.mrb[50].mxu0  ;;  %v19929_v51 = vpop.f32.mrb[50].mxu1 }
 0x330   :  { %5368 = vst [vmem:[#allocation2 + $0x40] sm:$0x80] %v5367_v16  ;;  %v19904_v45 = vsel %vm2754_vm12, %v7533_v57, %v7532_v32  ;;  %v19907_v5 = vsel %vm2754_vm12, %v7545_v49, %v7544_v60  ;;  %v5370_v6 = vsel %vm18917_vm8, 0, %v5369_v34  ;;  %v3823_v40 = vmul.f32 %v18950_v10, %v19506_v0  ;;  %22469 = vst [vmem:[#allocation31_spill] sm:$0xff] %v19913_v56 }
 0x331   :  { %22470 = vst [vmem:[#allocation32_spill] sm:$0xff] %v19915_v50  ;;  %v4543_v33 = vcombine.high %v4535_v54, %v4535_v54  ;;  %v4544_v21 = vcombine.high %v4542_v24, %v4542_v24  ;;  %v16296_v20 = vrot.slane %v4535_v54, 9  ;;  %v16298_v36 = vrot.slane %v4542_v24, 9  ;;  %5371 = vst [vmem:[#allocation2 + $0x48] sm:$0x80] %v5370_v6  ;;  %v19935_v6 = vpop.f32.mrb[51].mxu0 }
 0x332   :  { %22471 = vst [vmem:[#allocation33_spill] sm:$0xff] %v19917_v59  ;;  %v3957_v2 = vadd.f32 %v18962_v46, %v3823_v40  ;;  %v3825_v57 = vmul.f32 %v18953_v22, %v19528_v25  ;;  %v3824_v3 = vmul.f32 %v18956_v12, %v19546_v44  ;;  %v3826_v0 = vmul.f32 %v18959_v53, %v19548_v15  ;;  %v19937_v40 = vpop.f32.mrb[51].mxu1 }
 0x333   :  { %v16297_v49 = vrot.slane %v4543_v33, 9  ;;  %v16299_v14 = vrot.slane %v4544_v21, 9  ;;  %v5241_v11 = vmax.f32 %v4535_v54, %v16296_v20  ;;  %v5243_v35 = vmax.f32 %v4542_v24, %v16298_v36  ;;  %22472 = vst [vmem:[#allocation34_spill] sm:$0xff] %v19929_v51  ;;  %22473 = vst [vmem:[#allocation35_spill] sm:$0xff] %v19935_v6 }
 0x334   :  { %v4069_v29 = vmax.f32 %v3957_v2, 0.0  ;;  %v3959_v34 = vadd.f32 %v18965_v18, %v3825_v57  ;;  %v3958_v41 = vadd.f32 %v18968_v47, %v3824_v3  ;;  %v3960_v48 = vadd.f32 %v18971_v19, %v3826_v0  ;;  %22474 = vst [vmem:[#allocation36_spill] sm:$0xff] %v19937_v40 }
 0x335   :  { %v5242_v25 = vmax.f32 %v4543_v33, %v16297_v49  ;;  %v5244_v16 = vmax.f32 %v4544_v21, %v16299_v14  ;;  %v6049_v44 = vrot.slane %v5241_v11, %v18932_v55  ;;  %v6053_v32 = vrot.slane %v5241_v11, %v18935_v62 }
 0x336   :  { %v6065_v15 = vrot.slane %v5243_v35, %v18932_v55  ;;  %v6069_v60 = vrot.slane %v5243_v35, %v18935_v62  ;;  %v4071_v54 = vmax.f32 %v3959_v34, 0.0  ;;  %v4070_v24 = vmax.f32 %v3958_v41, 0.0 }
 0x337   :  { %v6057_v20 = vrot.slane %v5242_v25, %v18932_v55  ;;  %v6061_v36 = vrot.slane %v5242_v25, %v18935_v62  ;;  %v6073_v33 = vrot.slane %v5244_v16, %v18932_v55  ;;  %v6077_v21 = vrot.slane %v5244_v16, %v18935_v62 }
 0x338   :  { %v6758_v2 = vpack.c.bf16 %v6049_v44, %v6049_v44  ;;  %v6759_v57 = vpack.c.bf16 %v6053_v32, %v6053_v32  ;;  %v6762_v3 = vpack.c.bf16 %v6065_v15, %v6065_v15  ;;  %v6763_v0 = vpack.c.bf16 %v6069_v60, %v6069_v60 }
 0x339   :  { %v6760_v49 = vpack.c.bf16 %v6057_v20, %v6057_v20  ;;  %v6761_v14 = vpack.c.bf16 %v6061_v36, %v6061_v36  ;;  %v6764_v11 = vpack.c.bf16 %v6073_v33, %v6073_v33  ;;  %v6765_v35 = vpack.c.bf16 %v6077_v21, %v6077_v21 }
 0x33a   :  { %v7206_v34 = vunpack.c.l.b16 %v6758_v2  ;;  %v7207_v41 = vunpack.c.l.b16 %v6759_v57  ;;  %v7210_v6 = vunpack.c.l.b16 %v6762_v3  ;;  %v7211_v40 = vunpack.c.l.b16 %v6763_v0 }
 0x33b   :  { %v7208_v51 = vunpack.c.l.b16 %v6760_v49  ;;  %v7209_v59 = vunpack.c.l.b16 %v6761_v14  ;;  %v7212_v50 = vunpack.c.l.b16 %v6764_v11  ;;  %v7213_v25 = vunpack.c.l.b16 %v6765_v35 }
 0x33c   :  { %v7535_v56 = vrot.slane %v7206_v34, 3  ;;  %v7547_v63 = vrot.slane %v7207_v41, 3  ;;  %v7551_v8 = vrot.slane %v7210_v6, 7  ;;  %v7564_v16 = vrot.slane %v7211_v40, 7  ;;  %v22477_v34 = vld [vmem:[#allocation22_spill] sm:$0xff] }
 0x33d   :  { %v7537_v44 = vrot.slane %v7208_v51, 2  ;;  %v7549_v32 = vrot.slane %v7209_v59, 2  ;;  %v7552_v15 = vrot.slane %v7212_v50, 6  ;;  %v7565_v60 = vrot.slane %v7213_v25, 6  ;;  %v7762_v50 = vld [vmem:[#allocation2 + $0x40] sm:$0xff]  ;;  %v7765_v59 = vld [vmem:[#allocation2 + $0x48] sm:$0xff] }
 0x33e   :  { %v7536_v20 = vsel %vm7305_vm11, %v7535_v56, %v19904_v45  ;;  %v7548_v36 = vsel %vm7305_vm11, %v7547_v63, %v19907_v5  ;;  %v4145_v33 = vmax.f32 %v4069_v29, %v4071_v54  ;;  %v4072_v21 = vmax.f32 %v3960_v48, 0.0  ;;  %v22475_v29 = vld [vmem:[#allocation20_spill] sm:$0xff]  ;;  %v22476_v48 = vld [vmem:[#allocation21_spill] sm:$0xff] }
 0x33f   :  { %v7538_v2 = vsel %vm22324_vm13, %v7537_v44, %v7536_v20  ;;  %v7550_v57 = vsel %vm22324_vm13, %v7549_v32, %v7548_v36  ;;  %v19950_v3 = vsel %vm22323_vm10, %v7552_v15, %v7551_v8  ;;  %v19953_v51 = vsel %vm22323_vm10, %v7565_v60, %v7564_v16 }
 0x340   :  { %v7709_v6 = vpack.c.b16 %v7538_v2, %v19858_v1  ;;  %v7710_v45 = vpack.c.b16 %v7550_v57, %v19861_v30  ;;  %v4146_v56 = vmax.f32 %v4070_v24, %v4072_v21  ;;  %v3827_v63 = vmul.f32 %v18950_v10, %v19563_v31 }
 0x341   :  { %v3829_v5 = vmul.f32 %v18953_v22, %v19580_v37  ;;  %v3828_v8 = vmul.f32 %v18956_v12, %v22475_v29  ;;  %v3830_v54 = vmul.f32 %v18959_v53, %v22476_v48  ;;  %v3831_v40 = vmul.f32 %v18950_v10, %v19623_v52  ;;  %v22478_v29 = vld [vmem:[#allocation23_spill] sm:$0xff] }
 0x342   :  { %v7763_v1 = vsel %vm19242_vm5, %v7709_v6, %v7762_v50  ;;  %v7766_v30 = vsel %vm19254_vm1, %v7710_v45, %v7765_v59  ;;  %v4545_v24 = vcombine.low %v4145_v33, %v4146_v56  ;;  %v4546_v31 = vcombine.high %v4145_v33, %v4146_v56 }
 0x343   :  { %7764 = vst [vmem:[#allocation2 + $0x40] sm:$0xff] %v7763_v1  ;;  %7767 = vst [vmem:[#allocation2 + $0x48] sm:$0xff] %v7766_v30  ;;  %v3961_v37 = vadd.f32 %v18962_v46, %v3827_v63  ;;  %v3963_v0 = vadd.f32 %v18965_v18, %v3829_v5  ;;  %v3962_v49 = vadd.f32 %v18968_v47, %v3828_v8 }
 0x344   :  { %v3964_v14 = vadd.f32 %v18971_v19, %v3830_v54  ;;  %v4553_v52 = vrot.slane %v4545_v24, %v17901_v27  ;;  %v4560_v11 = vrot.slane %v4546_v31, %v17901_v27  ;;  %v19978_v35 = vadd.f32 %v18962_v46, %v3831_v40 }
 0x345   :  { %v3833_v41 = vmul.f32 %v18953_v22, %v22477_v34  ;;  %v4073_v25 = vmax.f32 %v3961_v37, 0.0  ;;  %v4075_v16 = vmax.f32 %v3963_v0, 0.0  ;;  %v4074_v44 = vmax.f32 %v3962_v49, 0.0 }
 0x346   :  { %v4076_v32 = vmax.f32 %v3964_v14, 0.0  ;;  %v4561_v15 = vcombine.high %v4553_v52, %v4553_v52  ;;  %v4562_v60 = vcombine.high %v4560_v11, %v4560_v11  ;;  %v16300_v20 = vrot.slane %v4553_v52, 9 }
 0x347   :  { %v16302_v36 = vrot.slane %v4560_v11, 9  ;;  %v4147_v33 = vmax.f32 %v4073_v25, %v4075_v16  ;;  %v4077_v2 = vmax.f32 %v19978_v35, 0.0  ;;  %v19984_v57 = vadd.f32 %v18965_v18, %v3833_v41 }
 0x348   :  { %v4148_v21 = vmax.f32 %v4074_v44, %v4076_v32  ;;  %v16301_v50 = vrot.slane %v4561_v15, 9  ;;  %v16303_v59 = vrot.slane %v4562_v60, 9  ;;  %v5245_v6 = vmax.f32 %v4553_v52, %v16300_v20 }
 0x349   :  { %v5247_v45 = vmax.f32 %v4560_v11, %v16302_v36  ;;  %v4079_v5 = vmax.f32 %v19984_v57, 0.0  ;;  %v3832_v8 = vmul.f32 %v18956_v12, %v22478_v29 }
 0x34a   :  { %v4563_v56 = vcombine.low %v4147_v33, %v4148_v21  ;;  %v4564_v63 = vcombine.high %v4147_v33, %v4148_v21  ;;  %v5246_v48 = vmax.f32 %v4561_v15, %v16301_v50  ;;  %v5248_v54 = vmax.f32 %v4562_v60, %v16303_v59 }
 0x34b   :  { %v6081_v40 = vrot.slane %v5245_v6, %v18932_v55  ;;  %v6085_v1 = vrot.slane %v5245_v6, %v18935_v62  ;;  %v6097_v30 = vrot.slane %v5247_v45, %v18932_v55  ;;  %v6101_v24 = vrot.slane %v5247_v45, %v18935_v62 }
 0x34c   :  { %v4571_v31 = vrot.slane %v4563_v56, %v17901_v27  ;;  %v4578_v37 = vrot.slane %v4564_v63, %v17901_v27  ;;  %v6089_v0 = vrot.slane %v5246_v48, %v18932_v55  ;;  %v6093_v49 = vrot.slane %v5246_v48, %v18935_v62 }
 0x34d   :  { %v6105_v14 = vrot.slane %v5248_v54, %v18932_v55  ;;  %v6109_v52 = vrot.slane %v5248_v54, %v18935_v62  ;;  %v6766_v11 = vpack.c.bf16 %v6081_v40, %v6081_v40  ;;  %v6767_v34 = vpack.c.bf16 %v6085_v1, %v6085_v1 }
 0x34e   :  { %v6770_v41 = vpack.c.bf16 %v6097_v30, %v6097_v30  ;;  %v6771_v25 = vpack.c.bf16 %v6101_v24, %v6101_v24  ;;  %v6768_v16 = vpack.c.bf16 %v6089_v0, %v6089_v0  ;;  %v6769_v44 = vpack.c.bf16 %v6093_v49, %v6093_v49 }
 0x34f   :  { %v6772_v32 = vpack.c.bf16 %v6105_v14, %v6105_v14  ;;  %v6773_v15 = vpack.c.bf16 %v6109_v52, %v6109_v52  ;;  %v7214_v60 = vunpack.c.l.b16 %v6766_v11  ;;  %v7215_v20 = vunpack.c.l.b16 %v6767_v34 }
 0x350   :  { %v7218_v36 = vunpack.c.l.b16 %v6770_v41  ;;  %v7219_v33 = vunpack.c.l.b16 %v6771_v25  ;;  %v7216_v21 = vunpack.c.l.b16 %v6768_v16  ;;  %v7217_v57 = vunpack.c.l.b16 %v6769_v44 }
 0x351   :  { %v7220_v50 = vunpack.c.l.b16 %v6772_v32  ;;  %v7221_v59 = vunpack.c.l.b16 %v6773_v15  ;;  %v7554_v6 = vrot.slane %v7214_v60, 5  ;;  %v7567_v56 = vrot.slane %v7215_v20, 5 }
 0x352   :  { %v7558_v45 = vrot.slane %v7218_v36, 3  ;;  %v7571_v63 = vrot.slane %v7219_v33, 3  ;;  %v7556_v29 = vrot.slane %v7216_v21, 4  ;;  %v7569_v54 = vrot.slane %v7217_v57, 4 }
 0x353   :  { %v7560_v48 = vrot.slane %v7220_v50, 2  ;;  %v7573_v40 = vrot.slane %v7221_v59, 2  ;;  %v7555_v1 = vsel %vm22329_vm9, %v7554_v6, %v19950_v3  ;;  %v7568_v30 = vsel %vm22329_vm9, %v7567_v56, %v19953_v51 }
 0x354   :  { %v4579_v24 = vcombine.high %v4571_v31, %v4571_v31  ;;  %v4580_v0 = vcombine.high %v4578_v37, %v4578_v37  ;;  %v7557_v49 = vsel %vm2754_vm12, %v7556_v29, %v7555_v1  ;;  %v7570_v14 = vsel %vm2754_vm12, %v7569_v54, %v7568_v30 }
 0x355   :  { %v16304_v52 = vrot.slane %v4571_v31, 9  ;;  %v16306_v11 = vrot.slane %v4578_v37, 9  ;;  %v7559_v34 = vsel %vm7305_vm11, %v7558_v45, %v7557_v49  ;;  %v7572_v41 = vsel %vm7305_vm11, %v7571_v63, %v7570_v14  ;;  %v5319_v14 = vld [vmem:[#allocation2 + $0x50] sm:$0x1] }
 0x356   :  { %v16305_v25 = vrot.slane %v4579_v24, 9  ;;  %v16307_v16 = vrot.slane %v4580_v0, 9  ;;  %v7561_v44 = vsel %vm22324_vm13, %v7560_v48, %v7559_v34  ;;  %v7574_v3 = vsel %vm22324_vm13, %v7573_v40, %v7572_v41 }
 0x357   :  { %v5249_v32 = vmax.f32 %v4571_v31, %v16304_v52  ;;  %v5251_v51 = vmax.f32 %v4578_v37, %v16306_v11  ;;  %v20011_v20 = vmax.f32 %v4077_v2, %v4079_v5  ;;  %v20014_v36 = vadd.f32 %v18968_v47, %v3832_v8  ;;  %v5322_v52 = vld [vmem:[#allocation2 + $0x58] sm:$0x1] }
 0x358   :  { %v5250_v15 = vmax.f32 %v4579_v24, %v16305_v25  ;;  %v5252_v60 = vmax.f32 %v4580_v0, %v16307_v16  ;;  %v5372_v16 = vld [vmem:[#allocation2 + $0x50] sm:$0x80]  ;;  %vm8706_vm13 = vsmask.f32 5396 }
 0x359   :  { %v6113_v33 = vrot.slane %v5249_v32, %v18932_v55  ;;  %v6117_v21 = vrot.slane %v5249_v32, %v18935_v62  ;;  %v6129_v57 = vrot.slane %v5251_v51, %v18932_v55  ;;  %v6133_v50 = vrot.slane %v5251_v51, %v18935_v62 }
 0x35a   :  { %v6121_v31 = vrot.slane %v5250_v15, %v18932_v55  ;;  %v6125_v37 = vrot.slane %v5250_v15, %v18935_v62  ;;  %v6137_v59 = vrot.slane %v5252_v60, %v18932_v55  ;;  %v6141_v35 = vrot.slane %v5252_v60, %v18935_v62  ;;  %v22479_v60 = vld [vmem:[#allocation24_spill] sm:$0xff] }
 0x35b   :  { %v6774_v2 = vpack.c.bf16 %v6113_v33, %v6113_v33  ;;  %v6775_v5 = vpack.c.bf16 %v6117_v21, %v6117_v21  ;;  %v6778_v8 = vpack.c.bf16 %v6129_v57, %v6129_v57  ;;  %v6779_v6 = vpack.c.bf16 %v6133_v50, %v6133_v50  ;;  %v5375_v21 = vld [vmem:[#allocation2 + $0x58] sm:$0x80] }
 0x35c   :  { %v6776_v45 = vpack.c.bf16 %v6121_v31, %v6121_v31  ;;  %v6777_v56 = vpack.c.bf16 %v6125_v37, %v6125_v37  ;;  %v6780_v63 = vpack.c.bf16 %v6137_v59, %v6137_v59  ;;  %v6781_v29 = vpack.c.bf16 %v6141_v35, %v6141_v35  ;;  %v17323_v59 = vld [vmem:[#allocation2] ss:$8 sps:$4 sm:$0xff]   ;;  %v17325_v35 = vld [vmem:[#allocation2 + $0x4] ss:$8 sps:$4 sm:$0xff]  }
 0x35d   :  { %v7222_v48 = vunpack.c.l.b16 %v6774_v2  ;;  %v7223_v54 = vunpack.c.l.b16 %v6775_v5  ;;  %v7226_v40 = vunpack.c.l.b16 %v6778_v8  ;;  %v7227_v1 = vunpack.c.l.b16 %v6779_v6  ;;  %v17326_v2 = vld [vmem:[#allocation2 + $0x10] ss:$8 sps:$4 sm:$0xff]  }
 0x35e   :  { %v7224_v30 = vunpack.c.l.b16 %v6776_v45  ;;  %v7225_v24 = vunpack.c.l.b16 %v6777_v56  ;;  %v7228_v0 = vunpack.c.l.b16 %v6780_v63  ;;  %v7229_v49 = vunpack.c.l.b16 %v6781_v29  ;;  %v22480_v56 = vld [vmem:[#allocation25_spill] sm:$0xff] }
 0x35f   :  { %v7562_v11 = vrot.slane %v7222_v48, 1  ;;  %v7575_v34 = vrot.slane %v7223_v54, 1  ;;  %v7577_v41 = vrot.slane %v7226_v40, 7  ;;  %v7589_v25 = vrot.slane %v7227_v1, 7  ;;  %v22481_v48 = vld [vmem:[#allocation26_spill] sm:$0xff]  ;;  %v22482_v40 = vld [vmem:[#allocation27_spill] sm:$0xff] }
 0x360   :  { %v7579_v32 = vrot.slane %v7228_v0, 6  ;;  %v7591_v51 = vrot.slane %v7229_v49, 6  ;;  %v4078_v15 = vmax.f32 %v20014_v36, 0.0  ;;  %v3834_v33 = vmul.f32 %v18959_v53, %v22479_v60  ;;  %v22484_v49 = vld [vmem:[#allocation15_spill] sm:$0xff] }
 0x361   :  { %v20028_v57 = vsel %vm22321_vm0, %v7562_v11, %v7561_v44  ;;  %v20031_v50 = vsel %vm22321_vm0, %v7575_v34, %v7574_v3  ;;  %v7578_v31 = vsel %vm22320_vm14, %v7577_v41, %v7224_v30  ;;  %v7590_v37 = vsel %vm22320_vm14, %v7589_v25, %v7225_v24  ;;  %v22483_v30 = vld [vmem:[#allocation28_spill] sm:$0xff] }
 0x362   :  { %v20036_v5 = vsel %vm22323_vm10, %v7579_v32, %v7578_v31  ;;  %v20039_v36 = vsel %vm22323_vm10, %v7591_v51, %v7590_v37  ;;  %v3968_v8 = vadd.f32 %v18971_v19, %v3834_v33  ;;  %v5320_v44 = vsel %vm18896_vm4, 0, %v5319_v14  ;;  %vm8699_vm10 = vmor %vm22489_vm3, %vm8698_vm15 }
 0x363   :  { %5321 = vst [vmem:[#allocation2 + $0x50] sm:$0x1] %v5320_v44  ;;  %v5323_v3 = vsel %vm18903_vm6, 0, %v5322_v52  ;;  %v5373_v6 = vsel %vm18910_vm7, 0, %v5372_v16  ;;  %v5376_v45 = vsel %vm18917_vm8, 0, %v5375_v21  ;;  %v3835_v63 = vmul.f32 %v18950_v10, %v22480_v56  ;;  %vm8701_vm0 = vmor %vm8699_vm10, %vm8700_vm2 }
 0x364   :  { %v4080_v29 = vmax.f32 %v3968_v8, 0.0  ;;  %5324 = vst [vmem:[#allocation2 + $0x58] sm:$0x1] %v5323_v3  ;;  %5374 = vst [vmem:[#allocation2 + $0x50] sm:$0x80] %v5373_v6  ;;  %v3837_v54 = vmul.f32 %v18953_v22, %v22481_v48  ;;  %v3836_v1 = vmul.f32 %v18956_v12, %v22482_v40  ;;  %v3838_v24 = vmul.f32 %v18959_v53, %v22483_v30  ;;  %v20095_v30 = vpop.f32.mrb[52].mxu0 }
 0x365   :  { %5377 = vst [vmem:[#allocation2 + $0x58] sm:$0x80] %v5376_v45  ;;  %v3969_v0 = vadd.f32 %v18962_v46, %v3835_v63  ;;  %v8306_v14 = vrot.slane %v17323_v59, %v22484_v49  ;;  %v8313_v52 = vrot.slane %v17325_v35, %v22484_v49  ;;  %v8356_v11 = vrot.slane %v17326_v2, %v22484_v49 }
 0x366   :  { %v4150_v34 = vmax.f32 %v4078_v15, %v4080_v29  ;;  %v3971_v41 = vadd.f32 %v18965_v18, %v3837_v54  ;;  %v3970_v25 = vadd.f32 %v18968_v47, %v3836_v1  ;;  %v3972_v16 = vadd.f32 %v18971_v19, %v3838_v24  ;;  %22485 = vst [vmem:[#allocation37_spill] sm:$0xff] %v20095_v30  ;;  %v20097_v24 = vpop.f32.mrb[52].mxu1 }
 0x367   :  { %v4081_v32 = vmax.f32 %v3969_v0, 0.0  ;;  %v8314_v51 = vcombine.high %v8306_v14, %v8306_v14  ;;  %v8315_v60 = vcombine.high %v8313_v52, %v8313_v52  ;;  %v20066_v33 = vrot.slane %v8306_v14, %v22484_v49  ;;  %22486 = vst [vmem:[#allocation38_spill] sm:$0xff] %v20097_v24 }
 0x368   :  { %v4581_v21 = vcombine.low %v20011_v20, %v4150_v34  ;;  %v4582_v31 = vcombine.high %v20011_v20, %v4150_v34  ;;  %v4083_v37 = vmax.f32 %v3971_v41, 0.0  ;;  %v4082_v59 = vmax.f32 %v3970_v25, 0.0  ;;  %v20102_v41 = vpop.f32.mrb[53].mxu0  ;;  %v20104_v25 = vpop.f32.mrb[53].mxu1 }
 0x369   :  { %v4084_v15 = vmax.f32 %v3972_v16, 0.0  ;;  %v20071_v35 = vrot.slane %v8313_v52, %v22484_v49  ;;  %v20074_v2 = vrot.slane %v8314_v51, %v22484_v49  ;;  %v20077_v8 = vrot.slane %v8315_v60, %v22484_v49  ;;  %22487 = vst [vmem:[#allocation39_spill] sm:$0xff] %v20102_v41  ;;  %22488 = vst [vmem:[#allocation40_spill] sm:$0xff] %v20104_v25 }
 0x36a   :  { %v4589_v44 = vrot.slane %v4581_v21, %v17901_v27  ;;  %v4596_v3 = vrot.slane %v4582_v31, %v17901_v27  ;;  %v4151_v6 = vmax.f32 %v4081_v32, %v4083_v37  ;;  %v20083_v20 = vcombine.high %v20066_v33, %v20066_v33 }
 0x36b   :  { %v4152_v45 = vmax.f32 %v4082_v59, %v4084_v15  ;;  %v20087_v56 = vcombine.high %v20071_v35, %v20071_v35  ;;  %v20091_v63 = vcombine.high %v20074_v2, %v20074_v2  ;;  %v8364_v52 = vcombine.high %v8356_v11, %v8356_v11 }
 0x36c   :  { %v4597_v48 = vcombine.high %v4589_v44, %v4589_v44  ;;  %v4598_v54 = vcombine.high %v4596_v3, %v4596_v3  ;;  %v16308_v40 = vrot.slane %v4589_v44, 9  ;;  %v16310_v1 = vrot.slane %v4596_v3, 9 }
 0x36d   :  { %v4599_v0 = vcombine.low %v4151_v6, %v4152_v45  ;;  %v4600_v14 = vcombine.high %v4151_v6, %v4152_v45  ;;  %v20100_v34 = vrot.slane %v8356_v11, %v22484_v49  ;;  %vm8702_vm14 = vsmask.f32 3340 }
 0x36e   :  { %v16309_v16 = vrot.slane %v4597_v48, 9  ;;  %v16311_v32 = vrot.slane %v4598_v54, 9  ;;  %v5253_v51 = vmax.f32 %v4589_v44, %v16308_v40  ;;  %v5255_v60 = vmax.f32 %v4596_v3, %v16310_v1  ;;  %vm8703_vm15 = vmor %vm8701_vm0, %vm8702_vm14 }
 0x36f   :  { %v4607_v21 = vrot.slane %v4599_v0, %v17901_v27  ;;  %v20108_v31 = vrot.slane %v4600_v14, %v17901_v27  ;;  %v20111_v37 = vrot.slane %v8364_v52, %v22484_v49  ;;  %vm8708_vm3 = vsmask.f32 6424 }
 0x370   :  { %v5254_v59 = vmax.f32 %v4597_v48, %v16309_v16  ;;  %v5256_v15 = vmax.f32 %v4598_v54, %v16311_v32  ;;  %v6145_v6 = vrot.slane %v5253_v51, %v18932_v55  ;;  %v6149_v45 = vrot.slane %v5253_v51, %v18935_v62 }
 0x371   :  { %v6161_v44 = vrot.slane %v5255_v60, %v18932_v55  ;;  %v6165_v3 = vrot.slane %v5255_v60, %v18935_v62  ;;  %v4615_v40 = vcombine.high %v4607_v21, %v4607_v21  ;;  %v4616_v1 = vcombine.high %v20108_v31, %v20108_v31 }
 0x372   :  { %v6153_v0 = vrot.slane %v5254_v59, %v18932_v55  ;;  %v6157_v14 = vrot.slane %v5254_v59, %v18935_v62  ;;  %v6169_v48 = vrot.slane %v5256_v15, %v18932_v55  ;;  %v6173_v54 = vrot.slane %v5256_v15, %v18935_v62 }
 0x373   :  { %v6782_v52 = vpack.c.bf16 %v6145_v6, %v6145_v6  ;;  %v6783_v16 = vpack.c.bf16 %v6149_v45, %v6149_v45  ;;  %v6786_v32 = vpack.c.bf16 %v6161_v44, %v6161_v44  ;;  %v6787_v51 = vpack.c.bf16 %v6165_v3, %v6165_v3 }
 0x374   :  { %v6784_v60 = vpack.c.bf16 %v6153_v0, %v6153_v0  ;;  %v6785_v29 = vpack.c.bf16 %v6157_v14, %v6157_v14  ;;  %v6788_v11 = vpack.c.bf16 %v6169_v48, %v6169_v48  ;;  %v6789_v25 = vpack.c.bf16 %v6173_v54, %v6173_v54 }
 0x375   :  { %v7230_v41 = vunpack.c.l.b16 %v6782_v52  ;;  %v7231_v24 = vunpack.c.l.b16 %v6783_v16  ;;  %v7234_v30 = vunpack.c.l.b16 %v6786_v32  ;;  %v7235_v59 = vunpack.c.l.b16 %v6787_v51  ;;  %v7768_v32 = vld [vmem:[#allocation2 + $0x50] sm:$0xff]  ;;  %v7771_v51 = vld [vmem:[#allocation2 + $0x58] sm:$0xff] }
 0x376   :  { %v7232_v26 = vunpack.c.l.b16 %v6784_v60  ;;  %v7233_v15 = vunpack.c.l.b16 %v6785_v29  ;;  %v7236_v38 = vunpack.c.l.b16 %v6788_v11  ;;  %v7237_v58 = vunpack.c.l.b16 %v6789_v25 }
 0x377   :  { %v7581_v6 = vrot.slane %v7230_v41, 5  ;;  %v7585_v45 = vrot.slane %v7234_v30, 3  ;;  %v7593_v44 = vrot.slane %v7231_v24, 5  ;;  %v7597_v3 = vrot.slane %v7235_v59, 3 }
 0x378   :  { %v7583_v43 = vrot.slane %v7232_v26, 4  ;;  %v7587_v0 = vrot.slane %v7236_v38, 2  ;;  %v7595_v14 = vrot.slane %v7233_v15, 4  ;;  %v7599_v48 = vrot.slane %v7237_v58, 2  ;;  %v20145_v15 = vpop.f32.mrb[54].mxu0 }
 0x379   :  { %v7582_v54 = vsel %vm22329_vm9, %v7581_v6, %v20036_v5  ;;  %v7594_v52 = vsel %vm22329_vm9, %v7593_v44, %v20039_v36  ;;  %v16312_v29 = vrot.slane %v4607_v21, 9  ;;  %v16313_v11 = vrot.slane %v4615_v40, 9  ;;  %v20147_v6 = vpop.f32.mrb[54].mxu1 }
 0x37a   :  { %vm8710_vm10 = vsmask.f32 7452  ;;  %v7584_v41 = vsel %vm2754_vm12, %v7583_v43, %v7582_v54  ;;  %v7596_v30 = vsel %vm2754_vm12, %v7595_v14, %v7594_v52  ;;  %v16314_v26 = vrot.slane %v20108_v31, 9 }
 0x37b   :  { %v16315_v38 = vrot.slane %v4616_v1, 9  ;;  %v7586_v58 = vsel %vm7305_vm11, %v7585_v45, %v7584_v41  ;;  %v7598_v24 = vsel %vm7305_vm11, %v7597_v3, %v7596_v30  ;;  %v5257_v25 = vmax.f32 %v4607_v21, %v16312_v29  ;;  %v20153_v3 = vpop.f32.mrb[55].mxu0 }
 0x37c   :  { %v5258_v16 = vmax.f32 %v4615_v40, %v16313_v11  ;;  %vm22490_vm0 = vsmask.f32 4368  ;;  %vm22493_vm2 = vcmask 1046534   ;;  %v5259_v60 = vmax.f32 %v20108_v31, %v16314_v26 }
 0x37d   :  { %vm20138_vm14 = vmor %vm8703_vm15, %vm22490_vm0  ;;  %v7588_v36 = vsel %vm22493_vm2, %v7587_v0, %v7586_v58  ;;  %v5260_v59 = vmax.f32 %v4616_v1, %v16315_v38  ;;  %v6177_v45 = vrot.slane %v5257_v25, %v18932_v55  ;;  %v6181_v44 = vrot.slane %v5257_v25, %v18935_v62  ;;  %v20155_v0 = vpop.f32.mrb[55].mxu1 }
 0x37e   :  { %vm22494_vm9 = vmmov %vm22493_vm2  ;;  %v7711_v21 = vpack.c.b16 %v7588_v36, %v20028_v57  ;;  %v6185_v14 = vrot.slane %v5258_v16, %v18932_v55  ;;  %v6189_v31 = vrot.slane %v5258_v16, %v18935_v62  ;;  %v6193_v1 = vrot.slane %v5259_v60, %v18932_v55 }
 0x37f   :  { %v7600_v43 = vsel %vm22494_vm9, %v7599_v48, %v7598_v24  ;;  %v6197_v48 = vrot.slane %v5259_v60, %v18935_v62  ;;  %vm20164_vm9 = vmor %vm20138_vm14, %vm8706_vm13  ;;  %v6201_v52 = vrot.slane %v5260_v59, %v18932_v55  ;;  %v6205_v29 = vrot.slane %v5260_v59, %v18935_v62 }
 0x380   :  { %v7712_v40 = vpack.c.b16 %v7600_v43, %v20031_v50  ;;  %v7769_v50 = vsel %vm19242_vm5, %v7711_v21, %v7768_v32  ;;  %v6790_v11 = vpack.c.bf16 %v6177_v45, %v6177_v45  ;;  %v6791_v41 = vpack.c.bf16 %v6181_v44, %v6181_v44  ;;  %vm8709_vm13 = vmor %vm20164_vm9, %vm8708_vm3 }
 0x381   :  { %7770 = vst [vmem:[#allocation2 + $0x50] sm:$0xff] %v7769_v50  ;;  %v6792_v30 = vpack.c.bf16 %v6185_v14, %v6185_v14  ;;  %v6793_v26 = vpack.c.bf16 %v6189_v31, %v6189_v31  ;;  %v6794_v38 = vpack.c.bf16 %v6193_v1, %v6193_v1  ;;  %v6795_v58 = vpack.c.bf16 %v6197_v48, %v6197_v48  ;;  %vm20178_vm15 = vmor %vm8709_vm13, %vm8710_vm10 }
 0x382   :  { %v7772_v54 = vsel %vm19254_vm1, %v7712_v40, %v7771_v51  ;;  %v6796_v24 = vpack.c.bf16 %v6201_v52, %v6201_v52  ;;  %v6797_v25 = vpack.c.bf16 %v6205_v29, %v6205_v29  ;;  %v7238_v16 = vunpack.c.l.b16 %v6790_v11 }
 0x383   :  { %7773 = vst [vmem:[#allocation2 + $0x58] sm:$0xff] %v7772_v54  ;;  %v7239_v5 = vunpack.c.l.b16 %v6791_v41  ;;  %v7240_v36 = vunpack.c.l.b16 %v6792_v30  ;;  %v7241_v43 = vunpack.c.l.b16 %v6793_v26  ;;  %v7242_v32 = vunpack.c.l.b16 %v6794_v38 }
 0x384   :  { %v7243_v51 = vunpack.c.l.b16 %v6795_v58  ;;  %v7244_v60 = vunpack.c.l.b16 %v6796_v24  ;;  %v7245_v59 = vunpack.c.l.b16 %v6797_v25  ;;  %v7601_v21 = vrot.slane %v7238_v16, 7 }
 0x385   :  { %v7602_v40 = vrot.slane %v7240_v36, 6  ;;  %v7614_v45 = vrot.slane %v7239_v5, 7  ;;  %v7615_v44 = vrot.slane %v7241_v43, 6  ;;  %v7604_v31 = vrot.slane %v7242_v32, 5 }
 0x386   :  { %v7606_v1 = vrot.slane %v7244_v60, 4  ;;  %v7617_v48 = vrot.slane %v7243_v51, 5  ;;  %v7619_v57 = vrot.slane %v7245_v59, 4  ;;  %vm22499_vm3 = vcmask 1042434  }
 0x387   :  { %v7603_v50 = vsel %vm22499_vm3, %v7602_v40, %v7601_v21  ;;  %vm22500_vm0 = vmmov %vm22499_vm3  ;;  %v8718_v52 = vshll.u32 %v20074_v2, 16  ;;  %v8721_v29 = vshrl.u32 %v20074_v2, 16  ;;  %vm22501_vm14 = vcmask 1043459  }
 0x388   :  { %v7616_v54 = vsel %vm22500_vm0, %v7615_v44, %v7614_v45  ;;  %v7605_v11 = vsel %vm22501_vm14, %v7604_v31, %v7603_v50  ;;  %vm22502_vm2 = vmmov %vm22501_vm14  ;;  %v8726_v30 = vshll.u32 %v20083_v20, 16  ;;  %v8729_v26 = vshrl.u32 %v20083_v20, 16 }
 0x389   :  { %v7618_v41 = vsel %vm22502_vm2, %v7617_v48, %v7616_v54  ;;  %v20191_v38 = vsel %vm2754_vm12, %v7606_v1, %v7605_v11  ;;  %v22503_v24 = vshrl.u32 %v20066_v33, 16  ;;  %v8734_v2 = vshll.u32 %v20091_v63, 16 }
 0x38a   :  { %v20194_v58 = vsel %vm2754_vm12, %v7619_v57, %v7618_v41  ;;  %v8728_v16 = vsel %vm20178_vm15, %v8721_v29, %v8726_v30  ;;  %v8737_v5 = vshrl.u32 %v20091_v63, 16  ;;  %v8742_v20 = vshll.u32 %v20071_v35, 16 }
 0x38b   :  { %v8720_v25 = vsel %vm20178_vm15, %v22503_v24, %v8718_v52  ;;  %v8745_v36 = vshrl.u32 %v20071_v35, 16  ;;  %v8736_v43 = vsel %vm20178_vm15, %v8729_v26, %v8734_v2  ;;  %v8750_v32 = vshll.u32 %v20077_v8, 16 }
 0x38c   :  { %v8753_v33 = vshrl.u32 %v20077_v8, 16  ;;  %v8758_v51 = vshll.u32 %v20087_v56, 16  ;;  %v8744_v60 = vsel %vm20178_vm15, %v8737_v5, %v8742_v20  ;;  %v8761_v59 = vshrl.u32 %v20087_v56, 16 }
 0x38d   :  { %v22504_v63 = vcombine.high %v20077_v8, %v20077_v8  ;;  %v8770_v35 = vshrl.u32 %v20100_v34, 16  ;;  %v8752_v40 = vsel %vm20178_vm15, %v8745_v36, %v8750_v32  ;;  %v8775_v44 = vshll.u32 %v20111_v37, 16 }
 0x38e   :  { %v8760_v45 = vsel %vm20178_vm15, %v8753_v33, %v8758_v51  ;;  %v9225_v31 = vcombine.low %v8720_v25, %v8728_v16  ;;  %v9226_v48 = vcombine.low %v8736_v43, %v8744_v60  ;;  %v3839_v8 = vmul.f32 %v18950_v10, %v19831_v4 }
 0x38f   :  { %v8766_v21 = vshll.u32 %v22504_v63, 16  ;;  %v9227_v56 = vcombine.low %v8752_v40, %v8760_v45  ;;  %v8777_v57 = vsel %vm20178_vm15, %v8770_v35, %v8775_v44  ;;  %v3841_v54 = vmul.f32 %v18953_v22, %v19833_v28 }
 0x390   :  { %v9235_v50 = vrot.slane %v9225_v31, %v22484_v49  ;;  %v3840_v52 = vmul.f32 %v18956_v12, %v19839_v23  ;;  %v9242_v11 = vrot.slane %v9226_v48, %v22484_v49  ;;  %v3973_v30 = vadd.f32 %v18962_v46, %v3839_v8 }
 0x391   :  { %v8768_v1 = vsel %vm20178_vm15, %v8761_v59, %v8766_v21  ;;  %v9249_v41 = vrot.slane %v9227_v56, %v22484_v49  ;;  %v3975_v4 = vadd.f32 %v18965_v18, %v3841_v54  ;;  %v3842_v24 = vmul.f32 %v18959_v53, %v19841_v13  ;;  %v22506_v56 = vld [vmem:[#allocation30_spill] sm:$0xff] }
 0x392   :  { %v9228_v29 = vcombine.low %v8768_v1, %v8777_v57  ;;  %v3974_v26 = vadd.f32 %v18968_v47, %v3840_v52  ;;  %v3843_v28 = vmul.f32 %v18950_v10, %v19875_v61  ;;  %v9257_v23 = vcombine.low %v9235_v50, %v9242_v11  ;;  %v22505_v1 = vld [vmem:[#allocation29_spill] sm:$0xff] }
 0x393   :  { %v9258_v2 = vcombine.high %v9235_v50, %v9242_v11  ;;  %v4085_v16 = vmax.f32 %v3973_v30, 0.0  ;;  %v4087_v5 = vmax.f32 %v3975_v4, 0.0  ;;  %v3976_v36 = vadd.f32 %v18971_v19, %v3842_v24  ;;  %v22509_v4 = vld [vmem:[#allocation31_spill] sm:$0xff] }
 0x394   :  { %v9256_v25 = vrot.slane %v9228_v29, %v22484_v49  ;;  %v4086_v20 = vmax.f32 %v3974_v26, 0.0  ;;  %v3977_v43 = vadd.f32 %v18962_v46, %v3843_v28  ;;  %v9267_v13 = vrot.slane %v9257_v23, %v22484_v49 }
 0x395   :  { %v9274_v51 = vrot.slane %v9258_v2, %v22484_v49  ;;  %v4153_v60 = vmax.f32 %v4085_v16, %v4087_v5  ;;  %v4088_v59 = vmax.f32 %v3976_v36, 0.0  ;;  %v3845_v63 = vmul.f32 %v18953_v22, %v19877_v42 }
 0x396   :  { %v9259_v32 = vcombine.low %v9249_v41, %v9256_v25  ;;  %v9260_v33 = vcombine.high %v9249_v41, %v9256_v25  ;;  %v4089_v61 = vmax.f32 %v3977_v43, 0.0  ;;  %v3844_v40 = vmul.f32 %v18956_v12, %v19879_v39 }
 0x397   :  { %v3846_v45 = vmul.f32 %v18959_v53, %v19881_v7  ;;  %v4154_v44 = vmax.f32 %v4086_v20, %v4088_v59  ;;  %v3979_v31 = vadd.f32 %v18965_v18, %v3845_v63  ;;  %v3847_v48 = vmul.f32 %v18950_v10, %v22505_v1  ;;  %v22510_v20 = vld [vmem:[#allocation32_spill] sm:$0xff] }
 0x398   :  { %v9288_v21 = vrot.slane %v9260_v33, %v22484_v49  ;;  %v9281_v35 = vrot.slane %v9259_v32, %v22484_v49  ;;  %v3849_v8 = vmul.f32 %v18953_v22, %v22506_v56  ;;  %v3978_v50 = vadd.f32 %v18968_v47, %v3844_v40  ;;  %v17338_v1 = vld [vmem:[#allocation3 + $0x8] ss:$16 sps:$4 sm:$0xff]  }
 0x399   :  { %v3980_v54 = vadd.f32 %v18971_v19, %v3846_v45  ;;  %v4617_v52 = vcombine.low %v4153_v60, %v4154_v44  ;;  %v4618_v39 = vcombine.high %v4153_v60, %v4154_v44  ;;  %v4091_v29 = vmax.f32 %v3979_v31, 0.0 }
 0x39a   :  { %v9290_v42 = vcombine.low %v9274_v51, %v9288_v21  ;;  %v9289_v57 = vcombine.low %v9267_v13, %v9281_v35  ;;  %v3981_v7 = vadd.f32 %v18962_v46, %v3847_v48  ;;  %vm22507_vm10 = vcmask 785408   ;;  %v5325_v13 = vld [vmem:[#allocation2 + $0x60] sm:$0x1]  ;;  %v17337_v35 = vld [vmem:[#allocation3 + $0x4] ss:$16 sps:$4 sm:$0xff]  }
 0x39b   :  { %vm22508_vm9 = vmmov %vm22507_vm10  ;;  %v4090_v11 = vmax.f32 %v3978_v50, 0.0  ;;  %v4092_v41 = vmax.f32 %v3980_v54, 0.0  ;;  %v3983_v30 = vadd.f32 %v18965_v18, %v3849_v8  ;;  %v3848_v26 = vmul.f32 %v18956_v12, %v22509_v4  ;;  %v17335_v21 = vld [vmem:[#allocation3] ss:$16 sps:$4 sm:$0xff]   ;;  %v17340_v48 = vld [vmem:[#allocation3 + $0xc] ss:$16 sps:$4 sm:$0xff]   ;;  %10972 = vmatprep.subr.bf16.mxu0 %v17337_v35 }
 0x39c   :  { %16452 = vmatprep.mubr.msk.bf16.mxu0 %vm22507_vm10, %v9290_v42  ;;  %16459 = vmatprep.mubr.msk.bf16.mxu1 %vm22508_vm9, %v9290_v42  ;;  %v4625_v24 = vrot.slane %v4617_v52, %v17901_v27  ;;  %v4632_v28 = vrot.slane %v4618_v39, %v17901_v27  ;;  %v4155_v25 = vmax.f32 %v4089_v61, %v4091_v29  ;;  %v4093_v23 = vmax.f32 %v3981_v7, 0.0  ;;  %v17343_v54 = vld [vmem:[#allocation3 + $0x24] ss:$16 sps:$4 sm:$0xff]  }
 0x39d   :  { %10029 = vmatmul.mubr.bf16.vlgmr.msra.gmra.mrb[56].mxu0 %v9289_v57  ;;  %10132 = vmatmul.mubr.bf16.vlgmr.msra.gmra.mrb[56].mxu1 %v9289_v57  ;;  %v4156_v2 = vmax.f32 %v4090_v11, %v4092_v41  ;;  %v4095_v16 = vmax.f32 %v3983_v30, 0.0  ;;  %v20272_v5 = vadd.f32 %v18968_v47, %v3848_v26  ;;  %v3850_v36 = vmul.f32 %v18959_v53, %v22510_v20  ;;  %v17346_v11 = vld [vmem:[#allocation3 + $0x2c] ss:$16 sps:$4 sm:$0xff]  }
 0x39e   :  { %v4633_v43 = vcombine.high %v4625_v24, %v4625_v24  ;;  %v4634_v32 = vcombine.high %v4632_v28, %v4632_v28  ;;  %v16316_v33 = vrot.slane %v4625_v24, 9  ;;  %v16318_v51 = vrot.slane %v4632_v28, 9  ;;  %11075 = vmatprep.subr.bf16.mxu1 %v17340_v48  ;;  %10973 = vmatpush1.bf16.msra.mxu0 %v17335_v21 }
 0x39f   :  { %v4635_v60 = vcombine.low %v4155_v25, %v4156_v2  ;;  %v4636_v59 = vcombine.high %v4155_v25, %v4156_v2  ;;  %v20276_v63 = vmax.f32 %v4093_v23, %v4095_v16  ;;  %v4094_v61 = vmax.f32 %v20272_v5, 0.0  ;;  %11076 = vmatpush1.bf16.msra.mxu1 %v17338_v1  ;;  %v17344_v16 = vld [vmem:[#allocation3 + $0x28] ss:$16 sps:$4 sm:$0xff]   ;;  %10974 = vmatprep.subr.bf16.mxu0 %v17343_v54 }
 0x3a0   :  { %v16317_v40 = vrot.slane %v4633_v43, 9  ;;  %v16319_v45 = vrot.slane %v4634_v32, 9  ;;  %v5261_v44 = vmax.f32 %v4625_v24, %v16316_v33  ;;  %v5263_v31 = vmax.f32 %v4632_v28, %v16318_v51  ;;  %v17341_v24 = vld [vmem:[#allocation3 + $0x20] ss:$16 sps:$4 sm:$0xff]   ;;  %11077 = vmatprep.subr.bf16.mxu1 %v17346_v11 }
 0x3a1   :  { %v4643_v56 = vrot.slane %v4635_v60, %v17901_v27  ;;  %v20281_v8 = vrot.slane %v4636_v59, %v17901_v27  ;;  %v20284_v42 = vadd.f32 %v18971_v19, %v3850_v36  ;;  %v5326_v50 = vsel %vm18896_vm4, 0, %v5325_v13 }
 0x3a2   :  { %v5262_v52 = vmax.f32 %v4633_v43, %v16317_v40  ;;  %v5264_v39 = vmax.f32 %v4634_v32, %v16319_v45  ;;  %v6209_v29 = vrot.slane %v5261_v44, %v18932_v55  ;;  %v6213_v7 = vrot.slane %v5261_v44, %v18935_v62  ;;  %5327 = vst [vmem:[#allocation2 + $0x60] sm:$0x1] %v5326_v50 }
 0x3a3   :  { %v6225_v41 = vrot.slane %v5263_v31, %v18932_v55  ;;  %v6229_v30 = vrot.slane %v5263_v31, %v18935_v62  ;;  %v4651_v4 = vcombine.high %v4643_v56, %v4643_v56  ;;  %v4652_v26 = vcombine.high %v20281_v8, %v20281_v8  ;;  %10975 = vmatpush1.bf16.msra.mxu0 %v17341_v24 }
 0x3a4   :  { %v6217_v28 = vrot.slane %v5262_v52, %v18932_v55  ;;  %v6221_v25 = vrot.slane %v5262_v52, %v18935_v62  ;;  %v6233_v23 = vrot.slane %v5264_v39, %v18932_v55  ;;  %v6237_v2 = vrot.slane %v5264_v39, %v18935_v62  ;;  %11078 = vmatpush1.bf16.msra.mxu1 %v17344_v16 }
 0x3a5   :  { %v6798_v20 = vpack.c.bf16 %v6209_v29, %v6209_v29  ;;  %v6799_v36 = vpack.c.bf16 %v6213_v7, %v6213_v7  ;;  %v6802_v43 = vpack.c.bf16 %v6225_v41, %v6225_v41  ;;  %v6803_v32 = vpack.c.bf16 %v6229_v30, %v6229_v30 }
 0x3a6   :  { %v6800_v33 = vpack.c.bf16 %v6217_v28, %v6217_v28  ;;  %v6801_v51 = vpack.c.bf16 %v6221_v25, %v6221_v25  ;;  %v6804_v13 = vpack.c.bf16 %v6233_v23, %v6233_v23  ;;  %v6805_v60 = vpack.c.bf16 %v6237_v2, %v6237_v2 }
 0x3a7   :  { %v7246_v59 = vunpack.c.l.b16 %v6798_v20  ;;  %v7247_v21 = vunpack.c.l.b16 %v6799_v36  ;;  %v7250_v35 = vunpack.c.l.b16 %v6802_v43  ;;  %v7251_v40 = vunpack.c.l.b16 %v6803_v32  ;;  %v17350_v20 = vld [vmem:[#allocation3 + $0x40] ss:$16 sps:$4 sm:$0xff]   ;;  %v17352_v36 = vld [vmem:[#allocation3 + $0x44] ss:$16 sps:$4 sm:$0xff]  }
 0x3a8   :  { %v7248_v45 = vunpack.c.l.b16 %v6800_v33  ;;  %v7249_v44 = vunpack.c.l.b16 %v6801_v51  ;;  %v20298_v31 = vunpack.c.l.b16 %v6804_v13  ;;  %v20300_v1 = vunpack.c.l.b16 %v6805_v60  ;;  %v17353_v33 = vld [vmem:[#allocation3 + $0x48] ss:$16 sps:$4 sm:$0xff]   ;;  %v17355_v51 = vld [vmem:[#allocation3 + $0x4c] ss:$16 sps:$4 sm:$0xff]   ;;  %10976 = vmatprep.subr.bf16.mxu0 %v17352_v36 }
 0x3a9   :  { %v7608_v48 = vrot.slane %v7246_v59, 3  ;;  %v7612_v50 = vrot.slane %v7250_v35, 1  ;;  %v7621_v54 = vrot.slane %v7247_v21, 3  ;;  %v7625_v52 = vrot.slane %v7251_v40, 1  ;;  %v17358_v59 = vld [vmem:[#allocation3 + $0x64] ss:$16 sps:$4 sm:$0xff]   ;;  %11079 = vmatprep.subr.bf16.mxu1 %v17355_v51  ;;  %10977 = vmatpush1.bf16.msra.mxu0 %v17350_v20 }
 0x3aa   :  { %v7610_v39 = vrot.slane %v7248_v45, 2  ;;  %v7623_v29 = vrot.slane %v7249_v44, 2  ;;  %v16320_v7 = vrot.slane %v4643_v56, 9  ;;  %v16321_v11 = vrot.slane %v4651_v4, 9  ;;  %v17361_v21 = vld [vmem:[#allocation3 + $0x6c] ss:$16 sps:$4 sm:$0xff]   ;;  %11080 = vmatpush1.bf16.msra.mxu1 %v17353_v33  ;;  %10978 = vmatprep.subr.bf16.mxu0 %v17358_v59 }
 0x3ab   :  { %v7609_v41 = vsel %vm7305_vm11, %v7608_v48, %v20191_v38  ;;  %v7622_v30 = vsel %vm7305_vm11, %v7621_v54, %v20194_v58  ;;  %v16322_v24 = vrot.slane %v20281_v8, 9  ;;  %v16323_v28 = vrot.slane %v4652_v26, 9  ;;  %v17356_v54 = vld [vmem:[#allocation3 + $0x60] ss:$16 sps:$4 sm:$0xff]   ;;  %11081 = vmatprep.subr.bf16.mxu1 %v17361_v21  ;;  %v5328_v20 = vld [vmem:[#allocation2 + $0x68] sm:$0x1] }
 0x3ac   :  { %vm22512_vm13 = vcmask 1046534   ;;  %v5265_v2 = vmax.f32 %v4643_v56, %v16320_v7  ;;  %v5266_v16 = vmax.f32 %v4651_v4, %v16321_v11  ;;  %vm22514_vm0 = vcmask 1047559   ;;  %v17359_v11 = vld [vmem:[#allocation3 + $0x68] ss:$16 sps:$4 sm:$0xff]   ;;  %v5381_v51 = vld [vmem:[#allocation2 + $0x68] sm:$0x80] }
 0x3ad   :  { %v7611_v25 = vsel %vm22512_vm13, %v7610_v39, %v7609_v41  ;;  %vm22513_vm3 = vmmov %vm22512_vm13  ;;  %v5267_v38 = vmax.f32 %v20281_v8, %v16322_v24  ;;  %v5268_v58 = vmax.f32 %v4652_v26, %v16323_v28  ;;  %v17364_v41 = vld [vmem:[#allocation3 + $0x84] ss:$16 sps:$4 sm:$0xff]   ;;  %10979 = vmatpush1.bf16.msra.mxu0 %v17356_v54  ;;  %v17365_v59 = vld [vmem:[#allocation3 + $0x88] ss:$16 sps:$4 sm:$0xff]   ;;  %vm22516_vm2 = vcmask 1041409  }
 0x3ae   :  { %v7624_v23 = vsel %vm22513_vm3, %v7623_v29, %v7622_v30  ;;  %v20310_v43 = vsel %vm22514_vm0, %v7612_v50, %v7611_v25  ;;  %vm22515_vm14 = vmmov %vm22514_vm0  ;;  %v6241_v13 = vrot.slane %v5265_v2, %v18932_v55  ;;  %v6245_v60 = vrot.slane %v5265_v2, %v18935_v62  ;;  %11082 = vmatpush1.bf16.msra.mxu1 %v17359_v11  ;;  %v17370_v54 = vld [vmem:[#allocation3 + $0xa4] ss:$16 sps:$4 sm:$0xff]  }
 0x3af   :  { %v20313_v32 = vsel %vm22515_vm14, %v7625_v52, %v7624_v23  ;;  %v6249_v56 = vrot.slane %v5266_v16, %v18932_v55  ;;  %v6253_v4 = vrot.slane %v5266_v16, %v18935_v62  ;;  %v6257_v35 = vrot.slane %v5267_v38, %v18932_v55  ;;  %v17367_v23 = vld [vmem:[#allocation3 + $0x8c] ss:$16 sps:$4 sm:$0xff]   ;;  %10980 = vmatprep.subr.bf16.mxu0 %v17364_v41  ;;  %vm22517_vm10 = vmmov %vm22516_vm2 }
 0x3b0   :  { %v6261_v40 = vrot.slane %v5267_v38, %v18935_v62  ;;  %v6265_v8 = vrot.slane %v5268_v58, %v18932_v55  ;;  %v6269_v26 = vrot.slane %v5268_v58, %v18935_v62  ;;  %v6806_v45 = vpack.c.bf16 %v6241_v13, %v6241_v13  ;;  %v5378_v58 = vld [vmem:[#allocation2 + $0x60] sm:$0x80]  ;;  %11083 = vmatprep.subr.bf16.mxu1 %v17367_v23  ;;  %v17368_v23 = vld [vmem:[#allocation3 + $0xa0] ss:$16 sps:$4 sm:$0xff]  }
 0x3b1   :  { %v6807_v44 = vpack.c.bf16 %v6245_v60, %v6245_v60  ;;  %v6808_v48 = vpack.c.bf16 %v6249_v56, %v6249_v56  ;;  %v6809_v50 = vpack.c.bf16 %v6253_v4, %v6253_v4  ;;  %v6810_v52 = vpack.c.bf16 %v6257_v35, %v6257_v35  ;;  %v17362_v4 = vld [vmem:[#allocation3 + $0x80] ss:$16 sps:$4 sm:$0xff]  }
 0x3b2   :  { %v6811_v39 = vpack.c.bf16 %v6261_v40, %v6261_v40  ;;  %v6812_v29 = vpack.c.bf16 %v6265_v8, %v6265_v8  ;;  %v6813_v7 = vpack.c.bf16 %v6269_v26, %v6269_v26  ;;  %v7254_v30 = vunpack.c.l.b16 %v6806_v45  ;;  %10981 = vmatpush1.bf16.msra.mxu0 %v17362_v4  ;;  %11084 = vmatpush1.bf16.msra.mxu1 %v17365_v59 }
 0x3b3   :  { %v7255_v24 = vunpack.c.l.b16 %v6807_v44  ;;  %v7256_v28 = vunpack.c.l.b16 %v6808_v48  ;;  %v7257_v25 = vunpack.c.l.b16 %v6809_v50  ;;  %v7258_v2 = vunpack.c.l.b16 %v6810_v52  ;;  %v17328_v52 = vld [vmem:[#allocation2 + $0x14] ss:$8 sps:$4 sm:$0xff]   ;;  %10982 = vmatprep.subr.bf16.mxu0 %v17370_v54 }
 0x3b4   :  { %v7259_v16 = vunpack.c.l.b16 %v6811_v39  ;;  %v7260_v36 = vunpack.c.l.b16 %v6812_v29  ;;  %v7261_v38 = vunpack.c.l.b16 %v6813_v7  ;;  %v7627_v13 = vrot.slane %v7254_v30, 7 }
 0x3b5   :  { %v7629_v60 = vrot.slane %v7256_v28, 6  ;;  %v7639_v56 = vrot.slane %v7255_v24, 7  ;;  %v7641_v33 = vrot.slane %v7257_v25, 6  ;;  %v7631_v35 = vrot.slane %v7258_v2, 5  ;;  %v22525_v28 = vld [vmem:[#allocation33_spill] sm:$0xff] }
 0x3b6   :  { %v7633_v40 = vrot.slane %v7260_v36, 4  ;;  %v7643_v8 = vrot.slane %v7259_v16, 5  ;;  %v7645_v26 = vrot.slane %v7261_v38, 4  ;;  %v7628_v21 = vsel %vm22516_vm2, %v7627_v13, %v20298_v31  ;;  %v22526_v36 = vld [vmem:[#allocation34_spill] sm:$0xff]  ;;  %10983 = vmatpush1.bf16.msra.mxu0 %v17368_v23 }
 0x3b7   :  { %v7640_v45 = vsel %vm22517_vm10, %v7639_v56, %v20300_v1  ;;  %v4096_v44 = vmax.f32 %v20284_v42, 0.0  ;;  %v5329_v50 = vsel %vm18903_vm6, 0, %v5328_v20  ;;  %vm22519_vm9 = vcmask 1042434   ;;  %v17373_v1 = vld [vmem:[#allocation3 + $0xac] ss:$16 sps:$4 sm:$0xff]   ;;  %v22527_v20 = vld [vmem:[#allocation35_spill] sm:$0xff] }
 0x3b8   :  { %v7630_v39 = vsel %vm22519_vm9, %v7629_v60, %v7628_v21  ;;  %vm22520_vm13 = vmmov %vm22519_vm9  ;;  %5330 = vst [vmem:[#allocation2 + $0x68] sm:$0x1] %v5329_v50  ;;  %v5379_v11 = vsel %vm18910_vm7, 0, %v5378_v58  ;;  %v5382_v41 = vsel %vm18917_vm8, 0, %v5381_v51  ;;  %vm22523_vm3 = vcmask 1043459   ;;  %v22528_v60 = vld [vmem:[#allocation36_spill] sm:$0xff]  ;;  %11085 = vmatprep.subr.bf16.mxu1 %v17373_v1 }
 0x3b9   :  { %v7642_v29 = vsel %vm22520_vm13, %v7641_v33, %v7640_v45  ;;  %v7632_v42 = vsel %vm22523_vm3, %v7631_v35, %v7630_v39  ;;  %vm22524_vm0 = vmmov %vm22523_vm3  ;;  %v4158_v24 = vmax.f32 %v4094_v61, %v4096_v44  ;;  %5380 = vst [vmem:[#allocation2 + $0x60] sm:$0x80] %v5379_v11  ;;  %v3851_v25 = vmul.f32 %v18950_v10, %v22525_v28  ;;  %v17371_v61 = vld [vmem:[#allocation3 + $0xa8] ss:$16 sps:$4 sm:$0xff]   ;;  %v17377_v45 = vld [vmem:[#allocation3 + $0xc0] ss:$16 sps:$4 sm:$0xff]  }
 0x3ba   :  { %v7644_v30 = vsel %vm22524_vm0, %v7643_v8, %v7642_v29  ;;  %5383 = vst [vmem:[#allocation2 + $0x68] sm:$0x80] %v5382_v41  ;;  %v20344_v2 = vsel %vm2754_vm12, %v7633_v40, %v7632_v42  ;;  %v3853_v38 = vmul.f32 %v18953_v22, %v22526_v36  ;;  %v3852_v5 = vmul.f32 %v18956_v12, %v22527_v20  ;;  %v17379_v8 = vld [vmem:[#allocation3 + $0xc4] ss:$16 sps:$4 sm:$0xff]   ;;  %v17382_v44 = vld [vmem:[#allocation3 + $0xcc] ss:$16 sps:$4 sm:$0xff]   ;;  %vm22531_vm10 = vmmov %vm22519_vm9 }
 0x3bb   :  { %v20347_v16 = vsel %vm2754_vm12, %v7645_v26, %v7644_v30  ;;  %v4653_v58 = vcombine.low %v20276_v63, %v4158_v24  ;;  %v4654_v51 = vcombine.high %v20276_v63, %v4158_v24  ;;  %v3985_v13 = vadd.f32 %v18962_v46, %v3851_v25  ;;  %11086 = vmatpush1.bf16.msra.mxu1 %v17371_v61  ;;  %v17380_v29 = vld [vmem:[#allocation3 + $0xc8] ss:$16 sps:$4 sm:$0xff]   ;;  %v17385_v30 = vld [vmem:[#allocation3 + $0xe4] ss:$16 sps:$4 sm:$0xff]   ;;  %v17388_v36 = vld [vmem:[#allocation3 + $0xec] ss:$16 sps:$4 sm:$0xff]  }
 0x3bc   :  { %v3854_v56 = vmul.f32 %v18959_v53, %v22528_v60  ;;  %v3987_v33 = vadd.f32 %v18965_v18, %v3853_v38  ;;  %v3986_v4 = vadd.f32 %v18968_v47, %v3852_v5  ;;  %v8363_v35 = vrot.slane %v17328_v52, %v22484_v49  ;;  %10984 = vmatprep.subr.bf16.mxu0 %v17379_v8  ;;  %vm22532_vm13 = vmmov %vm22524_vm0 }
 0x3bd   :  { %v20363_v40 = vcombine.high %v20100_v34, %v20100_v34  ;;  %v4661_v63 = vrot.slane %v4653_v58, %v17901_v27  ;;  %v4668_v26 = vrot.slane %v4654_v51, %v17901_v27  ;;  %v4097_v59 = vmax.f32 %v3985_v13, 0.0  ;;  %v17329_v34 = vld [vmem:[#allocation2 + $0x20] ss:$8 sps:$4 sm:$0xff]   ;;  %11087 = vmatprep.subr.bf16.mxu1 %v17382_v44  ;;  %10985 = vmatpush1.bf16.msra.mxu0 %v17377_v45  ;;  %vm22533_vm3 = vmmov %vm22524_vm0 }
 0x3be   :  { %v3988_v21 = vadd.f32 %v18971_v19, %v3854_v56  ;;  %v4099_v50 = vmax.f32 %v3987_v33, 0.0  ;;  %v4098_v54 = vmax.f32 %v3986_v4, 0.0  ;;  %v8365_v39 = vcombine.high %v8363_v35, %v8363_v35  ;;  %v17383_v58 = vld [vmem:[#allocation3 + $0xe0] ss:$16 sps:$4 sm:$0xff]   ;;  %v17386_v33 = vld [vmem:[#allocation3 + $0xe8] ss:$16 sps:$4 sm:$0xff]   ;;  %10986 = vmatprep.subr.bf16.mxu0 %v17385_v30 }
 0x3bf   :  { %v20369_v52 = vrot.slane %v8363_v35, %v22484_v49  ;;  %v4669_v11 = vcombine.high %v4661_v63, %v4661_v63  ;;  %v4670_v41 = vcombine.high %v4668_v26, %v4668_v26  ;;  %v16324_v1 = vrot.slane %v4661_v63, 9  ;;  %11088 = vmatpush1.bf16.msra.mxu1 %v17380_v29 }
 0x3c0   :  { %v16326_v42 = vrot.slane %v4668_v26, 9  ;;  %v20371_v24 = vmax.f32 %v4097_v59, %v4099_v50  ;;  %v4100_v28 = vmax.f32 %v3988_v21, 0.0  ;;  %v20374_v25 = vrot.slane %v8365_v39, %v22484_v49  ;;  %11089 = vmatprep.subr.bf16.mxu1 %v17388_v36  ;;  %v17394_v50 = vld [vmem:[#allocation3 + $0x10c] ss:$16 sps:$4 sm:$0xff]  }
 0x3c1   :  { %v20378_v23 = vcombine.high %v20369_v52, %v20369_v52  ;;  %v16325_v38 = vrot.slane %v4669_v11, 9  ;;  %v16327_v20 = vrot.slane %v4670_v41, 9  ;;  %v5269_v5 = vmax.f32 %v4661_v63, %v16324_v1  ;;  %10987 = vmatpush1.bf16.msra.mxu0 %v17383_v58 }
 0x3c2   :  { %v5271_v61 = vmax.f32 %v4668_v26, %v16326_v42  ;;  %v20380_v51 = vmax.f32 %v4098_v54, %v4100_v28  ;;  %v20384_v13 = vcombine.high %v20111_v37, %v20111_v37  ;;  %v20389_v56 = vrot.slane %v17329_v34, %v22484_v49  ;;  %v17391_v26 = vld [vmem:[#allocation3 + $0x104] ss:$16 sps:$4 sm:$0xff]   ;;  %v17392_v28 = vld [vmem:[#allocation3 + $0x108] ss:$16 sps:$4 sm:$0xff]  }
 0x3c3   :  { %v5270_v4 = vmax.f32 %v4669_v11, %v16325_v38  ;;  %v5272_v35 = vmax.f32 %v4670_v41, %v16327_v20  ;;  %v6273_v8 = vrot.slane %v5269_v5, %v18932_v55  ;;  %v6277_v63 = vrot.slane %v5269_v5, %v18935_v62  ;;  %v17389_v11 = vld [vmem:[#allocation3 + $0x100] ss:$16 sps:$4 sm:$0xff]   ;;  %11090 = vmatpush1.bf16.msra.mxu1 %v17386_v33 }
 0x3c4   :  { %v6289_v59 = vrot.slane %v5271_v61, %v18932_v55  ;;  %v6293_v21 = vrot.slane %v5271_v61, %v18935_v62  ;;  %v4671_v45 = vcombine.low %v20371_v24, %v20380_v51  ;;  %v4672_v44 = vcombine.high %v20371_v24, %v20380_v51  ;;  %10988 = vmatprep.subr.bf16.mxu0 %v17391_v26 }
 0x3c5   :  { %v6281_v54 = vrot.slane %v5270_v4, %v18932_v55  ;;  %v6285_v39 = vrot.slane %v5270_v4, %v18935_v62  ;;  %v6297_v34 = vrot.slane %v5272_v35, %v18932_v55  ;;  %v6301_v29 = vrot.slane %v5272_v35, %v18935_v62  ;;  %11091 = vmatprep.subr.bf16.mxu1 %v17394_v50 }
 0x3c6   :  { %v6814_v41 = vpack.c.bf16 %v6273_v8, %v6273_v8  ;;  %v6815_v1 = vpack.c.bf16 %v6277_v63, %v6277_v63  ;;  %v6818_v42 = vpack.c.bf16 %v6289_v59, %v6289_v59  ;;  %v6819_v30 = vpack.c.bf16 %v6293_v21, %v6293_v21  ;;  %10989 = vmatpush1.bf16.msra.mxu0 %v17389_v11  ;;  %v17398_v8 = vld [vmem:[#allocation3 + $0x120] ss:$16 sps:$4 sm:$0xff]   ;;  %v17400_v63 = vld [vmem:[#allocation3 + $0x124] ss:$16 sps:$4 sm:$0xff]   ;;  %v17401_v59 = vld [vmem:[#allocation3 + $0x128] ss:$16 sps:$4 sm:$0xff]  }
 0x3c7   :  { %v6816_v38 = vpack.c.bf16 %v6281_v54, %v6281_v54  ;;  %v6817_v24 = vpack.c.bf16 %v6285_v39, %v6285_v39  ;;  %v6820_v36 = vpack.c.bf16 %v6297_v34, %v6297_v34  ;;  %v6821_v20 = vpack.c.bf16 %v6301_v29, %v6301_v29  ;;  %11092 = vmatpush1.bf16.msra.mxu1 %v17392_v28  ;;  %v17403_v34 = vld [vmem:[#allocation3 + $0x12c] ss:$16 sps:$4 sm:$0xff]  }
 0x3c8   :  { %v7262_v5 = vunpack.c.l.b16 %v6814_v41  ;;  %v7263_v61 = vunpack.c.l.b16 %v6815_v1  ;;  %v7266_v51 = vunpack.c.l.b16 %v6818_v42  ;;  %v7267_v4 = vunpack.c.l.b16 %v6819_v30  ;;  %10990 = vmatprep.subr.bf16.mxu0 %v17400_v63  ;;  %11093 = vmatprep.subr.bf16.mxu1 %v17403_v34 }
 0x3c9   :  { %v7264_v60 = vunpack.c.l.b16 %v6816_v38  ;;  %v7265_v35 = vunpack.c.l.b16 %v6817_v24  ;;  %v7268_v58 = vunpack.c.l.b16 %v6820_v36  ;;  %v7269_v31 = vunpack.c.l.b16 %v6821_v20  ;;  %v17406_v38 = vld [vmem:[#allocation3 + $0x144] ss:$16 sps:$4 sm:$0xff]   ;;  %v17409_v24 = vld [vmem:[#allocation3 + $0x14c] ss:$16 sps:$4 sm:$0xff]  }
 0x3ca   :  { %v7635_v33 = vrot.slane %v7262_v5, 3  ;;  %v7647_v21 = vrot.slane %v7263_v61, 3  ;;  %v7651_v54 = vrot.slane %v7266_v51, 7  ;;  %v7664_v39 = vrot.slane %v7267_v4, 7  ;;  %v7777_v20 = vld [vmem:[#allocation2 + $0x68] sm:$0xff]  ;;  %10991 = vmatpush1.bf16.msra.mxu0 %v17398_v8 }
 0x3cb   :  { %v7637_v26 = vrot.slane %v7264_v60, 2  ;;  %v7649_v29 = vrot.slane %v7265_v35, 2  ;;  %v7652_v41 = vrot.slane %v7268_v58, 6  ;;  %v7665_v1 = vrot.slane %v7269_v31, 6  ;;  %11094 = vmatpush1.bf16.msra.mxu1 %v17401_v59  ;;  %v17407_v51 = vld [vmem:[#allocation3 + $0x148] ss:$16 sps:$4 sm:$0xff]   ;;  %10992 = vmatprep.subr.bf16.mxu0 %v17406_v38 }
 0x3cc   :  { %v7636_v50 = vsel %vm7305_vm11, %v7635_v33, %v20344_v2  ;;  %v7648_v11 = vsel %vm7305_vm11, %v7647_v21, %v20347_v16  ;;  %v4679_v42 = vrot.slane %v4671_v45, %v17901_v27  ;;  %v4686_v30 = vrot.slane %v4672_v44, %v17901_v27  ;;  %v7774_v2 = vld [vmem:[#allocation2 + $0x60] sm:$0xff]  ;;  %11095 = vmatprep.subr.bf16.mxu1 %v17409_v24  ;;  %v17415_v8 = vld [vmem:[#allocation3 + $0x16c] ss:$16 sps:$4 sm:$0xff]  }
 0x3cd   :  { %vm22529_vm14 = vcmask 1046534   ;;  %v20412_v31 = vsel %vm22531_vm10, %v7652_v41, %v7651_v54  ;;  %v20415_v36 = vsel %vm22519_vm9, %v7665_v1, %v7664_v39  ;;  %v17404_v16 = vld [vmem:[#allocation3 + $0x140] ss:$16 sps:$4 sm:$0xff]   ;;  %v17412_v4 = vld [vmem:[#allocation3 + $0x164] ss:$16 sps:$4 sm:$0xff]   ;;  %v8414_v63 = vcombine.high %v20389_v56, %v20389_v56 }
 0x3ce   :  { %v7638_v28 = vsel %vm22529_vm14, %v7637_v26, %v7636_v50  ;;  %vm22530_vm2 = vmmov %vm22529_vm14  ;;  %v4687_v5 = vcombine.high %v4679_v42, %v4679_v42  ;;  %v4688_v61 = vcombine.high %v4686_v30, %v4686_v30  ;;  %v16328_v35 = vrot.slane %v4679_v42, 9  ;;  %10993 = vmatpush1.bf16.msra.mxu0 %v17404_v16  ;;  %v17410_v26 = vld [vmem:[#allocation3 + $0x160] ss:$16 sps:$4 sm:$0xff]  }
 0x3cf   :  { %v7650_v60 = vsel %vm22530_vm2, %v7649_v29, %v7648_v11  ;;  %v7713_v45 = vpack.c.b16 %v7638_v28, %v20310_v43  ;;  %v16330_v58 = vrot.slane %v4686_v30, 9  ;;  %v20423_v33 = vrot.slane %v20389_v56, %v22484_v49  ;;  %11096 = vmatpush1.bf16.msra.mxu1 %v17407_v51  ;;  %10994 = vmatprep.subr.bf16.mxu0 %v17412_v4  ;;  %v17413_v11 = vld [vmem:[#allocation3 + $0x168] ss:$16 sps:$4 sm:$0xff]   ;;  %vm22534_vm0 = vmmov %vm22530_vm2 }
 0x3d0   :  { %v7714_v44 = vpack.c.b16 %v7650_v60, %v20313_v32  ;;  %v16329_v59 = vrot.slane %v4687_v5, 9  ;;  %v16331_v21 = vrot.slane %v4688_v61, 9  ;;  %v5273_v54 = vmax.f32 %v4679_v42, %v16328_v35  ;;  %11097 = vmatprep.subr.bf16.mxu1 %v17415_v8  ;;  %vm22535_vm14 = vmmov %vm22534_vm0 }
 0x3d1   :  { %v7775_v43 = vsel %vm19242_vm5, %v7713_v45, %v7774_v2  ;;  %v5275_v39 = vmax.f32 %v4686_v30, %v16330_v58  ;;  %v20430_v34 = vrot.slane %v8414_v63, %v22484_v49  ;;  %v20434_v56 = vcombine.high %v20423_v33, %v20423_v33 }
 0x3d2   :  { %v7778_v32 = vsel %vm19254_vm1, %v7714_v44, %v7777_v20  ;;  %7776 = vst [vmem:[#allocation2 + $0x60] sm:$0xff] %v7775_v43  ;;  %v5274_v29 = vmax.f32 %v4687_v5, %v16329_v59  ;;  %v5276_v41 = vmax.f32 %v4688_v61, %v16331_v21  ;;  %v8778_v1 = vshrl.u32 %v20111_v37, 16  ;;  %10995 = vmatpush1.bf16.msra.mxu0 %v17410_v26  ;;  %v17416_v43 = vld [vmem:[#allocation3 + $0x180] ss:$16 sps:$4 sm:$0xff]   ;;  %v17419_v26 = vld [vmem:[#allocation3 + $0x188] ss:$16 sps:$4 sm:$0xff]  }
 0x3d3   :  { %7779 = vst [vmem:[#allocation2 + $0x68] sm:$0xff] %v7778_v32  ;;  %v8783_v50 = vshll.u32 %v20363_v40, 16  ;;  %v6305_v42 = vrot.slane %v5273_v54, %v18932_v55  ;;  %v6309_v30 = vrot.slane %v5273_v54, %v18935_v62  ;;  %v6321_v38 = vrot.slane %v5275_v39, %v18932_v55  ;;  %11098 = vmatpush1.bf16.msra.mxu1 %v17413_v11  ;;  %v17418_v32 = vld [vmem:[#allocation3 + $0x184] ss:$16 sps:$4 sm:$0xff]  }
 0x3d4   :  { %v6325_v24 = vrot.slane %v5275_v39, %v18935_v62  ;;  %v6313_v28 = vrot.slane %v5274_v29, %v18932_v55  ;;  %v6317_v60 = vrot.slane %v5274_v29, %v18935_v62  ;;  %v6329_v37 = vrot.slane %v5276_v41, %v18932_v55  ;;  %10996 = vmatprep.subr.bf16.mxu0 %v17418_v32 }
 0x3d5   :  { %v6333_v2 = vrot.slane %v5276_v41, %v18935_v62  ;;  %v6822_v20 = vpack.c.bf16 %v6305_v42, %v6305_v42  ;;  %v6823_v16 = vpack.c.bf16 %v6309_v30, %v6309_v30  ;;  %v6826_v45 = vpack.c.bf16 %v6321_v38, %v6321_v38 }
 0x3d6   :  { %v6827_v44 = vpack.c.bf16 %v6325_v24, %v6325_v24  ;;  %v6824_v5 = vpack.c.bf16 %v6313_v28, %v6313_v28  ;;  %v6825_v61 = vpack.c.bf16 %v6317_v60, %v6317_v60  ;;  %v6828_v51 = vpack.c.bf16 %v6329_v37, %v6329_v37  ;;  %v17421_v60 = vld [vmem:[#allocation3 + $0x18c] ss:$16 sps:$4 sm:$0xff]   ;;  %10997 = vmatpush1.bf16.msra.mxu0 %v17416_v43  ;;  %v17435_v43 = vld [vmem:[#allocation3 + $0x384] ss:$16 sps:$4 sm:$0xff]  }
 0x3d7   :  { %v6829_v4 = vpack.c.bf16 %v6333_v2, %v6333_v2  ;;  %v7270_v35 = vunpack.c.l.b16 %v6822_v20  ;;  %v7271_v58 = vunpack.c.l.b16 %v6823_v16  ;;  %v7274_v63 = vunpack.c.l.b16 %v6826_v45  ;;  %11099 = vmatprep.subr.bf16.mxu1 %v17421_v60 }
 0x3d8   :  { %v7275_v8 = vunpack.c.l.b16 %v6827_v44  ;;  %v7272_v59 = vunpack.c.l.b16 %v6824_v5  ;;  %v7273_v21 = vunpack.c.l.b16 %v6825_v61  ;;  %v7276_v54 = vunpack.c.l.b16 %v6828_v51  ;;  %v17427_v51 = vld [vmem:[#allocation3 + $0x1a0] ss:$16 sps:$4 sm:$0xff]   ;;  %11100 = vmatpush1.bf16.msra.mxu1 %v17419_v26 }
 0x3d9   :  { %v7277_v39 = vunpack.c.l.b16 %v6829_v4  ;;  %v7654_v29 = vrot.slane %v7270_v35, 5  ;;  %v7658_v41 = vrot.slane %v7274_v63, 3  ;;  %v7667_v42 = vrot.slane %v7271_v58, 5  ;;  %v17429_v4 = vld [vmem:[#allocation3 + $0x1a4] ss:$16 sps:$4 sm:$0xff]  }
 0x3da   :  { %v7671_v30 = vrot.slane %v7275_v8, 3  ;;  %v7656_v38 = vrot.slane %v7272_v59, 4  ;;  %v7660_v24 = vrot.slane %v7276_v54, 2  ;;  %v7669_v28 = vrot.slane %v7273_v21, 4  ;;  %10998 = vmatprep.subr.bf16.mxu0 %v17429_v4 }
 0x3db   :  { %v7673_v11 = vrot.slane %v7277_v39, 2  ;;  %v7655_v37 = vsel %vm22532_vm13, %v7654_v29, %v20412_v31  ;;  %v7668_v2 = vsel %vm22533_vm3, %v7667_v42, %v20415_v36  ;;  %v8785_v20 = vsel %vm20178_vm15, %v8778_v1, %v8783_v50  ;;  %v17432_v50 = vld [vmem:[#allocation3 + $0x1ac] ss:$16 sps:$4 sm:$0xff]   ;;  %10999 = vmatpush1.bf16.msra.mxu0 %v17427_v51  ;;  %v22539_v51 = vld [vmem:[#allocation39_spill] sm:$0xff]  ;;  %vm22548_vm13 = vmmov %vm22519_vm9 }
 0x3dc   :  { %v8786_v16 = vshrl.u32 %v20363_v40, 16  ;;  %v7657_v45 = vsel %vm2754_vm12, %v7656_v38, %v7655_v37  ;;  %v7670_v44 = vsel %vm2754_vm12, %v7669_v28, %v7668_v2  ;;  %v8791_v5 = vshll.u32 %v20384_v13, 16  ;;  %v17430_v40 = vld [vmem:[#allocation3 + $0x1a8] ss:$16 sps:$4 sm:$0xff]   ;;  %11101 = vmatprep.subr.bf16.mxu1 %v17432_v50  ;;  %12437 = vmatprep.subr.bf16.mxu0 %v17435_v43 }
 0x3dd   :  { %v8794_v61 = vshrl.u32 %v20384_v13, 16  ;;  %v7659_v31 = vsel %vm7305_vm11, %v7658_v41, %v7657_v45  ;;  %v7672_v36 = vsel %vm7305_vm11, %v7671_v30, %v7670_v44  ;;  %v8799_v35 = vshll.u32 %v20369_v52, 16  ;;  %v17438_v30 = vld [vmem:[#allocation3 + $0x38c] ss:$16 sps:$4 sm:$0xff]   ;;  %11102 = vmatpush1.bf16.msra.mxu1 %v17430_v40 }
 0x3de   :  { %v8802_v1 = vshrl.u32 %v20369_v52, 16  ;;  %v20462_v58 = vsel %vm22534_vm0, %v7660_v24, %v7659_v31  ;;  %v20465_v63 = vsel %vm22535_vm14, %v7673_v11, %v7672_v36  ;;  %v8793_v13 = vsel %vm20178_vm15, %v8786_v16, %v8791_v5  ;;  %v22537_v11 = vld [vmem:[#allocation37_spill] sm:$0xff]  ;;  %12540 = vmatprep.subr.bf16.mxu1 %v17438_v30  ;;  %v22538_v45 = vld [vmem:[#allocation38_spill] sm:$0xff]  ;;  %vm22549_vm0 = vmmov %vm22533_vm3 }
 0x3df   :  { %v8807_v8 = vshll.u32 %v20374_v25, 16  ;;  %v8801_v32 = vsel %vm20178_vm15, %v8794_v61, %v8799_v35  ;;  %v8810_v52 = vshrl.u32 %v20374_v25, 16  ;;  %v8815_v59 = vshll.u32 %v20378_v23, 16  ;;  %v22540_v35 = vld [vmem:[#allocation40_spill] sm:$0xff] }
 0x3e0   :  { %v8818_v21 = vshrl.u32 %v20378_v23, 16  ;;  %v22536_v39 = vcombine.high %v20374_v25, %v20374_v25  ;;  %v8827_v41 = vshrl.u32 %v20423_v33, 16  ;;  %v8832_v42 = vshll.u32 %v20430_v34, 16 }
 0x3e1   :  { %v8809_v54 = vsel %vm20178_vm15, %v8802_v1, %v8807_v8  ;;  %v8817_v26 = vsel %vm20178_vm15, %v8810_v52, %v8815_v59  ;;  %v8835_v23 = vshrl.u32 %v20430_v34, 16  ;;  %v8840_v38 = vshll.u32 %v20434_v56, 16 }
 0x3e2   :  { %v8823_v29 = vshll.u32 %v22536_v39, 16  ;;  %v9291_v24 = vcombine.low %v8785_v20, %v8793_v13  ;;  %v8834_v25 = vsel %vm20178_vm15, %v8827_v41, %v8832_v42  ;;  %v9292_v33 = vcombine.low %v8801_v32, %v8809_v54  ;;  %v5331_v42 = vld [vmem:[#allocation2 + $0x70] sm:$0x1] }
 0x3e3   :  { %v3855_v60 = vmul.f32 %v18950_v10, %v22537_v11  ;;  %v8842_v37 = vsel %vm20178_vm15, %v8835_v23, %v8840_v38  ;;  %v3857_v20 = vmul.f32 %v18953_v22, %v22538_v45  ;;  %v3856_v4 = vmul.f32 %v18956_v12, %v22539_v51  ;;  %v17331_v38 = vld [vmem:[#allocation2 + $0x24] ss:$8 sps:$4 sm:$0xff]  }
 0x3e4   :  { %v8825_v28 = vsel %vm20178_vm15, %v8818_v21, %v8823_v29  ;;  %v9301_v16 = vrot.slane %v9291_v24, %v22484_v49  ;;  %v9294_v44 = vcombine.low %v8834_v25, %v8842_v37  ;;  %v9308_v5 = vrot.slane %v9292_v33, %v22484_v49  ;;  %v5384_v33 = vld [vmem:[#allocation2 + $0x70] sm:$0x80] }
 0x3e5   :  { %v9293_v2 = vcombine.low %v8817_v26, %v8825_v28  ;;  %v3989_v61 = vadd.f32 %v18962_v46, %v3855_v60  ;;  %v3991_v36 = vadd.f32 %v18965_v18, %v3857_v20  ;;  %v3858_v1 = vmul.f32 %v18959_v53, %v22540_v35 }
 0x3e6   :  { %v3859_v40 = vmul.f32 %v18950_v10, %v20145_v15  ;;  %v9322_v50 = vrot.slane %v9294_v44, %v22484_v49  ;;  %v9324_v13 = vcombine.high %v9301_v16, %v9308_v5  ;;  %v9323_v8 = vcombine.low %v9301_v16, %v9308_v5  ;;  %v5334_v10 = vld [vmem:[#allocation2 + $0x78] sm:$0x1]  ;;  %v5387_v16 = vld [vmem:[#allocation2 + $0x78] sm:$0x80] }
 0x3e7   :  { %v9315_v31 = vrot.slane %v9293_v2, %v22484_v49  ;;  %v4101_v43 = vmax.f32 %v3989_v61, 0.0  ;;  %v4103_v32 = vmax.f32 %v3991_v36, 0.0  ;;  %v3990_v52 = vadd.f32 %v18968_v47, %v3856_v4 }
 0x3e8   :  { %v3992_v59 = vadd.f32 %v18971_v19, %v3858_v1  ;;  %v3993_v21 = vadd.f32 %v18962_v46, %v3859_v40  ;;  %v9340_v39 = vrot.slane %v9324_v13, %v22484_v49  ;;  %v9333_v41 = vrot.slane %v9323_v8, %v22484_v49 }
 0x3e9   :  { %v9326_v54 = vcombine.high %v9315_v31, %v9322_v50  ;;  %v9325_v29 = vcombine.low %v9315_v31, %v9322_v50  ;;  %v4161_v15 = vmax.f32 %v4101_v43, %v4103_v32  ;;  %v4102_v30 = vmax.f32 %v3990_v52, 0.0 }
 0x3ea   :  { %v4104_v26 = vmax.f32 %v3992_v59, 0.0  ;;  %v4105_v23 = vmax.f32 %v3993_v21, 0.0  ;;  %v3861_v46 = vmul.f32 %v18953_v22, %v20147_v6  ;;  %v3860_v25 = vmul.f32 %v18956_v12, %v20153_v3  ;;  %v17332_v12 = vld [vmem:[#allocation2 + $0x30] ss:$8 sps:$4 sm:$0xff]  }
 0x3eb   :  { %v9354_v24 = vrot.slane %v9326_v54, %v22484_v49  ;;  %v9347_v28 = vrot.slane %v9325_v29, %v22484_v49  ;;  %v3862_v60 = vmul.f32 %v18959_v53, %v20155_v0  ;;  %v5332_v37 = vsel %vm18896_vm4, 0, %v5331_v42 }
 0x3ec   :  { %v4162_v11 = vmax.f32 %v4102_v30, %v4104_v26  ;;  %v5335_v2 = vsel %vm18903_vm6, 0, %v5334_v10  ;;  %v3995_v44 = vadd.f32 %v18965_v18, %v3861_v46  ;;  %v3994_v22 = vadd.f32 %v18968_v47, %v3860_v25  ;;  %5333 = vst [vmem:[#allocation2 + $0x70] sm:$0x1] %v5332_v37 }
 0x3ed   :  { %v9356_v45 = vcombine.low %v9340_v39, %v9354_v24  ;;  %v9355_v20 = vcombine.low %v9333_v41, %v9347_v28  ;;  %5336 = vst [vmem:[#allocation2 + $0x78] sm:$0x1] %v5335_v2  ;;  %v3996_v53 = vadd.f32 %v18971_v19, %v3862_v60  ;;  %v5385_v0 = vsel %vm18910_vm7, 0, %v5384_v33 }
 0x3ee   :  { %v4689_v6 = vcombine.low %v4161_v15, %v4162_v11  ;;  %v4690_v3 = vcombine.high %v4161_v15, %v4162_v11  ;;  %vm22541_vm4 = vcmask 785408   ;;  %v4107_v57 = vmax.f32 %v3995_v44, 0.0  ;;  %5386 = vst [vmem:[#allocation2 + $0x70] sm:$0x80] %v5385_v0 }
 0x3ef   :  { %16453 = vmatprep.mubr.msk.bf16.mxu0 %vm22541_vm4, %v9356_v45  ;;  %vm22542_vm6 = vmmov %vm22541_vm4  ;;  %v4106_v48 = vmax.f32 %v3994_v22, 0.0  ;;  %v5388_v47 = vsel %vm18917_vm8, 0, %v5387_v16  ;;  %v8413_v5 = vrot.slane %v17331_v38, %v22484_v49  ;;  %v4108_v7 = vmax.f32 %v3996_v53, 0.0 }
 0x3f0   :  { %16460 = vmatprep.mubr.msk.bf16.mxu1 %vm22542_vm6, %v9356_v45  ;;  %10039 = vmatmul.mubr.bf16.gmra.mrb[60].mxu0 %v9355_v20  ;;  %v4697_v61 = vrot.slane %v4689_v6, %v17901_v27  ;;  %v4704_v19 = vrot.slane %v4690_v3, %v17901_v27  ;;  %5389 = vst [vmem:[#allocation2 + $0x78] sm:$0x80] %v5388_v47  ;;  %vm22544_vm7 = vcmask 1047559   ;;  %vm22546_vm2 = vcmask 1041409   ;;  %vm22550_vm4 = vmmov %vm22535_vm14 }
 0x3f1   :  { %10142 = vmatmul.mubr.bf16.gmra.mrb[60].mxu1 %v9355_v20  ;;  %v20539_v51 = vcombine.high %v20430_v34, %v20430_v34  ;;  %v4163_v4 = vmax.f32 %v4105_v23, %v4107_v57  ;;  %v8415_v31 = vcombine.high %v8413_v5, %v8413_v5  ;;  %v20542_v36 = vrot.slane %v8413_v5, %v22484_v49  ;;  %vm22545_vm8 = vmmov %vm22544_vm7 }
 0x3f2   :  { %v20545_v35 = vrot.slane %v17332_v12, %v22484_v49  ;;  %v4705_v1 = vcombine.high %v4697_v61, %v4697_v61  ;;  %v4706_v40 = vcombine.high %v4704_v19, %v4704_v19  ;;  %v16332_v50 = vrot.slane %v4697_v61, 9  ;;  %vm22547_vm10 = vmmov %vm22546_vm2 }
 0x3f3   :  { %v16334_v13 = vrot.slane %v4704_v19, 9  ;;  %v4164_v8 = vmax.f32 %v4106_v48, %v4108_v7  ;;  %v20548_v43 = vrot.slane %v8415_v31, %v22484_v49  ;;  %v20552_v34 = vcombine.high %v20542_v36, %v20542_v36 }
 0x3f4   :  { %v8464_v32 = vcombine.high %v20545_v35, %v20545_v35  ;;  %v16333_v52 = vrot.slane %v4705_v1, 9  ;;  %v16335_v59 = vrot.slane %v4706_v40, 9  ;;  %v5277_v21 = vmax.f32 %v4697_v61, %v16332_v50 }
 0x3f5   :  { %v5279_v54 = vmax.f32 %v4704_v19, %v16334_v13  ;;  %v4707_v39 = vcombine.low %v4163_v4, %v4164_v8  ;;  %v4708_v29 = vcombine.high %v4163_v4, %v4164_v8  ;;  %v8447_v41 = vcombine.high %v20548_v43, %v20548_v43 }
 0x3f6   :  { %v20560_v42 = vrot.slane %v20545_v35, %v22484_v49  ;;  %v5278_v10 = vmax.f32 %v4705_v1, %v16333_v52  ;;  %v5280_v15 = vmax.f32 %v4706_v40, %v16335_v59  ;;  %v6337_v30 = vrot.slane %v5277_v21, %v18932_v55 }
 0x3f7   :  { %v6341_v26 = vrot.slane %v5277_v21, %v18935_v62  ;;  %v6353_v23 = vrot.slane %v5279_v54, %v18932_v55  ;;  %v6357_v38 = vrot.slane %v5279_v54, %v18935_v62  ;;  %v4715_v24 = vrot.slane %v4707_v39, %v17901_v27 }
 0x3f8   :  { %v4722_v28 = vrot.slane %v4708_v29, %v17901_v27  ;;  %v6345_v46 = vrot.slane %v5278_v10, %v18932_v55  ;;  %v6349_v25 = vrot.slane %v5278_v10, %v18935_v62  ;;  %v6361_v33 = vrot.slane %v5280_v15, %v18932_v55 }
 0x3f9   :  { %v6365_v11 = vrot.slane %v5280_v15, %v18935_v62  ;;  %v6830_v60 = vpack.c.bf16 %v6337_v30, %v6337_v30  ;;  %v6831_v37 = vpack.c.bf16 %v6341_v26, %v6341_v26  ;;  %v6834_v2 = vpack.c.bf16 %v6353_v23, %v6353_v23 }
 0x3fa   :  { %v6835_v16 = vpack.c.bf16 %v6357_v38, %v6357_v38  ;;  %v6832_v45 = vpack.c.bf16 %v6345_v46, %v6345_v46  ;;  %v6833_v20 = vpack.c.bf16 %v6349_v25, %v6349_v25  ;;  %v6836_v44 = vpack.c.bf16 %v6361_v33, %v6361_v33 }
 0x3fb   :  { %v6837_v22 = vpack.c.bf16 %v6365_v11, %v6365_v11  ;;  %v7278_v12 = vunpack.c.l.b16 %v6830_v60  ;;  %v7279_v6 = vunpack.c.l.b16 %v6831_v37  ;;  %v7282_v3 = vunpack.c.l.b16 %v6834_v2 }
 0x3fc   :  { %v7283_v53 = vunpack.c.l.b16 %v6835_v16  ;;  %v7280_v0 = vunpack.c.l.b16 %v6832_v45  ;;  %v7281_v57 = vunpack.c.l.b16 %v6833_v20  ;;  %v7284_v48 = vunpack.c.l.b16 %v6836_v44 }
 0x3fd   :  { %v7285_v18 = vunpack.c.l.b16 %v6837_v22  ;;  %v7662_v47 = vrot.slane %v7278_v12, 1  ;;  %v7675_v5 = vrot.slane %v7279_v6, 1  ;;  %v7677_v61 = vrot.slane %v7282_v3, 7 }
 0x3fe   :  { %v7689_v19 = vrot.slane %v7283_v53, 7  ;;  %v7679_v7 = vrot.slane %v7284_v48, 6  ;;  %v4723_v31 = vcombine.high %v4715_v24, %v4715_v24  ;;  %v4724_v35 = vcombine.high %v4722_v28, %v4722_v28 }
 0x3ff   :  { %v7691_v4 = vrot.slane %v7285_v18, 6  ;;  %v20574_v1 = vsel %vm22544_vm7, %v7662_v47, %v20462_v58  ;;  %v20578_v40 = vsel %vm22545_vm8, %v7675_v5, %v20465_v63  ;;  %v7678_v50 = vsel %vm22546_vm2, %v7677_v61, %v7280_v0 }
 0x400   :  { %v7690_v13 = vsel %vm22547_vm10, %v7689_v19, %v7281_v57  ;;  %v7680_v8 = vsel %vm22519_vm9, %v7679_v7, %v7678_v50  ;;  %v16336_v59 = vrot.slane %v4715_v24, 9  ;;  %v16337_v21 = vrot.slane %v4723_v31, 9 }
 0x401   :  { %v7692_v52 = vsel %vm22548_vm13, %v7691_v4, %v7690_v13  ;;  %v16338_v54 = vrot.slane %v4722_v28, 9  ;;  %v16339_v39 = vrot.slane %v4724_v35, 9  ;;  %v20585_v29 = vrot.slane %v8464_v32, %v22484_v49 }
 0x402   :  { %v20589_v58 = vcombine.high %v20560_v42, %v20560_v42  ;;  %v5281_v63 = vmax.f32 %v4715_v24, %v16336_v59  ;;  %v5282_v10 = vmax.f32 %v4723_v31, %v16337_v21  ;;  %v8843_v15 = vshrl.u32 %v20434_v56, 16 }
 0x403   :  { %v8848_v30 = vshll.u32 %v20539_v51, 16  ;;  %v5283_v26 = vmax.f32 %v4722_v28, %v16338_v54  ;;  %v5284_v23 = vmax.f32 %v4724_v35, %v16339_v39  ;;  %v20595_v38 = vcombine.high %v20585_v29, %v20585_v29 }
 0x404   :  { %v8851_v46 = vshrl.u32 %v20539_v51, 16  ;;  %v6369_v32 = vrot.slane %v5281_v63, %v18932_v55  ;;  %v6373_v25 = vrot.slane %v5281_v63, %v18935_v62  ;;  %v6377_v33 = vrot.slane %v5282_v10, %v18932_v55 }
 0x405   :  { %v6381_v24 = vrot.slane %v5282_v10, %v18935_v62  ;;  %v6385_v56 = vrot.slane %v5283_v26, %v18932_v55  ;;  %v6389_v11 = vrot.slane %v5283_v26, %v18935_v62  ;;  %v6393_v28 = vrot.slane %v5284_v23, %v18932_v55 }
 0x406   :  { %v6397_v60 = vrot.slane %v5284_v23, %v18935_v62  ;;  %v6838_v37 = vpack.c.bf16 %v6369_v32, %v6369_v32  ;;  %v6839_v2 = vpack.c.bf16 %v6373_v25, %v6373_v25  ;;  %v6840_v16 = vpack.c.bf16 %v6377_v33, %v6377_v33  ;;  %v7780_v32 = vld [vmem:[#allocation2 + $0x70] sm:$0xff]  ;;  %v7783_v25 = vld [vmem:[#allocation2 + $0x78] sm:$0xff] }
 0x407   :  { %v6841_v51 = vpack.c.bf16 %v6381_v24, %v6381_v24  ;;  %v6842_v45 = vpack.c.bf16 %v6385_v56, %v6385_v56  ;;  %v6843_v20 = vpack.c.bf16 %v6389_v11, %v6389_v11  ;;  %v6844_v44 = vpack.c.bf16 %v6393_v28, %v6393_v28  ;;  %v17334_v11 = vld [vmem:[#allocation2 + $0x34] ss:$8 sps:$4 sm:$0xff]  }
 0x408   :  { %v6845_v22 = vpack.c.bf16 %v6397_v60, %v6397_v60  ;;  %v7286_v12 = vunpack.c.l.b16 %v6838_v37  ;;  %v7287_v6 = vunpack.c.l.b16 %v6839_v2  ;;  %v7288_v3 = vunpack.c.l.b16 %v6840_v16  ;;  %v17347_v60 = vld [vmem:[#allocation2 + $0x40] ss:$8 sps:$4 sm:$0xff]  }
 0x409   :  { %v7289_v53 = vunpack.c.l.b16 %v6841_v51  ;;  %v7290_v0 = vunpack.c.l.b16 %v6842_v45  ;;  %v7291_v57 = vunpack.c.l.b16 %v6843_v20  ;;  %v7292_v48 = vunpack.c.l.b16 %v6844_v44 }
 0x40a   :  { %v7293_v18 = vunpack.c.l.b16 %v6845_v22  ;;  %v7681_v47 = vrot.slane %v7286_v12, 5  ;;  %v7683_v5 = vrot.slane %v7288_v3, 4  ;;  %v7693_v61 = vrot.slane %v7287_v6, 5 }
 0x40b   :  { %v7695_v19 = vrot.slane %v7289_v53, 4  ;;  %v7685_v7 = vrot.slane %v7290_v0, 3  ;;  %v7687_v4 = vrot.slane %v7292_v48, 2  ;;  %v7697_v31 = vrot.slane %v7291_v57, 3 }
 0x40c   :  { %v7699_v35 = vrot.slane %v7293_v18, 2  ;;  %v7682_v50 = vsel %vm22533_vm3, %v7681_v47, %v7680_v8  ;;  %v7694_v13 = vsel %vm22549_vm0, %v7693_v61, %v7692_v52  ;;  %v8850_v59 = vsel %vm20178_vm15, %v8843_v15, %v8848_v30 }
 0x40d   :  { %v8856_v21 = vshll.u32 %v20542_v36, 16  ;;  %v7684_v54 = vsel %vm2754_vm12, %v7683_v5, %v7682_v50  ;;  %v7696_v39 = vsel %vm2754_vm12, %v7695_v19, %v7694_v13  ;;  %v8859_v63 = vshrl.u32 %v20542_v36, 16 }
 0x40e   :  { %v8864_v10 = vshll.u32 %v20548_v43, 16  ;;  %v7686_v26 = vsel %vm7305_vm11, %v7685_v7, %v7684_v54  ;;  %v7698_v23 = vsel %vm7305_vm11, %v7697_v31, %v7696_v39  ;;  %v8867_v52 = vshrl.u32 %v20548_v43, 16 }
 0x40f   :  { %v8858_v8 = vsel %vm20178_vm15, %v8851_v46, %v8856_v21  ;;  %v7688_v15 = vsel %vm22535_vm14, %v7687_v4, %v7686_v26  ;;  %v7700_v30 = vsel %vm22550_vm4, %v7699_v35, %v7698_v23  ;;  %v8872_v33 = vshll.u32 %v20552_v34, 16 }
 0x410   :  { %v8866_v36 = vsel %vm20178_vm15, %v8859_v63, %v8864_v10  ;;  %v7715_v24 = vpack.c.b16 %v7688_v15, %v20574_v1  ;;  %v7716_v56 = vpack.c.b16 %v7700_v30, %v20578_v40  ;;  %v8875_v46 = vshrl.u32 %v20552_v34, 16  ;;  %v17349_v1 = vld [vmem:[#allocation2 + $0x44] ss:$8 sps:$4 sm:$0xff]  }
 0x411   :  { %v8880_v28 = vshll.u32 %v8447_v41, 16  ;;  %v8874_v37 = vsel %vm20178_vm15, %v8867_v52, %v8872_v33  ;;  %v8884_v2 = vshrl.u32 %v20560_v42, 16  ;;  %v8889_v16 = vshll.u32 %v20585_v29, 16 }
 0x412   :  { %v8892_v51 = vshrl.u32 %v20585_v29, 16  ;;  %v20638_v40 = vsel %vm19242_vm5, %v7715_v24, %v7780_v32  ;;  %v20642_v34 = vsel %vm19254_vm1, %v7716_v56, %v7783_v25  ;;  %v8897_v41 = vshll.u32 %v20589_v58, 16  ;;  %vm22551_vm1 = vmmov %vm22542_vm6 }
 0x413   :  { %v8882_v43 = vsel %vm20178_vm15, %v8875_v46, %v8880_v28  ;;  %7782 = vst [vmem:[#allocation2 + $0x70] sm:$0xff] %v20638_v40  ;;  %7785 = vst [vmem:[#allocation2 + $0x78] sm:$0xff] %v20642_v34  ;;  %v8891_v42 = vsel %vm20178_vm15, %v8884_v2, %v8889_v16  ;;  %v8900_v17 = vshrl.u32 %v20589_v58, 16  ;;  %v8905_v29 = vshll.u32 %v20595_v38, 16  ;;  %v17374_v16 = vld [vmem:[#allocation2 + $0x50] ss:$8 sps:$4 sm:$0xff]  }
 0x414   :  { %v9357_v45 = vcombine.low %v8850_v59, %v8858_v8  ;;  %v8899_v9 = vsel %vm20178_vm15, %v8892_v51, %v8897_v41  ;;  %v9358_v20 = vcombine.low %v8866_v36, %v8874_v37  ;;  %v9359_v44 = vcombine.low %v8882_v43, %v8891_v42  ;;  %vm22552_vm5 = vmmov %vm22551_vm1  ;;  %v17376_v42 = vld [vmem:[#allocation2 + $0x54] ss:$8 sps:$4 sm:$0xff]  }
 0x415   :  { %v8463_v22 = vrot.slane %v17334_v11, %v22484_v49  ;;  %v8907_v12 = vsel %vm20178_vm15, %v8900_v17, %v8905_v29  ;;  %v8506_v3 = vrot.slane %v17347_v60, %v22484_v49  ;;  %v20661_v53 = vrot.slane %v17349_v1, %v22484_v49  ;;  %vm22553_vm6 = vmmov %vm22551_vm1 }
 0x416   :  { %v9367_v6 = vrot.slane %v9357_v45, %v22484_v49  ;;  %v9360_v58 = vcombine.low %v8899_v9, %v8907_v12  ;;  %v9374_v0 = vrot.slane %v9358_v20, %v22484_v49  ;;  %v9381_v57 = vrot.slane %v9359_v44, %v22484_v49  ;;  %vm22554_vm7 = vmmov %vm22551_vm1 }
 0x417   :  { %v8465_v48 = vcombine.high %v8463_v22, %v8463_v22  ;;  %v8479_v18 = vrot.slane %v8463_v22, %v22484_v49  ;;  %v8514_v47 = vcombine.high %v8506_v3, %v8506_v3  ;;  %v8522_v5 = vrot.slane %v8506_v3, %v22484_v49  ;;  %vm22555_vm8 = vmmov %vm22551_vm1 }
 0x418   :  { %v20669_v61 = vrot.slane %v20661_v53, %v22484_v49  ;;  %v9388_v19 = vrot.slane %v9360_v58, %v22484_v49  ;;  %v9390_v7 = vcombine.high %v9367_v6, %v9374_v0  ;;  %v9389_v4 = vcombine.low %v9367_v6, %v9374_v0  ;;  %vm22556_vm2 = vmmov %vm22551_vm1 }
 0x419   :  { %v8493_v31 = vrot.slane %v8465_v48, %v22484_v49  ;;  %v8495_v35 = vcombine.high %v8479_v18, %v8479_v18  ;;  %v8536_v50 = vrot.slane %v8514_v47, %v22484_v49  ;;  %v8544_v13 = vcombine.high %v8522_v5, %v8522_v5  ;;  %vm22557_vm10 = vmmov %vm22551_vm1 }
 0x41a   :  { %v8908_v59 = vshrl.u32 %v20595_v38, 16  ;;  %v9392_v21 = vcombine.high %v9381_v57, %v9388_v19  ;;  %v9406_v54 = vrot.slane %v9390_v7, %v22484_v49  ;;  %v9391_v39 = vcombine.low %v9381_v57, %v9388_v19  ;;  %vm22558_vm9 = vmmov %vm22551_vm1 }
 0x41b   :  { %v9399_v63 = vrot.slane %v9389_v4, %v22484_v49  ;;  %v8497_v10 = vcombine.high %v8493_v31, %v8493_v31  ;;  %v8546_v26 = vcombine.high %v8536_v50, %v8536_v50  ;;  %v8913_v23 = vshll.u32 %v8479_v18, 16  ;;  %vm22560_vm13 = vmmov %vm22551_vm1 }
 0x41c   :  { %v8916_v8 = vshrl.u32 %v8479_v18, 16  ;;  %v9420_v52 = vrot.slane %v9392_v21, %v22484_v49  ;;  %v9413_v15 = vrot.slane %v9391_v39, %v22484_v49  ;;  %v8921_v30 = vshll.u32 %v8493_v31, 16  ;;  %vm22561_vm3 = vmmov %vm22551_vm1 }
 0x41d   :  { %v8924_v32 = vshrl.u32 %v8493_v31, 16  ;;  %v8915_v25 = vsel %vm20178_vm15, %v8908_v59, %v8913_v23  ;;  %v8929_v38 = vshll.u32 %v8495_v35, 16  ;;  %v8932_v36 = vshrl.u32 %v8495_v35, 16  ;;  %vm22562_vm0 = vmmov %vm22551_vm1 }
 0x41e   :  { %v8937_v33 = vshll.u32 %v8497_v10, 16  ;;  %v9422_v24 = vcombine.low %v9406_v54, %v9420_v52  ;;  %v9421_v56 = vcombine.low %v9399_v63, %v9413_v15  ;;  %v8923_v11 = vsel %vm20178_vm15, %v8916_v8, %v8921_v30  ;;  %vm22563_vm14 = vmmov %vm22562_vm0 }
 0x41f   :  { %v8941_v46 = vshrl.u32 %v8522_v5, 16  ;;  %v8931_v28 = vsel %vm20178_vm15, %v8924_v32, %v8929_v38  ;;  %v8946_v37 = vshll.u32 %v8536_v50, 16  ;;  %v8949_v2 = vshrl.u32 %v8536_v50, 16  ;;  %vm22564_vm4 = vmmov %vm22562_vm0 }
 0x420   :  { %v8939_v60 = vsel %vm20178_vm15, %v8932_v36, %v8937_v33  ;;  %16454 = vmatprep.mubr.msk.bf16.mxu0 %vm22551_vm1, %v9422_v24  ;;  %16461 = vmatprep.mubr.msk.bf16.mxu1 %vm22552_vm5, %v9422_v24  ;;  %v8954_v51 = vshll.u32 %v8544_v13, 16  ;;  %v8957_v1 = vshrl.u32 %v8544_v13, 16  ;;  %v8962_v43 = vshll.u32 %v8546_v26, 16  ;;  %vm22566_vm5 = vmmov %vm22562_vm0 }
 0x421   :  { %v8965_v41 = vshrl.u32 %v8546_v26, 16  ;;  %10049 = vmatmul.mubr.bf16.gmra.mrb[64].mxu0 %v9421_v56  ;;  %10152 = vmatmul.mubr.bf16.gmra.mrb[64].mxu1 %v9421_v56  ;;  %v8948_v17 = vsel %vm20178_vm15, %v8941_v46, %v8946_v37  ;;  %v8970_v29 = vshll.u32 %v20669_v61, 16  ;;  %v9423_v45 = vcombine.low %v8915_v25, %v8923_v11 }
 0x422   :  { %v9424_v9 = vcombine.low %v8931_v28, %v8939_v60  ;;  %v8956_v20 = vsel %vm20178_vm15, %v8949_v2, %v8954_v51  ;;  %v8964_v44 = vsel %vm20178_vm15, %v8957_v1, %v8962_v43  ;;  %v8515_v22 = vcombine.high %v20661_v53, %v20661_v53  ;;  %v17395_v51 = vld [vmem:[#allocation2 + $0x60] ss:$8 sps:$4 sm:$0xff]  }
 0x423   :  { %v8545_v12 = vcombine.high %v20669_v61, %v20669_v61  ;;  %v8972_v6 = vsel %vm20178_vm15, %v8965_v41, %v8970_v29  ;;  %v9425_v3 = vcombine.low %v8948_v17, %v8956_v20  ;;  %v9433_v58 = vrot.slane %v9423_v45, %v22484_v49  ;;  %v17397_v17 = vld [vmem:[#allocation2 + $0x64] ss:$8 sps:$4 sm:$0xff]  }
 0x424   :  { %v9440_v0 = vrot.slane %v9424_v9, %v22484_v49  ;;  %v9426_v57 = vcombine.low %v8964_v44, %v8972_v6  ;;  %v8543_v48 = vrot.slane %v8515_v22, %v22484_v49  ;;  %v8556_v18 = vrot.slane %v17374_v16, %v22484_v49 }
 0x425   :  { %v8563_v47 = vrot.slane %v17376_v42, %v22484_v49  ;;  %v9447_v53 = vrot.slane %v9425_v3, %v22484_v49  ;;  %v8973_v7 = vshrl.u32 %v20669_v61, 16  ;;  %v8986_v52 = vshll.u32 %v8545_v12, 16 }
 0x426   :  { %v9456_v5 = vcombine.high %v9433_v58, %v9440_v0  ;;  %v9455_v19 = vcombine.low %v9433_v58, %v9440_v0  ;;  %v9454_v4 = vrot.slane %v9426_v57, %v22484_v49  ;;  %v8547_v31 = vcombine.high %v8543_v48, %v8543_v48 }
 0x427   :  { %v8564_v35 = vcombine.high %v8556_v18, %v8556_v18  ;;  %v8565_v50 = vcombine.high %v8563_v47, %v8563_v47  ;;  %v8572_v21 = vrot.slane %v8556_v18, %v22484_v49  ;;  %v8579_v54 = vrot.slane %v8563_v47, %v22484_v49 }
 0x428   :  { %v9472_v13 = vrot.slane %v9456_v5, %v22484_v49  ;;  %v9465_v59 = vrot.slane %v9455_v19, %v22484_v49  ;;  %v9458_v39 = vcombine.high %v9447_v53, %v9454_v4  ;;  %v9457_v63 = vcombine.low %v9447_v53, %v9454_v4 }
 0x429   :  { %v8586_v10 = vrot.slane %v8564_v35, %v22484_v49  ;;  %v20716_v26 = vrot.slane %v8565_v50, %v22484_v49  ;;  %v8594_v61 = vcombine.high %v8572_v21, %v8572_v21  ;;  %v8978_v23 = vshll.u32 %v8543_v48, 16 }
 0x42a   :  { %v8981_v8 = vshrl.u32 %v8543_v48, 16  ;;  %v9486_v15 = vrot.slane %v9458_v39, %v22484_v49  ;;  %v9479_v30 = vrot.slane %v9457_v63, %v22484_v49  ;;  %v8989_v25 = vshrl.u32 %v8545_v12, 16 }
 0x42b   :  { %v8596_v32 = vcombine.high %v8586_v10, %v8586_v10  ;;  %v8980_v38 = vsel %vm20178_vm15, %v8973_v7, %v8978_v23  ;;  %v8994_v33 = vshll.u32 %v8547_v31, 16  ;;  %v8998_v24 = vshrl.u32 %v8572_v21, 16 }
 0x42c   :  { %v8988_v36 = vsel %vm20178_vm15, %v8981_v8, %v8986_v52  ;;  %v9488_v56 = vcombine.low %v9472_v13, %v9486_v15  ;;  %v9487_v11 = vcombine.low %v9465_v59, %v9479_v30  ;;  %v9003_v46 = vshll.u32 %v8586_v10, 16 }
 0x42d   :  { %v9006_v28 = vshrl.u32 %v8586_v10, 16  ;;  %v8996_v60 = vsel %vm20178_vm15, %v8989_v25, %v8994_v33  ;;  %v9011_v37 = vshll.u32 %v8594_v61, 16  ;;  %v9014_v2 = vshrl.u32 %v8594_v61, 16 }
 0x42e   :  { %v9019_v16 = vshll.u32 %v8596_v32, 16  ;;  %16455 = vmatprep.mubr.msk.bf16.mxu0 %vm22553_vm6, %v9488_v56  ;;  %16462 = vmatprep.mubr.msk.bf16.mxu1 %vm22554_vm7, %v9488_v56  ;;  %v9005_v1 = vsel %vm20178_vm15, %v8998_v24, %v9003_v46  ;;  %v9022_v43 = vshrl.u32 %v8596_v32, 16  ;;  %v9027_v41 = vshll.u32 %v8579_v54, 16  ;;  %vm22567_vm6 = vmmov %vm22562_vm0 }
 0x42f   :  { %v9030_v42 = vshrl.u32 %v8579_v54, 16  ;;  %10059 = vmatmul.mubr.bf16.gmra.mrb[68].mxu0 %v9487_v11  ;;  %10162 = vmatmul.mubr.bf16.gmra.mrb[68].mxu1 %v9487_v11  ;;  %v9013_v29 = vsel %vm20178_vm15, %v9006_v28, %v9011_v37  ;;  %v9035_v9 = vshll.u32 %v20716_v26, 16  ;;  %v9489_v20 = vcombine.low %v8980_v38, %v8988_v36  ;;  %vm22568_vm7 = vmmov %vm22562_vm0 }
 0x430   :  { %v9021_v45 = vsel %vm20178_vm15, %v9014_v2, %v9019_v16  ;;  %v9029_v44 = vsel %vm20178_vm15, %v9022_v43, %v9027_v41  ;;  %v9490_v22 = vcombine.low %v8996_v60, %v9005_v1  ;;  %v8595_v6 = vcombine.high %v8579_v54, %v8579_v54 }
 0x431   :  { %v9491_v12 = vcombine.low %v9013_v29, %v9021_v45  ;;  %v9037_v3 = vsel %vm20178_vm15, %v9030_v42, %v9035_v9  ;;  %v9499_v58 = vrot.slane %v9489_v20, %v22484_v49  ;;  %v8597_v0 = vcombine.high %v20716_v26, %v20716_v26 }
 0x432   :  { %v8606_v57 = vrot.slane %v17395_v51, %v22484_v49  ;;  %v9492_v48 = vcombine.low %v9029_v44, %v9037_v3  ;;  %v9506_v18 = vrot.slane %v9490_v22, %v22484_v49  ;;  %v8613_v53 = vrot.slane %v17397_v17, %v22484_v49 }
 0x433   :  { %v9513_v47 = vrot.slane %v9491_v12, %v22484_v49  ;;  %v9038_v7 = vshrl.u32 %v20716_v26, 16  ;;  %v9043_v4 = vshll.u32 %v8595_v6, 16  ;;  %v9046_v15 = vshrl.u32 %v8595_v6, 16  ;;  %v17422_v6 = vld [vmem:[#allocation2] ss:$8 sps:$4 sm:$0xff]  }
 0x434   :  { %v8614_v5 = vcombine.high %v8606_v57, %v8606_v57  ;;  %v8622_v19 = vrot.slane %v8606_v57, %v22484_v49  ;;  %v9520_v31 = vrot.slane %v9492_v48, %v22484_v49  ;;  %v9522_v35 = vcombine.high %v9499_v58, %v9506_v18 }
 0x435   :  { %v9521_v50 = vcombine.low %v9499_v58, %v9506_v18  ;;  %v8615_v13 = vcombine.high %v8613_v53, %v8613_v53  ;;  %v8629_v59 = vrot.slane %v8613_v53, %v22484_v49  ;;  %v9045_v39 = vsel %vm20178_vm15, %v9038_v7, %v9043_v4 }
 0x436   :  { %v8636_v21 = vrot.slane %v8614_v5, %v22484_v49  ;;  %v8644_v54 = vcombine.high %v8622_v19, %v8622_v19  ;;  %v9524_v63 = vcombine.high %v9513_v47, %v9520_v31  ;;  %v9538_v10 = vrot.slane %v9522_v35, %v22484_v49 }
 0x437   :  { %v9523_v61 = vcombine.low %v9513_v47, %v9520_v31  ;;  %v9531_v26 = vrot.slane %v9521_v50, %v22484_v49  ;;  %v8643_v23 = vrot.slane %v8615_v13, %v22484_v49  ;;  %v20756_v8 = vcombine.high %v8629_v59, %v8629_v59 }
 0x438   :  { %v8646_v52 = vcombine.high %v8636_v21, %v8636_v21  ;;  %v9552_v30 = vrot.slane %v9524_v63, %v22484_v49  ;;  %v9051_v25 = vshll.u32 %v8597_v0, 16  ;;  %v9055_v38 = vshrl.u32 %v8622_v19, 16 }
 0x439   :  { %v9545_v32 = vrot.slane %v9523_v61, %v22484_v49  ;;  %v9060_v36 = vshll.u32 %v8636_v21, 16  ;;  %v9063_v33 = vshrl.u32 %v8636_v21, 16  ;;  %v9068_v24 = vshll.u32 %v8644_v54, 16 }
 0x43a   :  { %v9071_v56 = vshrl.u32 %v8644_v54, 16  ;;  %v9554_v11 = vcombine.low %v9538_v10, %v9552_v30  ;;  %v9053_v28 = vsel %vm20178_vm15, %v9046_v15, %v9051_v25  ;;  %v9076_v60 = vshll.u32 %v8646_v52, 16 }
 0x43b   :  { %v9553_v46 = vcombine.low %v9531_v26, %v9545_v32  ;;  %v9062_v37 = vsel %vm20178_vm15, %v9055_v38, %v9060_v36  ;;  %v9070_v2 = vsel %vm20178_vm15, %v9063_v33, %v9068_v24  ;;  %v9079_v16 = vshrl.u32 %v8646_v52, 16 }
 0x43c   :  { %v9084_v51 = vshll.u32 %v8629_v59, 16  ;;  %16456 = vmatprep.mubr.msk.bf16.mxu0 %vm22555_vm8, %v9554_v11  ;;  %16463 = vmatprep.mubr.msk.bf16.mxu1 %vm22556_vm2, %v9554_v11  ;;  %v9078_v1 = vsel %vm20178_vm15, %v9071_v56, %v9076_v60  ;;  %v9087_v43 = vshrl.u32 %v8629_v59, 16  ;;  %v9092_v41 = vshll.u32 %v8643_v23, 16  ;;  %vm22569_vm8 = vmmov %vm22562_vm0 }
 0x43d   :  { %v9095_v42 = vshrl.u32 %v8643_v23, 16  ;;  %10069 = vmatmul.mubr.bf16.gmra.mrb[72].mxu0 %v9553_v46  ;;  %10172 = vmatmul.mubr.bf16.gmra.mrb[72].mxu1 %v9553_v46  ;;  %v9100_v29 = vshll.u32 %v20756_v8, 16  ;;  %v9555_v45 = vcombine.low %v9045_v39, %v9053_v28  ;;  %v9556_v9 = vcombine.low %v9062_v37, %v9070_v2  ;;  %v17424_v28 = vld [vmem:[#allocation2 + $0x4] ss:$8 sps:$4 sm:$0x77]   ;;  %vm22570_vm2 = vmmov %vm22562_vm0 }
 0x43e   :  { %v9086_v17 = vsel %vm20178_vm15, %v9079_v16, %v9084_v51  ;;  %v9094_v20 = vsel %vm20178_vm15, %v9087_v43, %v9092_v41  ;;  %v8647_v22 = vcombine.high %v8643_v23, %v8643_v23  ;;  %v8648_v12 = vcombine.low %v20638_v40, %v20642_v34 }
 0x43f   :  { %v9557_v44 = vcombine.low %v9078_v1, %v9086_v17  ;;  %v9102_v3 = vsel %vm20178_vm15, %v9095_v42, %v9100_v29  ;;  %v9565_v58 = vrot.slane %v9555_v45, %v22484_v49  ;;  %v9572_v0 = vrot.slane %v9556_v9, %v22484_v49  ;;  %v17425_v9 = vld [vmem:[#allocation2 + $0x10] ss:$8 sps:$4 sm:$0xff]  }
 0x440   :  { %v8649_v57 = vcombine.high %v20638_v40, %v20642_v34  ;;  %v9558_v48 = vcombine.low %v9094_v20, %v9102_v3  ;;  %v8656_v47 = vrot.slane %v8648_v12, %v22484_v49  ;;  %v9103_v53 = vshrl.u32 %v20756_v8, 16 }
 0x441   :  { %v9579_v18 = vrot.slane %v9557_v44, %v22484_v49  ;;  %v9588_v5 = vcombine.high %v9565_v58, %v9572_v0  ;;  %v9587_v19 = vcombine.low %v9565_v58, %v9572_v0  ;;  %v9108_v4 = vshll.u32 %v8647_v22, 16 }
 0x442   :  { %v8663_v7 = vrot.slane %v8649_v57, %v22484_v49  ;;  %v9586_v31 = vrot.slane %v9558_v48, %v22484_v49  ;;  %v8664_v35 = vcombine.high %v8656_v47, %v8656_v47  ;;  %v8672_v50 = vrot.slane %v8656_v47, %v22484_v49 }
 0x443   :  { %v7826_v13 = vrot.slane %v17422_v6, %v22484_v49  ;;  %v9604_v40 = vrot.slane %v9588_v5, %v22484_v49  ;;  %v9597_v34 = vrot.slane %v9587_v19, %v22484_v49  ;;  %v9110_v23 = vsel %vm20178_vm15, %v9103_v53, %v9108_v4 }
 0x444   :  { %v8665_v59 = vcombine.high %v8663_v7, %v8663_v7  ;;  %v8679_v21 = vrot.slane %v8663_v7, %v22484_v49  ;;  %v9590_v54 = vcombine.high %v9579_v18, %v9586_v31  ;;  %v9589_v39 = vcombine.low %v9579_v18, %v9586_v31 }
 0x445   :  { %v8686_v63 = vrot.slane %v8664_v35, %v22484_v49  ;;  %v8694_v10 = vcombine.high %v8672_v50, %v8672_v50  ;;  %v9112_v8 = vshrl.u32 %v8672_v50, 16  ;;  %v7833_v12 = vrot.slane %v17424_v28, %v22484_v49  ;;  %v17439_v50 = vld [vmem:[#allocation2 + $0x14] ss:$8 sps:$4 sm:$0x77]  }
 0x446   :  { %v8693_v61 = vrot.slane %v8665_v59, %v22484_v49  ;;  %v8695_v26 = vcombine.high %v8679_v21, %v8679_v21  ;;  %v9618_v52 = vrot.slane %v9590_v54, %v22484_v49  ;;  %v9611_v15 = vrot.slane %v9589_v39, %v22484_v49  ;;  %v17454_v28 = vld [vmem:[#allocation2 + $0x24] ss:$8 sps:$4 sm:$0x77]  }
 0x447   :  { %v8696_v30 = vcombine.high %v8686_v63, %v8686_v63  ;;  %v9117_v32 = vshll.u32 %v8686_v63, 16  ;;  %v9120_v38 = vshrl.u32 %v8686_v63, 16  ;;  %v9125_v36 = vshll.u32 %v8694_v10, 16 }
 0x448   :  { %v8697_v25 = vcombine.high %v8693_v61, %v8693_v61  ;;  %v9128_v33 = vshrl.u32 %v8694_v10, 16  ;;  %v9620_v24 = vcombine.low %v9604_v40, %v9618_v52  ;;  %v9619_v56 = vcombine.low %v9597_v34, %v9611_v15 }
 0x449   :  { %v9119_v11 = vsel %vm20178_vm15, %v9112_v8, %v9117_v32  ;;  %v9133_v46 = vshll.u32 %v8696_v30, 16  ;;  %v9127_v60 = vsel %vm20178_vm15, %v9120_v38, %v9125_v36  ;;  %v9136_v37 = vshrl.u32 %v8696_v30, 16 }
 0x44a   :  { %v9141_v2 = vshll.u32 %v8679_v21, 16  ;;  %v9144_v16 = vshrl.u32 %v8679_v21, 16  ;;  %16457 = vmatprep.mubr.msk.bf16.mxu0 %vm22557_vm10, %v9620_v24  ;;  %16464 = vmatprep.mubr.msk.bf16.mxu1 %vm22558_vm9, %v9620_v24  ;;  %v9149_v1 = vshll.u32 %v8693_v61, 16  ;;  %v9152_v43 = vshrl.u32 %v8693_v61, 16  ;;  %vm22571_vm10 = vmmov %vm22562_vm0 }
 0x44b   :  { %v9135_v51 = vsel %vm20178_vm15, %v9128_v33, %v9133_v46  ;;  %v9157_v41 = vshll.u32 %v8695_v26, 16  ;;  %10079 = vmatmul.mubr.bf16.gmra.mrb[76].mxu0 %v9619_v56  ;;  %10182 = vmatmul.mubr.bf16.gmra.mrb[76].mxu1 %v9619_v56  ;;  %v9160_v17 = vshrl.u32 %v8695_v26, 16  ;;  %v9165_v29 = vshll.u32 %v8697_v25, 16  ;;  %v17440_v46 = vld [vmem:[#allocation2 + $0x20] ss:$8 sps:$4 sm:$0xff]   ;;  %vm22572_vm9 = vmmov %vm22562_vm0 }
 0x44c   :  { %v9143_v42 = vsel %vm20178_vm15, %v9136_v37, %v9141_v2  ;;  %v9621_v45 = vcombine.low %v9110_v23, %v9119_v11  ;;  %v9151_v20 = vsel %vm20178_vm15, %v9144_v16, %v9149_v1  ;;  %v9622_v22 = vcombine.low %v9127_v60, %v9135_v51  ;;  %v17455_v51 = vld [vmem:[#allocation2 + $0x30] ss:$8 sps:$4 sm:$0xff]  }
 0x44d   :  { %v9159_v44 = vsel %vm20178_vm15, %v9152_v43, %v9157_v41  ;;  %v9167_v6 = vsel %vm20178_vm15, %v9160_v17, %v9165_v29  ;;  %v9623_v3 = vcombine.low %v9143_v42, %v9151_v20  ;;  %v7834_v0 = vcombine.high %v7826_v13, %v7826_v13  ;;  %vm22559_vm15 = vmmov %vm22551_vm1 }
 0x44e   :  { %v9631_v58 = vrot.slane %v9621_v45, %v22484_v49  ;;  %v9624_v57 = vcombine.low %v9159_v44, %v9167_v6  ;;  %v9638_v48 = vrot.slane %v9622_v22, %v22484_v49  ;;  %v7835_v18 = vcombine.high %v7833_v12, %v7833_v12  ;;  %vm22565_vm1 = vmmov %vm22562_vm0 }
 0x44f   :  { %v7842_v47 = vrot.slane %v7826_v13, %v22484_v49  ;;  %v9645_v53 = vrot.slane %v9623_v3, %v22484_v49  ;;  %v7849_v5 = vrot.slane %v7833_v12, %v22484_v49  ;;  %v7856_v19 = vrot.slane %v7834_v0, %v22484_v49  ;;  %v17470_v0 = vld [vmem:[#allocation2 + $0x40] ss:$8 sps:$4 sm:$0xff]  }
 0x450   :  { %v7875_v7 = vrot.slane %v17425_v9, %v22484_v49  ;;  %v9652_v14 = vrot.slane %v9624_v57, %v22484_v49  ;;  %v9654_v4 = vcombine.high %v9631_v58, %v9638_v48  ;;  %v9653_v31 = vcombine.low %v9631_v58, %v9638_v48  ;;  %v17469_v58 = vld [vmem:[#allocation2 + $0x34] ss:$8 sps:$4 sm:$0x77]  }
 0x451   :  { %v7863_v35 = vrot.slane %v7835_v18, %v22484_v49  ;;  %v7865_v40 = vcombine.high %v7849_v5, %v7849_v5  ;;  %v10202_v59 = vcombine.low %v7842_v47, %v7856_v19  ;;  %v16466_v13 = vcombine.high %v7842_v47, %v7856_v19 }
 0x452   :  { %v7891_v34 = vrot.slane %v7875_v7, %v22484_v49  ;;  %v9656_v21 = vcombine.high %v9645_v53, %v9652_v14  ;;  %v9670_v54 = vrot.slane %v9654_v4, %v22484_v49  ;;  %v9655_v39 = vcombine.low %v9645_v53, %v9652_v14  ;;  %v17436_v14 = vld [vmem:[#allocation3 + $0x388] ss:$16 sps:$4 sm:$0xff]  }
 0x453   :  { %v9663_v63 = vrot.slane %v9653_v31, %v22484_v49  ;;  %v10204_v10 = vcombine.low %v7849_v5, %v7863_v35  ;;  %v10212_v26 = vrot.slane %v10202_v59, %v22484_v49  ;;  %v10219_v23 = vrot.slane %v16466_v13, %v22484_v49 }
 0x454   :  { %v10205_v61 = vcombine.low %v7865_v40, %v7891_v34  ;;  %v9684_v8 = vrot.slane %v9656_v21, %v22484_v49  ;;  %v9677_v52 = vrot.slane %v9655_v39, %v22484_v49  ;;  %v7882_v15 = vrot.slane %v17439_v50, %v22484_v49  ;;  %v17444_v40 = vld [vmem:[#allocation3 + $0x3a4] ss:$16 sps:$4 sm:$0xff]  }
 0x455   :  { %v7883_v30 = vcombine.high %v7875_v7, %v7875_v7  ;;  %v10226_v32 = vrot.slane %v10204_v10, %v22484_v49  ;;  %v10234_v38 = vcombine.low %v10212_v26, %v10219_v23  ;;  %v10235_v36 = vcombine.high %v10212_v26, %v10219_v23  ;;  %v17433_v7 = vld [vmem:[#allocation3 + $0x380] ss:$16 sps:$4 sm:$0xff]  }
 0x456   :  { %v10233_v25 = vrot.slane %v10205_v61, %v22484_v49  ;;  %v9686_v33 = vcombine.low %v9670_v54, %v9684_v8  ;;  %v9685_v24 = vcombine.low %v9663_v63, %v9677_v52  ;;  %v7884_v56 = vcombine.high %v7882_v15, %v7882_v15 }
 0x457   :  { %v7898_v11 = vrot.slane %v7882_v15, %v22484_v49  ;;  %v10251_v2 = vrot.slane %v10235_v36, %v22484_v49  ;;  %v10244_v16 = vrot.slane %v10234_v38, %v22484_v49  ;;  %v7905_v1 = vrot.slane %v7883_v30, %v22484_v49  ;;  %v17442_v30 = vld [vmem:[#allocation3 + $0x3a0] ss:$16 sps:$4 sm:$0xff]   ;;  %v17450_v38 = vld [vmem:[#allocation3 + $0x3c4] ss:$16 sps:$4 sm:$0xff]   ;;  %v17453_v36 = vld [vmem:[#allocation3 + $0x3cc] ss:$16 sps:$4 sm:$0xff]  }
 0x458   :  { %v10236_v60 = vcombine.low %v10226_v32, %v10233_v25  ;;  %v10237_v37 = vcombine.high %v10226_v32, %v10233_v25  ;;  %16458 = vmatprep.mubr.msk.bf16.mxu0 %vm22559_vm15, %v9686_v33  ;;  %16465 = vmatprep.mubr.msk.bf16.mxu1 %vm22560_vm13, %v9686_v33  ;;  %v7912_v43 = vrot.slane %v7884_v56, %v22484_v49  ;;  %v17445_v32 = vld [vmem:[#allocation3 + $0x3a8] ss:$16 sps:$4 sm:$0xff]   ;;  %vm22573_vm15 = vmmov %vm22562_vm0 }
 0x459   :  { %v7913_v41 = vcombine.high %v7891_v34, %v7891_v34  ;;  %10089 = vmatmul.mubr.bf16.gmra.mrb[80].mxu0 %v9685_v24  ;;  %10192 = vmatmul.mubr.bf16.gmra.mrb[80].mxu1 %v9685_v24  ;;  %v7914_v29 = vcombine.high %v7898_v11, %v7898_v11  ;;  %v7915_v45 = vcombine.high %v7905_v1, %v7905_v1  ;;  %v17447_v34 = vld [vmem:[#allocation3 + $0x3ac] ss:$16 sps:$4 sm:$0xff]   ;;  %vm22574_vm13 = vmmov %vm22562_vm0 }
 0x45a   :  { %v10265_v42 = vrot.slane %v10237_v37, %v22484_v49  ;;  %v10258_v17 = vrot.slane %v10236_v60, %v22484_v49  ;;  %v7924_v9 = vrot.slane %v17440_v46, %v22484_v49  ;;  %v7931_v44 = vrot.slane %v17454_v28, %v22484_v49 }
 0x45b   :  { %v10268_v20 = vcombine.low %v7905_v1, %v7913_v41  ;;  %v10270_v6 = vcombine.low %v7912_v43, %v7914_v29  ;;  %v7973_v3 = vrot.slane %v17455_v51, %v22484_v49  ;;  %v10269_v18 = vcombine.low %v7915_v45, %v7898_v11 }
 0x45c   :  { %v10267_v22 = vcombine.low %v10251_v2, %v10265_v42  ;;  %v10266_v12 = vcombine.low %v10244_v16, %v10258_v17  ;;  %v7932_v57 = vcombine.high %v7924_v9, %v7924_v9  ;;  %v7940_v48 = vrot.slane %v7924_v9, %v22484_v49  ;;  %v17448_v42 = vld [vmem:[#allocation3 + $0x3c0] ss:$16 sps:$4 sm:$0xff]  }
 0x45d   :  { %v10278_v47 = vrot.slane %v10268_v20, %v22484_v49  ;;  %v10292_v53 = vrot.slane %v10270_v6, %v22484_v49  ;;  %v7933_v5 = vcombine.high %v7931_v44, %v7931_v44  ;;  %v7947_v19 = vrot.slane %v7931_v44, %v22484_v49  ;;  %v17451_v20 = vld [vmem:[#allocation3 + $0x3c8] ss:$16 sps:$4 sm:$0xff]   ;;  %v17484_v6 = vld [vmem:[#allocation2 + $0x44] ss:$8 sps:$4 sm:$0x77]  }
 0x45e   :  { %16526 = vmatprep.mubr.msk.bf16.mxu0 %vm22561_vm3, %v10267_v22  ;;  %16533 = vmatprep.mubr.msk.bf16.mxu1 %vm22562_vm0, %v10267_v22  ;;  %v7954_v4 = vrot.slane %v7932_v57, %v22484_v49  ;;  %v10285_v31 = vrot.slane %v10269_v18, %v22484_v49  ;;  %v7981_v35 = vcombine.high %v7973_v3, %v7973_v3  ;;  %v17487_v18 = vld [vmem:[#allocation2 + $0x54] ss:$8 sps:$4 sm:$0x77]   ;;  %vm22576_vm3 = vmmov %vm22562_vm0 }
 0x45f   :  { %v7989_v50 = vrot.slane %v7973_v3, %v22484_v49  ;;  %v7961_v59 = vrot.slane %v7933_v5, %v22484_v49  ;;  %v7963_v13 = vcombine.high %v7947_v19, %v7947_v19  ;;  %v7980_v21 = vrot.slane %v17469_v58, %v22484_v49 }
 0x460   :  { %v20859_v54 = vrot.slane %v17470_v0, %v22484_v49  ;;  %v10271_v39 = vcombine.low %v7940_v48, %v7954_v4  ;;  %v10301_v63 = vcombine.high %v10278_v47, %v10285_v31  ;;  %v10300_v10 = vcombine.low %v10278_v47, %v10285_v31  ;;  %v17459_v47 = vld [vmem:[#allocation3 + $0x3e4] ss:$16 sps:$4 sm:$0xff]  }
 0x461   :  { %v8003_v61 = vrot.slane %v7981_v35, %v22484_v49  ;;  %11005 = vmatmul.mubr.bf16.vlgmr.msra.gmra.mrb[56].mxu0 %v10266_v12  ;;  %11108 = vmatmul.mubr.bf16.vlgmr.msra.gmra.mrb[56].mxu1 %v10266_v12  ;;  %v8011_v26 = vcombine.high %v7989_v50, %v7989_v50  ;;  %v16467_v23 = vcombine.high %v7940_v48, %v7954_v4  ;;  %v17485_v48 = vld [vmem:[#allocation2 + $0x50] ss:$8 sps:$4 sm:$0xff]  }
 0x462   :  { %v10335_v8 = vcombine.low %v7947_v19, %v7961_v59  ;;  %12438 = vmatpush1.bf16.msra.mxu0 %v17433_v7  ;;  %12541 = vmatpush1.bf16.msra.mxu1 %v17436_v14  ;;  %v10299_v52 = vrot.slane %v10271_v39, %v22484_v49  ;;  %v10317_v15 = vrot.slane %v10301_v63, %v22484_v49  ;;  %v17457_v35 = vld [vmem:[#allocation3 + $0x3e0] ss:$16 sps:$4 sm:$0xff]  }
 0x463   :  { %v10310_v25 = vrot.slane %v10300_v10, %v22484_v49  ;;  %12439 = vmatprep.subr.bf16.mxu0 %v17444_v40  ;;  %12542 = vmatprep.subr.bf16.mxu1 %v17447_v34  ;;  %v10336_v33 = vcombine.low %v7963_v13, %v7989_v50  ;;  %v10337_v24 = vcombine.low %v8003_v61, %v8011_v26  ;;  %v17460_v50 = vld [vmem:[#allocation3 + $0x3e8] ss:$16 sps:$4 sm:$0xff]   ;;  %v17465_v13 = vld [vmem:[#allocation3 + $0x404] ss:$16 sps:$4 sm:$0xff]  }
 0x464   :  { %v10344_v56 = vrot.slane %v16467_v23, %v22484_v49  ;;  %v10303_v11 = vcombine.high %v10292_v53, %v10299_v52  ;;  %v10302_v46 = vcombine.low %v10292_v53, %v10299_v52  ;;  %v10351_v28 = vrot.slane %v10335_v8, %v22484_v49  ;;  %v17462_v53 = vld [vmem:[#allocation3 + $0x3ec] ss:$16 sps:$4 sm:$0xff]  }
 0x465   :  { %v7982_v60 = vcombine.high %v7980_v21, %v7980_v21  ;;  %v10358_v37 = vrot.slane %v10336_v33, %v22484_v49  ;;  %v10365_v2 = vrot.slane %v10337_v24, %v22484_v49  ;;  %v7996_v16 = vrot.slane %v7980_v21, %v22484_v49  ;;  %v17468_v21 = vld [vmem:[#allocation3 + $0x40c] ss:$16 sps:$4 sm:$0xff]   ;;  %v17474_v24 = vld [vmem:[#allocation3 + $0x424] ss:$16 sps:$4 sm:$0xff]  }
 0x466   :  { %v8013_v51 = vcombine.high %v8003_v61, %v8003_v61  ;;  %v10331_v1 = vrot.slane %v10303_v11, %v22484_v49  ;;  %12440 = vmatpush1.bf16.msra.mxu0 %v17442_v30  ;;  %12543 = vmatpush1.bf16.msra.mxu1 %v17445_v32  ;;  %v10324_v43 = vrot.slane %v10302_v46, %v22484_v49  ;;  %v17463_v30 = vld [vmem:[#allocation3 + $0x400] ss:$16 sps:$4 sm:$0xff]   ;;  %v17466_v32 = vld [vmem:[#allocation3 + $0x408] ss:$16 sps:$4 sm:$0xff]  }
 0x467   :  { %v10367_v41 = vcombine.high %v10344_v56, %v10351_v28  ;;  %12441 = vmatprep.subr.bf16.mxu0 %v17450_v38  ;;  %12544 = vmatprep.subr.bf16.mxu1 %v17453_v36  ;;  %v10369_v17 = vcombine.high %v10358_v37, %v10365_v2  ;;  %v10366_v29 = vcombine.low %v10344_v56, %v10351_v28  ;;  %v17477_v56 = vld [vmem:[#allocation3 + $0x42c] ss:$16 sps:$4 sm:$0xff]  }
 0x468   :  { %v10368_v45 = vcombine.low %v10358_v37, %v10365_v2  ;;  %v10333_v9 = vcombine.low %v10317_v15, %v10331_v1  ;;  %v10332_v44 = vcombine.low %v10310_v25, %v10324_v43  ;;  %v8010_v12 = vrot.slane %v7982_v60, %v22484_v49  ;;  %v17500_v43 = vld [vmem:[#allocation2 + $0x60] ss:$8 sps:$4 sm:$0xff]  }
 0x469   :  { %v10383_v22 = vrot.slane %v10367_v41, %v22484_v49  ;;  %v10397_v3 = vrot.slane %v10369_v17, %v22484_v49  ;;  %v10376_v58 = vrot.slane %v10366_v29, %v22484_v49  ;;  %v8012_v57 = vcombine.high %v7996_v16, %v7996_v16  ;;  %v17502_v29 = vld [vmem:[#allocation2 + $0x64] ss:$8 sps:$4 sm:$0x77]  }
 0x46a   :  { %v10390_v0 = vrot.slane %v10368_v45, %v22484_v49  ;;  %16527 = vmatprep.mubr.msk.bf16.mxu0 %vm22563_vm14, %v10333_v9  ;;  %16534 = vmatprep.mubr.msk.bf16.mxu1 %vm22564_vm4, %v10333_v9  ;;  %v8030_v5 = vcombine.high %v20859_v54, %v20859_v54  ;;  %v8038_v19 = vrot.slane %v20859_v54, %v22484_v49  ;;  %v17515_v45 = vld [vmem:[#allocation2 + $0x70] ss:$8 sps:$4 sm:$0xff]   ;;  %vm22577_vm14 = vmmov %vm22562_vm0 }
 0x46b   :  { %v10400_v7 = vcombine.low %v8013_v51, %v7996_v16  ;;  %11015 = vmatmul.mubr.bf16.gmra.mrb[60].mxu0 %v10332_v44  ;;  %11118 = vmatmul.mubr.bf16.gmra.mrb[60].mxu1 %v10332_v44  ;;  %v10399_v14 = vcombine.low %v10383_v22, %v10397_v3  ;;  %v10401_v31 = vcombine.low %v8010_v12, %v8012_v57  ;;  %v17472_v9 = vld [vmem:[#allocation3 + $0x420] ss:$16 sps:$4 sm:$0xff]   ;;  %v17480_v3 = vld [vmem:[#allocation3 + $0x444] ss:$16 sps:$4 sm:$0xff]   ;;  %vm22578_vm4 = vmmov %vm22562_vm0 }
 0x46c   :  { %v10398_v4 = vcombine.low %v10376_v58, %v10390_v0  ;;  %12442 = vmatpush1.bf16.msra.mxu0 %v17448_v42  ;;  %12545 = vmatpush1.bf16.msra.mxu1 %v17451_v20  ;;  %v8052_v40 = vrot.slane %v8030_v5, %v22484_v49  ;;  %v8029_v59 = vrot.slane %v17484_v6, %v22484_v49  ;;  %v17475_v20 = vld [vmem:[#allocation3 + $0x428] ss:$16 sps:$4 sm:$0xff]   ;;  %v17483_v58 = vld [vmem:[#allocation3 + $0x44c] ss:$16 sps:$4 sm:$0xff]  }
 0x46d   :  { %v10410_v34 = vrot.slane %v10400_v7, %v22484_v49  ;;  %16528 = vmatprep.mubr.msk.bf16.mxu0 %vm22565_vm1, %v10399_v14  ;;  %16535 = vmatprep.mubr.msk.bf16.mxu1 %vm22566_vm5, %v10399_v14  ;;  %v10417_v54 = vrot.slane %v10401_v31, %v22484_v49  ;;  %v8071_v39 = vrot.slane %v17485_v48, %v22484_v49  ;;  %v17481_v31 = vld [vmem:[#allocation3 + $0x448] ss:$16 sps:$4 sm:$0xff]   ;;  %vm22579_vm1 = vmmov %vm22562_vm0 }
 0x46e   :  { %v8078_v63 = vrot.slane %v17487_v18, %v22484_v49  ;;  %12443 = vmatprep.subr.bf16.mxu0 %v17459_v47  ;;  %12546 = vmatprep.subr.bf16.mxu1 %v17462_v53  ;;  %v10402_v10 = vcombine.low %v8038_v19, %v8052_v40  ;;  %v16468_v61 = vcombine.high %v8038_v19, %v8052_v40  ;;  %vm22580_vm5 = vmmov %vm22562_vm0 }
 0x46f   :  { %v8031_v26 = vcombine.high %v8029_v59, %v8029_v59  ;;  %v10433_v23 = vcombine.high %v10410_v34, %v10417_v54  ;;  %v10432_v8 = vcombine.low %v10410_v34, %v10417_v54  ;;  %v8045_v52 = vrot.slane %v8029_v59, %v22484_v49  ;;  %v17490_v34 = vld [vmem:[#allocation3 + $0x464] ss:$16 sps:$4 sm:$0xff]   ;;  %v17493_v59 = vld [vmem:[#allocation3 + $0x46c] ss:$16 sps:$4 sm:$0xff]  }
 0x470   :  { %v8079_v15 = vcombine.high %v8071_v39, %v8071_v39  ;;  %12444 = vmatpush1.bf16.msra.mxu0 %v17457_v35  ;;  %12547 = vmatpush1.bf16.msra.mxu1 %v17460_v50  ;;  %v10424_v25 = vrot.slane %v10402_v10, %v22484_v49  ;;  %v10431_v38 = vrot.slane %v16468_v61, %v22484_v49 }
 0x471   :  { %v8059_v36 = vrot.slane %v8031_v26, %v22484_v49  ;;  %12445 = vmatprep.subr.bf16.mxu0 %v17465_v13  ;;  %12548 = vmatprep.subr.bf16.mxu1 %v17468_v21  ;;  %v10449_v33 = vrot.slane %v10433_v23, %v22484_v49  ;;  %v10442_v11 = vrot.slane %v10432_v8, %v22484_v49 }
 0x472   :  { %v8061_v46 = vcombine.high %v8045_v52, %v8045_v52  ;;  %v10435_v28 = vcombine.high %v10424_v25, %v10431_v38  ;;  %v10434_v60 = vcombine.low %v10424_v25, %v10431_v38  ;;  %v8087_v37 = vrot.slane %v8071_v39, %v22484_v49  ;;  %v17530_v25 = vld [vmem:[#allocation2] ss:$8 sps:$4 sm:$0xee]  }
 0x473   :  { %v20899_v2 = vrot.slane %v8078_v63, %v22484_v49  ;;  %11025 = vmatmul.mubr.bf16.gmra.mrb[64].mxu0 %v10398_v4  ;;  %11128 = vmatmul.mubr.bf16.gmra.mrb[64].mxu1 %v10398_v4  ;;  %v8101_v16 = vrot.slane %v8079_v15, %v22484_v49  ;;  %v10466_v51 = vcombine.low %v8045_v52, %v8059_v36  ;;  %v17478_v4 = vld [vmem:[#allocation3 + $0x440] ss:$16 sps:$4 sm:$0xff]   ;;  %v17517_v52 = vld [vmem:[#allocation2 + $0x74] ss:$8 sps:$4 sm:$0x77]  }
 0x474   :  { %v8080_v1 = vcombine.high %v8078_v63, %v8078_v63  ;;  %12446 = vmatpush1.bf16.msra.mxu0 %v17463_v30  ;;  %12549 = vmatpush1.bf16.msra.mxu1 %v17466_v32  ;;  %v10463_v41 = vrot.slane %v10435_v28, %v22484_v49  ;;  %v10456_v42 = vrot.slane %v10434_v60, %v22484_v49  ;;  %v17488_v38 = vld [vmem:[#allocation3 + $0x460] ss:$16 sps:$4 sm:$0xff]   ;;  %v17491_v36 = vld [vmem:[#allocation3 + $0x468] ss:$16 sps:$4 sm:$0xff]   ;;  %v17499_v28 = vld [vmem:[#allocation3 + $0x48c] ss:$16 sps:$4 sm:$0xff]  }
 0x475   :  { %v8109_v17 = vcombine.high %v8087_v37, %v8087_v37  ;;  %12447 = vmatprep.subr.bf16.mxu0 %v17474_v24  ;;  %12550 = vmatprep.subr.bf16.mxu1 %v17477_v56  ;;  %v8111_v44 = vcombine.high %v8101_v16, %v8101_v16  ;;  %v10467_v22 = vcombine.low %v8061_v46, %v8087_v37  ;;  %v17496_v46 = vld [vmem:[#allocation3 + $0x484] ss:$16 sps:$4 sm:$0xff]  }
 0x476   :  { %v10476_v12 = vrot.slane %v10466_v51, %v22484_v49  ;;  %v10465_v6 = vcombine.low %v10449_v33, %v10463_v41  ;;  %v10464_v0 = vcombine.low %v10442_v11, %v10456_v42  ;;  %v8108_v48 = vrot.slane %v8080_v1, %v22484_v49 }
 0x477   :  { %v10468_v57 = vcombine.low %v8101_v16, %v8109_v17  ;;  %v10469_v18 = vcombine.low %v8111_v44, %v20899_v2  ;;  %v10483_v47 = vrot.slane %v10467_v22, %v22484_v49  ;;  %v8110_v53 = vcombine.high %v20899_v2, %v20899_v2  ;;  %v17505_v22 = vld [vmem:[#allocation3 + $0x4a4] ss:$16 sps:$4 sm:$0xff]  }
 0x478   :  { %v8120_v5 = vrot.slane %v17500_v43, %v22484_v49  ;;  %16529 = vmatprep.mubr.msk.bf16.mxu0 %vm22567_vm6, %v10465_v6  ;;  %16536 = vmatprep.mubr.msk.bf16.mxu1 %vm22568_vm7, %v10465_v6  ;;  %v8127_v7 = vrot.slane %v17502_v29, %v22484_v49  ;;  %v20916_v14 = vrot.slane %v17515_v45, %v22484_v49  ;;  %v17494_v29 = vld [vmem:[#allocation3 + $0x480] ss:$16 sps:$4 sm:$0xff]   ;;  %v17497_v45 = vld [vmem:[#allocation3 + $0x488] ss:$16 sps:$4 sm:$0xff]   ;;  %vm22581_vm6 = vmmov %vm22562_vm0 }
 0x479   :  { %v10490_v19 = vrot.slane %v10468_v57, %v22484_v49  ;;  %12448 = vmatpush1.bf16.msra.mxu0 %v17472_v9  ;;  %12551 = vmatpush1.bf16.msra.mxu1 %v17475_v20  ;;  %v10497_v35 = vrot.slane %v10469_v18, %v22484_v49  ;;  %v10499_v50 = vcombine.high %v10476_v12, %v10483_v47  ;;  %v17532_v18 = vld [vmem:[#allocation2 + $0x4] ss:$8 sps:$4 sm:$0xff]   ;;  %vm22582_vm7 = vmmov %vm22562_vm0 }
 0x47a   :  { %v10498_v40 = vcombine.low %v10476_v12, %v10483_v47  ;;  %12449 = vmatprep.subr.bf16.mxu0 %v17480_v3  ;;  %12552 = vmatprep.subr.bf16.mxu1 %v17483_v58  ;;  %v8128_v13 = vcombine.high %v8120_v5, %v8120_v5  ;;  %v8129_v21 = vcombine.high %v8127_v7, %v8127_v7  ;;  %v17508_v12 = vld [vmem:[#allocation3 + $0x4ac] ss:$16 sps:$4 sm:$0xff]  }
 0x47b   :  { %v8136_v54 = vrot.slane %v8120_v5, %v22484_v49  ;;  %11035 = vmatmul.mubr.bf16.gmra.mrb[68].mxu0 %v10464_v0  ;;  %11138 = vmatmul.mubr.bf16.gmra.mrb[68].mxu1 %v10464_v0  ;;  %v10501_v39 = vcombine.high %v10490_v19, %v10497_v35  ;;  %v10515_v63 = vrot.slane %v10499_v50, %v22484_v49  ;;  %v17511_v50 = vld [vmem:[#allocation3 + $0x4c4] ss:$16 sps:$4 sm:$0xff]  }
 0x47c   :  { %v10500_v10 = vcombine.low %v10490_v19, %v10497_v35  ;;  %v10508_v61 = vrot.slane %v10498_v40, %v22484_v49  ;;  %v20923_v26 = vrot.slane %v8127_v7, %v22484_v49  ;;  %v8150_v23 = vrot.slane %v8128_v13, %v22484_v49  ;;  %v17514_v40 = vld [vmem:[#allocation3 + $0x4cc] ss:$16 sps:$4 sm:$0xff]  }
 0x47d   :  { %v8157_v8 = vrot.slane %v8129_v21, %v22484_v49  ;;  %12450 = vmatpush1.bf16.msra.mxu0 %v17478_v4  ;;  %12553 = vmatpush1.bf16.msra.mxu1 %v17481_v31  ;;  %v10529_v15 = vrot.slane %v10501_v39, %v22484_v49  ;;  %v10532_v32 = vcombine.low %v8108_v48, %v8110_v53  ;;  %v17506_v4 = vld [vmem:[#allocation3 + $0x4a8] ss:$16 sps:$4 sm:$0xff]  }
 0x47e   :  { %v10522_v30 = vrot.slane %v10500_v10, %v22484_v49  ;;  %12451 = vmatprep.subr.bf16.mxu0 %v17490_v34  ;;  %12554 = vmatprep.subr.bf16.mxu1 %v17493_v59  ;;  %v10533_v33 = vcombine.low %v8136_v54, %v8150_v23  ;;  %v16469_v24 = vcombine.high %v8136_v54, %v8150_v23  ;;  %v17509_v23 = vld [vmem:[#allocation3 + $0x4c0] ss:$16 sps:$4 sm:$0xff]  }
 0x47f   :  { %v10535_v56 = vcombine.low %v20923_v26, %v8157_v8  ;;  %v10531_v11 = vcombine.low %v10515_v63, %v10529_v15  ;;  %v10542_v37 = vrot.slane %v10532_v32, %v22484_v49  ;;  %v8159_v2 = vcombine.high %v20923_v26, %v20923_v26  ;;  %v17512_v8 = vld [vmem:[#allocation3 + $0x4c8] ss:$16 sps:$4 sm:$0xff]   ;;  %v17520_v15 = vld [vmem:[#allocation3 + $0x4e4] ss:$16 sps:$4 sm:$0xff]  }
 0x480   :  { %v10530_v60 = vcombine.low %v10508_v61, %v10522_v30  ;;  %v10549_v16 = vrot.slane %v10533_v33, %v22484_v49  ;;  %v10556_v51 = vrot.slane %v16469_v24, %v22484_v49  ;;  %v8176_v43 = vrot.slane %v17517_v52, %v22484_v49  ;;  %v17533_v24 = vld [vmem:[#allocation2 + $0x10] ss:$8 sps:$4 sm:$0xee]  }
 0x481   :  { %v10563_v1 = vrot.slane %v10535_v56, %v22484_v49  ;;  %16530 = vmatprep.mubr.msk.bf16.mxu0 %vm22569_vm8, %v10531_v11  ;;  %16537 = vmatprep.mubr.msk.bf16.mxu1 %vm22570_vm2, %v10531_v11  ;;  %v8177_v41 = vcombine.high %v20916_v14, %v20916_v14  ;;  %v8185_v42 = vrot.slane %v20916_v14, %v22484_v49  ;;  %v17503_v14 = vld [vmem:[#allocation3 + $0x4a0] ss:$16 sps:$4 sm:$0xff]   ;;  %vm22583_vm8 = vmmov %vm22562_vm0 }
 0x482   :  { %v20944_v17 = vrot.slane %v17530_v25, %v22484_v49  ;;  %12452 = vmatpush1.bf16.msra.mxu0 %v17488_v38  ;;  %12555 = vmatpush1.bf16.msra.mxu1 %v17491_v36  ;;  %v10565_v9 = vcombine.high %v10542_v37, %v10549_v16  ;;  %v10564_v44 = vcombine.low %v10542_v37, %v10549_v16  ;;  %v17523_v36 = vld [vmem:[#allocation3 + $0x4ec] ss:$16 sps:$4 sm:$0xff]   ;;  %v17518_v16 = vld [vmem:[#allocation3 + $0x4e0] ss:$16 sps:$4 sm:$0xff]   ;;  %vm22584_vm2 = vmmov %vm22562_vm0 }
 0x483   :  { %v10567_v20 = vcombine.high %v10556_v51, %v10563_v1  ;;  %12453 = vmatprep.subr.bf16.mxu0 %v17496_v46  ;;  %12556 = vmatprep.subr.bf16.mxu1 %v17499_v28  ;;  %v10566_v6 = vcombine.low %v10556_v51, %v10563_v1  ;;  %v8178_v3 = vcombine.high %v8176_v43, %v8176_v43  ;;  %v17541_v28 = vld [vmem:[#allocation2 + $0x14] ss:$8 sps:$4 sm:$0xff]   ;;  %v17521_v51 = vld [vmem:[#allocation3 + $0x4e8] ss:$16 sps:$4 sm:$0xff]  }
 0x484   :  { %v8192_v58 = vrot.slane %v8176_v43, %v22484_v49  ;;  %11045 = vmatmul.mubr.bf16.gmra.mrb[72].mxu0 %v10530_v60  ;;  %11148 = vmatmul.mubr.bf16.gmra.mrb[72].mxu1 %v10530_v60  ;;  %v10581_v0 = vrot.slane %v10565_v9, %v22484_v49  ;;  %v10574_v48 = vrot.slane %v10564_v44, %v22484_v49  ;;  %v17529_v9 = vld [vmem:[#allocation3 + $0x50c] ss:$16 sps:$4 sm:$0xff]  }
 0x485   :  { %v10595_v57 = vrot.slane %v10567_v20, %v22484_v49  ;;  %v10588_v47 = vrot.slane %v10566_v6, %v22484_v49  ;;  %v8199_v53 = vrot.slane %v8177_v41, %v22484_v49  ;;  %v8206_v5 = vrot.slane %v8178_v3, %v22484_v49  ;;  %v17542_v6 = vld [vmem:[#allocation2 + $0x20] ss:$8 sps:$4 sm:$0xee]  }
 0x486   :  { %v8207_v19 = vcombine.high %v8185_v42, %v8185_v42  ;;  %12454 = vmatpush1.bf16.msra.mxu0 %v17494_v29  ;;  %12557 = vmatpush1.bf16.msra.mxu1 %v17497_v45  ;;  %v8208_v31 = vcombine.high %v8192_v58, %v8192_v58  ;;  %v10598_v35 = vcombine.low %v8159_v2, %v8185_v42 }
 0x487   :  { %v10597_v7 = vcombine.low %v10581_v0, %v10595_v57  ;;  %12455 = vmatprep.subr.bf16.mxu0 %v17505_v22  ;;  %12558 = vmatprep.subr.bf16.mxu1 %v17508_v12  ;;  %v10596_v34 = vcombine.low %v10574_v48, %v10588_v47  ;;  %v8209_v59 = vcombine.high %v8199_v53, %v8199_v53  ;;  %v17524_v48 = vld [vmem:[#allocation3 + $0x500] ss:$16 sps:$4 sm:$0xff]  }
 0x488   :  { %v10599_v13 = vcombine.low %v8199_v53, %v8207_v19  ;;  %v10601_v21 = vcombine.low %v8206_v5, %v8208_v31  ;;  %v10608_v54 = vrot.slane %v10598_v35, %v22484_v49  ;;  %v11225_v39 = vrot.slane %v17532_v18, %v22484_v49  ;;  %v17527_v18 = vld [vmem:[#allocation3 + $0x508] ss:$16 sps:$4 sm:$0xff]  }
 0x489   :  { %16531 = vmatprep.mubr.msk.bf16.mxu0 %vm22571_vm10, %v10597_v7  ;;  %16538 = vmatprep.mubr.msk.bf16.mxu1 %vm22572_vm9, %v10597_v7  ;;  %v10600_v63 = vcombine.low %v8209_v59, %v8192_v58  ;;  %v11226_v61 = vcombine.high %v20944_v17, %v20944_v17  ;;  %v11234_v26 = vrot.slane %v20944_v17, %v22484_v49  ;;  %v17526_v17 = vld [vmem:[#allocation3 + $0x504] ss:$16 sps:$4 sm:$0xff]   ;;  %vm22585_vm10 = vmmov %vm22562_vm0 }
 0x48a   :  { %v10615_v10 = vrot.slane %v10599_v13, %v22484_v49  ;;  %12456 = vmatpush1.bf16.msra.mxu0 %v17503_v14  ;;  %12559 = vmatpush1.bf16.msra.mxu1 %v17506_v4  ;;  %v10629_v52 = vrot.slane %v10601_v21, %v22484_v49  ;;  %v11227_v30 = vcombine.high %v11225_v39, %v11225_v39  ;;  %v17537_v14 = vld [vmem:[#allocation3 + $0x524] ss:$16 sps:$4 sm:$0xff]   ;;  %v17540_v4 = vld [vmem:[#allocation3 + $0x52c] ss:$16 sps:$4 sm:$0xff]   ;;  %vm22586_vm9 = vmmov %vm22562_vm0 }
 0x48b   :  { %v11241_v32 = vrot.slane %v11225_v39, %v22484_v49  ;;  %12457 = vmatprep.subr.bf16.mxu0 %v17511_v50  ;;  %12560 = vmatprep.subr.bf16.mxu1 %v17514_v40  ;;  %v10622_v25 = vrot.slane %v10600_v63, %v22484_v49  ;;  %v11248_v56 = vrot.slane %v11226_v61, %v22484_v49  ;;  %v17535_v63 = vld [vmem:[#allocation3 + $0x520] ss:$16 sps:$4 sm:$0xff]  }
 0x48c   :  { %v10631_v38 = vcombine.high %v10608_v54, %v10615_v10  ;;  %v10630_v33 = vcombine.low %v10608_v54, %v10615_v10  ;;  %11055 = vmatmul.mubr.bf16.gmra.mrb[76].mxu0 %v10596_v34  ;;  %11158 = vmatmul.mubr.bf16.gmra.mrb[76].mxu1 %v10596_v34  ;;  %v11255_v11 = vrot.slane %v11227_v30, %v22484_v49  ;;  %v17544_v34 = vld [vmem:[#allocation2 + $0x24] ss:$8 sps:$4 sm:$0xff]   ;;  %v17538_v10 = vld [vmem:[#allocation3 + $0x528] ss:$16 sps:$4 sm:$0xff]  }
 0x48d   :  { %v11256_v46 = vcombine.high %v11234_v26, %v11234_v26  ;;  %v10633_v60 = vcombine.high %v10622_v25, %v10629_v52  ;;  %v10632_v2 = vcombine.low %v10622_v25, %v10629_v52  ;;  %v11257_v43 = vcombine.high %v11241_v32, %v11241_v32 }
 0x48e   :  { %v10647_v37 = vrot.slane %v10631_v38, %v22484_v49  ;;  %12458 = vmatpush1.bf16.msra.mxu0 %v17509_v23  ;;  %12561 = vmatpush1.bf16.msra.mxu1 %v17512_v8  ;;  %v10640_v1 = vrot.slane %v10630_v33, %v22484_v49  ;;  %v11258_v41 = vcombine.high %v11248_v56, %v11248_v56 }
 0x48f   :  { %v10661_v42 = vrot.slane %v10633_v60, %v22484_v49  ;;  %12459 = vmatprep.subr.bf16.mxu0 %v17520_v15  ;;  %12562 = vmatprep.subr.bf16.mxu1 %v17523_v36  ;;  %v10654_v29 = vrot.slane %v10632_v2, %v22484_v49  ;;  %v11268_v45 = vrot.slane %v17533_v24, %v22484_v49 }
 0x490   :  { %v11667_v20 = vcombine.low %v11248_v56, %v11256_v46  ;;  %v11668_v44 = vcombine.low %v11258_v41, %v11241_v32  ;;  %v11669_v22 = vcombine.low %v11255_v11, %v11257_v43  ;;  %v11275_v12 = vrot.slane %v17541_v28, %v22484_v49  ;;  %v17545_v46 = vld [vmem:[#allocation2 + $0x30] ss:$8 sps:$4 sm:$0xee]  }
 0x491   :  { %v10663_v3 = vcombine.low %v10647_v37, %v10661_v42  ;;  %v10662_v58 = vcombine.low %v10640_v1, %v10654_v29  ;;  %v11259_v0 = vcombine.high %v11255_v11, %v11255_v11  ;;  %v11276_v57 = vcombine.high %v11268_v45, %v11268_v45 }
 0x492   :  { %12460 = vmatpush1.bf16.msra.mxu0 %v17518_v16  ;;  %12563 = vmatpush1.bf16.msra.mxu1 %v17521_v51  ;;  %v11677_v47 = vrot.slane %v11667_v20, %v22484_v49  ;;  %v11684_v53 = vrot.slane %v11668_v44, %v22484_v49  ;;  %v11284_v5 = vrot.slane %v11268_v45, %v22484_v49  ;;  %v22575_v16 = vmov 0  }
 0x493   :  { %16532 = vmatprep.mubr.msk.bf16.mxu0 %vm22573_vm15, %v10663_v3  ;;  %16539 = vmatprep.mubr.msk.bf16.mxu1 %vm22574_vm13, %v10663_v3  ;;  %v11298_v19 = vrot.slane %v11276_v57, %v22484_v49  ;;  %v11691_v7 = vrot.slane %v11669_v22, %v22484_v49  ;;  %v11277_v31 = vcombine.high %v11275_v12, %v11275_v12  ;;  %v17550_v3 = vld [vmem:[#allocation2 + $0x44] ss:$8 sps:$4 sm:$0xff]   ;;  %vm22587_vm15 = vmmov %vm22562_vm0 }
 0x494   :  { %12461 = vmatprep.subr.bf16.mxu0 %v17526_v17  ;;  %12564 = vmatprep.subr.bf16.mxu1 %v17529_v9  ;;  %v11700_v35 = vcombine.high %v11677_v47, %v11684_v53  ;;  %v11291_v50 = vrot.slane %v11275_v12, %v22484_v49  ;;  %v11318_v40 = vrot.slane %v17542_v6, %v22484_v49  ;;  %v17547_v9 = vld [vmem:[#allocation2 + $0x34] ss:$8 sps:$4 sm:$0xff]   ;;  %v17548_v6 = vld [vmem:[#allocation2 + $0x40] ss:$8 sps:$4 sm:$0xee]   ;;  %vm22588_vm13 = vmmov %vm22562_vm0 }
 0x495   :  { %11065 = vmatmul.mubr.bf16.gmra.mrb[80].mxu0 %v10662_v58  ;;  %11168 = vmatmul.mubr.bf16.gmra.mrb[80].mxu1 %v10662_v58  ;;  %v11670_v59 = vcombine.low %v11259_v0, %v11298_v19  ;;  %v11305_v13 = vrot.slane %v11277_v31, %v22484_v49  ;;  %v16540_v21 = vcombine.high %v11284_v5, %v11298_v19 }
 0x496   :  { %12462 = vmatpush1.bf16.msra.mxu0 %v17524_v48  ;;  %12565 = vmatpush1.bf16.msra.mxu1 %v17527_v18  ;;  %v11699_v54 = vcombine.low %v11677_v47, %v11684_v53  ;;  %v11716_v39 = vrot.slane %v11700_v35, %v22484_v49  ;;  %v11326_v61 = vcombine.high %v11318_v40, %v11318_v40  ;;  %v17551_v48 = vld [vmem:[#allocation2 + $0x50] ss:$8 sps:$4 sm:$0xee]  }
 0x497   :  { %v11698_v26 = vrot.slane %v11670_v59, %v22484_v49  ;;  %12463 = vmatprep.subr.bf16.mxu0 %v17537_v14  ;;  %12566 = vmatprep.subr.bf16.mxu1 %v17540_v4  ;;  %v11334_v23 = vrot.slane %v11318_v40, %v22484_v49  ;;  %v11734_v8 = vcombine.low %v11291_v50, %v11305_v13 }
 0x498   :  { %v11348_v52 = vrot.slane %v11326_v61, %v22484_v49  ;;  %v16541_v15 = vcombine.high %v11291_v50, %v11305_v13  ;;  %v11743_v30 = vrot.slane %v16540_v21, %v22484_v49  ;;  %v11325_v32 = vrot.slane %v17544_v34, %v22484_v49  ;;  %v17553_v13 = vld [vmem:[#allocation2 + $0x54] ss:$8 sps:$4 sm:$0xff]  }
 0x499   :  { %v11701_v25 = vcombine.low %v11691_v7, %v11698_v26  ;;  %v11702_v38 = vcombine.high %v11691_v7, %v11698_v26  ;;  %v11356_v36 = vcombine.high %v11334_v23, %v11334_v23  ;;  %v11750_v33 = vrot.slane %v11734_v8, %v22484_v49 }
 0x49a   :  { %12464 = vmatpush1.bf16.msra.mxu0 %v17535_v63  ;;  %12567 = vmatpush1.bf16.msra.mxu1 %v17538_v10  ;;  %v11709_v24 = vrot.slane %v11699_v54, %v22484_v49  ;;  %v11327_v56 = vcombine.high %v11325_v32, %v11325_v32  ;;  %v11341_v11 = vrot.slane %v11325_v32, %v22484_v49 }
 0x49b   :  { %v11730_v28 = vrot.slane %v11702_v38, %v22484_v49  ;;  %v11723_v60 = vrot.slane %v11701_v25, %v22484_v49  ;;  %v11736_v37 = vcombine.low %v11348_v52, %v11356_v36  ;;  %v11766_v2 = vcombine.high %v11743_v30, %v11750_v33  ;;  %14434 = vmatprep.subr.bf16.mxu0 %v22575_v16 }
 0x49c   :  { %v11765_v51 = vcombine.low %v11743_v30, %v11750_v33  ;;  %v11355_v1 = vrot.slane %v11327_v56, %v22484_v49  ;;  %v11357_v43 = vcombine.high %v11341_v11, %v11341_v11  ;;  %v11358_v41 = vcombine.high %v11348_v52, %v11348_v52  ;;  %14624 = vmatprep.subr.bf16.mxu1 %v22575_v16 }
 0x49d   :  { %v11732_v42 = vcombine.low %v11716_v39, %v11730_v28  ;;  %v11731_v17 = vcombine.low %v11709_v24, %v11723_v60  ;;  %v11757_v29 = vrot.slane %v16541_v15, %v22484_v49  ;;  %v11764_v45 = vrot.slane %v11736_v37, %v22484_v49 }
 0x49e   :  { %v11782_v20 = vrot.slane %v11766_v2, %v22484_v49  ;;  %v11775_v44 = vrot.slane %v11765_v51, %v22484_v49  ;;  %v11368_v22 = vrot.slane %v17545_v46, %v22484_v49  ;;  %v11799_v12 = vcombine.low %v11358_v41, %v11341_v11 }
 0x49f   :  { %16604 = vmatprep.mubr.msk.bf16.mxu0 %vm22576_vm3, %v11732_v42  ;;  %16611 = vmatprep.mubr.msk.bf16.mxu1 %vm22562_vm0, %v11732_v42  ;;  %v11768_v58 = vcombine.high %v11757_v29, %v11764_v45  ;;  %v11767_v0 = vcombine.low %v11757_v29, %v11764_v45  ;;  %v11800_v57 = vcombine.low %v11355_v1, %v11357_v43  ;;  %vm22599_vm3 = vcmask 1041409  }
 0x4a0   :  { %12470 = vmatmul.mubr.bf16.vlgmr.msra.gmra.mrb[56].mxu0 %v11731_v17  ;;  %12573 = vmatmul.mubr.bf16.vlgmr.msra.gmra.mrb[56].mxu1 %v11731_v17  ;;  %v11359_v18 = vcombine.high %v11355_v1, %v11355_v1  ;;  %v11376_v47 = vcombine.high %v11368_v22, %v11368_v22  ;;  %v11809_v53 = vrot.slane %v11799_v12, %v22484_v49  ;;  %vm22622_vm0 = vmmov %vm22599_vm3 }
 0x4a1   :  { %v11796_v5 = vrot.slane %v11768_v58, %v22484_v49  ;;  %v11789_v19 = vrot.slane %v11767_v0, %v22484_v49  ;;  %v11816_v7 = vrot.slane %v11800_v57, %v22484_v49  ;;  %v11375_v14 = vrot.slane %v17547_v9, %v22484_v49 }
 0x4a2   :  { %v11384_v4 = vrot.slane %v11368_v22, %v22484_v49  ;;  %v11398_v31 = vrot.slane %v11376_v47, %v22484_v49  ;;  %v11418_v35 = vrot.slane %v17548_v6, %v22484_v49  ;;  %v11425_v50 = vrot.slane %v17550_v3, %v22484_v49  ;;  %v17554_v3 = vld [vmem:[#allocation2 + $0x60] ss:$8 sps:$4 sm:$0xee]  }
 0x4a3   :  { %v11798_v40 = vcombine.low %v11782_v20, %v11796_v5  ;;  %v11797_v34 = vcombine.low %v11775_v44, %v11789_v19  ;;  %v11832_v59 = vcombine.high %v11809_v53, %v11816_v7  ;;  %v11468_v21 = vrot.slane %v17551_v48, %v22484_v49  ;;  %v17556_v48 = vld [vmem:[#allocation2 + $0x64] ss:$8 sps:$4 sm:$0xff]  }
 0x4a4   :  { %v11801_v54 = vcombine.low %v11359_v18, %v11398_v31  ;;  %v16542_v39 = vcombine.high %v11384_v4, %v11398_v31  ;;  %v11831_v63 = vcombine.low %v11809_v53, %v11816_v7  ;;  %v11377_v10 = vcombine.high %v11375_v14, %v11375_v14 }
 0x4a5   :  { %16605 = vmatprep.mubr.msk.bf16.mxu0 %vm22577_vm14, %v11798_v40  ;;  %16612 = vmatprep.mubr.msk.bf16.mxu1 %vm22578_vm4, %v11798_v40  ;;  %v11848_v61 = vrot.slane %v11832_v59, %v22484_v49  ;;  %v11391_v26 = vrot.slane %v11375_v14, %v22484_v49  ;;  %v11426_v23 = vcombine.high %v11418_v35, %v11418_v35  ;;  %vm22633_vm14 = vcmask 1042434   ;;  %vm22685_vm4 = vmmov %vm22622_vm0 }
 0x4a6   :  { %v11823_v8 = vrot.slane %v11801_v54, %v22484_v49  ;;  %v11830_v52 = vrot.slane %v16542_v39, %v22484_v49  ;;  %v11405_v15 = vrot.slane %v11377_v10, %v22484_v49  ;;  %v11434_v30 = vrot.slane %v11418_v35, %v22484_v49 }
 0x4a7   :  { %v11441_v32 = vrot.slane %v11425_v50, %v22484_v49  ;;  %v11448_v25 = vrot.slane %v11426_v23, %v22484_v49  ;;  %v11427_v38 = vcombine.high %v11425_v50, %v11425_v50  ;;  %v11475_v36 = vrot.slane %v17553_v13, %v22484_v49 }
 0x4a8   :  { %12480 = vmatmul.mubr.bf16.gmra.mrb[60].mxu0 %v11797_v34  ;;  %12583 = vmatmul.mubr.bf16.gmra.mrb[60].mxu1 %v11797_v34  ;;  %v11834_v33 = vcombine.high %v11823_v8, %v11830_v52  ;;  %v11833_v24 = vcombine.low %v11823_v8, %v11830_v52  ;;  %v11456_v56 = vcombine.high %v11434_v30, %v11434_v30 }
 0x4a9   :  { %v11458_v11 = vcombine.high %v11448_v25, %v11448_v25  ;;  %v11865_v46 = vcombine.low %v11391_v26, %v11405_v15  ;;  %v16543_v28 = vcombine.high %v11391_v26, %v11405_v15  ;;  %v11455_v60 = vrot.slane %v11427_v38, %v22484_v49 }
 0x4aa   :  { %v11862_v37 = vrot.slane %v11834_v33, %v22484_v49  ;;  %v11841_v2 = vrot.slane %v11831_v63, %v22484_v49  ;;  %v11855_v51 = vrot.slane %v11833_v24, %v22484_v49  ;;  %v11867_v1 = vcombine.low %v11448_v25, %v11456_v56 }
 0x4ab   :  { %v11868_v43 = vcombine.low %v11458_v11, %v11441_v32  ;;  %v11875_v41 = vrot.slane %v11865_v46, %v22484_v49  ;;  %v11882_v42 = vrot.slane %v16543_v28, %v22484_v49  ;;  %v11457_v17 = vcombine.high %v11441_v32, %v11441_v32  ;;  %v17559_v46 = vld [vmem:[#allocation2 + $0x74] ss:$8 sps:$4 sm:$0xff]  }
 0x4ac   :  { %v11864_v29 = vcombine.low %v11848_v61, %v11862_v37  ;;  %v11863_v45 = vcombine.low %v11841_v2, %v11855_v51  ;;  %v11459_v9 = vcombine.high %v11455_v60, %v11455_v60  ;;  %v11476_v20 = vcombine.high %v11468_v21, %v11468_v21 }
 0x4ad   :  { %v11889_v44 = vrot.slane %v11867_v1, %v22484_v49  ;;  %v11896_v22 = vrot.slane %v11868_v43, %v22484_v49  ;;  %v11898_v12 = vcombine.high %v11875_v41, %v11882_v42  ;;  %v11477_v6 = vcombine.high %v11475_v36, %v11475_v36 }
 0x4ae   :  { %16606 = vmatprep.mubr.msk.bf16.mxu0 %vm22579_vm1, %v11864_v29  ;;  %16613 = vmatprep.mubr.msk.bf16.mxu1 %vm22580_vm5, %v11864_v29  ;;  %v11897_v58 = vcombine.low %v11875_v41, %v11882_v42  ;;  %v11484_v0 = vrot.slane %v11468_v21, %v22484_v49  ;;  %v11498_v57 = vrot.slane %v11476_v20, %v22484_v49  ;;  %vm22687_vm1 = vmmov %vm22633_vm14  ;;  %vm22689_vm5 = vcmask 1043459  }
 0x4af   :  { %v11900_v18 = vcombine.high %v11889_v44, %v11896_v22  ;;  %v11914_v47 = vrot.slane %v11898_v12, %v22484_v49  ;;  %v11899_v53 = vcombine.low %v11889_v44, %v11896_v22  ;;  %v11491_v5 = vrot.slane %v11475_v36, %v22484_v49  ;;  %v17557_v36 = vld [vmem:[#allocation2 + $0x70] ss:$8 sps:$4 sm:$0xee]  }
 0x4b0   :  { %12490 = vmatmul.mubr.bf16.gmra.mrb[64].mxu0 %v11863_v45  ;;  %12593 = vmatmul.mubr.bf16.gmra.mrb[64].mxu1 %v11863_v45  ;;  %v11505_v19 = vrot.slane %v11477_v6, %v22484_v49  ;;  %v11931_v7 = vcombine.low %v11455_v60, %v11457_v17  ;;  %v11932_v14 = vcombine.low %v11459_v9, %v11498_v57 }
 0x4b1   :  { %v11928_v4 = vrot.slane %v11900_v18, %v22484_v49  ;;  %v11921_v31 = vrot.slane %v11899_v53, %v22484_v49  ;;  %v16544_v35 = vcombine.high %v11484_v0, %v11498_v57  ;;  %v11518_v50 = vrot.slane %v17554_v3, %v22484_v49 }
 0x4b2   :  { %v11934_v40 = vcombine.low %v11491_v5, %v11505_v19  ;;  %v11941_v34 = vrot.slane %v11931_v7, %v22484_v49  ;;  %v11948_v59 = vrot.slane %v11932_v14, %v22484_v49  ;;  %v11525_v13 = vrot.slane %v17556_v48, %v22484_v49 }
 0x4b3   :  { %v11930_v21 = vcombine.low %v11914_v47, %v11928_v4  ;;  %v11907_v54 = vrot.slane %v11897_v58, %v22484_v49  ;;  %v11955_v39 = vrot.slane %v16544_v35, %v22484_v49  ;;  %v11526_v63 = vcombine.high %v11518_v50, %v11518_v50 }
 0x4b4   :  { %v11962_v10 = vrot.slane %v11934_v40, %v22484_v49  ;;  %v11964_v61 = vcombine.high %v11941_v34, %v11948_v59  ;;  %v11963_v26 = vcombine.low %v11941_v34, %v11948_v59  ;;  %v11527_v23 = vcombine.high %v11525_v13, %v11525_v13 }
 0x4b5   :  { %16607 = vmatprep.mubr.msk.bf16.mxu0 %vm22581_vm6, %v11930_v21  ;;  %16614 = vmatprep.mubr.msk.bf16.mxu1 %vm22582_vm7, %v11930_v21  ;;  %v11534_v8 = vrot.slane %v11518_v50, %v22484_v49  ;;  %v11541_v52 = vrot.slane %v11525_v13, %v22484_v49  ;;  %v11548_v15 = vrot.slane %v11526_v63, %v22484_v49  ;;  %vm22692_vm6 = vmmov %vm22687_vm1 }
 0x4b6   :  { %v11929_v30 = vcombine.low %v11907_v54, %v11921_v31  ;;  %v11966_v32 = vcombine.high %v11955_v39, %v11962_v10  ;;  %v11980_v25 = vrot.slane %v11964_v61, %v22484_v49  ;;  %v11965_v38 = vcombine.low %v11955_v39, %v11962_v10  ;;  %vm22694_vm7 = vmmov %vm22689_vm5 }
 0x4b7   :  { %v11555_v33 = vrot.slane %v11527_v23, %v22484_v49  ;;  %v11556_v24 = vcombine.high %v11534_v8, %v11534_v8  ;;  %v11557_v56 = vcombine.high %v11541_v52, %v11541_v52  ;;  %v11558_v11 = vcombine.high %v11548_v15, %v11548_v15 }
 0x4b8   :  { %12500 = vmatmul.mubr.bf16.gmra.mrb[68].mxu0 %v11929_v30  ;;  %12603 = vmatmul.mubr.bf16.gmra.mrb[68].mxu1 %v11929_v30  ;;  %v11994_v28 = vrot.slane %v11966_v32, %v22484_v49  ;;  %v16545_v60 = vcombine.high %v11491_v5, %v11505_v19  ;;  %v11973_v37 = vrot.slane %v11963_v26, %v22484_v49  ;;  %v17560_v32 = vld [vmem:[#allocation5 + $0x70] sm:$0xff]  }
 0x4b9   :  { %v11998_v2 = vcombine.low %v11548_v15, %v11556_v24  ;;  %v11999_v51 = vcombine.low %v11558_v11, %v11541_v52  ;;  %v12000_v1 = vcombine.low %v11555_v33, %v11557_v56  ;;  %v11987_v41 = vrot.slane %v11965_v38, %v22484_v49  ;;  %14435 = vmatpush1.bf16.msra.mxu0 %v17560_v32  ;;  %v17562_v38 = vld [vmem:[#allocation5 + $0x78] sm:$0xff]   ;;  %v22589_v56 = vld [vmem:[#allocation13_spill] sm:$0xff] }
 0x4ba   :  { %v11996_v43 = vcombine.low %v11980_v25, %v11994_v28  ;;  %v12007_v42 = vrot.slane %v16545_v60, %v22484_v49  ;;  %v11568_v17 = vrot.slane %v17557_v36, %v22484_v49  ;;  %v11575_v20 = vrot.slane %v17559_v46, %v22484_v49  ;;  %v17561_v25 = vld [vmem:[#allocation5] sm:$0xff]   ;;  %14436 = vmatprep.subr.bf16.mxu0 %v22575_v16  ;;  %v22590_v46 = vld [vmem:[#allocation14_spill] sm:$0xff]  ;;  %v17563_v60 = vld [vmem:[#allocation5 + $0x8] sm:$0xff]  }
 0x4bb   :  { %v12014_v29 = vrot.slane %v11998_v2, %v22484_v49  ;;  %v12021_v45 = vrot.slane %v11999_v51, %v22484_v49  ;;  %v12028_v9 = vrot.slane %v12000_v1, %v22484_v49  ;;  %v11559_v3 = vcombine.high %v11555_v33, %v11555_v33  ;;  %14625 = vmatpush1.bf16.msra.mxu1 %v17561_v25  ;;  %v12777_v36 = vld [vmem:[%s22296_s6] sm:$0xf] }
 0x4bc   :  { %16608 = vmatprep.mubr.msk.bf16.mxu0 %vm22583_vm8, %v11996_v43  ;;  %16615 = vmatprep.mubr.msk.bf16.mxu1 %vm22584_vm2, %v11996_v43  ;;  %v11576_v44 = vcombine.high %v11568_v17, %v11568_v17  ;;  %v11995_v58 = vcombine.low %v11973_v37, %v11987_v41  ;;  %v11577_v0 = vcombine.high %v11575_v20, %v11575_v20  ;;  %v17564_v37 = vld [vmem:[#allocation5 + $0x80] sm:$0xff]   ;;  %vm22695_vm8 = vcmask 1046534  }
 0x4bd   :  { %v12030_v22 = vcombine.high %v12007_v42, %v12014_v29  ;;  %v12032_v12 = vcombine.high %v12021_v45, %v12028_v9  ;;  %v12031_v6 = vcombine.low %v12021_v45, %v12028_v9  ;;  %v11584_v57 = vrot.slane %v11568_v17, %v22484_v49  ;;  %14626 = vmatprep.subr.bf16.mxu1 %v22575_v16  ;;  %v17565_v17 = vld [vmem:[#allocation5 + $0x10] sm:$0xff]   ;;  %vm22698_vm2 = vmmov %vm22695_vm8 }
 0x4be   :  { %v11598_v48 = vrot.slane %v11576_v44, %v22484_v49  ;;  %v12029_v53 = vcombine.low %v12007_v42, %v12014_v29  ;;  %v11591_v5 = vrot.slane %v11575_v20, %v22484_v49  ;;  %v11605_v19 = vrot.slane %v11577_v0, %v22484_v49  ;;  %14437 = vmatpush1.bf16.msra.mxu0 %v17562_v38 }
 0x4bf   :  { %v12046_v18 = vrot.slane %v12030_v22, %v22484_v49  ;;  %v12060_v47 = vrot.slane %v12032_v12, %v22484_v49  ;;  %v12053_v31 = vrot.slane %v12031_v6, %v22484_v49  ;;  %14438 = vmatprep.subr.bf16.mxu0 %v22575_v16  ;;  %v21109_v2 = vrot.slane %v12777_v36, %v18932_v55 }
 0x4c0   :  { %12510 = vmatmul.mubr.bf16.gmra.mrb[72].mxu0 %v11995_v58  ;;  %12613 = vmatmul.mubr.bf16.gmra.mrb[72].mxu1 %v11995_v58  ;;  %v12063_v7 = vcombine.low %v11559_v3, %v11598_v48  ;;  %v16546_v14 = vcombine.high %v11584_v57, %v11598_v48  ;;  %v12065_v35 = vcombine.low %v11591_v5, %v11605_v19 }
 0x4c1   :  { %v12062_v4 = vcombine.low %v12046_v18, %v12060_v47  ;;  %v16547_v50 = vcombine.high %v11591_v5, %v11605_v19  ;;  %v12039_v59 = vrot.slane %v12029_v53, %v22484_v49  ;;  %v21112_v51 = vrot.slane %v12777_v36, %v18935_v62  ;;  %14627 = vmatpush1.bf16.msra.mxu1 %v17563_v60 }
 0x4c2   :  { %v12073_v40 = vrot.slane %v12063_v7, %v22484_v49  ;;  %v12080_v34 = vrot.slane %v16546_v14, %v22484_v49  ;;  %v12087_v13 = vrot.slane %v12065_v35, %v22484_v49  ;;  %v21115_v41 = vrot.slane %v12777_v36, %v22589_v56  ;;  %14439 = vmatpush1.bf16.msra.mxu0 %v17564_v37 }
 0x4c3   :  { %16609 = vmatprep.mubr.msk.bf16.mxu0 %vm22585_vm10, %v12062_v4  ;;  %16616 = vmatprep.mubr.msk.bf16.mxu1 %vm22586_vm9, %v12062_v4  ;;  %v12094_v21 = vrot.slane %v16547_v50, %v22484_v49  ;;  %v12061_v39 = vcombine.low %v12039_v59, %v12053_v31  ;;  %v21118_v42 = vrot.slane %v12777_v36, %v22590_v46  ;;  %v17566_v36 = vld [vmem:[#allocation5 + $0x88] sm:$0xff]   ;;  %vm22699_vm10 = vcmask 1047559  }
 0x4c4   :  { %v12096_v54 = vcombine.high %v12073_v40, %v12080_v34  ;;  %v12095_v61 = vcombine.low %v12073_v40, %v12080_v34  ;;  %14628 = vmatprep.subr.bf16.mxu1 %v22575_v16  ;;  %14440 = vmatprep.subr.bf16.mxu0 %v22575_v16  ;;  %vm22700_vm9 = vmmov %vm22699_vm10 }
 0x4c5   :  { %v12098_v63 = vcombine.high %v12087_v13, %v12094_v21  ;;  %v12097_v26 = vcombine.low %v12087_v13, %v12094_v21  ;;  %14629 = vmatpush1.bf16.msra.mxu1 %v17565_v17 }
 0x4c6   :  { %v12112_v10 = vrot.slane %v12096_v54, %v22484_v49  ;;  %v12105_v52 = vrot.slane %v12095_v61, %v22484_v49  ;;  %14630 = vmatprep.subr.bf16.mxu1 %v22575_v16  ;;  %14441 = vmatpush1.bf16.msra.mxu0 %v17566_v36 }
 0x4c7   :  { %v12126_v23 = vrot.slane %v12098_v63, %v22484_v49  ;;  %v12119_v15 = vrot.slane %v12097_v26, %v22484_v49  ;;  %v12699_v49 = vld [vmem:[%s22295_s5] sm:$0xf]  ;;  %14442 = vmatprep.subr.bf16.mxu0 %v22575_v16 }
 0x4c8   :  { %12520 = vmatmul.mubr.bf16.gmra.mrb[76].mxu0 %v12061_v39  ;;  %12623 = vmatmul.mubr.bf16.gmra.mrb[76].mxu1 %v12061_v39  ;;  %v21097_v33 = vrot.slane %v12699_v49, %v18932_v55  ;;  %v21100_v24 = vrot.slane %v12699_v49, %v18935_v62  ;;  %v21103_v11 = vrot.slane %v12699_v49, %v22589_v56 }
 0x4c9   :  { %v12128_v8 = vcombine.low %v12112_v10, %v12126_v23  ;;  %v12127_v30 = vcombine.low %v12105_v52, %v12119_v15  ;;  %v21106_v28 = vrot.slane %v12699_v49, %v22590_v46 }
 0x4cb   :  { %16610 = vmatprep.mubr.msk.bf16.mxu0 %vm22587_vm15, %v12128_v8  ;;  %16617 = vmatprep.mubr.msk.bf16.mxu1 %vm22588_vm13, %v12128_v8  ;;  %vm22704_vm15 = vmmov %vm22622_vm0 }
 0x4cc   :  { %vm22706_vm13 = vmmov %vm22687_vm1 }
 0x4d0   :  { %12530 = vmatmul.mubr.bf16.gmra.mrb[80].mxu0 %v12127_v30  ;;  %12633 = vmatmul.mubr.bf16.gmra.mrb[80].mxu1 %v12127_v30 }
 0x573   :  { %v12471_v1 = vpop.f32.mrb[56].mxu0  ;;  %v12574_v43 = vpop.f32.mrb[56].mxu1 }
 0x574   :  { %v12721_v29 = vmul.f32 %v21097_v33, %v12471_v1  ;;  %v12723_v45 = vmul.f32 %v21100_v24, %v12574_v43  ;;  %v12473_v9 = vpop.f32.mrb[57].mxu0  ;;  %v12576_v20 = vpop.f32.mrb[57].mxu1 }
 0x575   :  { %v12722_v44 = vmul.f32 %v21103_v11, %v12473_v9  ;;  %v12724_v22 = vmul.f32 %v21106_v28, %v12576_v20  ;;  %v12475_v12 = vpop.f32.mrb[58].mxu0  ;;  %v12578_v6 = vpop.f32.mrb[58].mxu1 }
 0x576   :  { %v12799_v3 = vadd.f32 %v21109_v2, %v12721_v29  ;;  %v12801_v58 = vadd.f32 %v21112_v51, %v12723_v45  ;;  %v12725_v0 = vmul.f32 %v21097_v33, %v12475_v12  ;;  %v12727_v57 = vmul.f32 %v21100_v24, %v12578_v6  ;;  %v12477_v48 = vpop.f32.mrb[59].mxu0  ;;  %v12580_v18 = vpop.f32.mrb[59].mxu1 }
 0x577   :  { %v12800_v47 = vadd.f32 %v21115_v41, %v12722_v44  ;;  %v12802_v53 = vadd.f32 %v21118_v42, %v12724_v22  ;;  %v12726_v5 = vmul.f32 %v21103_v11, %v12477_v48  ;;  %v12728_v19 = vmul.f32 %v21106_v28, %v12580_v18 }
 0x578   :  { %v12855_v7 = vmax.f32 %v12799_v3, 0.0  ;;  %v12857_v14 = vmax.f32 %v12801_v58, 0.0  ;;  %v12803_v4 = vadd.f32 %v21109_v2, %v12725_v0  ;;  %v12805_v31 = vadd.f32 %v21112_v51, %v12727_v57 }
 0x579   :  { %v12856_v35 = vmax.f32 %v12800_v47, 0.0  ;;  %v12858_v50 = vmax.f32 %v12802_v53, 0.0  ;;  %v12804_v40 = vadd.f32 %v21115_v41, %v12726_v5  ;;  %v12806_v34 = vadd.f32 %v21118_v42, %v12728_v19 }
 0x57a   :  { %v12911_v59 = vmax.f32 %v12855_v7, %v12857_v14  ;;  %v12859_v13 = vmax.f32 %v12803_v4, 0.0  ;;  %v12861_v21 = vmax.f32 %v12805_v31, 0.0 }
 0x57b   :  { %v12912_v54 = vmax.f32 %v12856_v35, %v12858_v50  ;;  %v12860_v39 = vmax.f32 %v12804_v40, 0.0  ;;  %v12862_v63 = vmax.f32 %v12806_v34, 0.0  ;;  %v12481_v10 = vpop.f32.mrb[60].mxu0  ;;  %v12584_v61 = vpop.f32.mrb[60].mxu1 }
 0x57c   :  { %v12913_v26 = vmax.f32 %v12859_v13, %v12861_v21  ;;  %v12729_v23 = vmul.f32 %v21097_v33, %v12481_v10  ;;  %v12731_v8 = vmul.f32 %v21100_v24, %v12584_v61  ;;  %v12483_v52 = vpop.f32.mrb[61].mxu0  ;;  %v12586_v15 = vpop.f32.mrb[61].mxu1 }
 0x57d   :  { %v12967_v30 = vcombine.low %v12911_v59, %v12912_v54  ;;  %v12968_v32 = vcombine.high %v12911_v59, %v12912_v54  ;;  %v12914_v25 = vmax.f32 %v12860_v39, %v12862_v63  ;;  %v12485_v38 = vpop.f32.mrb[62].mxu0  ;;  %v21141_v49 = vpop.f32.mrb[62].mxu1  ;;  %v12730_v20 = vmul.f32 %v21103_v11, %v12483_v52 }
 0x57e   :  { %v12807_v56 = vadd.f32 %v21109_v2, %v12729_v23  ;;  %v12809_v46 = vadd.f32 %v21112_v51, %v12731_v8  ;;  %v21145_v60 = vpop.f32.mrb[63].mxu0  ;;  %v21147_v37 = vpop.f32.mrb[63].mxu1  ;;  %v12732_v4 = vmul.f32 %v21106_v28, %v12586_v15 }
 0x57f   :  { %v12975_v1 = vrot.slane %v12967_v30, %v17901_v27  ;;  %v12982_v43 = vrot.slane %v12968_v32, %v17901_v27  ;;  %v12985_v17 = vcombine.low %v12913_v26, %v12914_v25  ;;  %v12986_v29 = vcombine.high %v12913_v26, %v12914_v25 }
 0x580   :  { %v12863_v45 = vmax.f32 %v12807_v56, 0.0  ;;  %v12865_v9 = vmax.f32 %v12809_v46, 0.0  ;;  %v21162_v14 = vadd.f32 %v21115_v41, %v12730_v20  ;;  %v17568_v20 = vld [vmem:[#allocation5 + $0x90] sm:$0xff]  }
 0x581   :  { %v12983_v44 = vcombine.high %v12975_v1, %v12975_v1  ;;  %v12984_v22 = vcombine.high %v12982_v43, %v12982_v43  ;;  %v16618_v12 = vrot.slane %v12975_v1, 9  ;;  %v16620_v6 = vrot.slane %v12982_v43, 9  ;;  %14443 = vmatpush1.bf16.msra.mxu0 %v17568_v20 }
 0x582   :  { %v12993_v3 = vrot.slane %v12985_v17, %v17901_v27  ;;  %v13000_v58 = vrot.slane %v12986_v29, %v17901_v27  ;;  %v21155_v0 = vmax.f32 %v12863_v45, %v12865_v9  ;;  %v12864_v29 = vmax.f32 %v21162_v14, 0.0  ;;  %v17567_v9 = vld [vmem:[#allocation5 + $0x18] sm:$0xff]   ;;  %14444 = vmatprep.subr.bf16.mxu0 %v22575_v16 }
 0x583   :  { %v16619_v57 = vrot.slane %v12983_v44, 9  ;;  %v16621_v48 = vrot.slane %v12984_v22, 9  ;;  %v13443_v18 = vmax.f32 %v12975_v1, %v16618_v12  ;;  %v13445_v47 = vmax.f32 %v12982_v43, %v16620_v6  ;;  %v21157_v53 = vpop.f32.mrb[64].mxu0  ;;  %v21159_v5 = vpop.f32.mrb[64].mxu1  ;;  %14631 = vmatpush1.bf16.msra.mxu1 %v17567_v9 }
 0x584   :  { %v13001_v19 = vcombine.high %v12993_v3, %v12993_v3  ;;  %v13002_v7 = vcombine.high %v13000_v58, %v13000_v58  ;;  %v21165_v31 = vpop.f32.mrb[65].mxu0  ;;  %v21167_v35 = vpop.f32.mrb[65].mxu1  ;;  %v16622_v63 = vrot.slane %v12993_v3, 9  ;;  %v16624_v10 = vrot.slane %v13000_v58, 9  ;;  %14632 = vmatprep.subr.bf16.mxu1 %v22575_v16 }
 0x585   :  { %v13444_v50 = vmax.f32 %v12983_v44, %v16619_v57  ;;  %v13446_v40 = vmax.f32 %v12984_v22, %v16621_v48  ;;  %v13558_v34 = vrot.slane %v13443_v18, %v18932_v55  ;;  %v13562_v59 = vrot.slane %v13443_v18, %v18935_v62  ;;  %v21171_v13 = vpop.f32.mrb[66].mxu0  ;;  %v21173_v21 = vpop.f32.mrb[66].mxu1 }
 0x586   :  { %v13574_v54 = vrot.slane %v13445_v47, %v18932_v55  ;;  %v13578_v39 = vrot.slane %v13445_v47, %v18935_v62  ;;  %v21177_v61 = vpop.f32.mrb[67].mxu0  ;;  %v21179_v26 = vpop.f32.mrb[67].mxu1  ;;  %v16623_v25 = vrot.slane %v13001_v19, 9  ;;  %v16625_v36 = vrot.slane %v13002_v7, 9 }
 0x587   :  { %v13566_v23 = vrot.slane %v13444_v50, %v18932_v55  ;;  %v13570_v8 = vrot.slane %v13444_v50, %v18935_v62  ;;  %v13582_v52 = vrot.slane %v13446_v40, %v18932_v55  ;;  %v13586_v15 = vrot.slane %v13446_v40, %v18935_v62 }
 0x588   :  { %v14115_v30 = vpack.c.bf16 %v13558_v34, %v13558_v34  ;;  %v14116_v32 = vpack.c.bf16 %v13562_v59, %v13562_v59  ;;  %v14119_v46 = vpack.c.bf16 %v13574_v54, %v13574_v54  ;;  %v14120_v1 = vpack.c.bf16 %v13578_v39, %v13578_v39 }
 0x589   :  { %v14117_v56 = vpack.c.bf16 %v13566_v23, %v13566_v23  ;;  %v12810_v43 = vadd.f32 %v21118_v42, %v12732_v4  ;;  %v14118_v17 = vpack.c.bf16 %v13570_v8, %v13570_v8  ;;  %v12733_v45 = vmul.f32 %v21097_v33, %v12485_v38  ;;  %v17569_v38 = vld [vmem:[#allocation5 + $0x20] sm:$0xff]  }
 0x58a   :  { %v14121_v44 = vpack.c.bf16 %v13582_v52, %v13582_v52  ;;  %v14122_v22 = vpack.c.bf16 %v13586_v15, %v13586_v15  ;;  %v21188_v12 = vunpack.c.l.b16 %v14115_v30  ;;  %v21190_v6 = vunpack.c.l.b16 %v14116_v32  ;;  %14633 = vmatpush1.bf16.msra.mxu1 %v17569_v38 }
 0x58b   :  { %v21192_v57 = vpop.f32.mrb[68].mxu0  ;;  %v21194_v48 = vpop.f32.mrb[68].mxu1  ;;  %v13447_v18 = vmax.f32 %v12993_v3, %v16622_v63  ;;  %v13448_v47 = vmax.f32 %v13001_v19, %v16623_v25  ;;  %v13449_v4 = vmax.f32 %v13000_v58, %v16624_v10  ;;  %v13450_v50 = vmax.f32 %v13002_v7, %v16625_v36  ;;  %14634 = vmatprep.subr.bf16.mxu1 %v22575_v16 }
 0x58c   :  { %22591 = vst [vmem:[#allocation41_spill] sm:$0xff] %v21190_v6  ;;  %v21196_v40 = vpop.f32.mrb[69].mxu0  ;;  %v21198_v14 = vpop.f32.mrb[69].mxu1  ;;  %v21200_v34 = vunpack.c.l.b16 %v14117_v56  ;;  %v21202_v59 = vunpack.c.l.b16 %v14119_v46  ;;  %v21204_v54 = vunpack.c.l.b16 %v14120_v1  ;;  %v12866_v39 = vmax.f32 %v12810_v43, 0.0 }
 0x58d   :  { %v21206_v23 = vpop.f32.mrb[70].mxu0  ;;  %v21208_v8 = vpop.f32.mrb[70].mxu1  ;;  %v13590_v3 = vrot.slane %v13447_v18, %v18932_v55  ;;  %v13594_v58 = vrot.slane %v13447_v18, %v18935_v62  ;;  %v13598_v19 = vrot.slane %v13448_v47, %v18932_v55  ;;  %v13602_v7 = vrot.slane %v13448_v47, %v18935_v62 }
 0x58e   :  { %22592 = vst [vmem:[#allocation16_spill] sm:$0xff] %v21202_v59  ;;  %22593 = vst [vmem:[#allocation17_spill] sm:$0xff] %v21204_v54  ;;  %v21215_v63 = vpop.f32.mrb[71].mxu0  ;;  %v21217_v10 = vpop.f32.mrb[71].mxu1  ;;  %v21221_v52 = vrot.slane %v13449_v4, %v18932_v55  ;;  %v21224_v15 = vrot.slane %v13449_v4, %v18935_v62  ;;  %v13614_v30 = vrot.slane %v13450_v50, %v18932_v55  ;;  %v21233_v1 = vunpack.c.l.b16 %v14118_v17 }
 0x58f   :  { %v13618_v32 = vrot.slane %v13450_v50, %v18935_v62  ;;  %v14123_v25 = vpack.c.bf16 %v13590_v3, %v13590_v3  ;;  %v12811_v36 = vadd.f32 %v21109_v2, %v12733_v45  ;;  %v12735_v56 = vmul.f32 %v21100_v24, %v21141_v49 }
 0x590   :  { %v12734_v46 = vmul.f32 %v21103_v11, %v21145_v60  ;;  %22594 = vst [vmem:[#allocation18_spill] sm:$0xff] %v21233_v1  ;;  %v21235_v43 = vunpack.c.l.b16 %v14121_v44  ;;  %v14124_v9 = vpack.c.bf16 %v13594_v58, %v13594_v58  ;;  %v14129_v20 = vpack.c.bf16 %v13614_v30, %v13614_v30 }
 0x591   :  { %v21238_v18 = vunpack.c.l.b16 %v14122_v22  ;;  %v14125_v47 = vpack.c.bf16 %v13598_v19, %v13598_v19  ;;  %v14126_v4 = vpack.c.bf16 %v13602_v7, %v13602_v7  ;;  %v14127_v45 = vpack.c.bf16 %v21221_v52, %v21221_v52 }
 0x592   :  { %22595 = vst [vmem:[#allocation19_spill] sm:$0xff] %v21235_v43  ;;  %v14130_v60 = vpack.c.bf16 %v13618_v32, %v13618_v32  ;;  %v14492_v50 = vunpack.c.l.b16 %v14129_v20  ;;  %v21244_v17 = vunpack.c.l.b16 %v14123_v25  ;;  %v12916_v3 = vmax.f32 %v12864_v29, %v12866_v39 }
 0x593   :  { %22596 = vst [vmem:[#allocation20_spill] sm:$0xff] %v21238_v18  ;;  %v21246_v44 = vpop.f32.mrb[72].mxu0  ;;  %v21248_v38 = vpop.f32.mrb[72].mxu1  ;;  %v12867_v58 = vmax.f32 %v12811_v36, 0.0  ;;  %v12813_v22 = vadd.f32 %v21112_v51, %v12735_v56  ;;  %v12812_v19 = vadd.f32 %v21115_v41, %v12734_v46  ;;  %v21256_v49 = vunpack.c.l.b16 %v14124_v9 }
 0x594   :  { %22597 = vst [vmem:[#allocation21_spill] sm:$0xff] %v21244_v17  ;;  %v21252_v7 = vpop.f32.mrb[73].mxu0  ;;  %v21254_v52 = vpop.f32.mrb[73].mxu1  ;;  %v14506_v30 = vrot.slane %v14492_v50, 7  ;;  %v12736_v32 = vmul.f32 %v21106_v28, %v21147_v37  ;;  %v12737_v25 = vmul.f32 %v21097_v33, %v21157_v53  ;;  %v13003_v39 = vcombine.low %v21155_v0, %v12916_v3  ;;  %v17570_v50 = vld [vmem:[#allocation5 + $0x98] sm:$0xff]  }
 0x595   :  { %22598 = vst [vmem:[#allocation22_spill] sm:$0xff] %v21256_v49  ;;  %v21262_v20 = vpop.f32.mrb[74].mxu0  ;;  %v21264_v29 = vpop.f32.mrb[74].mxu1  ;;  %v13004_v36 = vcombine.high %v21155_v0, %v12916_v3  ;;  %v12869_v56 = vmax.f32 %v12813_v22, 0.0  ;;  %v12868_v46 = vmax.f32 %v12812_v19, 0.0  ;;  %v12739_v49 = vmul.f32 %v21100_v24, %v21159_v5  ;;  %14445 = vmatpush1.bf16.msra.mxu0 %v17570_v50 }
 0x596   :  { %v21268_v17 = vpop.f32.mrb[75].mxu0  ;;  %v21270_v9 = vpop.f32.mrb[75].mxu1  ;;  %v21274_v37 = vsel %vm22599_vm3, %v14506_v30, %v21188_v12  ;;  %v12814_v53 = vadd.f32 %v21118_v42, %v12736_v32  ;;  %v12815_v43 = vadd.f32 %v21109_v2, %v12737_v25  ;;  %v21280_v59 = vunpack.c.l.b16 %v14125_v47  ;;  %14446 = vmatprep.subr.bf16.mxu0 %v22575_v16  ;;  %vm22708_vm3 = vmmov %vm22689_vm5 }
 0x597   :  { %v13011_v0 = vrot.slane %v13003_v39, %v17901_v27  ;;  %v13018_v3 = vrot.slane %v13004_v36, %v17901_v27  ;;  %v21284_v22 = vmax.f32 %v12867_v58, %v12869_v56  ;;  %v21286_v19 = vunpack.c.l.b16 %v14126_v4  ;;  %v17572_v56 = vld [vmem:[#allocation5 + $0xa0] sm:$0xff]  }
 0x598   :  { %22600 = vst [vmem:[#allocation23_spill] sm:$0xff] %v21280_v59  ;;  %v12870_v12 = vmax.f32 %v12814_v53, 0.0  ;;  %v12871_v30 = vmax.f32 %v12815_v43, 0.0  ;;  %v12817_v32 = vadd.f32 %v21112_v51, %v12739_v49  ;;  %v21290_v59 = vunpack.c.l.b16 %v14130_v60  ;;  %v17571_v43 = vld [vmem:[#allocation5 + $0x28] sm:$0xff]  }
 0x599   :  { %22601 = vst [vmem:[#allocation24_spill] sm:$0xff] %v21286_v19  ;;  %v13019_v25 = vcombine.high %v13011_v0, %v13011_v0  ;;  %v13020_v18 = vcombine.high %v13018_v3, %v13018_v3  ;;  %v16626_v5 = vrot.slane %v13011_v0, 9  ;;  %v16628_v47 = vrot.slane %v13018_v3, 9  ;;  %14635 = vmatpush1.bf16.msra.mxu1 %v17571_v43  ;;  %14447 = vmatpush1.bf16.msra.mxu0 %v17572_v56 }
 0x59a   :  { %22602 = vst [vmem:[#allocation25_spill] sm:$0xff] %v21290_v59  ;;  %v12918_v39 = vmax.f32 %v12868_v46, %v12870_v12  ;;  %v12873_v54 = vmax.f32 %v12817_v32, 0.0  ;;  %v12738_v58 = vmul.f32 %v21103_v11, %v21165_v31  ;;  %v21302_v60 = vunpack.c.l.b16 %v14127_v45  ;;  %14636 = vmatprep.subr.bf16.mxu1 %v22575_v16  ;;  %14448 = vmatprep.subr.bf16.mxu0 %v22575_v16 }
 0x59b   :  { %v21294_v36 = vpop.f32.mrb[76].mxu0  ;;  %v21296_v4 = vpop.f32.mrb[76].mxu1  ;;  %v16627_v49 = vrot.slane %v13019_v25, 9  ;;  %v16629_v50 = vrot.slane %v13020_v18, 9  ;;  %v13451_v53 = vmax.f32 %v13011_v0, %v16626_v5  ;;  %v13453_v19 = vmax.f32 %v13018_v3, %v16628_v47  ;;  %v17573_v0 = vld [vmem:[#allocation5 + $0x30] sm:$0xff]  }
 0x59c   :  { %22603 = vst [vmem:[#allocation26_spill] sm:$0xff] %v21296_v4  ;;  %v21298_v6 = vpop.f32.mrb[77].mxu0  ;;  %v21300_v1 = vpop.f32.mrb[77].mxu1  ;;  %22606 = vst [vmem:[#allocation15_spill] sm:$0xff] %v21302_v60  ;;  %v13021_v46 = vcombine.low %v21284_v22, %v12918_v39  ;;  %v13022_v31 = vcombine.high %v21284_v22, %v12918_v39  ;;  %v21306_v12 = vmax.f32 %v12871_v30, %v12873_v54 }
 0x59d   :  { %22604 = vst [vmem:[#allocation27_spill] sm:$0xff] %v21298_v6  ;;  %22605 = vst [vmem:[#allocation28_spill] sm:$0xff] %v21300_v1  ;;  %v21308_v32 = vpop.f32.mrb[78].mxu0  ;;  %v21310_v4 = vpop.f32.mrb[78].mxu1  ;;  %v13452_v3 = vmax.f32 %v13019_v25, %v16627_v49  ;;  %v13454_v5 = vmax.f32 %v13020_v18, %v16629_v50  ;;  %v13622_v47 = vrot.slane %v13451_v53, %v18932_v55  ;;  %14637 = vmatpush1.bf16.msra.mxu1 %v17573_v0 }
 0x59e   :  { %22607 = vst [vmem:[#allocation29_spill] sm:$0xff] %v21308_v32  ;;  %22608 = vst [vmem:[#allocation30_spill] sm:$0xff] %v21310_v4  ;;  %v13626_v45 = vrot.slane %v13451_v53, %v18935_v62  ;;  %v21314_v60 = vpop.f32.mrb[79].mxu0  ;;  %v21316_v1 = vpop.f32.mrb[79].mxu1  ;;  %v13638_v54 = vrot.slane %v13453_v19, %v18932_v55  ;;  %v13642_v22 = vrot.slane %v13453_v19, %v18935_v62  ;;  %14638 = vmatprep.subr.bf16.mxu1 %v22575_v16 }
 0x59f   :  { %22609 = vst [vmem:[#allocation31_spill] sm:$0xff] %v21314_v60  ;;  %22610 = vst [vmem:[#allocation32_spill] sm:$0xff] %v21316_v1  ;;  %v12816_v30 = vadd.f32 %v21115_v41, %v12738_v58  ;;  %v12740_v25 = vmul.f32 %v21106_v28, %v21167_v35  ;;  %v13630_v18 = vrot.slane %v13452_v3, %v18932_v55 }
 0x5a0   :  { %v13634_v39 = vrot.slane %v13452_v3, %v18935_v62  ;;  %v13646_v43 = vrot.slane %v13454_v5, %v18932_v55  ;;  %v13650_v56 = vrot.slane %v13454_v5, %v18935_v62  ;;  %v14131_v49 = vpack.c.bf16 %v13622_v47, %v13622_v47 }
 0x5a1   :  { %v14132_v50 = vpack.c.bf16 %v13626_v45, %v13626_v45  ;;  %v14135_v53 = vpack.c.bf16 %v13638_v54, %v13638_v54  ;;  %v14136_v1 = vpack.c.bf16 %v13642_v22, %v13642_v22  ;;  %v14133_v19 = vpack.c.bf16 %v13630_v18, %v13630_v18 }
 0x5a2   :  { %v14134_v58 = vpack.c.bf16 %v13634_v39, %v13634_v39  ;;  %v14137_v60 = vpack.c.bf16 %v13646_v43, %v13646_v43  ;;  %v13029_v35 = vrot.slane %v13021_v46, %v17901_v27  ;;  %v14302_v4 = vunpack.c.l.b16 %v14131_v49 }
 0x5a3   :  { %v21331_v32 = vunpack.c.l.b16 %v14132_v50  ;;  %v21333_v3 = vunpack.c.l.b16 %v14135_v53  ;;  %v13036_v6 = vrot.slane %v13022_v31, %v17901_v27  ;;  %v21336_v5 = vpop.f32.mrb[80].mxu0  ;;  %v21338_v47 = vpop.f32.mrb[80].mxu1  ;;  %v22615_v0 = vpack.c.bf16 %v21224_v15, %v21224_v15 }
 0x5a4   :  { %22613 = vst [vmem:[#allocation11_spill] sm:$0xff] %v21336_v5  ;;  %22614 = vst [vmem:[#allocation33_spill] sm:$0xff] %v21338_v47  ;;  %v14138_v54 = vpack.c.bf16 %v13650_v56, %v13650_v56  ;;  %v21345_v46 = vunpack.c.l.b16 %v14136_v1  ;;  %v12818_v22 = vadd.f32 %v21118_v42, %v12740_v25  ;;  %v21348_v18 = vpop.f32.mrb[81].mxu0  ;;  %v21350_v39 = vpop.f32.mrb[81].mxu1  ;;  %v14316_v43 = vrot.slane %v14302_v4, 7  ;;  %v17574_v56 = vld [vmem:[#allocation5 + $0xa8] sm:$0xff]  }
 0x5a5   :  { %22611 = vst [vmem:[#allocation9_spill] sm:$0xff] %v21331_v32  ;;  %22612 = vst [vmem:[#allocation10_spill] sm:$0xff] %v21333_v3  ;;  %v21343_v45 = vunpack.c.l.b16 %v22615_v0  ;;  %v21353_v49 = vunpack.c.l.b16 %v14133_v19  ;;  %v12872_v50 = vmax.f32 %v12816_v30, 0.0  ;;  %v21356_v15 = vunpack.c.l.b16 %v14134_v58  ;;  %v21368_v53 = vpop.f32.mrb[82].mxu0  ;;  %v21370_v58 = vpop.f32.mrb[82].mxu1  ;;  %14449 = vmatpush1.bf16.msra.mxu0 %v17574_v56 }
 0x5a6   :  { %22617 = vst [vmem:[#allocation35_spill] sm:$0xff] %v21345_v46  ;;  %22618 = vst [vmem:[#allocation36_spill] sm:$0xff] %v21348_v18  ;;  %v21359_v1 = vunpack.c.l.b16 %v14137_v60  ;;  %v21363_v25 = vsel %vm22622_vm0, %v14316_v43, %v21200_v34  ;;  %v13037_v0 = vcombine.high %v13029_v35, %v13029_v35  ;;  %v21366_v19 = vunpack.c.l.b16 %v14138_v54  ;;  %v21373_v43 = vpop.f32.mrb[83].mxu0  ;;  %14450 = vmatprep.subr.bf16.mxu0 %v22575_v16  ;;  %v17585_v18 = vld [vmem:[#allocation5 + $0x60] sm:$0xff]  }
 0x5a7   :  { %22616 = vst [vmem:[#allocation34_spill] sm:$0xff] %v21343_v45  ;;  %22619 = vst [vmem:[#allocation37_spill] sm:$0xff] %v21350_v39  ;;  %v13038_v45 = vcombine.high %v13036_v6, %v13036_v6  ;;  %v16630_v39 = vrot.slane %v13029_v35, 9  ;;  %v16632_v30 = vrot.slane %v13036_v6, 9  ;;  %v12874_v31 = vmax.f32 %v12818_v22, 0.0 }
 0x5a8   :  { %22620 = vst [vmem:[#allocation38_spill] sm:$0xff] %v21353_v49  ;;  %22621 = vst [vmem:[#allocation39_spill] sm:$0xff] %v21359_v1  ;;  %v16631_v3 = vrot.slane %v13037_v0, 9  ;;  %v12741_v54 = vmul.f32 %v21097_v33, %v21171_v13  ;;  %v12743_v22 = vmul.f32 %v21100_v24, %v21173_v21  ;;  %vm22709_vm0 = vcmask 785408  }
 0x5a9   :  { %22623 = vst [vmem:[#allocation40_spill] sm:$0xff] %v21363_v25  ;;  %22624 = vst [vmem:[#allocation12_spill] sm:$0xff] %v21366_v19  ;;  %v16633_v59 = vrot.slane %v13038_v45, 9  ;;  %v13455_v34 = vmax.f32 %v13029_v35, %v16630_v39  ;;  %v21375_v25 = vpop.f32.mrb[83].mxu1  ;;  %v13457_v32 = vmax.f32 %v13036_v6, %v16632_v30  ;;  %v12920_v4 = vmax.f32 %v12872_v50, %v12874_v31  ;;  %v17575_v31 = vld [vmem:[#allocation5 + $0x38] sm:$0xff]   ;;  %v17576_v50 = vld [vmem:[#allocation5 + $0xb0] sm:$0xff]  }
 0x5aa   :  { %22625 = vst [vmem:[#allocation13_spill] sm:$0xff] %v21368_v53  ;;  %22626 = vst [vmem:[#allocation14_spill] sm:$0xff] %v21370_v58  ;;  %v13456_v46 = vmax.f32 %v13037_v0, %v16631_v3  ;;  %14639 = vmatpush1.bf16.msra.mxu1 %v17575_v31  ;;  %14451 = vmatpush1.bf16.msra.mxu0 %v17576_v50  ;;  %v12819_v5 = vadd.f32 %v21109_v2, %v12741_v54  ;;  %v17579_v54 = vld [vmem:[#allocation5 + $0x48] sm:$0xff]  }
 0x5ab   :  { %22627 = vst [vmem:[#allocation42_spill] sm:$0xff] %v21373_v43  ;;  %22628 = vst [vmem:[#allocation43_spill] sm:$0xff] %v21375_v25  ;;  %v13458_v58 = vmax.f32 %v13038_v45, %v16633_v59  ;;  %v13654_v60 = vrot.slane %v13455_v34, %v18932_v55  ;;  %v13658_v49 = vrot.slane %v13455_v34, %v18935_v62  ;;  %14640 = vmatprep.subr.bf16.mxu1 %v22575_v16 }
 0x5ac   :  { %v13670_v35 = vrot.slane %v13457_v32, %v18932_v55  ;;  %v13674_v6 = vrot.slane %v13457_v32, %v18935_v62  ;;  %v13039_v39 = vcombine.low %v21306_v12, %v12920_v4  ;;  %v13040_v13 = vcombine.high %v21306_v12, %v12920_v4  ;;  %v17577_v32 = vld [vmem:[#allocation5 + $0x40] sm:$0xff]   ;;  %v17578_v4 = vld [vmem:[#allocation5 + $0xb8] sm:$0xff]   ;;  %14452 = vmatprep.subr.bf16.mxu0 %v22575_v16 }
 0x5ad   :  { %v13662_v21 = vrot.slane %v13456_v46, %v18932_v55  ;;  %v13666_v59 = vrot.slane %v13456_v46, %v18935_v62  ;;  %v13678_v3 = vrot.slane %v13458_v58, %v18932_v55  ;;  %v13682_v45 = vrot.slane %v13458_v58, %v18935_v62 }
 0x5ae   :  { %v14139_v56 = vpack.c.bf16 %v13654_v60, %v13654_v60  ;;  %v14140_v0 = vpack.c.bf16 %v13658_v49, %v13658_v49  ;;  %v14143_v30 = vpack.c.bf16 %v13670_v35, %v13670_v35  ;;  %v14144_v34 = vpack.c.bf16 %v13674_v6, %v13674_v6  ;;  %14641 = vmatpush1.bf16.msra.mxu1 %v17577_v32 }
 0x5af   :  { %v14141_v25 = vpack.c.bf16 %v13662_v21, %v13662_v21  ;;  %v14142_v43 = vpack.c.bf16 %v13666_v59, %v13666_v59  ;;  %v14145_v53 = vpack.c.bf16 %v13678_v3, %v13678_v3  ;;  %v14146_v12 = vpack.c.bf16 %v13682_v45, %v13682_v45  ;;  %14453 = vmatpush1.bf16.msra.mxu0 %v17578_v4  ;;  %v17583_v3 = vld [vmem:[#allocation5 + $0x58] sm:$0xff]  }
 0x5b0   :  { %v14494_v47 = vunpack.c.l.b16 %v14143_v30  ;;  %v21393_v46 = vunpack.c.l.b16 %v14144_v34  ;;  %v12821_v60 = vadd.f32 %v21112_v51, %v12743_v22  ;;  %v12742_v35 = vmul.f32 %v21103_v11, %v21177_v61  ;;  %14642 = vmatprep.subr.bf16.mxu1 %v22575_v16  ;;  %v17580_v61 = vld [vmem:[#allocation5 + $0xc0] sm:$0xff]   ;;  %14454 = vmatprep.subr.bf16.mxu0 %v22575_v16 }
 0x5b1   :  { %v21403_v6 = vunpack.c.l.b16 %v14145_v53  ;;  %v21405_v50 = vunpack.c.l.b16 %v14139_v56  ;;  %v21407_v21 = vunpack.c.l.b16 %v14140_v0  ;;  %v21409_v59 = vunpack.c.l.b16 %v14146_v12 }
 0x5b2   :  { %v14508_v31 = vrot.slane %v14494_v47, 6  ;;  %v21412_v45 = vunpack.c.l.b16 %v14141_v25  ;;  %v21414_v30 = vunpack.c.l.b16 %v14142_v43  ;;  %v13047_v53 = vrot.slane %v13039_v39, %v17901_v27  ;;  %14643 = vmatpush1.bf16.msra.mxu1 %v17579_v54  ;;  %v17581_v39 = vld [vmem:[#allocation5 + $0x50] sm:$0xff]  }
 0x5b3   :  { %22629 = vst [vmem:[#allocation44_spill] sm:$0xff] %v21405_v50  ;;  %22630 = vst [vmem:[#allocation45_spill] sm:$0xff] %v21407_v21  ;;  %v13054_v22 = vrot.slane %v13040_v13, %v17901_v27  ;;  %v12875_v56 = vmax.f32 %v12819_v5, 0.0  ;;  %v12877_v0 = vmax.f32 %v12821_v60, 0.0  ;;  %v12820_v25 = vadd.f32 %v21115_v41, %v12742_v35  ;;  %14455 = vmatpush1.bf16.msra.mxu0 %v17580_v61 }
 0x5b4   :  { %22631 = vst [vmem:[#allocation46_spill] sm:$0xff] %v21412_v45  ;;  %22632 = vst [vmem:[#allocation47_spill] sm:$0xff] %v21414_v30  ;;  %v21419_v47 = vsel %vm22633_vm14, %v14508_v31, %v21274_v37  ;;  %v12744_v43 = vmul.f32 %v21106_v28, %v21179_v26  ;;  %v12745_v34 = vmul.f32 %v21097_v33, %v21192_v57  ;;  %v16634_v37 = vrot.slane %v13047_v53, 9  ;;  %v17582_v26 = vld [vmem:[#allocation5 + $0xc8] sm:$0xff]  }
 0x5b5   :  { %v13055_v32 = vcombine.high %v13047_v53, %v13047_v53  ;;  %v13056_v12 = vcombine.high %v13054_v22, %v13054_v22  ;;  %v16636_v4 = vrot.slane %v13054_v22, 9  ;;  %v21430_v5 = vmax.f32 %v12875_v56, %v12877_v0  ;;  %14644 = vmatprep.subr.bf16.mxu1 %v22575_v16  ;;  %14456 = vmatprep.subr.bf16.mxu0 %v22575_v16  ;;  %vm22713_vm14 = vmmov %vm22685_vm4 }
 0x5b6   :  { %v12876_v31 = vmax.f32 %v12820_v25, 0.0  ;;  %v12822_v60 = vadd.f32 %v21118_v42, %v12744_v43  ;;  %v13459_v57 = vmax.f32 %v13047_v53, %v16634_v37  ;;  %v21438_v56 = vadd.f32 %v21109_v2, %v12745_v34  ;;  %14645 = vmatpush1.bf16.msra.mxu1 %v17581_v39 }
 0x5b7   :  { %v16635_v35 = vrot.slane %v13055_v32, 9  ;;  %v16637_v49 = vrot.slane %v13056_v12, 9  ;;  %v13461_v58 = vmax.f32 %v13054_v22, %v16636_v4  ;;  %v12747_v4 = vmul.f32 %v21100_v24, %v21194_v48  ;;  %14457 = vmatpush1.bf16.msra.mxu0 %v17582_v26  ;;  %14646 = vmatprep.subr.bf16.mxu1 %v22575_v16 }
 0x5b8   :  { %v12878_v13 = vmax.f32 %v12822_v60, 0.0  ;;  %v13686_v61 = vrot.slane %v13459_v57, %v18932_v55  ;;  %v13690_v43 = vrot.slane %v13459_v57, %v18935_v62  ;;  %v17584_v60 = vld [vmem:[#allocation5 + $0xd0] sm:$0xff]   ;;  %14458 = vmatprep.subr.bf16.mxu0 %v22575_v16 }
 0x5b9   :  { %v13460_v0 = vmax.f32 %v13055_v32, %v16635_v35  ;;  %v13462_v25 = vmax.f32 %v13056_v12, %v16637_v49  ;;  %v13702_v53 = vrot.slane %v13461_v58, %v18932_v55  ;;  %v13706_v22 = vrot.slane %v13461_v58, %v18935_v62 }
 0x5ba   :  { %v12922_v37 = vmax.f32 %v12876_v31, %v12878_v13  ;;  %v14147_v39 = vpack.c.bf16 %v13686_v61, %v13686_v61  ;;  %v14148_v35 = vpack.c.bf16 %v13690_v43, %v13690_v43  ;;  %14647 = vmatpush1.bf16.msra.mxu1 %v17583_v3  ;;  %v12746_v61 = vmul.f32 %v21103_v11, %v21196_v40  ;;  %v17586_v43 = vld [vmem:[#allocation5 + $0xd8] sm:$0xff]  }
 0x5bb   :  { %v13694_v34 = vrot.slane %v13460_v0, %v18932_v55  ;;  %v13698_v49 = vrot.slane %v13460_v0, %v18935_v62  ;;  %v13710_v32 = vrot.slane %v13462_v25, %v18932_v55  ;;  %v13714_v12 = vrot.slane %v13462_v25, %v18935_v62  ;;  %14459 = vmatpush1.bf16.msra.mxu0 %v17584_v60 }
 0x5bc   :  { %v14151_v57 = vpack.c.bf16 %v13702_v53, %v13702_v53  ;;  %v14152_v58 = vpack.c.bf16 %v13706_v22, %v13706_v22  ;;  %v21452_v54 = vunpack.c.l.b16 %v14147_v39  ;;  %v21454_v0 = vunpack.c.l.b16 %v14148_v35  ;;  %14648 = vmatprep.subr.bf16.mxu1 %v22575_v16  ;;  %14460 = vmatprep.subr.bf16.mxu0 %v22575_v16 }
 0x5bd   :  { %v14149_v13 = vpack.c.bf16 %v13694_v34, %v13694_v34  ;;  %v14150_v48 = vpack.c.bf16 %v13698_v49, %v13698_v49  ;;  %v14153_v31 = vpack.c.bf16 %v13710_v32, %v13710_v32  ;;  %v14154_v26 = vpack.c.bf16 %v13714_v12, %v13714_v12 }
 0x5be   :  { %22634 = vst [vmem:[#allocation48_spill] sm:$0xff] %v21452_v54  ;;  %v12825_v25 = vadd.f32 %v21112_v51, %v12747_v4  ;;  %v21463_v34 = vunpack.c.l.b16 %v14151_v57  ;;  %v21470_v32 = vunpack.c.l.b16 %v14152_v58  ;;  %v12879_v40 = vmax.f32 %v21438_v56, 0.0  ;;  %14649 = vmatpush1.bf16.msra.mxu1 %v17585_v18  ;;  %v17587_v57 = vld [vmem:[#allocation5 + $0x68] sm:$0xff]  }
 0x5bf   :  { %v21466_v49 = vunpack.c.l.b16 %v14149_v13  ;;  %v21468_v4 = vunpack.c.l.b16 %v14150_v48  ;;  %v21475_v39 = vunpack.c.l.b16 %v14153_v31  ;;  %v21477_v35 = vunpack.c.l.b16 %v14154_v26  ;;  %14461 = vmatpush1.bf16.msra.mxu0 %v17586_v43  ;;  %14650 = vmatprep.subr.bf16.mxu1 %v22575_v16 }
 0x5c0   :  { %22635 = vst [vmem:[#allocation49_spill] sm:$0xff] %v21463_v34  ;;  %22638 = vst [vmem:[#allocation52_spill] sm:$0xff] %v21470_v32  ;;  %v13057_v22 = vcombine.low %v21430_v5, %v12922_v37  ;;  %v13058_v13 = vcombine.high %v21430_v5, %v12922_v37  ;;  %v12881_v48 = vmax.f32 %v12825_v25, 0.0  ;;  %v12824_v58 = vadd.f32 %v21115_v41, %v12746_v61 }
 0x5c1   :  { %22636 = vst [vmem:[#allocation50_spill] sm:$0xff] %v21466_v49  ;;  %22637 = vst [vmem:[#allocation51_spill] sm:$0xff] %v21468_v4  ;;  %v12748_v31 = vmul.f32 %v21106_v28, %v21198_v14  ;;  %v12749_v26 = vmul.f32 %v21097_v33, %v21206_v23  ;;  %v12751_v18 = vmul.f32 %v21100_v24, %v21208_v8  ;;  %14843 = vmatprep.subr.bf16.mxu0 %v22575_v16 }
 0x5c2   :  { %22639 = vst [vmem:[#allocation53_spill] sm:$0xff] %v21475_v39  ;;  %22640 = vst [vmem:[#allocation54_spill] sm:$0xff] %v21477_v35  ;;  %v13065_v5 = vrot.slane %v13057_v22, %v17901_v27  ;;  %v13072_v37 = vrot.slane %v13058_v13, %v17901_v27  ;;  %v21493_v25 = vmax.f32 %v12879_v40, %v12881_v48  ;;  %v12880_v43 = vmax.f32 %v12824_v58, 0.0 }
 0x5c3   :  { %v12750_v61 = vmul.f32 %v21103_v11, %v21215_v63  ;;  %v12826_v14 = vadd.f32 %v21118_v42, %v12748_v31  ;;  %v12827_v3 = vadd.f32 %v21109_v2, %v12749_v26  ;;  %v12829_v23 = vadd.f32 %v21112_v51, %v12751_v18  ;;  %14651 = vmatpush1.bf16.msra.mxu1 %v17587_v57 }
 0x5c4   :  { %v13073_v8 = vcombine.high %v13065_v5, %v13065_v5  ;;  %v13074_v56 = vcombine.high %v13072_v37, %v13072_v37  ;;  %v16638_v60 = vrot.slane %v13065_v5, 9  ;;  %v16640_v12 = vrot.slane %v13072_v37, 9  ;;  %15063 = vmatprep.subr.bf16.mxu1 %v22575_v16 }
 0x5c5   :  { %v12882_v40 = vmax.f32 %v12826_v14, 0.0  ;;  %v12883_v13 = vmax.f32 %v12827_v3, 0.0  ;;  %v12885_v48 = vmax.f32 %v12829_v23, 0.0  ;;  %v12828_v57 = vadd.f32 %v21115_v41, %v12750_v61 }
 0x5c6   :  { %v16639_v63 = vrot.slane %v13073_v8, 9  ;;  %v16641_v58 = vrot.slane %v13074_v56, 9  ;;  %v13463_v53 = vmax.f32 %v13065_v5, %v16638_v60  ;;  %v13465_v31 = vmax.f32 %v13072_v37, %v16640_v12 }
 0x5c7   :  { %v12924_v45 = vmax.f32 %v12880_v43, %v12882_v40  ;;  %v21503_v18 = vmax.f32 %v12883_v13, %v12885_v48 }
 0x5c8   :  { %v13464_v50 = vmax.f32 %v13073_v8, %v16639_v63  ;;  %v13466_v30 = vmax.f32 %v13074_v56, %v16641_v58  ;;  %v13718_v34 = vrot.slane %v13463_v53, %v18932_v55  ;;  %v13722_v22 = vrot.slane %v13463_v53, %v18935_v62 }
 0x5c9   :  { %v13734_v3 = vrot.slane %v13465_v31, %v18932_v55  ;;  %v13738_v14 = vrot.slane %v13465_v31, %v18935_v62  ;;  %v13075_v60 = vcombine.low %v21493_v25, %v12924_v45  ;;  %v13076_v12 = vcombine.high %v21493_v25, %v12924_v45 }
 0x5ca   :  { %v13726_v5 = vrot.slane %v13464_v50, %v18932_v55  ;;  %v13730_v37 = vrot.slane %v13464_v50, %v18935_v62  ;;  %v13742_v61 = vrot.slane %v13466_v30, %v18932_v55  ;;  %v13746_v56 = vrot.slane %v13466_v30, %v18935_v62 }
 0x5cb   :  { %v14155_v43 = vpack.c.bf16 %v13718_v34, %v13718_v34  ;;  %v14156_v23 = vpack.c.bf16 %v13722_v22, %v13722_v22  ;;  %v14159_v8 = vpack.c.bf16 %v13734_v3, %v13734_v3  ;;  %v14160_v53 = vpack.c.bf16 %v13738_v14, %v13738_v14 }
 0x5cc   :  { %v14157_v40 = vpack.c.bf16 %v13726_v5, %v13726_v5  ;;  %v14158_v13 = vpack.c.bf16 %v13730_v37, %v13730_v37  ;;  %v14161_v48 = vpack.c.bf16 %v13742_v61, %v13742_v61  ;;  %v14162_v63 = vpack.c.bf16 %v13746_v56, %v13746_v56 }
 0x5cd   :  { %v21516_v58 = vunpack.c.l.b16 %v14159_v8  ;;  %v21518_v31 = vunpack.c.l.b16 %v14160_v53  ;;  %v21520_v45 = vunpack.c.l.b16 %v14155_v43  ;;  %v12752_v50 = vmul.f32 %v21106_v28, %v21217_v10 }
 0x5ce   :  { %v21526_v34 = vunpack.c.l.b16 %v14156_v23  ;;  %v12753_v22 = vmul.f32 %v21097_v33, %v21246_v44  ;;  %v21531_v14 = vunpack.c.l.b16 %v14157_v40  ;;  %v21533_v5 = vunpack.c.l.b16 %v14158_v13 }
 0x5cf   :  { %22641 = vst [vmem:[#allocation55_spill] sm:$0xff] %v21520_v45  ;;  %v12884_v37 = vmax.f32 %v12828_v57, 0.0  ;;  %v21537_v56 = vunpack.c.l.b16 %v14161_v48  ;;  %v21539_v43 = vunpack.c.l.b16 %v14162_v63  ;;  %v13083_v8 = vrot.slane %v13075_v60, %v17901_v27 }
 0x5d0   :  { %22642 = vst [vmem:[#allocation56_spill] sm:$0xff] %v21526_v34  ;;  %v13090_v44 = vrot.slane %v13076_v12, %v17901_v27  ;;  %v12830_v53 = vadd.f32 %v21118_v42, %v12752_v50  ;;  %v12831_v57 = vadd.f32 %v21109_v2, %v12753_v22  ;;  %v12755_v13 = vmul.f32 %v21100_v24, %v21248_v38 }
 0x5d1   :  { %22643 = vst [vmem:[#allocation57_spill] sm:$0xff] %v21537_v56  ;;  %v12754_v48 = vmul.f32 %v21103_v11, %v21252_v7  ;;  %v13091_v63 = vcombine.high %v13083_v8, %v13083_v8  ;;  %v16642_v3 = vrot.slane %v13083_v8, 9  ;;  %v12756_v50 = vmul.f32 %v21106_v28, %v21254_v52 }
 0x5d2   :  { %v13092_v30 = vcombine.high %v13090_v44, %v13090_v44  ;;  %v16644_v23 = vrot.slane %v13090_v44, 9  ;;  %v12886_v26 = vmax.f32 %v12830_v53, 0.0  ;;  %v12887_v10 = vmax.f32 %v12831_v57, 0.0 }
 0x5d3   :  { %v16643_v40 = vrot.slane %v13091_v63, 9  ;;  %v13467_v25 = vmax.f32 %v13083_v8, %v16642_v3  ;;  %v12833_v7 = vadd.f32 %v21112_v51, %v12755_v13  ;;  %v12832_v45 = vadd.f32 %v21115_v41, %v12754_v48 }
 0x5d4   :  { %v16645_v22 = vrot.slane %v13092_v30, 9  ;;  %v13469_v61 = vmax.f32 %v13090_v44, %v16644_v23  ;;  %v12926_v38 = vmax.f32 %v12884_v37, %v12886_v26 }
 0x5d5   :  { %v13468_v39 = vmax.f32 %v13091_v63, %v16643_v40  ;;  %v13750_v60 = vrot.slane %v13467_v25, %v18932_v55  ;;  %v13754_v12 = vrot.slane %v13467_v25, %v18935_v62 }
 0x5d6   :  { %v13470_v34 = vmax.f32 %v13092_v30, %v16645_v22  ;;  %v13766_v53 = vrot.slane %v13469_v61, %v18932_v55  ;;  %v13770_v52 = vrot.slane %v13469_v61, %v18935_v62  ;;  %v13093_v1 = vcombine.low %v21503_v18, %v12926_v38 }
 0x5d7   :  { %v13094_v3 = vcombine.high %v21503_v18, %v12926_v38  ;;  %v13758_v26 = vrot.slane %v13468_v39, %v18932_v55  ;;  %v13762_v37 = vrot.slane %v13468_v39, %v18935_v62  ;;  %v14163_v8 = vpack.c.bf16 %v13750_v60, %v13750_v60 }
 0x5d8   :  { %v13774_v23 = vrot.slane %v13470_v34, %v18932_v55  ;;  %v13778_v30 = vrot.slane %v13470_v34, %v18935_v62  ;;  %v14164_v44 = vpack.c.bf16 %v13754_v12, %v13754_v12  ;;  %v14167_v40 = vpack.c.bf16 %v13766_v53, %v13766_v53 }
 0x5d9   :  { %v14168_v25 = vpack.c.bf16 %v13770_v52, %v13770_v52  ;;  %v14165_v57 = vpack.c.bf16 %v13758_v26, %v13758_v26  ;;  %v14166_v13 = vpack.c.bf16 %v13762_v37, %v13762_v37  ;;  %v21567_v63 = vunpack.c.l.b16 %v14163_v8 }
 0x5da   :  { %v14169_v48 = vpack.c.bf16 %v13774_v23, %v13774_v23  ;;  %v14170_v61 = vpack.c.bf16 %v13778_v30, %v13778_v30  ;;  %v21569_v22 = vunpack.c.l.b16 %v14164_v44  ;;  %v12889_v18 = vmax.f32 %v12833_v7, 0.0 }
 0x5db   :  { %22644 = vst [vmem:[#allocation58_spill] sm:$0xff] %v21567_v63  ;;  %v12834_v38 = vadd.f32 %v21118_v42, %v12756_v50  ;;  %v21573_v35 = vunpack.c.l.b16 %v14165_v57  ;;  %v21575_v34 = vunpack.c.l.b16 %v14167_v40  ;;  %v21577_v60 = vunpack.c.l.b16 %v14168_v25 }
 0x5dc   :  { %22645 = vst [vmem:[#allocation59_spill] sm:$0xff] %v21569_v22  ;;  %v21580_v53 = vunpack.c.l.b16 %v14166_v13  ;;  %v12888_v52 = vmax.f32 %v12832_v45, 0.0  ;;  %v12757_v26 = vmul.f32 %v21097_v33, %v21262_v20  ;;  %v21586_v37 = vunpack.c.l.b16 %v14169_v48 }
 0x5dd   :  { %22646 = vst [vmem:[#allocation60_spill] sm:$0xff] %v21573_v35  ;;  %22647 = vst [vmem:[#allocation61_spill] sm:$0xff] %v21575_v34  ;;  %v21588_v23 = vunpack.c.l.b16 %v14170_v61  ;;  %v13101_v30 = vrot.slane %v13093_v1, %v17901_v27  ;;  %v13108_v8 = vrot.slane %v13094_v3, %v17901_v27  ;;  %v12927_v44 = vmax.f32 %v12887_v10, %v12889_v18 }
 0x5de   :  { %22648 = vst [vmem:[#allocation62_spill] sm:$0xff] %v21577_v60  ;;  %22649 = vst [vmem:[#allocation63_spill] sm:$0xff] %v21580_v53  ;;  %v12890_v40 = vmax.f32 %v12834_v38, 0.0  ;;  %v12759_v57 = vmul.f32 %v21100_v24, %v21264_v29  ;;  %v12758_v10 = vmul.f32 %v21103_v11, %v21268_v17  ;;  %v12835_v29 = vadd.f32 %v21109_v2, %v12757_v26 }
 0x5df   :  { %22650 = vst [vmem:[#allocation64_spill] sm:$0xff] %v21586_v37  ;;  %22651 = vst [vmem:[#allocation65_spill] sm:$0xff] %v21588_v23  ;;  %v13109_v13 = vcombine.high %v13101_v30, %v13101_v30  ;;  %v13110_v48 = vcombine.high %v13108_v8, %v13108_v8  ;;  %v16646_v7 = vrot.slane %v13101_v30, 9  ;;  %v16648_v61 = vrot.slane %v13108_v8, 9 }
 0x5e0   :  { %v12928_v3 = vmax.f32 %v12888_v52, %v12890_v40  ;;  %v12837_v12 = vadd.f32 %v21112_v51, %v12759_v57 }
 0x5e1   :  { %v16647_v18 = vrot.slane %v13109_v13, 9  ;;  %v16649_v38 = vrot.slane %v13110_v48, 9  ;;  %v13471_v45 = vmax.f32 %v13101_v30, %v16646_v7  ;;  %v13473_v25 = vmax.f32 %v13108_v8, %v16648_v61 }
 0x5e2   :  { %v13111_v20 = vcombine.low %v12927_v44, %v12928_v3  ;;  %v13112_v50 = vcombine.high %v12927_v44, %v12928_v3  ;;  %v12836_v7 = vadd.f32 %v21115_v41, %v12758_v10  ;;  %v12891_v10 = vmax.f32 %v12835_v29, 0.0 }
 0x5e3   :  { %v13472_v34 = vmax.f32 %v13109_v13, %v16647_v18  ;;  %v13474_v35 = vmax.f32 %v13110_v48, %v16649_v38  ;;  %v13782_v39 = vrot.slane %v13471_v45, %v18932_v55  ;;  %v13786_v1 = vrot.slane %v13471_v45, %v18935_v62 }
 0x5e4   :  { %v13798_v52 = vrot.slane %v13473_v25, %v18932_v55  ;;  %v13802_v17 = vrot.slane %v13473_v25, %v18935_v62  ;;  %v13119_v40 = vrot.slane %v13111_v20, %v17901_v27  ;;  %v13126_v25 = vrot.slane %v13112_v50, %v17901_v27 }
 0x5e5   :  { %v13790_v30 = vrot.slane %v13472_v34, %v18932_v55  ;;  %v13794_v26 = vrot.slane %v13472_v34, %v18935_v62  ;;  %v13806_v8 = vrot.slane %v13474_v35, %v18932_v55  ;;  %v13810_v44 = vrot.slane %v13474_v35, %v18935_v62 }
 0x5e6   :  { %v14171_v57 = vpack.c.bf16 %v13782_v39, %v13782_v39  ;;  %v14172_v13 = vpack.c.bf16 %v13786_v1, %v13786_v1  ;;  %v14175_v48 = vpack.c.bf16 %v13798_v52, %v13798_v52  ;;  %v14176_v45 = vpack.c.bf16 %v13802_v17, %v13802_v17 }
 0x5e7   :  { %v14173_v61 = vpack.c.bf16 %v13790_v30, %v13790_v30  ;;  %v14174_v3 = vpack.c.bf16 %v13794_v26, %v13794_v26  ;;  %v14177_v18 = vpack.c.bf16 %v13806_v8, %v13806_v8  ;;  %v12893_v38 = vmax.f32 %v12837_v12, 0.0 }
 0x5e8   :  { %v12760_v34 = vmul.f32 %v21106_v28, %v21270_v9  ;;  %v14178_v37 = vpack.c.bf16 %v13810_v44, %v13810_v44  ;;  %v21617_v60 = vunpack.c.l.b16 %v14171_v57  ;;  %v21619_v35 = vunpack.c.l.b16 %v14172_v13 }
 0x5e9   :  { %v12892_v39 = vmax.f32 %v12836_v7, 0.0  ;;  %v21621_v1 = vunpack.c.l.b16 %v14173_v61  ;;  %v21623_v52 = vunpack.c.l.b16 %v14174_v3  ;;  %v21625_v17 = vunpack.c.l.b16 %v14175_v48  ;;  %v22655_v3 = vld [vmem:[#allocation26_spill] sm:$0xff] }
 0x5ea   :  { %v21627_v50 = vunpack.c.l.b16 %v14176_v45  ;;  %v21629_v30 = vunpack.c.l.b16 %v14177_v18  ;;  %v13127_v12 = vcombine.high %v13119_v40, %v13119_v40  ;;  %v13128_v29 = vcombine.high %v13126_v25, %v13126_v25 }
 0x5eb   :  { %22652 = vst [vmem:[#allocation66_spill] sm:$0xff] %v21625_v17  ;;  %v16650_v26 = vrot.slane %v13119_v40, 9  ;;  %v16652_v9 = vrot.slane %v13126_v25, 9  ;;  %v12929_v8 = vmax.f32 %v12891_v10, %v12893_v38  ;;  %v12838_v44 = vadd.f32 %v21118_v42, %v12760_v34 }
 0x5ec   :  { %22653 = vst [vmem:[#allocation67_spill] sm:$0xff] %v21629_v30  ;;  %v12761_v7 = vmul.f32 %v21097_v33, %v21294_v36  ;;  %v21634_v57 = vunpack.c.l.b16 %v14178_v37  ;;  %v16651_v13 = vrot.slane %v13127_v12, 9  ;;  %v16653_v61 = vrot.slane %v13128_v29, 9 }
 0x5ed   :  { %v13475_v48 = vmax.f32 %v13119_v40, %v16650_v26  ;;  %v13477_v18 = vmax.f32 %v13126_v25, %v16652_v9  ;;  %v12894_v20 = vmax.f32 %v12838_v44, 0.0  ;;  %v22656_v40 = vld [vmem:[#allocation27_spill] sm:$0xff] }
 0x5ee   :  { %22654 = vst [vmem:[#allocation68_spill] sm:$0xff] %v21634_v57  ;;  %v13476_v23 = vmax.f32 %v13127_v12, %v16651_v13  ;;  %v13478_v21 = vmax.f32 %v13128_v29, %v16653_v61  ;;  %v12839_v63 = vadd.f32 %v21109_v2, %v12761_v7 }
 0x5ef   :  { %v13814_v10 = vrot.slane %v13475_v48, %v18932_v55  ;;  %v13818_v38 = vrot.slane %v13475_v48, %v18935_v62  ;;  %v13830_v34 = vrot.slane %v13477_v18, %v18932_v55  ;;  %v13834_v36 = vrot.slane %v13477_v18, %v18935_v62 }
 0x5f0   :  { %v12930_v37 = vmax.f32 %v12892_v39, %v12894_v20  ;;  %v13822_v26 = vrot.slane %v13476_v23, %v18932_v55  ;;  %v13826_v25 = vrot.slane %v13476_v23, %v18935_v62  ;;  %v13838_v12 = vrot.slane %v13478_v21, %v18932_v55 }
 0x5f1   :  { %v14179_v29 = vpack.c.bf16 %v13814_v10, %v13814_v10  ;;  %v14180_v9 = vpack.c.bf16 %v13818_v38, %v13818_v38  ;;  %v14183_v44 = vpack.c.bf16 %v13830_v34, %v13830_v34  ;;  %v14184_v13 = vpack.c.bf16 %v13834_v36, %v13834_v36 }
 0x5f2   :  { %v14181_v61 = vpack.c.bf16 %v13822_v26, %v13822_v26  ;;  %v14185_v48 = vpack.c.bf16 %v13838_v12, %v13838_v12  ;;  %v13129_v45 = vcombine.low %v12929_v8, %v12930_v37  ;;  %v12763_v20 = vmul.f32 %v21100_v24, %v22655_v3 }
 0x5f3   :  { %v12895_v18 = vmax.f32 %v12839_v63, 0.0  ;;  %v12762_v23 = vmul.f32 %v21103_v11, %v22656_v40  ;;  %v21654_v49 = vrot.slane %v13478_v21, %v18935_v62  ;;  %v14182_v10 = vpack.c.bf16 %v13826_v25, %v13826_v25 }
 0x5f4   :  { %v21656_v38 = vunpack.c.l.b16 %v14179_v29  ;;  %v13130_v34 = vcombine.high %v12929_v8, %v12930_v37  ;;  %v21658_v36 = vunpack.c.l.b16 %v14185_v48  ;;  %v21660_v26 = vunpack.c.l.b16 %v14180_v9  ;;  %v22662_v29 = vld [vmem:[#allocation28_spill] sm:$0xff]  ;;  %v22663_v37 = vld [vmem:[#allocation29_spill] sm:$0xff] }
 0x5f5   :  { %v21662_v3 = vunpack.c.l.b16 %v14183_v44  ;;  %v21664_v12 = vunpack.c.l.b16 %v14184_v13  ;;  %v21666_v7 = vunpack.c.l.b16 %v14181_v61  ;;  %v13137_v63 = vrot.slane %v13129_v45, %v17901_v27  ;;  %v22664_v44 = vld [vmem:[#allocation30_spill] sm:$0xff] }
 0x5f6   :  { %22657 = vst [vmem:[#allocation26_spill] sm:$0xff] %v21656_v38  ;;  %22658 = vst [vmem:[#allocation27_spill] sm:$0xff] %v21660_v26  ;;  %v13144_v40 = vrot.slane %v13130_v34, %v17901_v27  ;;  %v12841_v21 = vadd.f32 %v21112_v51, %v12763_v20  ;;  %v12840_v25 = vadd.f32 %v21115_v41, %v12762_v23 }
 0x5f7   :  { %22659 = vst [vmem:[#allocation69_spill] sm:$0xff] %v21662_v3  ;;  %22660 = vst [vmem:[#allocation70_spill] sm:$0xff] %v21664_v12  ;;  %v12764_v8 = vmul.f32 %v21106_v28, %v22662_v29  ;;  %v12765_v9 = vmul.f32 %v21097_v33, %v22663_v37  ;;  %v12767_v13 = vmul.f32 %v21100_v24, %v22664_v44  ;;  %v16654_v39 = vrot.slane %v13137_v63, 9 }
 0x5f8   :  { %22661 = vst [vmem:[#allocation71_spill] sm:$0xff] %v21666_v7  ;;  %v13145_v48 = vcombine.high %v13137_v63, %v13137_v63  ;;  %v13146_v61 = vcombine.high %v13144_v40, %v13144_v40  ;;  %v16656_v3 = vrot.slane %v13144_v40, 9  ;;  %v12897_v45 = vmax.f32 %v12841_v21, 0.0 }
 0x5f9   :  { %v12896_v7 = vmax.f32 %v12840_v25, 0.0  ;;  %v12842_v34 = vadd.f32 %v21118_v42, %v12764_v8  ;;  %v12843_v20 = vadd.f32 %v21109_v2, %v12765_v9  ;;  %v13479_v53 = vmax.f32 %v13137_v63, %v16654_v39  ;;  %v22669_v63 = vld [vmem:[#allocation32_spill] sm:$0xff] }
 0x5fa   :  { %v16655_v23 = vrot.slane %v13145_v48, 9  ;;  %v16657_v30 = vrot.slane %v13146_v61, 9  ;;  %v13481_v29 = vmax.f32 %v13144_v40, %v16656_v3  ;;  %v12931_v32 = vmax.f32 %v12895_v18, %v12897_v45 }
 0x5fb   :  { %v12898_v19 = vmax.f32 %v12842_v34, 0.0  ;;  %v12899_v37 = vmax.f32 %v12843_v20, 0.0  ;;  %v12845_v17 = vadd.f32 %v21112_v51, %v12767_v13  ;;  %v13846_v54 = vrot.slane %v13479_v53, %v18932_v55 }
 0x5fc   :  { %v13480_v44 = vmax.f32 %v13145_v48, %v16655_v23  ;;  %v13482_v56 = vmax.f32 %v13146_v61, %v16657_v30  ;;  %v13850_v21 = vrot.slane %v13479_v53, %v18935_v62  ;;  %v13862_v25 = vrot.slane %v13481_v29, %v18932_v55 }
 0x5fd   :  { %v13866_v8 = vrot.slane %v13481_v29, %v18935_v62  ;;  %v12932_v9 = vmax.f32 %v12896_v7, %v12898_v19  ;;  %v12901_v57 = vmax.f32 %v12845_v17, 0.0  ;;  %v21687_v3 = vunpack.c.l.b16 %v14182_v10  ;;  %v22667_v7 = vld [vmem:[#allocation31_spill] sm:$0xff] }
 0x5fe   :  { %v21692_v40 = vrot.slane %v13480_v44, %v18932_v55  ;;  %v21695_v53 = vrot.slane %v13480_v44, %v18935_v62  ;;  %v14187_v13 = vpack.c.bf16 %v13846_v54, %v13846_v54  ;;  %v12766_v61 = vmul.f32 %v21103_v11, %v22667_v7 }
 0x5ff   :  { %22665 = vst [vmem:[#allocation28_spill] sm:$0xff] %v21687_v3  ;;  %v13147_v48 = vcombine.low %v12931_v32, %v12932_v9  ;;  %v13148_v19 = vcombine.high %v12931_v32, %v12932_v9  ;;  %v12933_v17 = vmax.f32 %v12899_v37, %v12901_v57  ;;  %v21700_v10 = vrot.slane %v13482_v56, %v18932_v55  ;;  %v22670_v57 = vld [vmem:[#allocation11_spill] sm:$0xff]  ;;  %v22671_v9 = vld [vmem:[#allocation33_spill] sm:$0xff] }
 0x600   :  { %22666 = vst [vmem:[#allocation29_spill] sm:$0xff] %v21692_v40  ;;  %v14188_v45 = vpack.c.bf16 %v13850_v21, %v13850_v21  ;;  %v14191_v34 = vpack.c.bf16 %v13862_v25, %v13862_v25  ;;  %v14192_v20 = vpack.c.bf16 %v13866_v8, %v13866_v8  ;;  %v12844_v44 = vadd.f32 %v21115_v41, %v12766_v61  ;;  %v22672_v21 = vld [vmem:[#allocation36_spill] sm:$0xff] }
 0x601   :  { %22668 = vst [vmem:[#allocation30_spill] sm:$0xff] %v21700_v10  ;;  %v13155_v23 = vrot.slane %v13147_v48, %v17901_v27  ;;  %v13162_v29 = vrot.slane %v13148_v19, %v17901_v27  ;;  %v12768_v54 = vmul.f32 %v21106_v28, %v22669_v63  ;;  %v21707_v32 = vunpack.c.l.b16 %v14187_v13 }
 0x602   :  { %v12769_v37 = vmul.f32 %v21097_v33, %v22670_v57  ;;  %v12771_v7 = vmul.f32 %v21100_v24, %v22671_v9  ;;  %v12770_v25 = vmul.f32 %v21103_v11, %v22672_v21  ;;  %v12900_v18 = vmax.f32 %v12844_v44, 0.0 }
 0x603   :  { %v13163_v8 = vcombine.high %v13155_v23, %v13155_v23  ;;  %v13164_v48 = vcombine.high %v13162_v29, %v13162_v29  ;;  %v16658_v39 = vrot.slane %v13155_v23, 9  ;;  %v16660_v19 = vrot.slane %v13162_v29, 9 }
 0x604   :  { %v12846_v61 = vadd.f32 %v21118_v42, %v12768_v54  ;;  %v12847_v63 = vadd.f32 %v21109_v2, %v12769_v37  ;;  %v12849_v13 = vadd.f32 %v21112_v51, %v12771_v7  ;;  %v21719_v9 = vrot.slane %v13482_v56, %v18935_v62 }
 0x605   :  { %v16659_v30 = vrot.slane %v13163_v8, 9  ;;  %v16661_v12 = vrot.slane %v13164_v48, 9  ;;  %v13483_v57 = vmax.f32 %v13155_v23, %v16658_v39  ;;  %v13485_v38 = vmax.f32 %v13162_v29, %v16660_v19 }
 0x606   :  { %v12902_v10 = vmax.f32 %v12846_v61, 0.0  ;;  %v12903_v21 = vmax.f32 %v12847_v63, 0.0  ;;  %v12905_v3 = vmax.f32 %v12849_v13, 0.0  ;;  %v21721_v26 = vunpack.c.l.b16 %v14188_v45 }
 0x607   :  { %v21723_v40 = vunpack.c.l.b16 %v14191_v34  ;;  %v13484_v44 = vmax.f32 %v13163_v8, %v16659_v30  ;;  %v13486_v54 = vmax.f32 %v13164_v48, %v16661_v12  ;;  %v13882_v37 = vrot.slane %v13483_v57, %v18935_v62 }
 0x608   :  { %v13894_v7 = vrot.slane %v13485_v38, %v18932_v55  ;;  %v12934_v22 = vmax.f32 %v12900_v18, %v12902_v10  ;;  %v12935_v4 = vmax.f32 %v12903_v21, %v12905_v3  ;;  %v21728_v23 = vunpack.c.l.b16 %v14192_v20  ;;  %v22677_v10 = vld [vmem:[#allocation37_spill] sm:$0xff] }
 0x609   :  { %22673 = vst [vmem:[#allocation31_spill] sm:$0xff] %v21723_v40  ;;  %v13902_v56 = vrot.slane %v13486_v54, %v18932_v55  ;;  %v12848_v29 = vadd.f32 %v21115_v41, %v12770_v25  ;;  %v21733_v45 = vrot.slane %v13483_v57, %v18932_v55  ;;  %v21736_v8 = vrot.slane %v13484_v44, %v18932_v55  ;;  %v22679_v57 = vld [vmem:[#allocation14_spill] sm:$0xff] }
 0x60a   :  { %v14199_v34 = vpack.c.bf16 %v13894_v7, %v13894_v7  ;;  %v13165_v30 = vcombine.low %v12933_v17, %v12934_v22  ;;  %v13166_v12 = vcombine.high %v12933_v17, %v12934_v22  ;;  %v21739_v18 = vrot.slane %v13484_v44, %v18935_v62  ;;  %v22678_v17 = vld [vmem:[#allocation13_spill] sm:$0xff] }
 0x60b   :  { %22674 = vst [vmem:[#allocation32_spill] sm:$0xff] %v21733_v45  ;;  %22675 = vst [vmem:[#allocation11_spill] sm:$0xff] %v21736_v8  ;;  %v21742_v3 = vrot.slane %v13485_v38, %v18935_v62  ;;  %v12772_v20 = vmul.f32 %v21106_v28, %v22677_v10  ;;  %v14196_v48 = vpack.c.bf16 %v13882_v37, %v13882_v37  ;;  %v12904_v63 = vmax.f32 %v12848_v29, 0.0 }
 0x60c   :  { %22676 = vst [vmem:[#allocation33_spill] sm:$0xff] %v21739_v18  ;;  %v14201_v25 = vpack.c.bf16 %v13902_v56, %v13902_v56  ;;  %v13173_v19 = vrot.slane %v13165_v30, %v17901_v27  ;;  %v13180_v61 = vrot.slane %v13166_v12, %v17901_v27  ;;  %v12773_v13 = vmul.f32 %v21097_v33, %v22678_v17  ;;  %v22680_v33 = vld [vmem:[#allocation42_spill] sm:$0xff] }
 0x60d   :  { %v12850_v22 = vadd.f32 %v21118_v42, %v12772_v20  ;;  %v12775_v21 = vmul.f32 %v21100_v24, %v22679_v57  ;;  %v21753_v38 = vunpack.c.l.b16 %v14199_v34  ;;  %v12774_v17 = vmul.f32 %v21103_v11, %v22680_v33 }
 0x60e   :  { %v13181_v44 = vcombine.high %v13173_v19, %v13173_v19  ;;  %v13182_v7 = vcombine.high %v13180_v61, %v13180_v61  ;;  %v16662_v10 = vrot.slane %v13173_v19, 9  ;;  %v16664_v37 = vrot.slane %v13180_v61, 9 }
 0x60f   :  { %v12906_v56 = vmax.f32 %v12850_v22, 0.0  ;;  %v12851_v30 = vadd.f32 %v21109_v2, %v12773_v13  ;;  %v12853_v12 = vadd.f32 %v21112_v51, %v12775_v21  ;;  %v21761_v24 = vunpack.c.l.b16 %v14196_v48  ;;  %v22681_v48 = vld [vmem:[#allocation43_spill] sm:$0xff] }
 0x610   :  { %v16663_v20 = vrot.slane %v13181_v44, 9  ;;  %v16665_v39 = vrot.slane %v13182_v7, 9  ;;  %v21763_v18 = vunpack.c.l.b16 %v14201_v25  ;;  %v14516_v22 = vrot.slane %v21753_v38, 2  ;;  %v17592_v38 = vld [vmem:[#allocation5 + $0xf0] sm:$0xff]  }
 0x611   :  { %v12936_v34 = vmax.f32 %v12904_v63, %v12906_v56  ;;  %v12907_v57 = vmax.f32 %v12851_v30, 0.0  ;;  %v12909_v8 = vmax.f32 %v12853_v12, 0.0  ;;  %v13487_v2 = vmax.f32 %v13173_v19, %v16662_v10  ;;  %v22682_v19 = vld [vmem:[#allocation18_spill] sm:$0xff] }
 0x612   :  { %v13489_v13 = vmax.f32 %v13180_v61, %v16664_v37  ;;  %v21766_v51 = vmax.f32 %v13181_v44, %v16663_v20  ;;  %v21768_v21 = vmax.f32 %v13182_v7, %v16665_v39  ;;  %v12852_v11 = vadd.f32 %v21115_v41, %v12774_v17  ;;  %v22683_v61 = vld [vmem:[#allocation9_spill] sm:$0xff] }
 0x613   :  { %v13183_v29 = vcombine.low %v12935_v4, %v12936_v34  ;;  %v13184_v45 = vcombine.high %v12935_v4, %v12936_v34  ;;  %v12937_v40 = vmax.f32 %v12907_v57, %v12909_v8  ;;  %v12776_v63 = vmul.f32 %v21106_v28, %v22681_v48 }
 0x614   :  { %v13906_v56 = vrot.slane %v13486_v54, %v18935_v62  ;;  %v22684_v44 = vrot.slane %v22683_v61, 7  ;;  %v14336_v7 = vrot.slane %v21623_v52, 4  ;;  %v12908_v4 = vmax.f32 %v12852_v11, 0.0 }
 0x615   :  { %v13191_v25 = vrot.slane %v13183_v29, %v17901_v27  ;;  %v13198_v30 = vrot.slane %v13184_v45, %v17901_v27  ;;  %v12854_v8 = vadd.f32 %v21118_v42, %v12776_v63  ;;  %v22686_v10 = vrot.slane %v21409_v59, 6 }
 0x616   :  { %v14331_v39 = vsel %vm22685_vm4, %v22684_v44, %v22682_v19  ;;  %v14202_v41 = vpack.c.bf16 %v13906_v56, %v13906_v56  ;;  %v21786_v54 = vrot.slane %v13487_v2, %v18932_v55  ;;  %v21789_v29 = vrot.slane %v13487_v2, %v18935_v62  ;;  %v22690_v56 = vld [vmem:[#allocation40_spill] sm:$0xff]  ;;  %vm22715_vm4 = vmmov %vm22687_vm1 }
 0x617   :  { %v14333_v28 = vsel %vm22687_vm1, %v22686_v10, %v14331_v39  ;;  %v13199_v37 = vcombine.high %v13191_v25, %v13191_v25  ;;  %v13200_v45 = vcombine.high %v13198_v30, %v13198_v30  ;;  %v16668_v12 = vrot.slane %v13198_v30, 9  ;;  %vm22716_vm1 = vmmov %vm22698_vm2 }
 0x618   :  { %v12910_v20 = vmax.f32 %v12854_v8, 0.0  ;;  %v14313_v33 = vunpack.c.l.b16 %v14202_v41  ;;  %v22688_v52 = vrot.slane %v21518_v31, 5  ;;  %v16666_v17 = vrot.slane %v13191_v25, 9 }
 0x619   :  { %v16667_v34 = vrot.slane %v13199_v37, 9  ;;  %v13493_v59 = vmax.f32 %v13198_v30, %v16668_v12  ;;  %v14338_v57 = vrot.slane %v21721_v26, 3  ;;  %v21796_v11 = vrot.slane %v13489_v13, %v18932_v55 }
 0x61a   :  { %v14335_v42 = vsel %vm22689_vm5, %v22688_v52, %v14333_v28  ;;  %v12938_v48 = vmax.f32 %v12908_v4, %v12910_v20  ;;  %v22691_v2 = vrot.slane %v21403_v6, 6  ;;  %v21804_v31 = vrot.slane %v13489_v13, %v18935_v62  ;;  %vm22718_vm5 = vmmov %vm22708_vm3 }
 0x61b   :  { %v14337_v63 = vsel %vm2754_vm12, %v14336_v7, %v14335_v42  ;;  %v16669_v61 = vrot.slane %v13200_v45, 9  ;;  %v13492_v44 = vmax.f32 %v13199_v37, %v16667_v34  ;;  %v14340_v39 = vrot.slane %v14313_v33, 2 }
 0x61c   :  { %v14319_v19 = vsel %vm22692_vm6, %v22691_v2, %v22690_v56  ;;  %v13958_v30 = vrot.slane %v13493_v59, %v18932_v55  ;;  %v13201_v26 = vcombine.low %v12937_v40, %v12938_v48  ;;  %v13202_v8 = vcombine.high %v12937_v40, %v12938_v48  ;;  %vm22719_vm6 = vmmov %vm22700_vm9 }
 0x61d   :  { %v13962_v41 = vrot.slane %v13493_v59, %v18935_v62  ;;  %v21808_v4 = vmax.f32 %v13191_v25, %v16666_v17  ;;  %v14339_v7 = vsel %vm7305_vm11, %v14338_v57, %v14337_v63  ;;  %v22693_v6 = vrot.slane %v21516_v58, 5 }
 0x61e   :  { %v14326_v13 = vrot.slane %v21763_v18, 2  ;;  %v14215_v28 = vpack.c.bf16 %v13958_v30, %v13958_v30  ;;  %v13209_v37 = vrot.slane %v13201_v26, %v17901_v27  ;;  %v21817_v12 = vrot.slane %v13202_v8, %v17901_v27 }
 0x61f   :  { %v14321_v10 = vsel %vm22694_vm7, %v22693_v6, %v14319_v19  ;;  %v14216_v20 = vpack.c.bf16 %v13962_v41, %v13962_v41  ;;  %v14341_v40 = vsel %vm22695_vm8, %v14340_v39, %v14339_v7  ;;  %v22696_v25 = vrot.slane %v21621_v1, 4  ;;  %v22701_v7 = vld [vmem:[#allocation41_spill] sm:$0xff]  ;;  %vm22722_vm7 = vmmov %vm22708_vm3 }
 0x620   :  { %v13954_v52 = vrot.slane %v13492_v44, %v18935_v62  ;;  %v14186_v58 = vpack.c.bf16 %v21654_v49, %v21654_v49  ;;  %v14314_v42 = vunpack.c.l.b16 %v14215_v28  ;;  %v13217_v18 = vcombine.high %v13209_v37, %v13209_v37  ;;  %v22702_v6 = vld [vmem:[#allocation25_spill] sm:$0xff]  ;;  %vm22724_vm8 = vmmov %vm22709_vm0 }
 0x621   :  { %v14323_v33 = vsel %vm2754_vm12, %v22696_v25, %v14321_v10  ;;  %v21828_v17 = vcombine.high %v21817_v12, %v21817_v12  ;;  %v16670_v27 = vrot.slane %v13209_v37, 9  ;;  %v21830_v34 = vmax.f32 %v13200_v45, %v16669_v61  ;;  %v17588_v25 = vld [vmem:[#allocation5 + $0xe0] sm:$0xff]  }
 0x622   :  { %v14315_v59 = vunpack.c.l.b16 %v14216_v20  ;;  %v22697_v57 = vrot.slane %v21707_v32, 3  ;;  %v14200_v48 = vpack.c.bf16 %v21742_v3, %v21742_v3  ;;  %v13950_v63 = vrot.slane %v13492_v44, %v18932_v55 }
 0x623   :  { %v16671_v49 = vrot.slane %v13217_v18, 9  ;;  %v16672_v56 = vrot.slane %v21817_v12, 9  ;;  %v16673_v19 = vrot.slane %v21828_v17, 9  ;;  %v14328_v45 = vrot.slane %v14314_v42, 1 }
 0x624   :  { %v14325_v1 = vsel %vm7305_vm11, %v22697_v57, %v14323_v33  ;;  %v14342_v39 = vrot.slane %v14315_v59, 1  ;;  %v14214_v61 = vpack.c.bf16 %v13954_v52, %v13954_v52  ;;  %v21841_v30 = vmax.f32 %v13209_v37, %v16670_v27 }
 0x625   :  { %v14327_v2 = vsel %vm22698_vm2, %v14326_v13, %v14325_v1  ;;  %v21843_v32 = vmax.f32 %v13217_v18, %v16671_v49  ;;  %v14501_v26 = vunpack.c.l.b16 %v14186_v58  ;;  %v14503_v8 = vunpack.c.l.b16 %v14200_v48  ;;  %vm22729_vm2 = vmmov %vm22713_vm14 }
 0x626   :  { %v14343_v3 = vsel %vm22699_vm10, %v14342_v39, %v14341_v40  ;;  %v14329_v44 = vsel %vm22700_vm9, %v14328_v45, %v14327_v2  ;;  %v14505_v41 = vunpack.c.l.b16 %v14214_v61  ;;  %v22703_v10 = vrot.slane %v22702_v6, 7  ;;  %vm22730_vm10 = vmmov %vm22716_vm1 }
 0x627   :  { %v14345_v28 = vpack.c.b16 %v14343_v3, %v14343_v3  ;;  %v14344_v20 = vpack.c.b16 %v14329_v44, %v14329_v44  ;;  %v22705_v37 = vrot.slane %v21393_v46, 6  ;;  %v14528_v52 = vrot.slane %v14501_v26, 3  ;;  %vm22731_vm9 = vmmov %vm22716_vm1 }
 0x628   :  { %v14521_v13 = vsel %vm22704_vm15, %v22703_v10, %v22701_v7  ;;  %v22707_v58 = vrot.slane %v21533_v5, 5  ;;  %v14530_v42 = vrot.slane %v14503_v8, 2  ;;  %v14532_v18 = vrot.slane %v14505_v41, 1  ;;  %v22711_v5 = vld [vmem:[#allocation17_spill] sm:$0xff]  ;;  %vm22734_vm15 = vmmov %vm22715_vm4 }
 0x629   :  { %v14523_v33 = vsel %vm22706_vm13, %v22705_v37, %v14521_v13  ;;  %v13970_v27 = vrot.slane %v21830_v34, %v18935_v62  ;;  %16688 = vmatprep.mubr.msk.bf16.mxu0 %vm22709_vm0, %v14345_v28  ;;  %v22710_v59 = vrot.slane %v21619_v35, 4  ;;  %v14190_v46 = vpack.c.bf16 %v21695_v53, %v21695_v53  ;;  %vm22735_vm13 = vmmov %vm22719_vm6 }
 0x62a   :  { %v14525_v40 = vsel %vm22708_vm3, %v22707_v58, %v14523_v33  ;;  %v14204_v1 = vpack.c.bf16 %v21789_v29, %v21789_v29  ;;  %v22712_v48 = vrot.slane %v21356_v15, 7  ;;  %14467 = vmatmul.mubr.bf16.vlgmr.msra.gmra.mrb[84].mxu0 %v14344_v20  ;;  %v22714_v45 = vrot.slane %v21454_v0, 6  ;;  %vm22736_vm3 = vmmov %vm22719_vm6 }
 0x62b   :  { %v14527_v57 = vsel %vm2754_vm12, %v22710_v59, %v14525_v40  ;;  %v14218_v39 = vpack.c.bf16 %v13970_v27, %v13970_v27  ;;  %v14213_v61 = vpack.c.bf16 %v13950_v63, %v13950_v63  ;;  %14844 = vmatpush1.bf16.msra.mxu0 %v17588_v25  ;;  %v14720_v26 = vunpack.c.l.b16 %v14190_v46  ;;  %v17590_v63 = vld [vmem:[#allocation5 + $0xe8] sm:$0xff]   ;;  %v22732_v46 = vld [vmem:[#allocation51_spill] sm:$0xff]  ;;  %vm22739_vm0 = vmmov %vm22718_vm5 }
 0x62c   :  { %v14740_v49 = vsel %vm22713_vm14, %v22712_v48, %v22711_v5  ;;  %v14529_v2 = vsel %vm7305_vm11, %v14528_v52, %v14527_v57  ;;  %v14722_v8 = vunpack.c.l.b16 %v14204_v1  ;;  %v22717_v29 = vrot.slane %v21539_v43, 5  ;;  %14845 = vmatprep.subr.bf16.mxu0 %v22575_v16  ;;  %vm22742_vm14 = vmmov %vm22724_vm8 }
 0x62d   :  { %v14742_v35 = vsel %vm22715_vm4, %v22714_v45, %v14740_v49  ;;  %v14531_v53 = vsel %vm22716_vm1, %v14530_v42, %v14529_v2  ;;  %v14724_v44 = vunpack.c.l.b16 %v14218_v39  ;;  %v22720_v41 = vrot.slane %v21627_v50, 4  ;;  %v22727_v42 = vld [vmem:[#allocation35_spill] sm:$0xff]  ;;  %v17589_v49 = vld [vmem:[#allocation5 + $0x150] sm:$0xff]   ;;  %vm22746_vm4 = vmmov %vm22729_vm2 }
 0x62e   :  { %v14744_v15 = vsel %vm22718_vm5, %v22717_v29, %v14742_v35  ;;  %v14533_v3 = vsel %vm22719_vm6, %v14532_v18, %v14531_v53  ;;  %v14504_v0 = vunpack.c.l.b16 %v14213_v61  ;;  %v14747_v10 = vrot.slane %v14720_v26, 3  ;;  %v22737_v39 = vld [vmem:[#allocation59_spill] sm:$0xff]  ;;  %v22740_v26 = vld [vmem:[#allocation68_spill] sm:$0xff]  ;;  %vm22749_vm5 = vmmov %vm22734_vm15 }
 0x62f   :  { %v14746_v7 = vsel %vm2754_vm12, %v22720_v41, %v14744_v15  ;;  %v14535_v6 = vpack.c.b16 %v14533_v3, %v14533_v3  ;;  %v14749_v13 = vrot.slane %v14722_v8, 2  ;;  %v22721_v28 = vrot.slane %v21531_v14, 5  ;;  %v22726_v14 = vld [vmem:[#allocation20_spill] sm:$0xff]  ;;  %14846 = vmatpush1.bf16.msra.mxu0 %v17590_v63  ;;  %vm22750_vm6 = vmmov %vm22736_vm3 }
 0x630   :  { %v14751_v20 = vrot.slane %v14724_v44, 1  ;;  %v22723_v25 = vrot.slane %v21617_v60, 4  ;;  %v14518_v50 = vrot.slane %v14504_v0, 1  ;;  %v13922_v33 = vrot.slane %v21766_v51, %v18935_v62  ;;  %14847 = vmatprep.subr.bf16.mxu0 %v22575_v16  ;;  %v22741_v44 = vld [vmem:[#allocation29_spill] sm:$0xff] }
 0x631   :  { %v14511_v43 = vsel %vm22722_vm7, %v22721_v28, %v21419_v47  ;;  %16703 = vmatprep.mubr.msk.bf16.mxu1 %vm22724_vm8, %v14535_v6  ;;  %v14748_v52 = vsel %vm7305_vm11, %v14747_v10, %v14746_v7  ;;  %v22725_v58 = vrot.slane %v21658_v36, 3  ;;  %v13978_v47 = vrot.slane %v21841_v30, %v18935_v62  ;;  %v22743_v6 = vld [vmem:[#allocation16_spill] sm:$0xff]  ;;  %v22744_v10 = vld [vmem:[#allocation38_spill] sm:$0xff]  ;;  %vm22753_vm7 = vmmov %vm22739_vm0 }
 0x632   :  { %v14513_v37 = vsel %vm2754_vm12, %v22723_v25, %v14511_v43  ;;  %v22728_v60 = vrot.slane %v22727_v42, 7  ;;  %v14750_v27 = vsel %vm22730_vm10, %v14749_v13, %v14748_v52  ;;  %v14206_v57 = vpack.c.bf16 %v13922_v33, %v13922_v33  ;;  %v17591_v43 = vld [vmem:[#allocation5 + $0x158] sm:$0xff]   ;;  %v22747_v33 = vld [vmem:[#allocation48_spill] sm:$0xff]  ;;  %v22751_v42 = vld [vmem:[#allocation57_spill] sm:$0xff] }
 0x633   :  { %v14515_v40 = vsel %vm7305_vm11, %v22725_v58, %v14513_v37  ;;  %v22733_v1 = vrot.slane %v22732_v46, 6  ;;  %v14752_v5 = vsel %vm22735_vm13, %v14751_v20, %v14750_v27  ;;  %v14220_v2 = vpack.c.bf16 %v13978_v47, %v13978_v47  ;;  %14848 = vmatpush1.bf16.msra.mxu0 %v17592_v38  ;;  %v17594_v20 = vld [vmem:[#allocation5 + $0xf8] sm:$0xff]   ;;  %vm22760_vm10 = vmmov %vm22746_vm4 }
 0x634   :  { %v14960_v18 = vsel %vm22729_vm2, %v22728_v60, %v22726_v14  ;;  %v14517_v59 = vsel %vm22731_vm9, %v14516_v22, %v14515_v40  ;;  %v22738_v45 = vrot.slane %v22737_v39, 5  ;;  %v14754_v22 = vpack.c.b16 %v14752_v5, %v14752_v5  ;;  %14849 = vmatprep.subr.bf16.mxu0 %v22575_v16  ;;  %vm22756_vm2 = vmmov %vm22716_vm1 }
 0x635   :  { %v14962_v36 = vsel %vm22734_vm15, %v22733_v1, %v14960_v18  ;;  %v14519_v48 = vsel %vm22736_vm3, %v14518_v50, %v14517_v59  ;;  %v14942_v53 = vunpack.c.l.b16 %v14206_v57  ;;  %v14965_v8 = vrot.slane %v22740_v26, 4  ;;  %v22754_v57 = vld [vmem:[#allocation66_spill] sm:$0xff]  ;;  %vm22761_vm9 = vmmov %vm22736_vm3 }
 0x636   :  { %v14964_v35 = vsel %vm22739_vm0, %v22738_v45, %v14962_v36  ;;  %v14534_v61 = vpack.c.b16 %v14519_v48, %v14519_v48  ;;  %v14944_v29 = vunpack.c.l.b16 %v14220_v2  ;;  %v14967_v15 = vrot.slane %v21728_v23, 3  ;;  %16718 = vmatprep.mubr.msk.bf16.mxu0 %vm22742_vm14, %v14754_v22  ;;  %v17593_v48 = vld [vmem:[#allocation5 + $0x160] sm:$0xff]   ;;  %vm22764_vm15 = vmmov %vm22749_vm5 }
 0x637   :  { %v13966_v3 = vrot.slane %v21830_v34, %v18932_v55  ;;  %v14189_v41 = vpack.c.bf16 %v22741_v44, %v22741_v44  ;;  %v14966_v7 = vsel %vm2754_vm12, %v14965_v8, %v14964_v35  ;;  %v14969_v0 = vrot.slane %v14942_v53, 2  ;;  %14850 = vmatpush1.bf16.msra.mxu0 %v17594_v20  ;;  %vm22767_vm13 = vmmov %vm22739_vm0 }
 0x638   :  { %14657 = vmatmul.mubr.bf16.vlgmr.msra.gmra.mrb[84].mxu1 %v14534_v61  ;;  %v14203_v63 = vpack.c.bf16 %v21786_v54, %v21786_v54  ;;  %v22745_v13 = vrot.slane %v22744_v10, 7  ;;  %v14968_v34 = vsel %vm7305_vm11, %v14967_v15, %v14966_v7  ;;  %v14971_v28 = vrot.slane %v14944_v29, 1  ;;  %v22757_v61 = vld [vmem:[#allocation22_spill] sm:$0xff]  ;;  %14851 = vmatprep.subr.bf16.mxu0 %v22575_v16  ;;  %vm22773_vm3 = vmmov %vm22746_vm4 }
 0x639   :  { %15064 = vmatpush1.bf16.msra.mxu1 %v17589_v49  ;;  %v14217_v25 = vpack.c.bf16 %v13966_v3, %v13966_v3  ;;  %v14719_v37 = vunpack.c.l.b16 %v14189_v41  ;;  %v14970_v50 = vsel %vm22716_vm1, %v14969_v0, %v14968_v34  ;;  %v22748_v52 = vrot.slane %v22747_v33, 6  ;;  %v17596_v49 = vld [vmem:[#allocation5 + $0x100] sm:$0xff]   ;;  %v22762_v3 = vld [vmem:[#allocation52_spill] sm:$0xff]  ;;  %vm22775_vm0 = vmmov %vm22716_vm1 }
 0x63a   :  { %v14726_v23 = vsel %vm22746_vm4, %v22745_v13, %v22743_v6  ;;  %15065 = vmatprep.subr.bf16.mxu1 %v22575_v16  ;;  %v14721_v54 = vunpack.c.l.b16 %v14203_v63  ;;  %v13986_v40 = vrot.slane %v21843_v32, %v18935_v62  ;;  %v14972_v47 = vsel %vm22750_vm6, %v14971_v28, %v14970_v50  ;;  %v22765_v0 = vld [vmem:[#allocation63_spill] sm:$0xff]  ;;  %v17595_v13 = vld [vmem:[#allocation5 + $0x168] sm:$0xff]   ;;  %vm22778_vm14 = vmmov %vm22749_vm5 }
 0x63b   :  { %v14728_v58 = vsel %vm22749_vm5, %v22748_v52, %v14726_v23  ;;  %v14723_v14 = vunpack.c.l.b16 %v14217_v25  ;;  %v22752_v60 = vrot.slane %v22751_v42, 5  ;;  %v14733_v27 = vrot.slane %v14719_v37, 3  ;;  %14852 = vmatpush1.bf16.msra.mxu0 %v17596_v49  ;;  %v17598_v23 = vld [vmem:[#allocation5 + $0x108] sm:$0xff]   ;;  %v22768_v34 = vld [vmem:[#allocation27_spill] sm:$0xff]  ;;  %vm22780_vm4 = vmmov %vm22750_vm6 }
 0x63c   :  { %v14974_v59 = vpack.c.b16 %v14972_v47, %v14972_v47  ;;  %v22755_v46 = vrot.slane %v22754_v57, 4  ;;  %v14735_v36 = vrot.slane %v14721_v54, 2  ;;  %v14194_v5 = vpack.c.bf16 %v21719_v9, %v21719_v9  ;;  %v22758_v9 = vld [vmem:[#allocation12_spill] sm:$0xff]  ;;  %14853 = vmatprep.subr.bf16.mxu0 %v22575_v16  ;;  %v22770_v50 = vld [vmem:[#allocation19_spill] sm:$0xff]  ;;  %vm22783_vm1 = vmmov %vm22753_vm7 }
 0x63d   :  { %v14730_v18 = vsel %vm22753_vm7, %v22752_v60, %v14728_v58  ;;  %15066 = vmatpush1.bf16.msra.mxu1 %v17591_v43  ;;  %v14737_v39 = vrot.slane %v14723_v14, 1  ;;  %v14208_v45 = vpack.c.bf16 %v21804_v31, %v21804_v31  ;;  %v14222_v35 = vpack.c.bf16 %v13986_v40, %v13986_v40  ;;  %v22774_v52 = vld [vmem:[#allocation67_spill] sm:$0xff]  ;;  %v22776_v14 = vld [vmem:[#allocation50_spill] sm:$0xff]  ;;  %v17597_v49 = vld [vmem:[#allocation5 + $0x170] sm:$0xff]  }
 0x63e   :  { %v14732_v1 = vsel %vm2754_vm12, %v22755_v46, %v14730_v18  ;;  %16733 = vmatprep.mubr.msk.bf16.mxu1 %vm22724_vm8, %v14974_v59  ;;  %15067 = vmatprep.subr.bf16.mxu1 %v22575_v16  ;;  %v15160_v22 = vunpack.c.l.b16 %v14194_v5  ;;  %v22759_v53 = vrot.slane %v22758_v9, 7  ;;  %v13918_v8 = vrot.slane %v21766_v51, %v18932_v55  ;;  %v22779_v18 = vld [vmem:[#allocation31_spill] sm:$0xff]  ;;  %v22781_v46 = vld [vmem:[#allocation58_spill] sm:$0xff]  ;;  %vm22787_vm5 = vmmov %vm22773_vm3 }
 0x63f   :  { %v14734_v2 = vsel %vm7305_vm11, %v14733_v27, %v14732_v1  ;;  %v15162_v29 = vunpack.c.l.b16 %v14208_v45  ;;  %v15164_v15 = vunpack.c.l.b16 %v14222_v35  ;;  %v22763_v44 = vrot.slane %v22762_v3, 6  ;;  %14854 = vmatpush1.bf16.msra.mxu0 %v17598_v23  ;;  %vm22788_vm6 = vmmov %vm22775_vm0 }
 0x640   :  { %v14736_v38 = vsel %vm22756_vm2, %v14735_v36, %v14734_v2  ;;  %v15180_v26 = vsel %vm22760_vm10, %v22759_v53, %v22757_v61  ;;  %v21971_v7 = vmax.f32 %v21817_v12, %v16672_v56  ;;  %v22766_v63 = vrot.slane %v22765_v0, 5  ;;  %v17600_v2 = vld [vmem:[#allocation5 + $0x110] sm:$0xff]   ;;  %14855 = vmatprep.subr.bf16.mxu0 %v22575_v16  ;;  %vm22791_vm7 = vmmov %vm22778_vm14 }
 0x641   :  { %v21963_v31 = vsel %vm22761_vm9, %v14737_v39, %v14736_v38  ;;  %v15182_v41 = vsel %vm22764_vm15, %v22763_v44, %v15180_v26  ;;  %v15187_v6 = vrot.slane %v15160_v22, 3  ;;  %v13974_v10 = vrot.slane %v21841_v30, %v18932_v55  ;;  %15068 = vmatpush1.bf16.msra.mxu1 %v17593_v48  ;;  %v22771_v30 = vld [vmem:[#allocation10_spill] sm:$0xff]  ;;  %v22792_v44 = vld [vmem:[#allocation28_spill] sm:$0xff]  ;;  %vm22793_vm8 = vmmov %vm22780_vm4 }
 0x642   :  { %v15184_v51 = vsel %vm22767_vm13, %v22766_v63, %v15182_v41  ;;  %v22769_v28 = vrot.slane %v22768_v34, 4  ;;  %v15189_v20 = vrot.slane %v15162_v29, 2  ;;  %v15191_v25 = vrot.slane %v15164_v15, 1  ;;  %15069 = vmatprep.subr.bf16.mxu1 %v22575_v16  ;;  %v22789_v29 = vld [vmem:[#allocation54_spill] sm:$0xff]  ;;  %vm22796_vm2 = vmmov %vm22783_vm1 }
 0x643   :  { %v14205_v12 = vpack.c.bf16 %v13918_v8, %v13918_v8  ;;  %v14219_v37 = vpack.c.bf16 %v13974_v10, %v13974_v10  ;;  %v22772_v54 = vrot.slane %v22771_v30, 7  ;;  %v14951_v58 = vrot.slane %v22774_v52, 4  ;;  %v17599_v34 = vld [vmem:[#allocation5 + $0x178] sm:$0xff]   ;;  %14856 = vmatpush1.bf16.msra.mxu0 %v17600_v2  ;;  %v22799_v52 = vld [vmem:[#allocation39_spill] sm:$0xff]  ;;  %vm22801_vm10 = vmmov %vm22773_vm3 }
 0x644   :  { %v15186_v43 = vsel %vm2754_vm12, %v22769_v28, %v15184_v51  ;;  %v22777_v42 = vrot.slane %v22776_v14, 6  ;;  %v14953_v27 = vrot.slane %v22779_v18, 3  ;;  %v22782_v1 = vrot.slane %v22781_v46, 5  ;;  %v22794_v51 = vld [vmem:[#allocation62_spill] sm:$0xff]  ;;  %14857 = vmatprep.subr.bf16.mxu0 %v22575_v16  ;;  %vm22802_vm9 = vmmov %vm22775_vm0 }
 0x645   :  { %v15188_v56 = vsel %vm7305_vm11, %v15187_v6, %v15186_v43  ;;  %v14946_v33 = vsel %vm22773_vm3, %v22772_v54, %v22770_v50  ;;  %v14941_v47 = vunpack.c.l.b16 %v14205_v12  ;;  %v14943_v57 = vunpack.c.l.b16 %v14219_v37  ;;  %15070 = vmatpush1.bf16.msra.mxu1 %v17595_v13  ;;  %v17602_v28 = vld [vmem:[#allocation5 + $0x118] sm:$0xff]   ;;  %vm22805_vm15 = vmmov %vm22791_vm7 }
 0x646   :  { %v15190_v40 = vsel %vm22775_vm0, %v15189_v20, %v15188_v56  ;;  %v14948_v60 = vsel %vm22778_vm14, %v22777_v42, %v14946_v33  ;;  %v13938_v5 = vrot.slane %v21768_v21, %v18935_v62  ;;  %v22005_v48 = vmax.f32 %v21828_v17, %v16673_v19  ;;  %15071 = vmatprep.subr.bf16.mxu1 %v22575_v16  ;;  %v22784_v17 = vld [vmem:[#allocation24_spill] sm:$0xff]  ;;  %v22785_v19 = vld [vmem:[#allocation45_spill] sm:$0xff]  ;;  %v22797_v56 = vld [vmem:[#allocation30_spill] sm:$0xff] }
 0x647   :  { %v21995_v59 = vsel %vm22780_vm4, %v15191_v25, %v15190_v40  ;;  %v14950_v36 = vsel %vm22783_vm1, %v22782_v1, %v14948_v60  ;;  %v14955_v45 = vrot.slane %v14941_v47, 2  ;;  %v13994_v35 = vrot.slane %v21971_v7, %v18935_v62  ;;  %v22798_v33 = vld [vmem:[#allocation21_spill] sm:$0xff]  ;;  %14858 = vmatpush1.bf16.msra.mxu0 %v17602_v28  ;;  %vm22806_vm13 = vmmov %vm22780_vm4  ;;  %v22820_v28 = vld [vmem:[#allocation56_spill] sm:$0xff] }
 0x648   :  { %v14952_v39 = vsel %vm2754_vm12, %v14951_v58, %v14950_v36  ;;  %v14957_v22 = vrot.slane %v14943_v57, 1  ;;  %v14210_v61 = vpack.c.bf16 %v13938_v5, %v13938_v5  ;;  %v22786_v9 = vrot.slane %v22785_v19, 7  ;;  %v22803_v60 = vld [vmem:[#allocation49_spill] sm:$0xff]  ;;  %v17604_v57 = vld [vmem:[#allocation5 + $0x120] sm:$0xff]   ;;  %v22807_v36 = vld [vmem:[#allocation60_spill] sm:$0xff]  ;;  %14859 = vmatprep.subr.bf16.mxu0 %v22575_v16 }
 0x649   :  { %v14954_v38 = vsel %vm7305_vm11, %v14953_v27, %v14952_v39  ;;  %v14224_v8 = vpack.c.bf16 %v13994_v35, %v13994_v35  ;;  %v22790_v15 = vrot.slane %v22789_v29, 6  ;;  %v15405_v41 = vrot.slane %v22792_v44, 4  ;;  %15072 = vmatpush1.bf16.msra.mxu1 %v17597_v49  ;;  %vm22809_vm3 = vmmov %vm22783_vm1  ;;  %v22810_v49 = vld [vmem:[#allocation33_spill] sm:$0xff]  ;;  %v22811_v39 = vld [vmem:[#allocation32_spill] sm:$0xff] }
 0x64a   :  { %v15400_v53 = vsel %vm22787_vm5, %v22786_v9, %v22784_v17  ;;  %v14956_v26 = vsel %vm22788_vm6, %v14955_v45, %v14954_v38  ;;  %v15382_v63 = vunpack.c.l.b16 %v14210_v61  ;;  %v22795_v6 = vrot.slane %v22794_v51, 5  ;;  %15073 = vmatprep.subr.bf16.mxu1 %v22575_v16  ;;  %v22813_v38 = vld [vmem:[#allocation26_spill] sm:$0xff]  ;;  %vm22818_vm0 = vmmov %vm22787_vm5 }
 0x64b   :  { %v15402_v3 = vsel %vm22791_vm7, %v22790_v15, %v15400_v53  ;;  %v22023_v0 = vsel %vm22793_vm8, %v14957_v22, %v14956_v26  ;;  %v15407_v13 = vrot.slane %v21761_v24, 3  ;;  %v13946_v23 = vrot.slane %v21808_v4, %v18935_v62  ;;  %v22815_v15 = vld [vmem:[#allocation34_spill] sm:$0xff]  ;;  %14860 = vmatpush1.bf16.msra.mxu0 %v17604_v57  ;;  %vm22819_vm14 = vmmov %vm22788_vm6 }
 0x64c   :  { %v15404_v10 = vsel %vm22796_vm2, %v22795_v6, %v15402_v3  ;;  %v15384_v43 = vunpack.c.l.b16 %v14224_v8  ;;  %v13982_v25 = vrot.slane %v21843_v32, %v18932_v55  ;;  %v15409_v24 = vrot.slane %v15382_v63, 2  ;;  %v22816_v3 = vld [vmem:[#allocation47_spill] sm:$0xff]  ;;  %v17603_v6 = vld [vmem:[#allocation5 + $0x188] sm:$0xff]   ;;  %vm22822_vm4 = vmmov %vm22791_vm7  ;;  %14861 = vmatprep.subr.bf16.mxu0 %v22575_v16 }
 0x64d   :  { %v15406_v20 = vsel %vm2754_vm12, %v15405_v41, %v15404_v10  ;;  %v14193_v37 = vpack.c.bf16 %v22797_v56, %v22797_v56  ;;  %v14207_v50 = vpack.c.bf16 %v21796_v11, %v21796_v11  ;;  %v22800_v58 = vrot.slane %v22799_v52, 7  ;;  %15074 = vmatpush1.bf16.msra.mxu1 %v17599_v34  ;;  %v17601_v11 = vld [vmem:[#allocation5 + $0x180] sm:$0xff]   ;;  %v17606_v10 = vld [vmem:[#allocation5 + $0x128] sm:$0xff]   ;;  %vm22823_vm1 = vmmov %vm22793_vm8 }
 0x64e   :  { %v15408_v12 = vsel %vm7305_vm11, %v15407_v13, %v15406_v20  ;;  %v15411_v30 = vrot.slane %v15384_v43, 1  ;;  %v14221_v54 = vpack.c.bf16 %v13982_v25, %v13982_v25  ;;  %v14002_v40 = vrot.slane %v22005_v48, %v18935_v62  ;;  %15075 = vmatprep.subr.bf16.mxu1 %v22575_v16  ;;  %vm22826_vm5 = vmmov %vm22796_vm2 }
 0x64f   :  { %v15166_v32 = vsel %vm22801_vm10, %v22800_v58, %v22798_v33  ;;  %v15410_v47 = vsel %vm22802_vm9, %v15409_v24, %v15408_v12  ;;  %v15159_v14 = vunpack.c.l.b16 %v14193_v37  ;;  %v15161_v42 = vunpack.c.l.b16 %v14207_v50  ;;  %v22827_v50 = vld [vmem:[#allocation70_spill] sm:$0xff]  ;;  %vm22832_vm6 = vmmov %vm22818_vm0  ;;  %14862 = vmatpush1.bf16.msra.mxu0 %v17606_v10 }
 0x650   :  { %v22804_v18 = vrot.slane %v22803_v60, 6  ;;  %v22052_v46 = vsel %vm22806_vm13, %v15411_v30, %v15410_v47  ;;  %v15163_v1 = vunpack.c.l.b16 %v14221_v54  ;;  %v22808_v5 = vrot.slane %v22807_v36, 5  ;;  %v22829_v47 = vld [vmem:[#allocation23_spill] sm:$0xff]  ;;  %vm22833_vm7 = vmmov %vm22802_vm9  ;;  %14863 = vmatprep.subr.bf16.mxu0 %v22575_v16 }
 0x651   :  { %v14198_v2 = vpack.c.bf16 %v22810_v49, %v22810_v49  ;;  %v22812_v45 = vpack.c.bf16 %v22811_v39, %v22811_v39  ;;  %v22814_v22 = vrot.slane %v22813_v38, 4  ;;  %v15173_v17 = vrot.slane %v15159_v14, 3  ;;  %15076 = vmatpush1.bf16.msra.mxu1 %v17601_v11  ;;  %v22830_v14 = vld [vmem:[#allocation44_spill] sm:$0xff]  ;;  %v22834_v11 = vld [vmem:[#allocation53_spill] sm:$0xff]  ;;  %vm22836_vm8 = vmmov %vm22822_vm4 }
 0x652   :  { %v15168_v27 = vsel %vm22805_vm15, %v22804_v18, %v15166_v32  ;;  %v15175_v19 = vrot.slane %v15161_v42, 2  ;;  %v15177_v9 = vrot.slane %v15163_v1, 1  ;;  %v14212_v53 = vpack.c.bf16 %v13946_v23, %v13946_v23  ;;  %15077 = vmatprep.subr.bf16.mxu1 %v22575_v16  ;;  %v17605_v18 = vld [vmem:[#allocation5 + $0x190] sm:$0xff]   ;;  %v22837_v36 = vld [vmem:[#allocation71_spill] sm:$0xff]  ;;  %vm22838_vm2 = vmmov %vm22823_vm1 }
 0x653   :  { %v15170_v62 = vsel %vm22809_vm3, %v22808_v5, %v15168_v27  ;;  %v15379_v35 = vunpack.c.l.b16 %v22812_v45  ;;  %v14226_v26 = vpack.c.bf16 %v14002_v40, %v14002_v40  ;;  %v15600_v8 = vunpack.c.l.b16 %v14198_v2  ;;  %v17608_v27 = vld [vmem:[#allocation5 + $0x130] sm:$0xff]   ;;  %vm22841_vm10 = vmmov %vm22809_vm3 }
 0x654   :  { %v15172_v61 = vsel %vm2754_vm12, %v22814_v22, %v15170_v62  ;;  %v22817_v44 = vrot.slane %v22816_v3, 7  ;;  %v13934_v63 = vrot.slane %v21768_v21, %v18932_v55  ;;  %v13990_v51 = vrot.slane %v21971_v7, %v18932_v55  ;;  %v22824_v7 = vld [vmem:[#allocation65_spill] sm:$0xff]  ;;  %v22845_v3 = vld [vmem:[#allocation46_spill] sm:$0xff]  ;;  %vm22847_vm9 = vmmov %vm22818_vm0  ;;  %14864 = vmatpush1.bf16.msra.mxu0 %v17608_v27 }
 0x655   :  { %v15174_v29 = vsel %vm7305_vm11, %v15173_v17, %v15172_v61  ;;  %v15602_v23 = vunpack.c.l.b16 %v14212_v53  ;;  %v15604_v34 = vunpack.c.l.b16 %v14226_v26  ;;  %v22821_v43 = vrot.slane %v22820_v28, 6  ;;  %15078 = vmatpush1.bf16.msra.mxu1 %v17603_v6  ;;  %v22839_v39 = vld [vmem:[#allocation61_spill] sm:$0xff]  ;;  %vm22848_vm15 = vmmov %vm22833_vm7  ;;  %14865 = vmatprep.subr.bf16.mxu0 %v22575_v16 }
 0x656   :  { %v15620_v41 = vsel %vm22818_vm0, %v22817_v44, %v22815_v15  ;;  %v15176_v13 = vsel %vm22819_vm14, %v15175_v19, %v15174_v29  ;;  %v22825_v25 = vrot.slane %v22824_v7, 5  ;;  %v15627_v24 = vrot.slane %v15600_v8, 3  ;;  %15079 = vmatprep.subr.bf16.mxu1 %v22575_v16  ;;  %v22842_v61 = vld [vmem:[#allocation69_spill] sm:$0xff]  ;;  %v22844_v15 = vld [vmem:[#allocation15_spill] sm:$0xff]  ;;  %vm22851_vm13 = vmmov %vm22822_vm4 }
 0x657   :  { %v15622_v20 = vsel %vm22822_vm4, %v22821_v43, %v15620_v41  ;;  %v22083_v21 = vsel %vm22823_vm1, %v15177_v9, %v15176_v13  ;;  %v14209_v56 = vpack.c.bf16 %v13934_v63, %v13934_v63  ;;  %v13942_v37 = vrot.slane %v21808_v4, %v18932_v55  ;;  %v22843_v9 = vld [vmem:[#allocation11_spill] sm:$0xff]  ;;  %v17607_v63 = vld [vmem:[#allocation5 + $0x198] sm:$0xff]   ;;  %vm22852_vm3 = vmmov %vm22823_vm1 }
 0x658   :  { %v15624_v12 = vsel %vm22826_vm5, %v22825_v25, %v15622_v20  ;;  %v22828_v30 = vrot.slane %v22827_v50, 4  ;;  %v15629_v33 = vrot.slane %v15602_v23, 2  ;;  %v15631_v52 = vrot.slane %v15604_v34, 1  ;;  %v22853_v43 = vld [vmem:[#allocation64_spill] sm:$0xff]  ;;  %vm22855_vm0 = vmmov %vm22826_vm5  ;;  %v17612_v50 = vld [vmem:[#allocation5 + $0x140] sm:$0xff]  }
 0x659   :  { %v14223_v32 = vpack.c.bf16 %v13990_v51, %v13990_v51  ;;  %v15381_v40 = vunpack.c.l.b16 %v14209_v56  ;;  %v22831_v42 = vrot.slane %v22830_v14, 7  ;;  %v22835_v57 = vrot.slane %v22834_v11, 6  ;;  %15080 = vmatpush1.bf16.msra.mxu1 %v17605_v18  ;;  %v17610_v51 = vld [vmem:[#allocation5 + $0x138] sm:$0xff]   ;;  %vm22856_vm14 = vmmov %vm22833_vm7  ;;  %v17618_v18 = vld [vmem:[#allocation5 + $0x1c8] sm:$0xff]  }
 0x65a   :  { %v15626_v54 = vsel %vm2754_vm12, %v22828_v30, %v15624_v12  ;;  %v15391_v5 = vrot.slane %v22837_v36, 4  ;;  %v15393_v62 = vrot.slane %v15379_v35, 3  ;;  %v22840_v45 = vrot.slane %v22839_v39, 5  ;;  %15081 = vmatprep.subr.bf16.mxu1 %v22575_v16  ;;  %14866 = vmatpush1.bf16.msra.mxu0 %v17610_v51  ;;  %vm22857_vm4 = vmmov %vm22823_vm1  ;;  %v17617_v27 = vld [vmem:[#allocation5 + $0x230] sm:$0xff]   ;;  %v17619_v11 = vld [vmem:[#allocation5 + $0x238] sm:$0xff]  }
 0x65b   :  { %v15628_v58 = vsel %vm7305_vm11, %v15627_v24, %v15626_v54  ;;  %v15386_v60 = vsel %vm22832_vm6, %v22831_v42, %v22829_v47  ;;  %v15383_v2 = vunpack.c.l.b16 %v14223_v32  ;;  %v15395_v22 = vrot.slane %v15381_v40, 2  ;;  %14867 = vmatprep.subr.bf16.mxu0 %v22575_v16  ;;  %v17614_v32 = vld [vmem:[#allocation5 + $0x148] sm:$0xff]   ;;  %v17613_v40 = vld [vmem:[#allocation5 + $0x1b0] sm:$0xff]   ;;  %v17616_v47 = vld [vmem:[#allocation5 + $0x1c0] sm:$0xff]  }
 0x65c   :  { %v15630_v4 = vsel %vm22833_vm7, %v15629_v33, %v15628_v58  ;;  %v15388_v1 = vsel %vm22836_vm8, %v22835_v57, %v15386_v60  ;;  %v15611_v17 = vrot.slane %v22842_v61, 4  ;;  %v13998_v35 = vrot.slane %v22005_v48, %v18932_v55  ;;  %v22849_v48 = vld [vmem:[#allocation55_spill] sm:$0xff]  ;;  %v17611_v58 = vld [vmem:[#allocation5 + $0x1a8] sm:$0xff]   ;;  %v17615_v60 = vld [vmem:[#allocation5 + $0x1b8] sm:$0xff]  }
 0x65d   :  { %v22106_v49 = vsel %vm22838_vm2, %v15631_v52, %v15630_v4  ;;  %v15390_v38 = vsel %vm22841_vm10, %v22840_v45, %v15388_v1  ;;  %v14197_v53 = vpack.c.bf16 %v22843_v9, %v22843_v9  ;;  %v15397_v8 = vrot.slane %v15383_v2, 1  ;;  %15082 = vmatpush1.bf16.msra.mxu1 %v17607_v63  ;;  %v17622_v57 = vld [vmem:[#allocation5 + $0x1d8] sm:$0xff]   ;;  %v17624_v1 = vld [vmem:[#allocation5 + $0x1e0] sm:$0xff]   ;;  %v17626_v36 = vld [vmem:[#allocation5 + $0x1e8] sm:$0xff]  }
 0x65e   :  { %v15392_v19 = vsel %vm2754_vm12, %v15391_v5, %v15390_v38  ;;  %v14211_v29 = vpack.c.bf16 %v13942_v37, %v13942_v37  ;;  %v22846_v44 = vrot.slane %v22845_v3, 7  ;;  %v14225_v10 = vpack.c.bf16 %v13998_v35, %v13998_v35  ;;  %v17609_v37 = vld [vmem:[#allocation5 + $0x1a0] sm:$0xff]   ;;  %15083 = vmatprep.subr.bf16.mxu1 %v22575_v16  ;;  %14868 = vmatpush1.bf16.msra.mxu0 %v17612_v50  ;;  %v17625_v5 = vld [vmem:[#allocation5 + $0x250] sm:$0xff]   ;;  %v17627_v2 = vld [vmem:[#allocation5 + $0x258] sm:$0xff]  }
 0x65f   :  { %v15394_v26 = vsel %vm7305_vm11, %v15393_v62, %v15392_v19  ;;  %v15599_v55 = vunpack.c.l.b16 %v14197_v53  ;;  %v22850_v13 = vrot.slane %v22849_v48, 6  ;;  %v22854_v20 = vrot.slane %v22853_v43, 5  ;;  %14869 = vmatprep.subr.bf16.mxu0 %v22575_v16  ;;  %v17628_v62 = vld [vmem:[#allocation5 + $0x1f0] sm:$0xff]   ;;  %v17630_v39 = vld [vmem:[#allocation5 + $0x1f8] sm:$0xff]   ;;  %v17629_v45 = vld [vmem:[#allocation5 + $0x260] sm:$0xff]  }
 0x660   :  { %v15606_v41 = vsel %vm22847_vm9, %v22846_v44, %v22844_v15  ;;  %v15396_v6 = vsel %vm22848_vm15, %v15395_v22, %v15394_v26  ;;  %v15601_v28 = vunpack.c.l.b16 %v14211_v29  ;;  %v15603_v25 = vunpack.c.l.b16 %v14225_v10  ;;  %v17632_v38 = vld [vmem:[#allocation5 + $0x200] sm:$0xff]   ;;  %v17631_v22 = vld [vmem:[#allocation5 + $0x268] sm:$0xff]   ;;  %v17636_v19 = vld [vmem:[#allocation5 + $0x210] sm:$0xff]  }
 0x661   :  { %v15608_v23 = vsel %vm22851_vm13, %v22850_v13, %v15606_v41  ;;  %v22129_v34 = vsel %vm22852_vm3, %v15397_v8, %v15396_v6  ;;  %v15613_v24 = vrot.slane %v15599_v55, 3  ;;  %15084 = vmatpush1.bf16.msra.mxu1 %v17609_v37  ;;  %v14753_v14 = vpack.c.b16 %v21963_v31, %v21963_v31  ;;  %v17634_v61 = vld [vmem:[#allocation5 + $0x208] sm:$0xff]   ;;  %v17635_v35 = vld [vmem:[#allocation5 + $0x278] sm:$0xff]   ;;  %v17637_v53 = vld [vmem:[#allocation5 + $0x280] sm:$0xff]  }
 0x662   :  { %v15610_v7 = vsel %vm22855_vm0, %v22854_v20, %v15608_v23  ;;  %v15615_v56 = vrot.slane %v15601_v28, 2  ;;  %v15617_v54 = vrot.slane %v15603_v25, 1  ;;  %15085 = vmatprep.subr.bf16.mxu1 %v22575_v16  ;;  %14870 = vmatpush1.bf16.msra.mxu0 %v17614_v32  ;;  %v15194_v42 = vpack.c.b16 %v21995_v59, %v21995_v59  ;;  %v17620_v59 = vld [vmem:[#allocation5 + $0x1d0] sm:$0xff]   ;;  %v17638_v9 = vld [vmem:[#allocation5 + $0x218] sm:$0xff]   ;;  %v17640_v26 = vld [vmem:[#allocation5 + $0x220] sm:$0xff]  }
 0x663   :  { %v15612_v12 = vsel %vm2754_vm12, %v15611_v17, %v15610_v7  ;;  %15283 = vmatprep.subr.bf16.mxu0 %v22575_v16  ;;  %vm22858_vm12 = vcmask 785408   ;;  %v14973_v31 = vpack.c.b16 %v22023_v0, %v22023_v0  ;;  %v15414_v4 = vpack.c.b16 %v22052_v46, %v22052_v46  ;;  %v17621_v0 = vld [vmem:[#allocation5 + $0x240] sm:$0xff]   ;;  %v17623_v46 = vld [vmem:[#allocation5 + $0x248] sm:$0xff]   ;;  %v17633_v17 = vld [vmem:[#allocation5 + $0x270] sm:$0xff]  }
 0x664   :  { %v15614_v30 = vsel %vm7305_vm11, %v15613_v24, %v15612_v12  ;;  %vm22859_vm11 = vmmov %vm22858_vm12  ;;  %v17639_v8 = vld [vmem:[#allocation5 + $0x288] sm:$0xff]   ;;  %v17641_v15 = vld [vmem:[#allocation5 + $0x290] sm:$0xff]   ;;  %v15193_v44 = vpack.c.b16 %v22083_v21, %v22083_v21  ;;  %v15634_v63 = vpack.c.b16 %v22106_v49, %v22106_v49  ;;  %v15413_v21 = vpack.c.b16 %v22129_v34, %v22129_v34 }
 0x665   :  { %v15616_v33 = vsel %vm22856_vm14, %v15615_v56, %v15614_v30  ;;  %15086 = vmatpush1.bf16.msra.mxu1 %v17611_v58  ;;  %14876 = vmatmul.mubr.bf16.vlgmr.msra.gmra.mrb[88].mxu0 %v14753_v14  ;;  %v17642_v29 = vld [vmem:[#allocation5 + $0x228] sm:$0xff]   ;;  %v17644_v3 = vld [vmem:[#allocation5 + $0x2a0] sm:$0xff]   ;;  %v17643_v41 = vld [vmem:[#allocation5 + $0x298] sm:$0xff]   ;;  %v17751_v24 = vmov 0.0   ;;  %vm17752_vm5 = vmmov 0   ;;  %vm15998_vm6 = vcmask 203776  }
 0x666   :  { %v22140_v52 = vsel %vm22857_vm4, %v15617_v54, %v15616_v33  ;;  %15087 = vmatprep.subr.bf16.mxu1 %v22575_v16  ;;  %15284 = vmatpush1.bf16.msra.mxu0 %v17616_v47  ;;  %v17645_v51 = vld [vmem:[#allocation5 + $0x2a8] sm:$0xff]   ;;  %vm22860_vm1 = vmmov %vm22859_vm11  ;;  %v17646_v6 = vld [vmem:[#allocation5 + $0x2b0] sm:$0xff]  }
 0x667   :  { %16748 = vmatprep.mubr.msk.bf16.mxu0 %vm22858_vm12, %v15194_v42  ;;  %15285 = vmatprep.subr.bf16.mxu0 %v22575_v16  ;;  %v17647_v10 = vld [vmem:[#allocation5 + $0x2b8] sm:$0xff]   ;;  %v17648_v49 = vld [vmem:[#allocation5 + $0x2c0] sm:$0xff]   ;;  %v17649_v55 = vld [vmem:[#allocation5 + $0x2c8] sm:$0xff]   ;;  %v15633_v25 = vpack.c.b16 %v22140_v52, %v22140_v52 }
 0x668   :  { %v17650_v48 = vld [vmem:[#allocation5 + $0x2d0] sm:$0xff]   ;;  %v17651_v13 = vld [vmem:[#allocation5 + $0x2d8] sm:$0xff]   ;;  %v17652_v23 = vld [vmem:[#allocation5 + $0x2e0] sm:$0xff]  }
 0x669   :  { %15088 = vmatpush1.bf16.msra.mxu1 %v17613_v40  ;;  %v17653_v34 = vld [vmem:[#allocation5 + $0x2e8] sm:$0xff]   ;;  %v17654_v28 = vld [vmem:[#allocation5 + $0x2f0] sm:$0xff]   ;;  %v17655_v43 = vld [vmem:[#allocation5 + $0x2f8] sm:$0xff]  }
 0x66a   :  { %15089 = vmatprep.subr.bf16.mxu1 %v22575_v16  ;;  %15286 = vmatpush1.bf16.msra.mxu0 %v17618_v18  ;;  %v17656_v20 = vld [vmem:[#allocation5 + $0x300] sm:$0xff]   ;;  %v17657_v7 = vld [vmem:[#allocation5 + $0x308] sm:$0xff]   ;;  %v17660_v54 = vld [vmem:[%s22299_s9 + $0x10] sm:$0xff]  }
 0x66b   :  { %15287 = vmatprep.subr.bf16.mxu0 %v22575_v16  ;;  %v17658_v12 = vld [vmem:[%s22299_s9] sm:$0xff]   ;;  %v17659_v56 = vld [vmem:[%s22299_s9 + $0x8] sm:$0xff]   ;;  %v17661_v33 = vld [vmem:[%s22299_s9 + $0x18] sm:$0xff]  }
 0x66c   :  { %v17662_v40 = vld [vmem:[%s22299_s9 + $0x20] sm:$0xff]   ;;  %v17663_v42 = vld [vmem:[%s22299_s9 + $0x28] sm:$0xff]   ;;  %v17665_v18 = vld [vmem:[%s22299_s9 + $0x38] sm:$0xff]  }
 0x66d   :  { %15090 = vmatpush1.bf16.msra.mxu1 %v17615_v60  ;;  %v17664_v60 = vld [vmem:[%s22299_s9 + $0x30] sm:$0xff]  }
 0x66e   :  { %15503 = vmatprep.subr.bf16.mxu1 %v22575_v16  ;;  %15288 = vmatpush1.bf16.msra.mxu0 %v17620_v59 }
 0x66f   :  { %15289 = vmatprep.subr.bf16.mxu0 %v22575_v16 }
 0x670   :  { %15096 = vmatmul.mubr.bf16.vlgmr.msra.gmra.mrb[88].mxu1 %v14973_v31 }
 0x671   :  { %15504 = vmatpush1.bf16.msra.mxu1 %v17617_v27  ;;  %16763 = vmatprep.mubr.msk.bf16.mxu1 %vm22859_vm11, %v15414_v4 }
 0x672   :  { %15505 = vmatprep.subr.bf16.mxu1 %v22575_v16  ;;  %15290 = vmatpush1.bf16.msra.mxu0 %v17622_v57 }
 0x673   :  { %15291 = vmatprep.subr.bf16.mxu0 %v22575_v16 }
 0x675   :  { %15506 = vmatpush1.bf16.msra.mxu1 %v17619_v11 }
 0x676   :  { %15507 = vmatprep.subr.bf16.mxu1 %v22575_v16  ;;  %15292 = vmatpush1.bf16.msra.mxu0 %v17624_v1 }
 0x677   :  { %15293 = vmatprep.subr.bf16.mxu0 %v22575_v16 }
 0x679   :  { %15508 = vmatpush1.bf16.msra.mxu1 %v17621_v0 }
 0x67a   :  { %15509 = vmatprep.subr.bf16.mxu1 %v22575_v16  ;;  %15294 = vmatpush1.bf16.msra.mxu0 %v17626_v36 }
 0x67b   :  { %15295 = vmatprep.subr.bf16.mxu0 %v22575_v16 }
 0x67d   :  { %15510 = vmatpush1.bf16.msra.mxu1 %v17623_v46 }
 0x67e   :  { %15511 = vmatprep.subr.bf16.mxu1 %v22575_v16  ;;  %15296 = vmatpush1.bf16.msra.mxu0 %v17628_v62 }
 0x67f   :  { %15297 = vmatprep.subr.bf16.mxu0 %v22575_v16 }
 0x681   :  { %15512 = vmatpush1.bf16.msra.mxu1 %v17625_v5 }
 0x682   :  { %15513 = vmatprep.subr.bf16.mxu1 %v22575_v16  ;;  %15298 = vmatpush1.bf16.msra.mxu0 %v17630_v39 }
 0x683   :  { %15299 = vmatprep.subr.bf16.mxu0 %v22575_v16 }
 0x685   :  { %15514 = vmatpush1.bf16.msra.mxu1 %v17627_v2 }
 0x686   :  { %15515 = vmatprep.subr.bf16.mxu1 %v22575_v16  ;;  %15300 = vmatpush1.bf16.msra.mxu0 %v17632_v38 }
 0x687   :  { %15301 = vmatprep.subr.bf16.mxu0 %v22575_v16 }
 0x689   :  { %15516 = vmatpush1.bf16.msra.mxu1 %v17629_v45 }
 0x68a   :  { %15517 = vmatprep.subr.bf16.mxu1 %v22575_v16  ;;  %15302 = vmatpush1.bf16.msra.mxu0 %v17634_v61 }
 0x68b   :  { %15303 = vmatprep.subr.bf16.mxu0 %v22575_v16 }
 0x68d   :  { %15518 = vmatpush1.bf16.msra.mxu1 %v17631_v22 }
 0x68e   :  { %15519 = vmatprep.subr.bf16.mxu1 %v22575_v16  ;;  %15304 = vmatpush1.bf16.msra.mxu0 %v17636_v19 }
 0x68f   :  { %15305 = vmatprep.subr.bf16.mxu0 %v22575_v16 }
 0x691   :  { %15520 = vmatpush1.bf16.msra.mxu1 %v17633_v17 }
 0x692   :  { %15521 = vmatprep.subr.bf16.mxu1 %v22575_v16  ;;  %15306 = vmatpush1.bf16.msra.mxu0 %v17638_v9  ;;  %v16779_v9 = vld [vmem:[%s22298_s8] ss:$0 sm:$0xff] }
 0x693   :  { %15307 = vmatprep.subr.bf16.mxu0 %v22575_v16 }
 0x695   :  { %15522 = vmatpush1.bf16.msra.mxu1 %v17635_v35 }
 0x696   :  { %15523 = vmatprep.subr.bf16.mxu1 %v22575_v16  ;;  %15308 = vmatpush1.bf16.msra.mxu0 %v17640_v26 }
 0x697   :  { %15309 = vmatprep.subr.bf16.mxu0 %v22575_v16 }
 0x699   :  { %15524 = vmatpush1.bf16.msra.mxu1 %v17637_v53 }
 0x69a   :  { %15525 = vmatprep.subr.bf16.mxu1 %v22575_v16  ;;  %15310 = vmatpush1.bf16.msra.mxu0 %v17642_v29 }
 0x69b   :  { %15723 = vmatprep.subr.bf16.mxu0 %v22575_v16 }
 0x69d   :  { %15526 = vmatpush1.bf16.msra.mxu1 %v17639_v8  ;;  %15316 = vmatmul.mubr.bf16.vlgmr.msra.gmra.mrb[92].mxu0 %v15193_v44  ;;  %v17666_v44 = vld [vmem:[%s22301_s11] sm:$0xff]  }
 0x69e   :  { %15527 = vmatprep.subr.bf16.mxu1 %v22575_v16  ;;  %15724 = vmatpush1.bf16.msra.mxu0 %v17644_v3 }
 0x69f   :  { %16778 = vmatprep.mubr.msk.bf16.mxu0 %vm22860_vm1, %v15634_v63  ;;  %15725 = vmatprep.subr.bf16.mxu0 %v22575_v16  ;;  %v17667_v63 = vld [vmem:[%s22301_s11 + $0x8] sm:$0xff]  }
 0x6a1   :  { %15528 = vmatpush1.bf16.msra.mxu1 %v17641_v15 }
 0x6a2   :  { %15529 = vmatprep.subr.bf16.mxu1 %v22575_v16  ;;  %15726 = vmatpush1.bf16.msra.mxu0 %v17645_v51  ;;  %v17668_v51 = vld [vmem:[%s22301_s11 + $0x10] sm:$0xff]  }
 0x6a3   :  { %15727 = vmatprep.subr.bf16.mxu0 %v22575_v16 }
 0x6a5   :  { %15530 = vmatpush1.bf16.msra.mxu1 %v17643_v41 }
 0x6a6   :  { %15728 = vmatpush1.bf16.msra.mxu0 %v17646_v6  ;;  %16816 = vmatprep.subr.bf16.mxu1 %v17751_v24  ;;  %v17670_v6 = vld [vmem:[%s22301_s11 + $0x20] sm:$0xff]  }
 0x6a7   :  { %15729 = vmatprep.subr.bf16.mxu0 %v22575_v16 }
 0x6a8   :  { %15536 = vmatmul.mubr.bf16.vlgmr.msra.gmra.mrb[92].mxu1 %v15413_v21  ;;  %v17669_v21 = vld [vmem:[%s22301_s11 + $0x18] sm:$0xff]  }
 0x6a9   :  { %16817 = vmatpush3.bf16.msra.mxu1 %v17658_v12  ;;  %16832 = vmatprep.mubr.msk.bf16.mxu1 %vm17752_vm5, %v17751_v24 }
 0x6aa   :  { %15730 = vmatpush1.bf16.msra.mxu0 %v17647_v10  ;;  %16818 = vmatprep.subr.bf16.mxu1 %v17751_v24  ;;  %v17671_v10 = vld [vmem:[%s22301_s11 + $0x28] sm:$0xff]  }
 0x6ab   :  { %15731 = vmatprep.subr.bf16.mxu0 %v22575_v16 }
 0x6ad   :  { %16819 = vmatpush3.bf16.msra.mxu1 %v17659_v56 }
 0x6ae   :  { %15732 = vmatpush1.bf16.msra.mxu0 %v17648_v49  ;;  %16820 = vmatprep.subr.bf16.mxu1 %v17751_v24  ;;  %v17672_v49 = vld [vmem:[%s22301_s11 + $0x30] sm:$0xff]  }
 0x6af   :  { %15733 = vmatprep.subr.bf16.mxu0 %v22575_v16 }
 0x6b1   :  { %16821 = vmatpush3.bf16.msra.mxu1 %v17660_v54 }
 0x6b2   :  { %15734 = vmatpush1.bf16.msra.mxu0 %v17649_v55  ;;  %16822 = vmatprep.subr.bf16.mxu1 %v17751_v24  ;;  %v17673_v55 = vld [vmem:[%s22301_s11 + $0x38] sm:$0xff]  }
 0x6b3   :  { %15735 = vmatprep.subr.bf16.mxu0 %v22575_v16 }
 0x6b5   :  { %16823 = vmatpush3.bf16.msra.mxu1 %v17661_v33 }
 0x6b6   :  { %15736 = vmatpush1.bf16.msra.mxu0 %v17650_v48  ;;  %16824 = vmatprep.subr.bf16.mxu1 %v17751_v24  ;;  %v16780_v48 = vld [vmem:[%s22300_s10] ss:$0 sm:$0xff] }
 0x6b7   :  { %15737 = vmatprep.subr.bf16.mxu0 %v22575_v16 }
 0x6b9   :  { %16825 = vmatpush3.bf16.msra.mxu1 %v17662_v40 }
 0x6ba   :  { %15738 = vmatpush1.bf16.msra.mxu0 %v17651_v13  ;;  %16826 = vmatprep.subr.bf16.mxu1 %v17751_v24 }
 0x6bb   :  { %15739 = vmatprep.subr.bf16.mxu0 %v22575_v16 }
 0x6bd   :  { %16827 = vmatpush3.bf16.msra.mxu1 %v17663_v42 }
 0x6be   :  { %15740 = vmatpush1.bf16.msra.mxu0 %v17652_v23  ;;  %16828 = vmatprep.subr.bf16.mxu1 %v17751_v24 }
 0x6bf   :  { %15741 = vmatprep.subr.bf16.mxu0 %v22575_v16 }
 0x6c1   :  { %16829 = vmatpush3.bf16.msra.mxu1 %v17664_v60 }
 0x6c2   :  { %15742 = vmatpush1.bf16.msra.mxu0 %v17653_v34  ;;  %16830 = vmatprep.subr.bf16.mxu1 %v17751_v24 }
 0x6c3   :  { %15743 = vmatprep.subr.bf16.mxu0 %v22575_v16 }
 0x6c5   :  { %16831 = vmatpush3.bf16.msra.mxu1 %v17665_v18 }
 0x6c6   :  { %15744 = vmatpush1.bf16.msra.mxu0 %v17654_v28  ;;  %16836 = vmatprep.subr.bf16.mxu1 %v17751_v24 }
 0x6c7   :  { %15745 = vmatprep.subr.bf16.mxu0 %v22575_v16 }
 0x6ca   :  { %15746 = vmatpush1.bf16.msra.mxu0 %v17655_v43 }
 0x6cb   :  { %15747 = vmatprep.subr.bf16.mxu0 %v22575_v16 }
 0x6ce   :  { %15748 = vmatpush1.bf16.msra.mxu0 %v17656_v20 }
 0x6cf   :  { %15749 = vmatprep.subr.bf16.mxu0 %v22575_v16 }
 0x6d2   :  { %15750 = vmatpush1.bf16.msra.mxu0 %v17657_v7 }
 0x6d5   :  { %15756 = vmatmul.mubr.bf16.vlgmr.msra.gmra.mrb[96].mxu0 %v15633_v25  ;;  %v16789_v25 = vld [vmem:[%s22302_s12] ss:$0 sm:$0xff] }
 0x6fd   :  { %v14468_v37 = vpop.f32.mrb[84].mxu0 }
 0x6fe   :  { %v14470_v16 = vpop.f32.mrb[85].mxu0 }
 0x6ff   :  { %v14471_v50 = vpop.f32.mrb[86].mxu0 }
 0x700   :  { %v14472_v30 = vpop.f32.mrb[87].mxu0 }
 0x70b   :  { %v14658_v52 = vpop.f32.mrb[84].mxu1 }
 0x70c   :  { %v14659_v58 = vadd.f32 %v14658_v52, %v14468_v37  ;;  %v14660_v32 = vpop.f32.mrb[85].mxu1 }
 0x70d   :  { %v14661_v47 = vpop.f32.mrb[86].mxu1 }
 0x70e   :  { %v14662_v14 = vpop.f32.mrb[87].mxu1 }
 0x738   :  { %v14877_v27 = vpop.f32.mrb[88].mxu0 }
 0x739   :  { %v14883_v31 = vadd.f32 %v14877_v27, %v14659_v58  ;;  %v14879_v59 = vpop.f32.mrb[89].mxu0 }
 0x73a   :  { %v14880_v4 = vpop.f32.mrb[90].mxu0 }
 0x73b   :  { %v14881_v11 = vpop.f32.mrb[91].mxu0 }
 0x743   :  { %v15097_v57 = vpop.f32.mrb[88].mxu1 }
 0x744   :  { %v15103_v0 = vadd.f32 %v15097_v57, %v14883_v31  ;;  %v15099_v1 = vpop.f32.mrb[89].mxu1 }
 0x745   :  { %v15100_v46 = vpop.f32.mrb[90].mxu1 }
 0x746   :  { %v15101_v36 = vpop.f32.mrb[91].mxu1 }
 0x770   :  { %v15317_v5 = vpop.f32.mrb[92].mxu0 }
 0x771   :  { %v15323_v62 = vadd.f32 %v15317_v5, %v15103_v0  ;;  %v15319_v2 = vpop.f32.mrb[93].mxu0 }
 0x772   :  { %v15320_v39 = vpop.f32.mrb[94].mxu0 }
 0x773   :  { %v15321_v45 = vpop.f32.mrb[95].mxu0 }
 0x77b   :  { %v15537_v38 = vpop.f32.mrb[92].mxu1 }
 0x77c   :  { %v15543_v22 = vadd.f32 %v15537_v38, %v15323_v62  ;;  %v15539_v61 = vpop.f32.mrb[93].mxu1 }
 0x77d   :  { %v15540_v17 = vpop.f32.mrb[94].mxu1 }
 0x77e   :  { %v15541_v19 = vpop.f32.mrb[95].mxu1 }
 0x7a8   :  { %v15757_v35 = vpop.f32.mrb[96].mxu0 }
 0x7a9   :  { %v15763_v53 = vadd.f32 %v15757_v35, %v15543_v22  ;;  %v15759_v26 = vpop.f32.mrb[97].mxu0 }
 0x7aa   :  { %v15760_v8 = vpop.f32.mrb[98].mxu0 }
 0x7ab   :  { %v15771_v29 = vadd.f32 %v16779_v9, %v15763_v53  ;;  %v15761_v15 = vpop.f32.mrb[99].mxu0 }
 0x7ad   :  { %v15772_v3 = vmax.f32 %v15771_v29, 0.0 }
 0x7af   :  { %v15773_v41 = vpack.c.bf16 %v15772_v3, %v15772_v3 }
 0x7b1   :  { %16833 = vmatmul.mubr.bf16.vlgmr.msra.gmra.mrb[96].mxu1 %v15773_v41 }
 0x7b2   :  { %16837 = vmatpush3.bf16.msra.mxu1 %v17666_v44  ;;  %16852 = vmatprep.mubr.msk.bf16.mxu1 %vm17752_vm5, %v17751_v24 }
 0x7b3   :  { %16838 = vmatprep.subr.bf16.mxu1 %v17751_v24 }
 0x7b6   :  { %16839 = vmatpush3.bf16.msra.mxu1 %v17667_v63 }
 0x7b7   :  { %16840 = vmatprep.subr.bf16.mxu1 %v17751_v24 }
 0x7ba   :  { %16841 = vmatpush3.bf16.msra.mxu1 %v17668_v51 }
 0x7bb   :  { %16842 = vmatprep.subr.bf16.mxu1 %v17751_v24 }
 0x7be   :  { %16843 = vmatpush3.bf16.msra.mxu1 %v17669_v21 }
 0x7bf   :  { %16844 = vmatprep.subr.bf16.mxu1 %v17751_v24 }
 0x7c2   :  { %16845 = vmatpush3.bf16.msra.mxu1 %v17670_v6 }
 0x7c3   :  { %16846 = vmatprep.subr.bf16.mxu1 %v17751_v24 }
 0x7c6   :  { %16847 = vmatpush3.bf16.msra.mxu1 %v17671_v10 }
 0x7c7   :  { %16848 = vmatprep.subr.bf16.mxu1 %v17751_v24 }
 0x7ca   :  { %16849 = vmatpush3.bf16.msra.mxu1 %v17672_v49 }
 0x7cb   :  { %16850 = vmatprep.subr.bf16.mxu1 %v17751_v24 }
 0x7ce   :  { %16851 = vmatpush3.bf16.msra.mxu1 %v17673_v55 }
 0x884   :  { %v15879_v13 = vpop.f32.mrb[96].mxu1 }
 0x885   :  { %v15880_v23 = vadd.f32 %v16780_v48, %v15879_v13  ;;  %v16834_v34 = vpop.f32.mrb[97].mxu1 }
 0x886   :  { %v15882_v28 = vpop.f32.mrb[98].mxu1 }
 0x887   :  { %v15885_v43 = vmax.f32 %v15880_v23, 0.0  ;;  %v16835_v20 = vpop.f32.mrb[99].mxu1 }
 0x889   :  { %v15886_v7 = vpack.c.bf16 %v15885_v43, %v15885_v43 }
 0x88b   :  { %16853 = vmatmul.mubr.bf16.vlgmr.msra.gmra.mrb[100].mxu1 %v15886_v7 }
 0x95e   :  { %v15992_v12 = vpop.f32.mrb[100].mxu1 }
 0x95f   :  { %v15993_v24 = vadd.f32 %v16789_v25, %v15992_v12  ;;  %v16854_v56 = vpop.f32.mrb[101].mxu1 }
 0x960   :  { %v15995_v37 = vpop.f32.mrb[102].mxu1 }
 0x961   :  { %v16855_v16 = vpop.f32.mrb[103].mxu1  ;;  %v15999_v50 = vsel %vm15998_vm6, %v15993_v24, -inf }
 0x962   :  { %16000 = vmax.xlane.f32.xlu0 %v15999_v50 }
 0x9ef   :  { %v16001_v30 = vpop.xlane.xlu0 %16000 }
 0x9f0   :  { %v16002_v54 = vsub.f32 %v15993_v24, %v16001_v30 }
 0x9f2   :  { %v16003_v33 = vmul.f32 1.442695, %v16002_v54 }
 0x9f4   :  { %17674 = vpow2.f32 %v16003_v33 }
 0x9fe   :  { %v17675_v52 = vpop.eup %17674 }
 0x9ff   :  { %v16005_v58 = vsel %vm15998_vm6, %v17675_v52, 0.0 }
 0xa00   :  { %16006 = vadd.xlane.f32.xlu0 %v16005_v58 }
 0xa8d   :  { %v16007_v32 = vpop.xlane.xlu0 %16006 }
 0xa8e   :  { %17676 = vlog2.f32 %v16007_v32 }
 0xa98   :  { %v17677_v40 = vpop.eup %17676 }
 0xa99   :  { %v16009_v47 = vmul.f32 0.6931472, %v17677_v40 }
 0xa9b   :  { %v16010_v14 = vsub.f32 %v16002_v54, %v16009_v47 }
 0xa9d   :  { %16011 = vst.msk [vmem:[%s22303_s13] sm:$0xff] %vm15998_vm6, %v16010_v14 }
 0xa9e   :  { %16016 = vsyncpa [#allocation4], 1 }
 0xa9f   :  { %16017 = vsyncpa [#allocation6], 1 }

</bundles_post_ra>
